<compile_context>
chip_gen: v7x
topology: tpu7x:2x2x1
jax: 0.10.0
libtpu: 0.0.40
codegen_flags: <defaults>
</compile_context>

<pallas_src>
import functools

import jax
import jax.numpy as jnp
from jax.experimental import pallas as pl
from jax.experimental.pallas import tpu as pltpu

LANE = 128                         # TPU lane width; channel dims padded to multiples of this
CIN_PAD = 32                       # image channels padded 3 -> 32 so space-to-depth gives 128
BACKBONE_CH = [24, 40, 112, 320]   # efficientnet-b0 endpoints reduction_2..reduction_5
FPN_OUT = 64
STEM_CH = 16


def _ceil_to(x, m):
    return ((x + m - 1) // m) * m


def _pick_tile_rows(h, w, *, cap, multiple):
    """Largest divisor of h (multiple of `multiple`) keeping rows*w <= cap."""
    assert h % multiple == 0
    best = multiple
    cand = multiple
    while cand <= h:
        if h % cand == 0 and cand * w <= cap:
            best = cand
        cand += multiple
    return best


# ----------------------------------------------------------------------------
# Kernel 1: fused matmul + bias + optional ReLU (backbone stand-in stages and
# the small FPN lateral convs).  K and N pre-padded to 128; bf16 in, f32 acc.
# ----------------------------------------------------------------------------
def _matmul_bias_kernel(x_ref, w_ref, b_ref, o_ref, *, relu):
    acc = jnp.dot(x_ref[...], w_ref[...], preferred_element_type=jnp.float32)
    acc = acc + b_ref[...]
    if relu:
        acc = jnp.maximum(acc, 0.0)
    o_ref[...] = acc.astype(o_ref.dtype)


def matmul_bias(x, w, b, *, relu=False, out_dtype=jnp.bfloat16, tm_cap=1024):
    """y = x @ w + b (optional ReLU).  x:(M,K) bf16, w:(K,N) bf16, b:(N,) f32."""
    M, K = x.shape
    N = w.shape[1]
    tm = M if M <= tm_cap else tm_cap
    return pl.pallas_call(
        functools.partial(_matmul_bias_kernel, relu=relu),
        out_shape=jax.ShapeDtypeStruct((M, N), out_dtype),
        grid=(pl.cdiv(M, tm),),
        in_specs=[
            pl.BlockSpec((tm, K), lambda i: (i, 0)),
            pl.BlockSpec((K, N), lambda i: (0, 0)),
            pl.BlockSpec((1, N), lambda i: (0, 0)),
        ],
        out_specs=pl.BlockSpec((tm, N), lambda i: (i, 0)),
        compiler_params=pltpu.CompilerParams(dimension_semantics=("parallel",)),
    )(x, w, b.reshape(1, N))


def conv1x1(x_nhwc, w, b, *, relu=False, out_dtype=jnp.bfloat16):
    n, h, wd, c = x_nhwc.shape
    y = matmul_bias(x_nhwc.reshape(n * h * wd, c), w, b, relu=relu, out_dtype=out_dtype)
    return y.reshape(n, h, wd, w.shape[1])


# ----------------------------------------------------------------------------
# Kernel 2: the fused 'reduction_2' FPN kernel, tiled over (batch, row-tiles).
#   p2 = conv1x1(r2) + nearest_up2(merged upper levels); out = conv3x3(p2)
# The merged upper levels arrive pre-repeated horizontally (shape (N,H3,W2,128)),
# so in-kernel upsampling is only a leading-dim broadcast (vertical row repeat).
# The 3x3 conv uses a zero-padded (th+2, W2+2, C) VMEM tile; the 9 taps are static
# slices packed into an im2col scratch feeding a single (M, 1152)x(1152, 128) GEMM.
# ----------------------------------------------------------------------------
def _fpn_p2_kernel(r2_ref, r2t_ref, r2b_ref, td_ref, tdt_ref, tdb_ref,
                   w2_ref, b2_ref, w33_ref, b33_ref, o_ref,
                   pad_ref, col_ref, *, th, wd2):
    f32 = jnp.float32
    bf16 = jnp.bfloat16
    c = LANE
    th2 = th // 2
    i = pl.program_id(1)
    nt = pl.num_programs(1)

    # lateral 1x1 conv (inner_block of reduction_2) for the tile and its halo rows
    l2 = jnp.dot(r2_ref[0].reshape(th * wd2, c), w2_ref[...],
                 preferred_element_type=f32) + b2_ref[...]
    l2t = jnp.dot(r2t_ref[0, 0], w2_ref[...], preferred_element_type=f32) + b2_ref[...]
    l2b = jnp.dot(r2b_ref[0, 0], w2_ref[...], preferred_element_type=f32) + b2_ref[...]

    # nearest-2x vertical upsample of the (already horizontally repeated) top-down map:
    # pure leading-dim broadcast + leading-dim merge (no sublane relayout).
    td = td_ref[0].astype(f32)                                      # (th2, wd2, C)
    td = jnp.broadcast_to(td.reshape(th2, 1, wd2, c), (th2, 2, wd2, c)).reshape(th, wd2, c)
    p2 = l2.reshape(th, wd2, c) + td

    # halo rows: same math as the neighbouring tiles compute for themselves; zero
    # them at the true top / bottom image border (= the conv's zero padding).
    top_ok = (i > 0).astype(f32)
    bot_ok = (i < nt - 1).astype(f32)
    p2t = (l2t + tdt_ref[0, 0].astype(f32)) * top_ok
    p2b = (l2b + tdb_ref[0, 0].astype(f32)) * bot_ok

    # zero-padded (th+2, wd2+2, C) tile so every 3x3 tap is a static slice
    pad_ref[...] = jnp.zeros(pad_ref.shape, pad_ref.dtype)
    pad_ref[1:th + 1, 1:wd2 + 1, :] = p2.astype(bf16)
    pad_ref[0, 1:wd2 + 1, :] = p2t.astype(bf16)
    pad_ref[th + 1, 1:wd2 + 1, :] = p2b.astype(bf16)

    # 3x3 'same' conv (layer_block of reduction_2): im2col in VMEM -> one K=1152 GEMM.
    # tap index k = 3*ky + kx matches the PyTorch (ky, kx) weight layout.
    for ky in range(3):
        for kx in range(3):
            k = 3 * ky + kx
            col_ref[:, :, k * c:(k + 1) * c] = pad_ref[ky:ky + th, kx:kx + wd2, :]
    out = jnp.dot(col_ref[...].reshape(th * wd2, 9 * c), w33_ref[...],
                  preferred_element_type=f32) + b33_ref[...]
    o_ref[0] = out.reshape(th, wd2, c).astype(o_ref.dtype)


def _fpn_reduction2(r2, td, params):
    """r2: (N,H2,W2,128) bf16; td: (N,H3,W2,128) bf16 merged+h-repeated upper levels."""
    n, h2, wd2, c2 = r2.shape
    h3 = td.shape[1]
    th = _pick_tile_rows(h2, wd2, cap=128, multiple=2)      # ~128..2*W2 rows per GEMM
    th2 = th // 2
    b2 = params["lat0_b"].reshape(1, LANE)
    b33 = params["layer0_b"].reshape(1, LANE)
    kern = functools.partial(_fpn_p2_kernel, th=th, wd2=wd2)
    return pl.pallas_call(
        kern,
        out_shape=jax.ShapeDtypeStruct((n, h2, wd2, LANE), jnp.bfloat16),
        grid=(n, h2 // th),
        in_specs=[
            pl.BlockSpec((1, th, wd2, c2), lambda b, i: (b, i, 0, 0)),
            pl.BlockSpec((1, 1, wd2, c2),
                         lambda b, i: (b, jnp.maximum(i * th - 1, 0), 0, 0)),
            pl.BlockSpec((1, 1, wd2, c2),
                         lambda b, i: (b, jnp.minimum(i * th + th, h2 - 1), 0, 0)),
            pl.BlockSpec((1, th2, wd2, LANE), lambda b, i: (b, i, 0, 0)),
            pl.BlockSpec((1, 1, wd2, LANE),
                         lambda b, i: (b, jnp.maximum(i * th2 - 1, 0), 0, 0)),
            pl.BlockSpec((1, 1, wd2, LANE),
                         lambda b, i: (b, jnp.minimum((i + 1) * th2, h3 - 1), 0, 0)),
            pl.BlockSpec((LANE, LANE), lambda b, i: (0, 0)),
            pl.BlockSpec((1, LANE), lambda b, i: (0, 0)),
            pl.BlockSpec((9 * LANE, LANE), lambda b, i: (0, 0)),
            pl.BlockSpec((1, LANE), lambda b, i: (0, 0)),
        ],
        out_specs=pl.BlockSpec((1, th, wd2, LANE), lambda b, i: (b, i, 0, 0)),
        scratch_shapes=[
            pltpu.VMEM((th + 2, wd2 + 2, LANE), jnp.bfloat16),   # zero-padded p2 tile
            pltpu.VMEM((th, wd2, 9 * LANE), jnp.bfloat16),       # im2col buffer
        ],
        compiler_params=pltpu.CompilerParams(
            dimension_semantics=("parallel", "parallel")),
    )(r2, r2, r2, td, td, td,
      params["lat0_w"], b2, params["layer0_w"], b33)


# ----------------------------------------------------------------------------
# Upper pyramid levels (reduction_3..5): Pallas lateral matmuls + nearest-2x
# repeats / adds in XLA.  These maps are <= 1/4 the size of the reduction_2 map,
# so this glue is cheap; the expensive reduction_2-level work stays fused above.
# ----------------------------------------------------------------------------
def _up2_nearest(x_nhwc):
    return jnp.repeat(jnp.repeat(x_nhwc, 2, axis=1), 2, axis=2)


def _merge_upper(r3, r4, r5, params):
    l3 = conv1x1(r3, params["lat1_w"], params["lat1_b"], out_dtype=jnp.float32)
    l4 = conv1x1(r4, params["lat2_w"], params["lat2_b"], out_dtype=jnp.float32)
    l5 = conv1x1(r5, params["lat3_w"], params["lat3_b"], out_dtype=jnp.float32)
    m4 = l4 + _up2_nearest(l5)
    m3 = l3 + _up2_nearest(m4)            # merged upper levels at reduction_3 resolution
    # pre-repeat horizontally so the fused kernel only needs a leading-dim row repeat
    return jnp.repeat(m3, 2, axis=2).astype(jnp.bfloat16)      # (N, H3, W2, 128)


# ----------------------------------------------------------------------------
# Backbone stand-in glue + parameter packing (padded, lane-aligned, bf16)
# ----------------------------------------------------------------------------
def _space_to_depth2(x):
    n, h, w, c = x.shape
    x = x.reshape(n, h // 2, 2, w // 2, 2, c)
    x = jnp.transpose(x, (0, 1, 3, 2, 4, 5))
    return x.reshape(n, h // 2, w // 2, 4 * c)


def _uniform(key, shape, fan_in):
    bound = float(fan_in) ** -0.5
    return jax.random.uniform(key, shape, jnp.float32, -bound, bound)


def _pack_s2d_weight(key, cin_real, cin_pad, cout_real, cout_pad):
    w_real = _uniform(key, (4, cin_real, cout_real), 4 * cin_real)
    w = jnp.zeros((4, cin_pad, cout_pad), jnp.float32)
    w = w.at[:, :cin_real, :cout_real].set(w_real)
    return w.reshape(4 * cin_pad, cout_pad).astype(jnp.bfloat16)


def _pack_1x1_weight(key, cin_real, cin_pad, cout_real, cout_pad):
    w_real = _uniform(key, (cin_real, cout_real), cin_real)
    w = jnp.zeros((cin_pad, cout_pad), jnp.float32)
    w = w.at[:cin_real, :cout_real].set(w_real)
    return w.astype(jnp.bfloat16)


def _pack_3x3_weight(key, c_real, c_pad):
    w_real = _uniform(key, (9, c_real, c_real), 9 * c_real)
    w = jnp.zeros((9, c_pad, c_pad), jnp.float32)
    w = w.at[:, :c_real, :c_real].set(w_real)
    return w.reshape(9 * c_pad, c_pad).astype(jnp.bfloat16)     # tap-major rows (ky, kx)


def init_params(key):
    ks = jax.random.split(key, 10)
    p = {}
    # backbone stand-in (see TODO(synk)): stem (stride 2) + 4 downsampling stages
    p["stem_w"] = _pack_s2d_weight(ks[0], 3, CIN_PAD, STEM_CH, LANE)
    p["stem_b"] = jnp.zeros((LANE,), jnp.float32)
    prev_real, prev_pad = STEM_CH, LANE
    for i, c in enumerate(BACKBONE_CH):
        c_pad = _ceil_to(c, LANE)
        p[f"stage{i}_w"] = _pack_s2d_weight(ks[1 + i], prev_real, prev_pad, c, c_pad)
        p[f"stage{i}_b"] = jnp.zeros((c_pad,), jnp.float32)
        prev_real, prev_pad = c, c_pad
    # FPN: lateral 1x1 convs (inner_blocks) + 3x3 layer_block for reduction_2
    for i, c in enumerate(BACKBONE_CH):
        p[f"lat{i}_w"] = _pack_1x1_weight(ks[5 + i], c, _ceil_to(c, LANE), FPN_OUT, LANE)
        p[f"lat{i}_b"] = jnp.zeros((LANE,), jnp.float32)
    p["layer0_w"] = _pack_3x3_weight(ks[9], FPN_OUT, LANE)      # (9*128, 128)
    p["layer0_b"] = jnp.zeros((LANE,), jnp.float32)
    return p


def _backbone_endpoints(x_nhwc_pad, params):
    """Stand-in for EfficientNet.extract_endpoints (channel counts / strides match)."""
    a = conv1x1(_space_to_depth2(x_nhwc_pad), params["stem_w"], params["stem_b"],
                relu=True)                                        # /2
    endpoints = []
    for i in range(4):                                            # /4, /8, /16, /32
        a = conv1x1(_space_to_depth2(a), params[f"stage{i}_w"], params[f"stage{i}_b"],
                    relu=True)
        endpoints.append(a)
    return endpoints                                              # [r2, r3, r4, r5]


@jax.jit
def feature_extractor_forward(x_nchw, params):
    n, c, h, w = x_nchw.shape
    assert c == 3 and h % 32 == 0 and w % 32 == 0
    x = jnp.transpose(x_nchw, (0, 2, 3, 1)).astype(jnp.bfloat16)  # NHWC, bf16
    x = jnp.pad(x, ((0, 0), (0, 0), (0, 0), (0, CIN_PAD - c)))    # lane-align channels
    r2, r3, r4, r5 = _backbone_endpoints(x, params)
    td = _merge_upper(r3, r4, r5, params)                         # (N, H/8, W/4, 128)
    out = _fpn_reduction2(r2, td, params)                         # (N, H/4, W/4, 128) bf16
    out = out[..., :FPN_OUT].astype(jnp.float32)                  # drop channel padding
    return jnp.transpose(out, (0, 3, 1, 2))                       # NCHW like PyTorch


# ----------------------------------------------------------------------------
if __name__ == "__main__":
    x = jax.random.normal(jax.random.PRNGKey(0), (2, 3, 64, 64), dtype=jnp.float32)
    params = init_params(jax.random.PRNGKey(1))

    out = feature_extractor_forward(x, params)
    out = jax.block_until_ready(out)

    assert out.shape == (2, 64, 16, 16), out.shape               # (N, 64, H/4, W/4)
    assert bool(jnp.all(jnp.isfinite(out)))
    print("KERNEL_OK")
</pallas_src>

<mosaic_0001>
module attributes {stable_mosaic.version = 11 : i64} {
  func.func @_matmul_bias_kernel(%arg0: i32, %arg1: memref<1024x128xbf16, #tpu.memory_space<vmem>>, %arg2: memref<128x128xbf16, #tpu.memory_space<vmem>>, %arg3: memref<1x128xf32, #tpu.memory_space<vmem>>, %arg4: memref<1024x128xbf16, #tpu.memory_space<vmem>>) attributes {dimension_semantics = [#tpu.dimension_semantics<parallel>], iteration_bounds = array<i64: 2>, scalar_prefetch = 0 : i64, scratch_operands = 0 : i64, tpu.core_type = #tpu.core_type<tc>, window_params = [{transform_indices = @transform_0, window_bounds = array<i64: 1024, 128>}, {pipeline_mode = #tpu.pipeline_mode<synchronous>, transform_indices = @transform_1, window_bounds = array<i64: 128, 128>}, {pipeline_mode = #tpu.pipeline_mode<synchronous>, transform_indices = @transform_2, window_bounds = array<i64: 1, 128>}, {transform_indices = @transform_3, window_bounds = array<i64: 1024, 128>}]} {
    %c0 = arith.constant 0 : index
    %c0_0 = arith.constant 0 : index
    %0 = vector.load %arg1[%c0, %c0_0] : memref<1024x128xbf16, #tpu.memory_space<vmem>>, vector<1024x128xbf16>
    %c0_1 = arith.constant 0 : index
    %c0_2 = arith.constant 0 : index
    %1 = vector.load %arg2[%c0_1, %c0_2] : memref<128x128xbf16, #tpu.memory_space<vmem>>, vector<128x128xbf16>
    %cst = arith.constant dense<0.000000e+00> : vector<1024x128xf32>
    %2 = tpu.matmul %0, %1, %cst {dimension_numbers = #tpu.dot_dimension_numbers<[1], [0], [0], [1], [0, 0, 1, 1], [], []>} : vector<1024x128xbf16>, vector<128x128xbf16>, vector<1024x128xf32> -> vector<1024x128xf32>
    %c0_3 = arith.constant 0 : index
    %c0_4 = arith.constant 0 : index
    %3 = vector.load %arg3[%c0_3, %c0_4] : memref<1x128xf32, #tpu.memory_space<vmem>>, vector<1x128xf32>
    %4 = vector.broadcast %3 : vector<1x128xf32> to vector<1024x128xf32>
    %5 = arith.addf %2, %4 : vector<1024x128xf32>
    %cst_5 = arith.constant 0.000000e+00 : f32
    %6 = vector.broadcast %cst_5 : f32 to vector<1024x128xf32>
    %7 = arith.maximumf %5, %6 : vector<1024x128xf32>
    %8 = arith.truncf %7 : vector<1024x128xf32> to vector<1024x128xbf16>
    %c0_6 = arith.constant 0 : index
    %c0_7 = arith.constant 0 : index
    %9 = vector.load %arg4[%c0_6, %c0_7] : memref<1024x128xbf16, #tpu.memory_space<vmem>>, vector<1024x128xbf16>
    tpu.vector_store %arg4[%c0_6, %c0_7], %8 {strides = array<i32>} : memref<1024x128xbf16, #tpu.memory_space<vmem>>, vector<1024x128xbf16>,
    return
  }
  func.func @transform_0(%arg0: i32) -> (i32, i32) {
    %c0_i32 = arith.constant 0 : i32
    %c0_i32_0 = arith.constant 0 : i32
    return %arg0, %c0_i32 : i32, i32
  }
  func.func @transform_1(%arg0: i32) -> (i32, i32) {
    %c0_i32 = arith.constant 0 : i32
    %c0_i32_0 = arith.constant 0 : i32
    %c0_i32_1 = arith.constant 0 : i32
    return %c0_i32, %c0_i32_0 : i32, i32
  }
  func.func @transform_2(%arg0: i32) -> (i32, i32) {
    %c0_i32 = arith.constant 0 : i32
    %c0_i32_0 = arith.constant 0 : i32
    %c0_i32_1 = arith.constant 0 : i32
    return %c0_i32, %c0_i32_0 : i32, i32
  }
  func.func @transform_3(%arg0: i32) -> (i32, i32) {
    %c0_i32 = arith.constant 0 : i32
    %c0_i32_0 = arith.constant 0 : i32
    return %arg0, %c0_i32 : i32, i32
  }
}

module attributes {stable_mosaic.version = 11 : i64} {
  func.func @_matmul_bias_kernel(%arg0: i32, %arg1: memref<512x512xbf16, #tpu.memory_space<vmem>>, %arg2: memref<512x128xbf16, #tpu.memory_space<vmem>>, %arg3: memref<1x128xf32, #tpu.memory_space<vmem>>, %arg4: memref<512x128xbf16, #tpu.memory_space<vmem>>) attributes {dimension_semantics = [#tpu.dimension_semantics<parallel>], iteration_bounds = array<i64: 1>, scalar_prefetch = 0 : i64, scratch_operands = 0 : i64, tpu.core_type = #tpu.core_type<tc>, window_params = [{transform_indices = @transform_0, window_bounds = array<i64: 512, 512>}, {pipeline_mode = #tpu.pipeline_mode<synchronous>, transform_indices = @transform_1, window_bounds = array<i64: 512, 128>}, {pipeline_mode = #tpu.pipeline_mode<synchronous>, transform_indices = @transform_2, window_bounds = array<i64: 1, 128>}, {transform_indices = @transform_3, window_bounds = array<i64: 512, 128>}]} {
    %c0 = arith.constant 0 : index
    %c0_0 = arith.constant 0 : index
    %0 = vector.load %arg1[%c0, %c0_0] : memref<512x512xbf16, #tpu.memory_space<vmem>>, vector<512x512xbf16>
    %c0_1 = arith.constant 0 : index
    %c0_2 = arith.constant 0 : index
    %1 = vector.load %arg2[%c0_1, %c0_2] : memref<512x128xbf16, #tpu.memory_space<vmem>>, vector<512x128xbf16>
    %cst = arith.constant dense<0.000000e+00> : vector<512x128xf32>
    %2 = tpu.matmul %0, %1, %cst {dimension_numbers = #tpu.dot_dimension_numbers<[1], [0], [0], [1], [0, 0, 1, 1], [], []>} : vector<512x512xbf16>, vector<512x128xbf16>, vector<512x128xf32> -> vector<512x128xf32>
    %c0_3 = arith.constant 0 : index
    %c0_4 = arith.constant 0 : index
    %3 = vector.load %arg3[%c0_3, %c0_4] : memref<1x128xf32, #tpu.memory_space<vmem>>, vector<1x128xf32>
    %4 = vector.broadcast %3 : vector<1x128xf32> to vector<512x128xf32>
    %5 = arith.addf %2, %4 : vector<512x128xf32>
    %cst_5 = arith.constant 0.000000e+00 : f32
    %6 = vector.broadcast %cst_5 : f32 to vector<512x128xf32>
    %7 = arith.maximumf %5, %6 : vector<512x128xf32>
    %8 = arith.truncf %7 : vector<512x128xf32> to vector<512x128xbf16>
    %c0_6 = arith.constant 0 : index
    %c0_7 = arith.constant 0 : index
    %9 = vector.load %arg4[%c0_6, %c0_7] : memref<512x128xbf16, #tpu.memory_space<vmem>>, vector<512x128xbf16>
    tpu.vector_store %arg4[%c0_6, %c0_7], %8 {strides = array<i32>} : memref<512x128xbf16, #tpu.memory_space<vmem>>, vector<512x128xbf16>,
    return
  }
  func.func @transform_0(%arg0: i32) -> (i32, i32) {
    %c0_i32 = arith.constant 0 : i32
    %c0_i32_0 = arith.constant 0 : i32
    return %arg0, %c0_i32 : i32, i32
  }
  func.func @transform_1(%arg0: i32) -> (i32, i32) {
    %c0_i32 = arith.constant 0 : i32
    %c0_i32_0 = arith.constant 0 : i32
    %c0_i32_1 = arith.constant 0 : i32
    return %c0_i32, %c0_i32_0 : i32, i32
  }
  func.func @transform_2(%arg0: i32) -> (i32, i32) {
    %c0_i32 = arith.constant 0 : i32
    %c0_i32_0 = arith.constant 0 : i32
    %c0_i32_1 = arith.constant 0 : i32
    return %c0_i32, %c0_i32_0 : i32, i32
  }
  func.func @transform_3(%arg0: i32) -> (i32, i32) {
    %c0_i32 = arith.constant 0 : i32
    %c0_i32_0 = arith.constant 0 : i32
    return %arg0, %c0_i32 : i32, i32
  }
}

module attributes {stable_mosaic.version = 11 : i64} {
  func.func @_matmul_bias_kernel(%arg0: i32, %arg1: memref<128x512xbf16, #tpu.memory_space<vmem>>, %arg2: memref<512x128xbf16, #tpu.memory_space<vmem>>, %arg3: memref<1x128xf32, #tpu.memory_space<vmem>>, %arg4: memref<128x128xbf16, #tpu.memory_space<vmem>>) attributes {dimension_semantics = [#tpu.dimension_semantics<parallel>], iteration_bounds = array<i64: 1>, scalar_prefetch = 0 : i64, scratch_operands = 0 : i64, tpu.core_type = #tpu.core_type<tc>, window_params = [{transform_indices = @transform_0, window_bounds = array<i64: 128, 512>}, {pipeline_mode = #tpu.pipeline_mode<synchronous>, transform_indices = @transform_1, window_bounds = array<i64: 512, 128>}, {pipeline_mode = #tpu.pipeline_mode<synchronous>, transform_indices = @transform_2, window_bounds = array<i64: 1, 128>}, {transform_indices = @transform_3, window_bounds = array<i64: 128, 128>}]} {
    %c0 = arith.constant 0 : index
    %c0_0 = arith.constant 0 : index
    %0 = vector.load %arg1[%c0, %c0_0] : memref<128x512xbf16, #tpu.memory_space<vmem>>, vector<128x512xbf16>
    %c0_1 = arith.constant 0 : index
    %c0_2 = arith.constant 0 : index
    %1 = vector.load %arg2[%c0_1, %c0_2] : memref<512x128xbf16, #tpu.memory_space<vmem>>, vector<512x128xbf16>
    %cst = arith.constant dense<0.000000e+00> : vector<128x128xf32>
    %2 = tpu.matmul %0, %1, %cst {dimension_numbers = #tpu.dot_dimension_numbers<[1], [0], [0], [1], [0, 0, 1, 1], [], []>} : vector<128x512xbf16>, vector<512x128xbf16>, vector<128x128xf32> -> vector<128x128xf32>
    %c0_3 = arith.constant 0 : index
    %c0_4 = arith.constant 0 : index
    %3 = vector.load %arg3[%c0_3, %c0_4] : memref<1x128xf32, #tpu.memory_space<vmem>>, vector<1x128xf32>
    %4 = vector.broadcast %3 : vector<1x128xf32> to vector<128x128xf32>
    %5 = arith.addf %2, %4 : vector<128x128xf32>
    %cst_5 = arith.constant 0.000000e+00 : f32
    %6 = vector.broadcast %cst_5 : f32 to vector<128x128xf32>
    %7 = arith.maximumf %5, %6 : vector<128x128xf32>
    %8 = arith.truncf %7 : vector<128x128xf32> to vector<128x128xbf16>
    %c0_6 = arith.constant 0 : index
    %c0_7 = arith.constant 0 : index
    %9 = vector.load %arg4[%c0_6, %c0_7] : memref<128x128xbf16, #tpu.memory_space<vmem>>, vector<128x128xbf16>
    tpu.vector_store %arg4[%c0_6, %c0_7], %8 {strides = array<i32>} : memref<128x128xbf16, #tpu.memory_space<vmem>>, vector<128x128xbf16>,
    return
  }
  func.func @transform_0(%arg0: i32) -> (i32, i32) {
    %c0_i32 = arith.constant 0 : i32
    %c0_i32_0 = arith.constant 0 : i32
    return %arg0, %c0_i32 : i32, i32
  }
  func.func @transform_1(%arg0: i32) -> (i32, i32) {
    %c0_i32 = arith.constant 0 : i32
    %c0_i32_0 = arith.constant 0 : i32
    %c0_i32_1 = arith.constant 0 : i32
    return %c0_i32, %c0_i32_0 : i32, i32
  }
  func.func @transform_2(%arg0: i32) -> (i32, i32) {
    %c0_i32 = arith.constant 0 : i32
    %c0_i32_0 = arith.constant 0 : i32
    %c0_i32_1 = arith.constant 0 : i32
    return %c0_i32, %c0_i32_0 : i32, i32
  }
  func.func @transform_3(%arg0: i32) -> (i32, i32) {
    %c0_i32 = arith.constant 0 : i32
    %c0_i32_0 = arith.constant 0 : i32
    return %arg0, %c0_i32 : i32, i32
  }
}

module attributes {stable_mosaic.version = 11 : i64} {
  func.func @_matmul_bias_kernel(%arg0: i32, %arg1: memref<32x512xbf16, #tpu.memory_space<vmem>>, %arg2: memref<512x128xbf16, #tpu.memory_space<vmem>>, %arg3: memref<1x128xf32, #tpu.memory_space<vmem>>, %arg4: memref<32x128xbf16, #tpu.memory_space<vmem>>) attributes {dimension_semantics = [#tpu.dimension_semantics<parallel>], iteration_bounds = array<i64: 1>, scalar_prefetch = 0 : i64, scratch_operands = 0 : i64, tpu.core_type = #tpu.core_type<tc>, window_params = [{transform_indices = @transform_0, window_bounds = array<i64: 32, 512>}, {pipeline_mode = #tpu.pipeline_mode<synchronous>, transform_indices = @transform_1, window_bounds = array<i64: 512, 128>}, {pipeline_mode = #tpu.pipeline_mode<synchronous>, transform_indices = @transform_2, window_bounds = array<i64: 1, 128>}, {transform_indices = @transform_3, window_bounds = array<i64: 32, 128>}]} {
    %c0 = arith.constant 0 : index
    %c0_0 = arith.constant 0 : index
    %0 = vector.load %arg1[%c0, %c0_0] : memref<32x512xbf16, #tpu.memory_space<vmem>>, vector<32x512xbf16>
    %c0_1 = arith.constant 0 : index
    %c0_2 = arith.constant 0 : index
    %1 = vector.load %arg2[%c0_1, %c0_2] : memref<512x128xbf16, #tpu.memory_space<vmem>>, vector<512x128xbf16>
    %cst = arith.constant dense<0.000000e+00> : vector<32x128xf32>
    %2 = tpu.matmul %0, %1, %cst {dimension_numbers = #tpu.dot_dimension_numbers<[1], [0], [0], [1], [0, 0, 1, 1], [], []>} : vector<32x512xbf16>, vector<512x128xbf16>, vector<32x128xf32> -> vector<32x128xf32>
    %c0_3 = arith.constant 0 : index
    %c0_4 = arith.constant 0 : index
    %3 = vector.load %arg3[%c0_3, %c0_4] : memref<1x128xf32, #tpu.memory_space<vmem>>, vector<1x128xf32>
    %4 = vector.broadcast %3 : vector<1x128xf32> to vector<32x128xf32>
    %5 = arith.addf %2, %4 : vector<32x128xf32>
    %cst_5 = arith.constant 0.000000e+00 : f32
    %6 = vector.broadcast %cst_5 : f32 to vector<32x128xf32>
    %7 = arith.maximumf %5, %6 : vector<32x128xf32>
    %8 = arith.truncf %7 : vector<32x128xf32> to vector<32x128xbf16>
    %c0_6 = arith.constant 0 : index
    %c0_7 = arith.constant 0 : index
    %9 = vector.load %arg4[%c0_6, %c0_7] : memref<32x128xbf16, #tpu.memory_space<vmem>>, vector<32x128xbf16>
    tpu.vector_store %arg4[%c0_6, %c0_7], %8 {strides = array<i32>} : memref<32x128xbf16, #tpu.memory_space<vmem>>, vector<32x128xbf16>,
    return
  }
  func.func @transform_0(%arg0: i32) -> (i32, i32) {
    %c0_i32 = arith.constant 0 : i32
    %c0_i32_0 = arith.constant 0 : i32
    return %arg0, %c0_i32 : i32, i32
  }
  func.func @transform_1(%arg0: i32) -> (i32, i32) {
    %c0_i32 = arith.constant 0 : i32
    %c0_i32_0 = arith.constant 0 : i32
    %c0_i32_1 = arith.constant 0 : i32
    return %c0_i32, %c0_i32_0 : i32, i32
  }
  func.func @transform_2(%arg0: i32) -> (i32, i32) {
    %c0_i32 = arith.constant 0 : i32
    %c0_i32_0 = arith.constant 0 : i32
    %c0_i32_1 = arith.constant 0 : i32
    return %c0_i32, %c0_i32_0 : i32, i32
  }
  func.func @transform_3(%arg0: i32) -> (i32, i32) {
    %c0_i32 = arith.constant 0 : i32
    %c0_i32_0 = arith.constant 0 : i32
    return %arg0, %c0_i32 : i32, i32
  }
}

module attributes {stable_mosaic.version = 11 : i64} {
  func.func @_matmul_bias_kernel(%arg0: i32, %arg1: memref<8x512xbf16, #tpu.memory_space<vmem>>, %arg2: memref<512x384xbf16, #tpu.memory_space<vmem>>, %arg3: memref<1x384xf32, #tpu.memory_space<vmem>>, %arg4: memref<8x384xbf16, #tpu.memory_space<vmem>>) attributes {dimension_semantics = [#tpu.dimension_semantics<parallel>], iteration_bounds = array<i64: 1>, scalar_prefetch = 0 : i64, scratch_operands = 0 : i64, tpu.core_type = #tpu.core_type<tc>, window_params = [{transform_indices = @transform_0, window_bounds = array<i64: 8, 512>}, {pipeline_mode = #tpu.pipeline_mode<synchronous>, transform_indices = @transform_1, window_bounds = array<i64: 512, 384>}, {pipeline_mode = #tpu.pipeline_mode<synchronous>, transform_indices = @transform_2, window_bounds = array<i64: 1, 384>}, {transform_indices = @transform_3, window_bounds = array<i64: 8, 384>}]} {
    %c0 = arith.constant 0 : index
    %c0_0 = arith.constant 0 : index
    %0 = vector.load %arg1[%c0, %c0_0] : memref<8x512xbf16, #tpu.memory_space<vmem>>, vector<8x512xbf16>
    %c0_1 = arith.constant 0 : index
    %c0_2 = arith.constant 0 : index
    %1 = vector.load %arg2[%c0_1, %c0_2] : memref<512x384xbf16, #tpu.memory_space<vmem>>, vector<512x384xbf16>
    %cst = arith.constant dense<0.000000e+00> : vector<8x384xf32>
    %2 = tpu.matmul %0, %1, %cst {dimension_numbers = #tpu.dot_dimension_numbers<[1], [0], [0], [1], [0, 0, 1, 1], [], []>} : vector<8x512xbf16>, vector<512x384xbf16>, vector<8x384xf32> -> vector<8x384xf32>
    %c0_3 = arith.constant 0 : index
    %c0_4 = arith.constant 0 : index
    %3 = vector.load %arg3[%c0_3, %c0_4] : memref<1x384xf32, #tpu.memory_space<vmem>>, vector<1x384xf32>
    %4 = vector.broadcast %3 : vector<1x384xf32> to vector<8x384xf32>
    %5 = arith.addf %2, %4 : vector<8x384xf32>
    %cst_5 = arith.constant 0.000000e+00 : f32
    %6 = vector.broadcast %cst_5 : f32 to vector<8x384xf32>
    %7 = arith.maximumf %5, %6 : vector<8x384xf32>
    %8 = arith.truncf %7 : vector<8x384xf32> to vector<8x384xbf16>
    %c0_6 = arith.constant 0 : index
    %c0_7 = arith.constant 0 : index
    %9 = vector.load %arg4[%c0_6, %c0_7] : memref<8x384xbf16, #tpu.memory_space<vmem>>, vector<8x384xbf16>
    tpu.vector_store %arg4[%c0_6, %c0_7], %8 {strides = array<i32>} : memref<8x384xbf16, #tpu.memory_space<vmem>>, vector<8x384xbf16>,
    return
  }
  func.func @transform_0(%arg0: i32) -> (i32, i32) {
    %c0_i32 = arith.constant 0 : i32
    %c0_i32_0 = arith.constant 0 : i32
    return %arg0, %c0_i32 : i32, i32
  }
  func.func @transform_1(%arg0: i32) -> (i32, i32) {
    %c0_i32 = arith.constant 0 : i32
    %c0_i32_0 = arith.constant 0 : i32
    %c0_i32_1 = arith.constant 0 : i32
    return %c0_i32, %c0_i32_0 : i32, i32
  }
  func.func @transform_2(%arg0: i32) -> (i32, i32) {
    %c0_i32 = arith.constant 0 : i32
    %c0_i32_0 = arith.constant 0 : i32
    %c0_i32_1 = arith.constant 0 : i32
    return %c0_i32, %c0_i32_0 : i32, i32
  }
  func.func @transform_3(%arg0: i32) -> (i32, i32) {
    %c0_i32 = arith.constant 0 : i32
    %c0_i32_0 = arith.constant 0 : i32
    return %arg0, %c0_i32 : i32, i32
  }
}

module attributes {stable_mosaic.version = 11 : i64} {
  func.func @_matmul_bias_kernel(%arg0: i32, %arg1: memref<8x384xbf16, #tpu.memory_space<vmem>>, %arg2: memref<384x128xbf16, #tpu.memory_space<vmem>>, %arg3: memref<1x128xf32, #tpu.memory_space<vmem>>, %arg4: memref<8x128xf32, #tpu.memory_space<vmem>>) attributes {dimension_semantics = [#tpu.dimension_semantics<parallel>], iteration_bounds = array<i64: 1>, scalar_prefetch = 0 : i64, scratch_operands = 0 : i64, tpu.core_type = #tpu.core_type<tc>, window_params = [{transform_indices = @transform_0, window_bounds = array<i64: 8, 384>}, {pipeline_mode = #tpu.pipeline_mode<synchronous>, transform_indices = @transform_1, window_bounds = array<i64: 384, 128>}, {pipeline_mode = #tpu.pipeline_mode<synchronous>, transform_indices = @transform_2, window_bounds = array<i64: 1, 128>}, {transform_indices = @transform_3, window_bounds = array<i64: 8, 128>}]} {
    %c0 = arith.constant 0 : index
    %c0_0 = arith.constant 0 : index
    %0 = vector.load %arg1[%c0, %c0_0] : memref<8x384xbf16, #tpu.memory_space<vmem>>, vector<8x384xbf16>
    %c0_1 = arith.constant 0 : index
    %c0_2 = arith.constant 0 : index
    %1 = vector.load %arg2[%c0_1, %c0_2] : memref<384x128xbf16, #tpu.memory_space<vmem>>, vector<384x128xbf16>
    %cst = arith.constant dense<0.000000e+00> : vector<8x128xf32>
    %2 = tpu.matmul %0, %1, %cst {dimension_numbers = #tpu.dot_dimension_numbers<[1], [0], [0], [1], [0, 0, 1, 1], [], []>} : vector<8x384xbf16>, vector<384x128xbf16>, vector<8x128xf32> -> vector<8x128xf32>
    %c0_3 = arith.constant 0 : index
    %c0_4 = arith.constant 0 : index
    %3 = vector.load %arg3[%c0_3, %c0_4] : memref<1x128xf32, #tpu.memory_space<vmem>>, vector<1x128xf32>
    %4 = vector.broadcast %3 : vector<1x128xf32> to vector<8x128xf32>
    %5 = arith.addf %2, %4 : vector<8x128xf32>
    %c0_5 = arith.constant 0 : index
    %c0_6 = arith.constant 0 : index
    %6 = vector.load %arg4[%c0_5, %c0_6] : memref<8x128xf32, #tpu.memory_space<vmem>>, vector<8x128xf32>
    tpu.vector_store %arg4[%c0_5, %c0_6], %5 {strides = array<i32>} : memref<8x128xf32, #tpu.memory_space<vmem>>, vector<8x128xf32>,
    return
  }
  func.func @transform_0(%arg0: i32) -> (i32, i32) {
    %c0_i32 = arith.constant 0 : i32
    %c0_i32_0 = arith.constant 0 : i32
    return %arg0, %c0_i32 : i32, i32
  }
  func.func @transform_1(%arg0: i32) -> (i32, i32) {
    %c0_i32 = arith.constant 0 : i32
    %c0_i32_0 = arith.constant 0 : i32
    %c0_i32_1 = arith.constant 0 : i32
    return %c0_i32, %c0_i32_0 : i32, i32
  }
  func.func @transform_2(%arg0: i32) -> (i32, i32) {
    %c0_i32 = arith.constant 0 : i32
    %c0_i32_0 = arith.constant 0 : i32
    %c0_i32_1 = arith.constant 0 : i32
    return %c0_i32, %c0_i32_0 : i32, i32
  }
  func.func @transform_3(%arg0: i32) -> (i32, i32) {
    %c0_i32 = arith.constant 0 : i32
    %c0_i32_0 = arith.constant 0 : i32
    return %arg0, %c0_i32 : i32, i32
  }
}

module attributes {stable_mosaic.version = 11 : i64} {
  func.func @_matmul_bias_kernel(%arg0: i32, %arg1: memref<32x128xbf16, #tpu.memory_space<vmem>>, %arg2: memref<128x128xbf16, #tpu.memory_space<vmem>>, %arg3: memref<1x128xf32, #tpu.memory_space<vmem>>, %arg4: memref<32x128xf32, #tpu.memory_space<vmem>>) attributes {dimension_semantics = [#tpu.dimension_semantics<parallel>], iteration_bounds = array<i64: 1>, scalar_prefetch = 0 : i64, scratch_operands = 0 : i64, tpu.core_type = #tpu.core_type<tc>, window_params = [{transform_indices = @transform_0, window_bounds = array<i64: 32, 128>}, {pipeline_mode = #tpu.pipeline_mode<synchronous>, transform_indices = @transform_1, window_bounds = array<i64: 128, 128>}, {pipeline_mode = #tpu.pipeline_mode<synchronous>, transform_indices = @transform_2, window_bounds = array<i64: 1, 128>}, {transform_indices = @transform_3, window_bounds = array<i64: 32, 128>}]} {
    %c0 = arith.constant 0 : index
    %c0_0 = arith.constant 0 : index
    %0 = vector.load %arg1[%c0, %c0_0] : memref<32x128xbf16, #tpu.memory_space<vmem>>, vector<32x128xbf16>
    %c0_1 = arith.constant 0 : index
    %c0_2 = arith.constant 0 : index
    %1 = vector.load %arg2[%c0_1, %c0_2] : memref<128x128xbf16, #tpu.memory_space<vmem>>, vector<128x128xbf16>
    %cst = arith.constant dense<0.000000e+00> : vector<32x128xf32>
    %2 = tpu.matmul %0, %1, %cst {dimension_numbers = #tpu.dot_dimension_numbers<[1], [0], [0], [1], [0, 0, 1, 1], [], []>} : vector<32x128xbf16>, vector<128x128xbf16>, vector<32x128xf32> -> vector<32x128xf32>
    %c0_3 = arith.constant 0 : index
    %c0_4 = arith.constant 0 : index
    %3 = vector.load %arg3[%c0_3, %c0_4] : memref<1x128xf32, #tpu.memory_space<vmem>>, vector<1x128xf32>
    %4 = vector.broadcast %3 : vector<1x128xf32> to vector<32x128xf32>
    %5 = arith.addf %2, %4 : vector<32x128xf32>
    %c0_5 = arith.constant 0 : index
    %c0_6 = arith.constant 0 : index
    %6 = vector.load %arg4[%c0_5, %c0_6] : memref<32x128xf32, #tpu.memory_space<vmem>>, vector<32x128xf32>
    tpu.vector_store %arg4[%c0_5, %c0_6], %5 {strides = array<i32>} : memref<32x128xf32, #tpu.memory_space<vmem>>, vector<32x128xf32>,
    return
  }
  func.func @transform_0(%arg0: i32) -> (i32, i32) {
    %c0_i32 = arith.constant 0 : i32
    %c0_i32_0 = arith.constant 0 : i32
    return %arg0, %c0_i32 : i32, i32
  }
  func.func @transform_1(%arg0: i32) -> (i32, i32) {
    %c0_i32 = arith.constant 0 : i32
    %c0_i32_0 = arith.constant 0 : i32
    %c0_i32_1 = arith.constant 0 : i32
    return %c0_i32, %c0_i32_0 : i32, i32
  }
  func.func @transform_2(%arg0: i32) -> (i32, i32) {
    %c0_i32 = arith.constant 0 : i32
    %c0_i32_0 = arith.constant 0 : i32
    %c0_i32_1 = arith.constant 0 : i32
    return %c0_i32, %c0_i32_0 : i32, i32
  }
  func.func @transform_3(%arg0: i32) -> (i32, i32) {
    %c0_i32 = arith.constant 0 : i32
    %c0_i32_0 = arith.constant 0 : i32
    return %arg0, %c0_i32 : i32, i32
  }
}

module attributes {stable_mosaic.version = 11 : i64} {
  func.func @_matmul_bias_kernel(%arg0: i32, %arg1: memref<128x128xbf16, #tpu.memory_space<vmem>>, %arg2: memref<128x128xbf16, #tpu.memory_space<vmem>>, %arg3: memref<1x128xf32, #tpu.memory_space<vmem>>, %arg4: memref<128x128xf32, #tpu.memory_space<vmem>>) attributes {dimension_semantics = [#tpu.dimension_semantics<parallel>], iteration_bounds = array<i64: 1>, scalar_prefetch = 0 : i64, scratch_operands = 0 : i64, tpu.core_type = #tpu.core_type<tc>, window_params = [{transform_indices = @transform_0, window_bounds = array<i64: 128, 128>}, {pipeline_mode = #tpu.pipeline_mode<synchronous>, transform_indices = @transform_1, window_bounds = array<i64: 128, 128>}, {pipeline_mode = #tpu.pipeline_mode<synchronous>, transform_indices = @transform_2, window_bounds = array<i64: 1, 128>}, {transform_indices = @transform_3, window_bounds = array<i64: 128, 128>}]} {
    %c0 = arith.constant 0 : index
    %c0_0 = arith.constant 0 : index
    %0 = vector.load %arg1[%c0, %c0_0] : memref<128x128xbf16, #tpu.memory_space<vmem>>, vector<128x128xbf16>
    %c0_1 = arith.constant 0 : index
    %c0_2 = arith.constant 0 : index
    %1 = vector.load %arg2[%c0_1, %c0_2] : memref<128x128xbf16, #tpu.memory_space<vmem>>, vector<128x128xbf16>
    %cst = arith.constant dense<0.000000e+00> : vector<128x128xf32>
    %2 = tpu.matmul %0, %1, %cst {dimension_numbers = #tpu.dot_dimension_numbers<[1], [0], [0], [1], [0, 0, 1, 1], [], []>} : vector<128x128xbf16>, vector<128x128xbf16>, vector<128x128xf32> -> vector<128x128xf32>
    %c0_3 = arith.constant 0 : index
    %c0_4 = arith.constant 0 : index
    %3 = vector.load %arg3[%c0_3, %c0_4] : memref<1x128xf32, #tpu.memory_space<vmem>>, vector<1x128xf32>
    %4 = vector.broadcast %3 : vector<1x128xf32> to vector<128x128xf32>
    %5 = arith.addf %2, %4 : vector<128x128xf32>
    %c0_5 = arith.constant 0 : index
    %c0_6 = arith.constant 0 : index
    %6 = vector.load %arg4[%c0_5, %c0_6] : memref<128x128xf32, #tpu.memory_space<vmem>>, vector<128x128xf32>
    tpu.vector_store %arg4[%c0_5, %c0_6], %5 {strides = array<i32>} : memref<128x128xf32, #tpu.memory_space<vmem>>, vector<128x128xf32>,
    return
  }
  func.func @transform_0(%arg0: i32) -> (i32, i32) {
    %c0_i32 = arith.constant 0 : i32
    %c0_i32_0 = arith.constant 0 : i32
    return %arg0, %c0_i32 : i32, i32
  }
  func.func @transform_1(%arg0: i32) -> (i32, i32) {
    %c0_i32 = arith.constant 0 : i32
    %c0_i32_0 = arith.constant 0 : i32
    %c0_i32_1 = arith.constant 0 : i32
    return %c0_i32, %c0_i32_0 : i32, i32
  }
  func.func @transform_2(%arg0: i32) -> (i32, i32) {
    %c0_i32 = arith.constant 0 : i32
    %c0_i32_0 = arith.constant 0 : i32
    %c0_i32_1 = arith.constant 0 : i32
    return %c0_i32, %c0_i32_0 : i32, i32
  }
  func.func @transform_3(%arg0: i32) -> (i32, i32) {
    %c0_i32 = arith.constant 0 : i32
    %c0_i32_0 = arith.constant 0 : i32
    return %arg0, %c0_i32 : i32, i32
  }
}

module attributes {stable_mosaic.version = 11 : i64} {
  func.func @_fpn_p2_kernel(%arg0: i32, %arg1: i32, %arg2: memref<1x8x16x128xbf16, #tpu.memory_space<vmem>>, %arg3: memref<1x1x16x128xbf16, #tpu.memory_space<vmem>>, %arg4: memref<1x1x16x128xbf16, #tpu.memory_space<vmem>>, %arg5: memref<1x4x16x128xbf16, #tpu.memory_space<vmem>>, %arg6: memref<1x1x16x128xbf16, #tpu.memory_space<vmem>>, %arg7: memref<1x1x16x128xbf16, #tpu.memory_space<vmem>>, %arg8: memref<128x128xbf16, #tpu.memory_space<vmem>>, %arg9: memref<1x128xf32, #tpu.memory_space<vmem>>, %arg10: memref<1152x128xbf16, #tpu.memory_space<vmem>>, %arg11: memref<1x128xf32, #tpu.memory_space<vmem>>, %arg12: memref<1x8x16x128xbf16, #tpu.memory_space<vmem>>, %arg13: memref<10x18x128xbf16, #tpu.memory_space<vmem>>, %arg14: memref<8x16x1152xbf16, #tpu.memory_space<vmem>>) attributes {dimension_semantics = [#tpu.dimension_semantics<parallel>, #tpu.dimension_semantics<parallel>], iteration_bounds = array<i64: 2, 2>, scalar_prefetch = 0 : i64, scratch_operands = 2 : i64, tpu.core_type = #tpu.core_type<tc>, window_params = [{transform_indices = @transform_0, window_bounds = array<i64: 1, 8, 16, 128>}, {transform_indices = @transform_1, window_bounds = array<i64: 1, 1, 16, 128>}, {transform_indices = @transform_2, window_bounds = array<i64: 1, 1, 16, 128>}, {transform_indices = @transform_3, window_bounds = array<i64: 1, 4, 16, 128>}, {transform_indices = @transform_4, window_bounds = array<i64: 1, 1, 16, 128>}, {transform_indices = @transform_5, window_bounds = array<i64: 1, 1, 16, 128>}, {pipeline_mode = #tpu.pipeline_mode<synchronous>, transform_indices = @transform_6, window_bounds = array<i64: 128, 128>}, {pipeline_mode = #tpu.pipeline_mode<synchronous>, transform_indices = @transform_7, window_bounds = array<i64: 1, 128>}, {pipeline_mode = #tpu.pipeline_mode<synchronous>, transform_indices = @transform_8, window_bounds = array<i64: 1152, 128>}, {pipeline_mode = #tpu.pipeline_mode<synchronous>, transform_indices = @transform_9, window_bounds = array<i64: 1, 128>}, {transform_indices = @transform_10, window_bounds = array<i64: 1, 8, 16, 128>}]} {
    %c0 = arith.constant 0 : index
    %c0_0 = arith.constant 0 : index
    %c0_1 = arith.constant 0 : index
    %c0_2 = arith.constant 0 : index
    %0 = vector.load %arg2[%c0, %c0_0, %c0_1, %c0_2] : memref<1x8x16x128xbf16, #tpu.memory_space<vmem>>, vector<1x8x16x128xbf16>
    %1 = vector.shape_cast %0 : vector<1x8x16x128xbf16> to vector<8x16x128xbf16>
    %2 = vector.shape_cast %1 : vector<8x16x128xbf16> to vector<128x128xbf16>
    %c0_3 = arith.constant 0 : index
    %c0_4 = arith.constant 0 : index
    %3 = vector.load %arg8[%c0_3, %c0_4] : memref<128x128xbf16, #tpu.memory_space<vmem>>, vector<128x128xbf16>
    %cst = arith.constant dense<0.000000e+00> : vector<128x128xf32>
    %4 = tpu.matmul %2, %3, %cst {dimension_numbers = #tpu.dot_dimension_numbers<[1], [0], [0], [1], [0, 0, 1, 1], [], []>} : vector<128x128xbf16>, vector<128x128xbf16>, vector<128x128xf32> -> vector<128x128xf32>
    %c0_5 = arith.constant 0 : index
    %c0_6 = arith.constant 0 : index
    %5 = vector.load %arg9[%c0_5, %c0_6] : memref<1x128xf32, #tpu.memory_space<vmem>>, vector<1x128xf32>
    %6 = vector.broadcast %5 : vector<1x128xf32> to vector<128x128xf32>
    %7 = arith.addf %4, %6 : vector<128x128xf32>
    %c0_7 = arith.constant 0 : index
    %c0_8 = arith.constant 0 : index
    %c0_9 = arith.constant 0 : index
    %c0_10 = arith.constant 0 : index
    %8 = vector.load %arg3[%c0_7, %c0_8, %c0_9, %c0_10] : memref<1x1x16x128xbf16, #tpu.memory_space<vmem>>, vector<1x1x16x128xbf16>
    %9 = vector.shape_cast %8 : vector<1x1x16x128xbf16> to vector<16x128xbf16>
    %c0_11 = arith.constant 0 : index
    %c0_12 = arith.constant 0 : index
    %10 = vector.load %arg8[%c0_11, %c0_12] : memref<128x128xbf16, #tpu.memory_space<vmem>>, vector<128x128xbf16>
    %cst_13 = arith.constant dense<0.000000e+00> : vector<16x128xf32>
    %11 = tpu.matmul %9, %10, %cst_13 {dimension_numbers = #tpu.dot_dimension_numbers<[1], [0], [0], [1], [0, 0, 1, 1], [], []>} : vector<16x128xbf16>, vector<128x128xbf16>, vector<16x128xf32> -> vector<16x128xf32>
    %c0_14 = arith.constant 0 : index
    %c0_15 = arith.constant 0 : index
    %12 = vector.load %arg9[%c0_14, %c0_15] : memref<1x128xf32, #tpu.memory_space<vmem>>, vector<1x128xf32>
    %13 = vector.broadcast %12 : vector<1x128xf32> to vector<16x128xf32>
    %14 = arith.addf %11, %13 : vector<16x128xf32>
    %c0_16 = arith.constant 0 : index
    %c0_17 = arith.constant 0 : index
    %c0_18 = arith.constant 0 : index
    %c0_19 = arith.constant 0 : index
    %15 = vector.load %arg4[%c0_16, %c0_17, %c0_18, %c0_19] : memref<1x1x16x128xbf16, #tpu.memory_space<vmem>>, vector<1x1x16x128xbf16>
    %16 = vector.shape_cast %15 : vector<1x1x16x128xbf16> to vector<16x128xbf16>
    %c0_20 = arith.constant 0 : index
    %c0_21 = arith.constant 0 : index
    %17 = vector.load %arg8[%c0_20, %c0_21] : memref<128x128xbf16, #tpu.memory_space<vmem>>, vector<128x128xbf16>
    %cst_22 = arith.constant dense<0.000000e+00> : vector<16x128xf32>
    %18 = tpu.matmul %16, %17, %cst_22 {dimension_numbers = #tpu.dot_dimension_numbers<[1], [0], [0], [1], [0, 0, 1, 1], [], []>} : vector<16x128xbf16>, vector<128x128xbf16>, vector<16x128xf32> -> vector<16x128xf32>
    %c0_23 = arith.constant 0 : index
    %c0_24 = arith.constant 0 : index
    %19 = vector.load %arg9[%c0_23, %c0_24] : memref<1x128xf32, #tpu.memory_space<vmem>>, vector<1x128xf32>
    %20 = vector.broadcast %19 : vector<1x128xf32> to vector<16x128xf32>
    %21 = arith.addf %18, %20 : vector<16x128xf32>
    %c0_25 = arith.constant 0 : index
    %c0_26 = arith.constant 0 : index
    %c0_27 = arith.constant 0 : index
    %c0_28 = arith.constant 0 : index
    %22 = vector.load %arg5[%c0_25, %c0_26, %c0_27, %c0_28] : memref<1x4x16x128xbf16, #tpu.memory_space<vmem>>, vector<1x4x16x128xbf16>
    %23 = vector.shape_cast %22 : vector<1x4x16x128xbf16> to vector<4x16x128xbf16>
    %24 = arith.extf %23 : vector<4x16x128xbf16> to vector<4x16x128xf32>
    %25 = vector.shape_cast %24 : vector<4x16x128xf32> to vector<4x1x16x128xf32>
    %26 = vector.shape_cast %25 : vector<4x1x16x128xf32> to vector<4x1x16x128xf32>
    %27 = vector.broadcast %26 : vector<4x1x16x128xf32> to vector<4x2x16x128xf32>
    %28 = vector.shape_cast %27 : vector<4x2x16x128xf32> to vector<8x16x128xf32>
    %29 = vector.shape_cast %7 : vector<128x128xf32> to vector<8x16x128xf32>
    %30 = arith.addf %29, %28 : vector<8x16x128xf32>
    %c0_i32 = arith.constant 0 : i32
    %31 = arith.cmpi sgt, %arg1, %c0_i32 : i32
    %32 = arith.extui %31 : i1 to i32
    %33 = arith.sitofp %32 : i32 to f32
    %c1_i32 = arith.constant 1 : i32
    %34 = arith.cmpi slt, %arg1, %c1_i32 : i32
    %35 = arith.extui %34 : i1 to i32
    %36 = arith.sitofp %35 : i32 to f32
    %c0_29 = arith.constant 0 : index
    %c0_30 = arith.constant 0 : index
    %c0_31 = arith.constant 0 : index
    %c0_32 = arith.constant 0 : index
    %37 = vector.load %arg6[%c0_29, %c0_30, %c0_31, %c0_32] : memref<1x1x16x128xbf16, #tpu.memory_space<vmem>>, vector<1x1x16x128xbf16>
    %38 = vector.shape_cast %37 : vector<1x1x16x128xbf16> to vector<16x128xbf16>
    %39 = arith.extf %38 : vector<16x128xbf16> to vector<16x128xf32>
    %40 = arith.addf %14, %39 : vector<16x128xf32>
    %41 = vector.broadcast %33 : f32 to vector<16x128xf32>
    %42 = arith.mulf %40, %41 : vector<16x128xf32>
    %c0_33 = arith.constant 0 : index
    %c0_34 = arith.constant 0 : index
    %c0_35 = arith.constant 0 : index
    %c0_36 = arith.constant 0 : index
    %43 = vector.load %arg7[%c0_33, %c0_34, %c0_35, %c0_36] : memref<1x1x16x128xbf16, #tpu.memory_space<vmem>>, vector<1x1x16x128xbf16>
    %44 = vector.shape_cast %43 : vector<1x1x16x128xbf16> to vector<16x128xbf16>
    %45 = arith.extf %44 : vector<16x128xbf16> to vector<16x128xf32>
    %46 = arith.addf %21, %45 : vector<16x128xf32>
    %47 = vector.broadcast %36 : f32 to vector<16x128xf32>
    %48 = arith.mulf %46, %47 : vector<16x128xf32>
    %cst_37 = arith.constant 0.000000e+00 : bf16
    %49 = vector.broadcast %cst_37 : bf16 to vector<10x18x128xbf16>
    %c0_38 = arith.constant 0 : index
    %c0_39 = arith.constant 0 : index
    %c0_40 = arith.constant 0 : index
    %50 = vector.load %arg13[%c0_38, %c0_39, %c0_40] : memref<10x18x128xbf16, #tpu.memory_space<vmem>>, vector<10x18x128xbf16>
    tpu.vector_store %arg13[%c0_38, %c0_39, %c0_40], %49 {strides = array<i32>} : memref<10x18x128xbf16, #tpu.memory_space<vmem>>, vector<10x18x128xbf16>,
    %51 = arith.truncf %30 : vector<8x16x128xf32> to vector<8x16x128xbf16>
    %c1 = arith.constant 1 : index
    %c1_41 = arith.constant 1 : index
    %c0_42 = arith.constant 0 : index
    %52 = vector.load %arg13[%c1, %c1_41, %c0_42] : memref<10x18x128xbf16, #tpu.memory_space<vmem>>, vector<8x16x128xbf16>
    tpu.vector_store %arg13[%c1, %c1_41, %c0_42], %51 {strides = array<i32>} : memref<10x18x128xbf16, #tpu.memory_space<vmem>>, vector<8x16x128xbf16>,
    %53 = arith.truncf %42 : vector<16x128xf32> to vector<16x128xbf16>
    %c0_43 = arith.constant 0 : index
    %c1_44 = arith.constant 1 : index
    %c0_45 = arith.constant 0 : index
    %54 = vector.load %arg13[%c0_43, %c1_44, %c0_45] : memref<10x18x128xbf16, #tpu.memory_space<vmem>>, vector<1x16x128xbf16>
    %55 = vector.shape_cast %54 : vector<1x16x128xbf16> to vector<16x128xbf16>
    %56 = vector.shape_cast %53 : vector<16x128xbf16> to vector<1x16x128xbf16>
    tpu.vector_store %arg13[%c0_43, %c1_44, %c0_45], %56 {strides = array<i32>} : memref<10x18x128xbf16, #tpu.memory_space<vmem>>, vector<1x16x128xbf16>,
    %57 = arith.truncf %48 : vector<16x128xf32> to vector<16x128xbf16>
    %c9 = arith.constant 9 : index
    %c1_46 = arith.constant 1 : index
    %c0_47 = arith.constant 0 : index
    %58 = vector.load %arg13[%c9, %c1_46, %c0_47] : memref<10x18x128xbf16, #tpu.memory_space<vmem>>, vector<1x16x128xbf16>
    %59 = vector.shape_cast %58 : vector<1x16x128xbf16> to vector<16x128xbf16>
    %60 = vector.shape_cast %57 : vector<16x128xbf16> to vector<1x16x128xbf16>
    tpu.vector_store %arg13[%c9, %c1_46, %c0_47], %60 {strides = array<i32>} : memref<10x18x128xbf16, #tpu.memory_space<vmem>>, vector<1x16x128xbf16>,
    %c0_48 = arith.constant 0 : index
    %c0_49 = arith.constant 0 : index
    %c0_50 = arith.constant 0 : index
    %61 = vector.load %arg13[%c0_48, %c0_49, %c0_50] : memref<10x18x128xbf16, #tpu.memory_space<vmem>>, vector<8x16x128xbf16>
    %c0_51 = arith.constant 0 : index
    %c0_52 = arith.constant 0 : index
    %c0_53 = arith.constant 0 : index
    %62 = vector.load %arg14[%c0_51, %c0_52, %c0_53] : memref<8x16x1152xbf16, #tpu.memory_space<vmem>>, vector<8x16x128xbf16>
    tpu.vector_store %arg14[%c0_51, %c0_52, %c0_53], %61 {strides = array<i32>} : memref<8x16x1152xbf16, #tpu.memory_space<vmem>>, vector<8x16x128xbf16>,
    %c0_54 = arith.constant 0 : index
    %c1_55 = arith.constant 1 : index
    %c0_56 = arith.constant 0 : index
    %63 = vector.load %arg13[%c0_54, %c1_55, %c0_56] : memref<10x18x128xbf16, #tpu.memory_space<vmem>>, vector<8x16x128xbf16>
    %c0_57 = arith.constant 0 : index
    %c0_58 = arith.constant 0 : index
    %c128 = arith.constant 128 : index
    %64 = vector.load %arg14[%c0_57, %c0_58, %c128] : memref<8x16x1152xbf16, #tpu.memory_space<vmem>>, vector<8x16x128xbf16>
    tpu.vector_store %arg14[%c0_57, %c0_58, %c128], %63 {strides = array<i32>} : memref<8x16x1152xbf16, #tpu.memory_space<vmem>>, vector<8x16x128xbf16>,
    %c0_59 = arith.constant 0 : index
    %c2 = arith.constant 2 : index
    %c0_60 = arith.constant 0 : index
    %65 = vector.load %arg13[%c0_59, %c2, %c0_60] : memref<10x18x128xbf16, #tpu.memory_space<vmem>>, vector<8x16x128xbf16>
    %c0_61 = arith.constant 0 : index
    %c0_62 = arith.constant 0 : index
    %c256 = arith.constant 256 : index
    %66 = vector.load %arg14[%c0_61, %c0_62, %c256] : memref<8x16x1152xbf16, #tpu.memory_space<vmem>>, vector<8x16x128xbf16>
    tpu.vector_store %arg14[%c0_61, %c0_62, %c256], %65 {strides = array<i32>} : memref<8x16x1152xbf16, #tpu.memory_space<vmem>>, vector<8x16x128xbf16>,
    %c1_63 = arith.constant 1 : index
    %c0_64 = arith.constant 0 : index
    %c0_65 = arith.constant 0 : index
    %67 = vector.load %arg13[%c1_63, %c0_64, %c0_65] : memref<10x18x128xbf16, #tpu.memory_space<vmem>>, vector<8x16x128xbf16>
    %c0_66 = arith.constant 0 : index
    %c0_67 = arith.constant 0 : index
    %c384 = arith.constant 384 : index
    %68 = vector.load %arg14[%c0_66, %c0_67, %c384] : memref<8x16x1152xbf16, #tpu.memory_space<vmem>>, vector<8x16x128xbf16>
    tpu.vector_store %arg14[%c0_66, %c0_67, %c384], %67 {strides = array<i32>} : memref<8x16x1152xbf16, #tpu.memory_space<vmem>>, vector<8x16x128xbf16>,
    %c1_68 = arith.constant 1 : index
    %c1_69 = arith.constant 1 : index
    %c0_70 = arith.constant 0 : index
    %69 = vector.load %arg13[%c1_68, %c1_69, %c0_70] : memref<10x18x128xbf16, #tpu.memory_space<vmem>>, vector<8x16x128xbf16>
    %c0_71 = arith.constant 0 : index
    %c0_72 = arith.constant 0 : index
    %c512 = arith.constant 512 : index
    %70 = vector.load %arg14[%c0_71, %c0_72, %c512] : memref<8x16x1152xbf16, #tpu.memory_space<vmem>>, vector<8x16x128xbf16>
    tpu.vector_store %arg14[%c0_71, %c0_72, %c512], %69 {strides = array<i32>} : memref<8x16x1152xbf16, #tpu.memory_space<vmem>>, vector<8x16x128xbf16>,
    %c1_73 = arith.constant 1 : index
    %c2_74 = arith.constant 2 : index
    %c0_75 = arith.constant 0 : index
    %71 = vector.load %arg13[%c1_73, %c2_74, %c0_75] : memref<10x18x128xbf16, #tpu.memory_space<vmem>>, vector<8x16x128xbf16>
    %c0_76 = arith.constant 0 : index
    %c0_77 = arith.constant 0 : index
    %c640 = arith.constant 640 : index
    %72 = vector.load %arg14[%c0_76, %c0_77, %c640] : memref<8x16x1152xbf16, #tpu.memory_space<vmem>>, vector<8x16x128xbf16>
    tpu.vector_store %arg14[%c0_76, %c0_77, %c640], %71 {strides = array<i32>} : memref<8x16x1152xbf16, #tpu.memory_space<vmem>>, vector<8x16x128xbf16>,
    %c2_78 = arith.constant 2 : index
    %c0_79 = arith.constant 0 : index
    %c0_80 = arith.constant 0 : index
    %73 = vector.load %arg13[%c2_78, %c0_79, %c0_80] : memref<10x18x128xbf16, #tpu.memory_space<vmem>>, vector<8x16x128xbf16>
    %c0_81 = arith.constant 0 : index
    %c0_82 = arith.constant 0 : index
    %c768 = arith.constant 768 : index
    %74 = vector.load %arg14[%c0_81, %c0_82, %c768] : memref<8x16x1152xbf16, #tpu.memory_space<vmem>>, vector<8x16x128xbf16>
    tpu.vector_store %arg14[%c0_81, %c0_82, %c768], %73 {strides = array<i32>} : memref<8x16x1152xbf16, #tpu.memory_space<vmem>>, vector<8x16x128xbf16>,
    %c2_83 = arith.constant 2 : index
    %c1_84 = arith.constant 1 : index
    %c0_85 = arith.constant 0 : index
    %75 = vector.load %arg13[%c2_83, %c1_84, %c0_85] : memref<10x18x128xbf16, #tpu.memory_space<vmem>>, vector<8x16x128xbf16>
    %c0_86 = arith.constant 0 : index
    %c0_87 = arith.constant 0 : index
    %c896 = arith.constant 896 : index
    %76 = vector.load %arg14[%c0_86, %c0_87, %c896] : memref<8x16x1152xbf16, #tpu.memory_space<vmem>>, vector<8x16x128xbf16>
    tpu.vector_store %arg14[%c0_86, %c0_87, %c896], %75 {strides = array<i32>} : memref<8x16x1152xbf16, #tpu.memory_space<vmem>>, vector<8x16x128xbf16>,
    %c2_88 = arith.constant 2 : index
    %c2_89 = arith.constant 2 : index
    %c0_90 = arith.constant 0 : index
    %77 = vector.load %arg13[%c2_88, %c2_89, %c0_90] : memref<10x18x128xbf16, #tpu.memory_space<vmem>>, vector<8x16x128xbf16>
    %c0_91 = arith.constant 0 : index
    %c0_92 = arith.constant 0 : index
    %c1024 = arith.constant 1024 : index
    %78 = vector.load %arg14[%c0_91, %c0_92, %c1024] : memref<8x16x1152xbf16, #tpu.memory_space<vmem>>, vector<8x16x128xbf16>
    tpu.vector_store %arg14[%c0_91, %c0_92, %c1024], %77 {strides = array<i32>} : memref<8x16x1152xbf16, #tpu.memory_space<vmem>>, vector<8x16x128xbf16>,
    %c0_93 = arith.constant 0 : index
    %c0_94 = arith.constant 0 : index
    %c0_95 = arith.constant 0 : index
    %79 = vector.load %arg14[%c0_93, %c0_94, %c0_95] : memref<8x16x1152xbf16, #tpu.memory_space<vmem>>, vector<8x16x1152xbf16>
    %80 = vector.shape_cast %79 : vector<8x16x1152xbf16> to vector<128x1152xbf16>
    %c0_96 = arith.constant 0 : index
    %c0_97 = arith.constant 0 : index
    %81 = vector.load %arg10[%c0_96, %c0_97] : memref<1152x128xbf16, #tpu.memory_space<vmem>>, vector<1152x128xbf16>
    %cst_98 = arith.constant dense<0.000000e+00> : vector<128x128xf32>
    %82 = tpu.matmul %80, %81, %cst_98 {dimension_numbers = #tpu.dot_dimension_numbers<[1], [0], [0], [1], [0, 0, 1, 1], [], []>} : vector<128x1152xbf16>, vector<1152x128xbf16>, vector<128x128xf32> -> vector<128x128xf32>
    %c0_99 = arith.constant 0 : index
    %c0_100 = arith.constant 0 : index
    %83 = vector.load %arg11[%c0_99, %c0_100] : memref<1x128xf32, #tpu.memory_space<vmem>>, vector<1x128xf32>
    %84 = vector.broadcast %83 : vector<1x128xf32> to vector<128x128xf32>
    %85 = arith.addf %82, %84 : vector<128x128xf32>
    %86 = vector.shape_cast %85 : vector<128x128xf32> to vector<8x16x128xf32>
    %87 = arith.truncf %86 : vector<8x16x128xf32> to vector<8x16x128xbf16>
    %c0_101 = arith.constant 0 : index
    %c0_102 = arith.constant 0 : index
    %c0_103 = arith.constant 0 : index
    %c0_104 = arith.constant 0 : index
    %88 = vector.load %arg12[%c0_101, %c0_102, %c0_103, %c0_104] : memref<1x8x16x128xbf16, #tpu.memory_space<vmem>>, vector<1x8x16x128xbf16>
    %89 = vector.shape_cast %88 : vector<1x8x16x128xbf16> to vector<8x16x128xbf16>
    %90 = vector.shape_cast %87 : vector<8x16x128xbf16> to vector<1x8x16x128xbf16>
    tpu.vector_store %arg12[%c0_101, %c0_102, %c0_103, %c0_104], %90 {strides = array<i32>} : memref<1x8x16x128xbf16, #tpu.memory_space<vmem>>, vector<1x8x16x128xbf16>,
    return
  }
  func.func @transform_0(%arg0: i32, %arg1: i32) -> (i32, i32, i32, i32) {
    %c0_i32 = arith.constant 0 : i32
    %c0_i32_0 = arith.constant 0 : i32
    %c0_i32_1 = arith.constant 0 : i32
    return %arg0, %arg1, %c0_i32, %c0_i32_0 : i32, i32, i32, i32
  }
  func.func @transform_1(%arg0: i32, %arg1: i32) -> (i32, i32, i32, i32) {
    %c8_i32 = arith.constant 8 : i32
    %0 = arith.muli %arg1, %c8_i32 : i32
    %c1_i32 = arith.constant 1 : i32
    %1 = arith.subi %0, %c1_i32 : i32
    %c0_i32 = arith.constant 0 : i32
    %2 = arith.maxsi %1, %c0_i32 : i32
    %c0_i32_0 = arith.constant 0 : i32
    %c0_i32_1 = arith.constant 0 : i32
    %c0_i32_2 = arith.constant 0 : i32
    return %arg0, %2, %c0_i32_0, %c0_i32_1 : i32, i32, i32, i32
  }
  func.func @transform_2(%arg0: i32, %arg1: i32) -> (i32, i32, i32, i32) {
    %c8_i32 = arith.constant 8 : i32
    %0 = arith.muli %arg1, %c8_i32 : i32
    %c8_i32_0 = arith.constant 8 : i32
    %1 = arith.addi %0, %c8_i32_0 : i32
    %c15_i32 = arith.constant 15 : i32
    %2 = arith.minsi %1, %c15_i32 : i32
    %c0_i32 = arith.constant 0 : i32
    %c0_i32_1 = arith.constant 0 : i32
    %c0_i32_2 = arith.constant 0 : i32
    return %arg0, %2, %c0_i32, %c0_i32_1 : i32, i32, i32, i32
  }
  func.func @transform_3(%arg0: i32, %arg1: i32) -> (i32, i32, i32, i32) {
    %c0_i32 = arith.constant 0 : i32
    %c0_i32_0 = arith.constant 0 : i32
    %c0_i32_1 = arith.constant 0 : i32
    return %arg0, %arg1, %c0_i32, %c0_i32_0 : i32, i32, i32, i32
  }
  func.func @transform_4(%arg0: i32, %arg1: i32) -> (i32, i32, i32, i32) {
    %c4_i32 = arith.constant 4 : i32
    %0 = arith.muli %arg1, %c4_i32 : i32
    %c1_i32 = arith.constant 1 : i32
    %1 = arith.subi %0, %c1_i32 : i32
    %c0_i32 = arith.constant 0 : i32
    %2 = arith.maxsi %1, %c0_i32 : i32
    %c0_i32_0 = arith.constant 0 : i32
    %c0_i32_1 = arith.constant 0 : i32
    %c0_i32_2 = arith.constant 0 : i32
    return %arg0, %2, %c0_i32_0, %c0_i32_1 : i32, i32, i32, i32
  }
  func.func @transform_5(%arg0: i32, %arg1: i32) -> (i32, i32, i32, i32) {
    %c1_i32 = arith.constant 1 : i32
    %0 = arith.addi %arg1, %c1_i32 : i32
    %c4_i32 = arith.constant 4 : i32
    %1 = arith.muli %0, %c4_i32 : i32
    %c7_i32 = arith.constant 7 : i32
    %2 = arith.minsi %1, %c7_i32 : i32
    %c0_i32 = arith.constant 0 : i32
    %c0_i32_0 = arith.constant 0 : i32
    %c0_i32_1 = arith.constant 0 : i32
    return %arg0, %2, %c0_i32, %c0_i32_0 : i32, i32, i32, i32
  }
  func.func @transform_6(%arg0: i32, %arg1: i32) -> (i32, i32) {
    %c0_i32 = arith.constant 0 : i32
    %c0_i32_0 = arith.constant 0 : i32
    %c0_i32_1 = arith.constant 0 : i32
    return %c0_i32, %c0_i32_0 : i32, i32
  }
  func.func @transform_7(%arg0: i32, %arg1: i32) -> (i32, i32) {
    %c0_i32 = arith.constant 0 : i32
    %c0_i32_0 = arith.constant 0 : i32
    %c0_i32_1 = arith.constant 0 : i32
    return %c0_i32, %c0_i32_0 : i32, i32
  }
  func.func @transform_8(%arg0: i32, %arg1: i32) -> (i32, i32) {
    %c0_i32 = arith.constant 0 : i32
    %c0_i32_0 = arith.constant 0 : i32
    %c0_i32_1 = arith.constant 0 : i32
    return %c0_i32, %c0_i32_0 : i32, i32
  }
  func.func @transform_9(%arg0: i32, %arg1: i32) -> (i32, i32) {
    %c0_i32 = arith.constant 0 : i32
    %c0_i32_0 = arith.constant 0 : i32
    %c0_i32_1 = arith.constant 0 : i32
    return %c0_i32, %c0_i32_0 : i32, i32
  }
  func.func @transform_10(%arg0: i32, %arg1: i32) -> (i32, i32, i32, i32) {
    %c0_i32 = arith.constant 0 : i32
    %c0_i32_0 = arith.constant 0 : i32
    %c0_i32_1 = arith.constant 0 : i32
    return %arg0, %arg1, %c0_i32, %c0_i32_0 : i32, i32, i32, i32
  }
}

</mosaic_0001>

<bundles_post_ra>
// kernel: feature_extractor_forward.9
= control target key start
LH: loop header
LB: loop body
LE: loop exit
PB: predicated region body
PF: predicated region fallthrough
CT: control target
= control target key end

     0   :  { %s3190_s12 = smov 0   ;;  %s3503_s0 = inlined_call_operand.vmem [shape: bf16[2048,128], index: 0, kind: input, shape index: {}]   ;;  %s3504_s1 = inlined_call_operand.vmem [shape: bf16[128,128], index: 1, kind: input, shape index: {}]   ;;  %s3505_s2 = inlined_call_operand.vmem [shape: f32[1,128], index: 2, kind: input, shape index: {}]   ;;  %s3506_s3 = inlined_call_operand.vmem [shape: bf16[2048,128], index: 3, kind: output, shape index: {}]  }
   0x1 LB: > { %s2127_s13 = sadd.s32 4294967295, %s3168_s12   ;;  %p2131_p0 = scmp.ge.s32.totalorder %s3168_s12, 1  ;;  %s3168_s12 = sphi %s3190_s12, %s13_s12  }
   0x2   : > { %p138_p1 = scmp.lt.s32.totalorder %s3168_s12, 3 }
   0x4   : > { %p139_p2 = pnand %p2131_p0, %p138_p1 }
   0x5   : > { %v3090_v0 = vld [vmem:[%s3504_s1] sm:$0xff] (!%p139_p2)   ;;  %s2132_s16 = sshll.u32 (!%p139_p2), %s2127_s13, 7  ;;  %v3091_v1 = vld [vmem:[%s3504_s1 + $0x8] sm:$0xff] (!%p139_p2)   ;;  %v3092_v2 = vld [vmem:[%s3504_s1 + $0x10] sm:$0xff] (!%p139_p2)  }
   0x6   : > { %142 = sbr.rel (%p139_p2) target bundleno = 380 (0x17c), region = 32  ;;  %p163_p3 = scmp.lt.s32.totalorder (!%p139_p2), %s2132_s16, 255  ;;  %2922 = vmatprep.subr.bf16.mxu0 (!%p139_p2), %v3090_v0  ;;  %3066 = vmatprep.subr.bf16.mxu1 (!%p139_p2), %v3090_v0  ;;  %v3093_v3 = vld [vmem:[%s3504_s1 + $0x18] sm:$0xff] (!%p139_p2)   ;;  %v3094_v6 = vld [vmem:[%s3504_s1 + $0x20] sm:$0xff] (!%p139_p2)   ;;  %v3095_v7 = vld [vmem:[%s3504_s1 + $0x28] sm:$0xff] (!%p139_p2)  }
   0x7   : > { %2923 = vmatpush3.bf16.msra.mxu0 (!%p139_p2), %v3090_v0  ;;  %3074 = vmatpush3.bf16.msra.mxu1 (!%p139_p2), %v3090_v0  ;;  %v3096_v8 = vld [vmem:[%s3504_s1 + $0x30] sm:$0xff] (!%p139_p2)   ;;  %v3097_v9 = vld [vmem:[%s3504_s1 + $0x38] sm:$0xff] (!%p139_p2)  }
   0x8   : > { %2924 = vmatprep.subr.bf16.mxu0 (!%p139_p2), %v3091_v1  ;;  %3067 = vmatprep.subr.bf16.mxu1 (!%p139_p2), %v3091_v1 }
   0xb   : > { %2925 = vmatpush3.bf16.msra.mxu0 (!%p139_p2), %v3091_v1  ;;  %3075 = vmatpush3.bf16.msra.mxu1 (!%p139_p2), %v3091_v1 }
   0xc   : > { %2926 = vmatprep.subr.bf16.mxu0 (!%p139_p2), %v3092_v2  ;;  %3068 = vmatprep.subr.bf16.mxu1 (!%p139_p2), %v3092_v2 }
   0xd   : > { %s3508_s16 = smov (!%p163_p3, %s2132_s16), 255 }
   0xe   : > { %s2133_s21 = sshll.u32 %s3508_s16, 2 }
   0xf   : > { %s3215_s24 = scalar_lea.vmem %s3503_s0, %s2133_s21  ;;  %2927 = vmatpush3.bf16.msra.mxu0 %v3092_v2  ;;  %3076 = vmatpush3.bf16.msra.mxu1 %v3092_v2  ;;  %s3314_s13 = scalar_lea.vmem %s3506_s3, %s2133_s21 }
  0x10   : > { %v3098_v4 = vld [vmem:[%s3215_s24] sm:$0xff]   ;;  %2928 = vmatprep.subr.bf16.mxu0 %v3093_v3  ;;  %3069 = vmatprep.subr.bf16.mxu1 %v3093_v3  ;;  %v3100_v10 = vld [vmem:[%s3215_s24 + $0x8] sm:$0xff]   ;;  %v3102_v12 = vld [vmem:[%s3215_s24 + $0x10] sm:$0xff]  }
  0x11   : > { %v3099_v5 = vld [vmem:[%s3215_s24 + $0x100] sm:$0xff]   ;;  %2938 = vmatprep.mubr.bf16.mxu0 %v3098_v4  ;;  %v3101_v11 = vld [vmem:[%s3215_s24 + $0x108] sm:$0xff]   ;;  %v3103_v13 = vld [vmem:[%s3215_s24 + $0x110] sm:$0xff]  }
  0x12   : > { %3002 = vmatprep.mubr.bf16.mxu1 %v3099_v5  ;;  %v3104_v14 = vld [vmem:[%s3215_s24 + $0x18] sm:$0xff]   ;;  %v3106_v16 = vld [vmem:[%s3215_s24 + $0x20] sm:$0xff]   ;;  %v3108_v18 = vld [vmem:[%s3215_s24 + $0x28] sm:$0xff]  }
  0x13   : > { %2929 = vmatpush3.bf16.msra.mxu0 %v3093_v3  ;;  %3077 = vmatpush3.bf16.msra.mxu1 %v3093_v3  ;;  %v3105_v15 = vld [vmem:[%s3215_s24 + $0x118] sm:$0xff]   ;;  %v3107_v17 = vld [vmem:[%s3215_s24 + $0x120] sm:$0xff]   ;;  %v3109_v19 = vld [vmem:[%s3215_s24 + $0x128] sm:$0xff]  }
  0x14   : > { %2930 = vmatprep.subr.bf16.mxu0 %v3094_v6  ;;  %3070 = vmatprep.subr.bf16.mxu1 %v3094_v6  ;;  %v3110_v20 = vld [vmem:[%s3215_s24 + $0x30] sm:$0xff]   ;;  %v3112_v22 = vld [vmem:[%s3215_s24 + $0x38] sm:$0xff]   ;;  %v3114_v24 = vld [vmem:[%s3215_s24 + $0x40] sm:$0xff]  }
  0x15   : > { %v3111_v21 = vld [vmem:[%s3215_s24 + $0x130] sm:$0xff]   ;;  %v3113_v23 = vld [vmem:[%s3215_s24 + $0x138] sm:$0xff]   ;;  %v3115_v25 = vld [vmem:[%s3215_s24 + $0x140] sm:$0xff]  }
  0x16   : > { %v3116_v26 = vld [vmem:[%s3215_s24 + $0x48] sm:$0xff]   ;;  %v3118_v28 = vld [vmem:[%s3215_s24 + $0x50] sm:$0xff]   ;;  %v3120_v30 = vld [vmem:[%s3215_s24 + $0x58] sm:$0xff]  }
  0x17   : > { %2931 = vmatpush3.bf16.msra.mxu0 %v3094_v6  ;;  %3078 = vmatpush3.bf16.msra.mxu1 %v3094_v6  ;;  %v3117_v27 = vld [vmem:[%s3215_s24 + $0x148] sm:$0xff]   ;;  %v3119_v29 = vld [vmem:[%s3215_s24 + $0x150] sm:$0xff]   ;;  %v3121_v31 = vld [vmem:[%s3215_s24 + $0x158] sm:$0xff]  }
  0x18   : > { %2932 = vmatprep.subr.bf16.mxu0 %v3095_v7  ;;  %3071 = vmatprep.subr.bf16.mxu1 %v3095_v7  ;;  %v3122_v32 = vld [vmem:[%s3215_s24 + $0x60] sm:$0xff]   ;;  %v3124_v34 = vld [vmem:[%s3215_s24 + $0x68] sm:$0xff]   ;;  %v3126_v36 = vld [vmem:[%s3215_s24 + $0x70] sm:$0xff]  }
  0x19   : > { %v3123_v33 = vld [vmem:[%s3215_s24 + $0x160] sm:$0xff]   ;;  %v3125_v35 = vld [vmem:[%s3215_s24 + $0x168] sm:$0xff]   ;;  %v3127_v37 = vld [vmem:[%s3215_s24 + $0x170] sm:$0xff]  }
  0x1a   : > { %v3128_v38 = vld [vmem:[%s3215_s24 + $0x78] sm:$0xff]   ;;  %v3130_v40 = vld [vmem:[%s3215_s24 + $0x80] sm:$0xff]   ;;  %v3132_v42 = vld [vmem:[%s3215_s24 + $0x88] sm:$0xff]  }
  0x1b   : > { %2933 = vmatpush3.bf16.msra.mxu0 %v3095_v7  ;;  %3079 = vmatpush3.bf16.msra.mxu1 %v3095_v7  ;;  %v3129_v39 = vld [vmem:[%s3215_s24 + $0x178] sm:$0xff]   ;;  %v3131_v41 = vld [vmem:[%s3215_s24 + $0x180] sm:$0xff]   ;;  %v3133_v43 = vld [vmem:[%s3215_s24 + $0x188] sm:$0xff]  }
  0x1c   : > { %2934 = vmatprep.subr.bf16.mxu0 %v3096_v8  ;;  %3072 = vmatprep.subr.bf16.mxu1 %v3096_v8  ;;  %v3134_v44 = vld [vmem:[%s3215_s24 + $0x90] sm:$0xff]   ;;  %v3136_v46 = vld [vmem:[%s3215_s24 + $0x98] sm:$0xff]   ;;  %v3138_v48 = vld [vmem:[%s3215_s24 + $0xa0] sm:$0xff]  }
  0x1d   : > { %v3135_v45 = vld [vmem:[%s3215_s24 + $0x190] sm:$0xff]   ;;  %v3137_v47 = vld [vmem:[%s3215_s24 + $0x198] sm:$0xff]   ;;  %v3139_v49 = vld [vmem:[%s3215_s24 + $0x1a0] sm:$0xff]  }
  0x1e   : > { %v3140_v50 = vld [vmem:[%s3215_s24 + $0xa8] sm:$0xff]   ;;  %v3142_v52 = vld [vmem:[%s3215_s24 + $0xb0] sm:$0xff]   ;;  %v3144_v54 = vld [vmem:[%s3215_s24 + $0xb8] sm:$0xff]  }
  0x1f   : > { %2935 = vmatpush3.bf16.msra.mxu0 %v3096_v8  ;;  %3080 = vmatpush3.bf16.msra.mxu1 %v3096_v8  ;;  %v3141_v51 = vld [vmem:[%s3215_s24 + $0x1a8] sm:$0xff]   ;;  %v3143_v53 = vld [vmem:[%s3215_s24 + $0x1b0] sm:$0xff]   ;;  %v3145_v55 = vld [vmem:[%s3215_s24 + $0x1b8] sm:$0xff]  }
  0x20   : > { %2936 = vmatprep.subr.bf16.mxu0 %v3097_v9  ;;  %3073 = vmatprep.subr.bf16.mxu1 %v3097_v9  ;;  %v3146_v56 = vld [vmem:[%s3215_s24 + $0xc0] sm:$0xff]   ;;  %v3148_v58 = vld [vmem:[%s3215_s24 + $0xc8] sm:$0xff]   ;;  %v3150_v60 = vld [vmem:[%s3215_s24 + $0xd0] sm:$0xff]  }
  0x21   : > { %v3147_v57 = vld [vmem:[%s3215_s24 + $0x1c0] sm:$0xff]   ;;  %v3149_v59 = vld [vmem:[%s3215_s24 + $0x1c8] sm:$0xff]   ;;  %v3151_v61 = vld [vmem:[%s3215_s24 + $0x1d0] sm:$0xff]  }
  0x22   : > { %v3152_v62 = vld [vmem:[%s3215_s24 + $0xd8] sm:$0xff]   ;;  %v3154_v0 = vld [vmem:[%s3215_s24 + $0xe0] sm:$0xff]   ;;  %v3156_v2 = vld [vmem:[%s3215_s24 + $0xe8] sm:$0xff]  }
  0x23   : > { %2937 = vmatpush3.bf16.msra.mxu0 %v3097_v9  ;;  %3081 = vmatpush3.bf16.msra.mxu1 %v3097_v9  ;;  %v3153_v63 = vld [vmem:[%s3215_s24 + $0x1d8] sm:$0xff]   ;;  %v3155_v1 = vld [vmem:[%s3215_s24 + $0x1e0] sm:$0xff]   ;;  %v3157_v3 = vld [vmem:[%s3215_s24 + $0x1e8] sm:$0xff]  }
  0x24   : > { %v3158_v4 = vld [vmem:[%s3215_s24 + $0xf0] sm:$0xff]   ;;  %v3160_v6 = vld [vmem:[%s3215_s24 + $0xf8] sm:$0xff]   ;;  %v3299_v8 = vld [vmem:[%s3505_s2] ss:$0 sm:$0xff] }
  0x25   : > { %v3159_v5 = vld [vmem:[%s3215_s24 + $0x1f0] sm:$0xff]   ;;  %v3161_v7 = vld [vmem:[%s3215_s24 + $0x1f8] sm:$0xff]  }
  0x26   : > { %2939 = vmatmul.mubr.bf16.vlgmr.msra.gmra.mrb[0].mxu0 %v3100_v10  ;;  %3003 = vmatmul.mubr.bf16.vlgmr.msra.gmra.mrb[0].mxu1 %v3101_v11 }
  0x27   : > { %2942 = vmatprep.mubr.bf16.mxu0 %v3102_v12  ;;  %3006 = vmatprep.mubr.bf16.mxu1 %v3103_v13 }
  0x2e   : > { %2943 = vmatmul.mubr.bf16.gmra.mrb[4].mxu0 %v3104_v14  ;;  %3007 = vmatmul.mubr.bf16.gmra.mrb[4].mxu1 %v3105_v15 }
  0x2f   : > { %2946 = vmatprep.mubr.bf16.mxu0 %v3106_v16  ;;  %3010 = vmatprep.mubr.bf16.mxu1 %v3107_v17 }
  0x36   : > { %2947 = vmatmul.mubr.bf16.gmra.mrb[8].mxu0 %v3108_v18  ;;  %3011 = vmatmul.mubr.bf16.gmra.mrb[8].mxu1 %v3109_v19 }
  0x37   : > { %2950 = vmatprep.mubr.bf16.mxu0 %v3110_v20  ;;  %3014 = vmatprep.mubr.bf16.mxu1 %v3111_v21 }
  0x3e   : > { %2951 = vmatmul.mubr.bf16.gmra.mrb[12].mxu0 %v3112_v22  ;;  %3015 = vmatmul.mubr.bf16.gmra.mrb[12].mxu1 %v3113_v23 }
  0x3f   : > { %2954 = vmatprep.mubr.bf16.mxu0 %v3114_v24  ;;  %3018 = vmatprep.mubr.bf16.mxu1 %v3115_v25 }
  0x46   : > { %2955 = vmatmul.mubr.bf16.gmra.mrb[16].mxu0 %v3116_v26  ;;  %3019 = vmatmul.mubr.bf16.gmra.mrb[16].mxu1 %v3117_v27 }
  0x47   : > { %2958 = vmatprep.mubr.bf16.mxu0 %v3118_v28  ;;  %3022 = vmatprep.mubr.bf16.mxu1 %v3119_v29 }
  0x4e   : > { %2959 = vmatmul.mubr.bf16.gmra.mrb[20].mxu0 %v3120_v30  ;;  %3023 = vmatmul.mubr.bf16.gmra.mrb[20].mxu1 %v3121_v31 }
  0x4f   : > { %2962 = vmatprep.mubr.bf16.mxu0 %v3122_v32  ;;  %3026 = vmatprep.mubr.bf16.mxu1 %v3123_v33 }
  0x56   : > { %2963 = vmatmul.mubr.bf16.gmra.mrb[24].mxu0 %v3124_v34  ;;  %3027 = vmatmul.mubr.bf16.gmra.mrb[24].mxu1 %v3125_v35 }
  0x57   : > { %2966 = vmatprep.mubr.bf16.mxu0 %v3126_v36  ;;  %3030 = vmatprep.mubr.bf16.mxu1 %v3127_v37 }
  0x5e   : > { %2967 = vmatmul.mubr.bf16.gmra.mrb[28].mxu0 %v3128_v38  ;;  %3031 = vmatmul.mubr.bf16.gmra.mrb[28].mxu1 %v3129_v39 }
  0x5f   : > { %2970 = vmatprep.mubr.bf16.mxu0 %v3130_v40  ;;  %3034 = vmatprep.mubr.bf16.mxu1 %v3131_v41 }
  0x66   : > { %2971 = vmatmul.mubr.bf16.gmra.mrb[32].mxu0 %v3132_v42  ;;  %3035 = vmatmul.mubr.bf16.gmra.mrb[32].mxu1 %v3133_v43 }
  0x67   : > { %2974 = vmatprep.mubr.bf16.mxu0 %v3134_v44  ;;  %3038 = vmatprep.mubr.bf16.mxu1 %v3135_v45 }
  0x6e   : > { %2975 = vmatmul.mubr.bf16.gmra.mrb[36].mxu0 %v3136_v46  ;;  %3039 = vmatmul.mubr.bf16.gmra.mrb[36].mxu1 %v3137_v47 }
  0x6f   : > { %2978 = vmatprep.mubr.bf16.mxu0 %v3138_v48  ;;  %3042 = vmatprep.mubr.bf16.mxu1 %v3139_v49 }
  0x76   : > { %2979 = vmatmul.mubr.bf16.gmra.mrb[40].mxu0 %v3140_v50  ;;  %3043 = vmatmul.mubr.bf16.gmra.mrb[40].mxu1 %v3141_v51 }
  0x77   : > { %2982 = vmatprep.mubr.bf16.mxu0 %v3142_v52  ;;  %3046 = vmatprep.mubr.bf16.mxu1 %v3143_v53 }
  0x7e   : > { %2983 = vmatmul.mubr.bf16.gmra.mrb[44].mxu0 %v3144_v54  ;;  %3047 = vmatmul.mubr.bf16.gmra.mrb[44].mxu1 %v3145_v55 }
  0x7f   : > { %2986 = vmatprep.mubr.bf16.mxu0 %v3146_v56  ;;  %3050 = vmatprep.mubr.bf16.mxu1 %v3147_v57 }
  0x86   : > { %2987 = vmatmul.mubr.bf16.gmra.mrb[48].mxu0 %v3148_v58  ;;  %3051 = vmatmul.mubr.bf16.gmra.mrb[48].mxu1 %v3149_v59 }
  0x87   : > { %2990 = vmatprep.mubr.bf16.mxu0 %v3150_v60  ;;  %3054 = vmatprep.mubr.bf16.mxu1 %v3151_v61 }
  0x8e   : > { %2991 = vmatmul.mubr.bf16.gmra.mrb[52].mxu0 %v3152_v62  ;;  %3055 = vmatmul.mubr.bf16.gmra.mrb[52].mxu1 %v3153_v63 }
  0x8f   : > { %2994 = vmatprep.mubr.bf16.mxu0 %v3154_v0  ;;  %3058 = vmatprep.mubr.bf16.mxu1 %v3155_v1 }
  0x96   : > { %2995 = vmatmul.mubr.bf16.gmra.mrb[56].mxu0 %v3156_v2  ;;  %3059 = vmatmul.mubr.bf16.gmra.mrb[56].mxu1 %v3157_v3 }
  0x97   : > { %2998 = vmatprep.mubr.bf16.mxu0 %v3158_v4  ;;  %3062 = vmatprep.mubr.bf16.mxu1 %v3159_v5 }
  0x9e   : > { %2999 = vmatmul.mubr.bf16.gmra.mrb[60].mxu0 %v3160_v6  ;;  %3063 = vmatmul.mubr.bf16.gmra.mrb[60].mxu1 %v3161_v7 }
  0xf9   : > { %v2940_v9 = vpop.f32.mrb[0].mxu0  ;;  %v3004_v10 = vpop.f32.mrb[0].mxu1 }
  0xfa   : > { %v801_v11 = vadd.f32 %v2940_v9, %v3299_v8  ;;  %v1057_v12 = vadd.f32 %v3004_v10, %v3299_v8  ;;  %v792_v13 = vpop.f32.mrb[1].mxu0  ;;  %v1048_v14 = vpop.f32.mrb[1].mxu1 }
  0xfb   : > { %v793_v15 = vadd.f32 %v3299_v8, %v792_v13  ;;  %v1049_v16 = vadd.f32 %v3299_v8, %v1048_v14  ;;  %v2941_v17 = vpop.f32.mrb[2].mxu0  ;;  %v3005_v18 = vpop.f32.mrb[2].mxu1 }
  0xfc   : > { %v804_v19 = vadd.f32 %v2941_v17, %v3299_v8  ;;  %v1060_v20 = vadd.f32 %v3005_v18, %v3299_v8  ;;  %v795_v21 = vpop.f32.mrb[3].mxu0  ;;  %v1051_v22 = vpop.f32.mrb[3].mxu1  ;;  %v1305_v25 = vmax.f32 %v801_v11, 0.0  ;;  %v1369_v26 = vmax.f32 %v1057_v12, 0.0 }
  0xfd   : > { %v796_v23 = vadd.f32 %v3299_v8, %v795_v21  ;;  %v1052_v24 = vadd.f32 %v3299_v8, %v1051_v22  ;;  %v1303_v29 = vmax.f32 %v793_v15, 0.0  ;;  %v1367_v30 = vmax.f32 %v1049_v16, 0.0 }
  0xfe   : > { %v1306_v27 = vmax.f32 %v804_v19, 0.0  ;;  %v1370_v28 = vmax.f32 %v1060_v20, 0.0 }
  0xff   : > { %v1304_v31 = vmax.f32 %v796_v23, 0.0  ;;  %v1368_v32 = vmax.f32 %v1052_v24, 0.0 }
 0x100   : > { %v2475_v33 = vpack.c.bf16 %v1306_v27, %v1305_v25  ;;  %v2635_v34 = vpack.c.bf16 %v1370_v28, %v1369_v26 }
 0x101   : > { %v2470_v35 = vpack.c.bf16 %v1304_v31, %v1303_v29  ;;  %v2630_v36 = vpack.c.bf16 %v1368_v32, %v1367_v30  ;;  %v2944_v37 = vpop.f32.mrb[4].mxu0  ;;  %v3008_v38 = vpop.f32.mrb[4].mxu1 }
 0x102   : > { %2787 = vst [vmem:[%s3314_s13 + $0x8] sm:$0xff] %v2475_v33   ;;  %2819 = vst [vmem:[%s3314_s13 + $0x108] sm:$0xff] %v2635_v34   ;;  %v817_v39 = vadd.f32 %v2944_v37, %v3299_v8  ;;  %v1073_v40 = vadd.f32 %v3008_v38, %v3299_v8  ;;  %v808_v41 = vpop.f32.mrb[5].mxu0  ;;  %v1064_v42 = vpop.f32.mrb[5].mxu1 }
 0x103   : > { %2471 = vst [vmem:[%s3314_s13] sm:$0xff] %v2470_v35   ;;  %2818 = vst [vmem:[%s3314_s13 + $0x100] sm:$0xff] %v2630_v36   ;;  %v809_v43 = vadd.f32 %v3299_v8, %v808_v41  ;;  %v1065_v44 = vadd.f32 %v3299_v8, %v1064_v42  ;;  %v2945_v45 = vpop.f32.mrb[6].mxu0  ;;  %v3009_v46 = vpop.f32.mrb[6].mxu1 }
 0x104   : > { %v820_v47 = vadd.f32 %v2945_v45, %v3299_v8  ;;  %v1076_v48 = vadd.f32 %v3009_v46, %v3299_v8  ;;  %v811_v49 = vpop.f32.mrb[7].mxu0  ;;  %v1067_v50 = vpop.f32.mrb[7].mxu1  ;;  %v1309_v53 = vmax.f32 %v817_v39, 0.0  ;;  %v1373_v54 = vmax.f32 %v1073_v40, 0.0 }
 0x105   : > { %v812_v51 = vadd.f32 %v3299_v8, %v811_v49  ;;  %v1068_v52 = vadd.f32 %v3299_v8, %v1067_v50  ;;  %v1307_v57 = vmax.f32 %v809_v43, 0.0  ;;  %v1371_v58 = vmax.f32 %v1065_v44, 0.0 }
 0x106   : > { %v1310_v55 = vmax.f32 %v820_v47, 0.0  ;;  %v1374_v56 = vmax.f32 %v1076_v48, 0.0 }
 0x107   : > { %v1308_v59 = vmax.f32 %v812_v51, 0.0  ;;  %v1372_v60 = vmax.f32 %v1068_v52, 0.0 }
 0x108   : > { %v2485_v61 = vpack.c.bf16 %v1310_v55, %v1309_v53  ;;  %v2645_v62 = vpack.c.bf16 %v1374_v56, %v1373_v54 }
 0x109   : > { %v2480_v63 = vpack.c.bf16 %v1308_v59, %v1307_v57  ;;  %v2640_v0 = vpack.c.bf16 %v1372_v60, %v1371_v58  ;;  %v2948_v1 = vpop.f32.mrb[8].mxu0  ;;  %v3012_v2 = vpop.f32.mrb[8].mxu1 }
 0x10a   : > { %2789 = vst [vmem:[%s3314_s13 + $0x18] sm:$0xff] %v2485_v61   ;;  %2821 = vst [vmem:[%s3314_s13 + $0x118] sm:$0xff] %v2645_v62   ;;  %v833_v3 = vadd.f32 %v2948_v1, %v3299_v8  ;;  %v1089_v4 = vadd.f32 %v3012_v2, %v3299_v8  ;;  %v824_v5 = vpop.f32.mrb[9].mxu0  ;;  %v1080_v6 = vpop.f32.mrb[9].mxu1 }
 0x10b   : > { %2788 = vst [vmem:[%s3314_s13 + $0x10] sm:$0xff] %v2480_v63   ;;  %2820 = vst [vmem:[%s3314_s13 + $0x110] sm:$0xff] %v2640_v0   ;;  %v825_v7 = vadd.f32 %v3299_v8, %v824_v5  ;;  %v1081_v9 = vadd.f32 %v3299_v8, %v1080_v6  ;;  %v2949_v10 = vpop.f32.mrb[10].mxu0  ;;  %v3013_v11 = vpop.f32.mrb[10].mxu1 }
 0x10c   : > { %v836_v12 = vadd.f32 %v2949_v10, %v3299_v8  ;;  %v1092_v13 = vadd.f32 %v3013_v11, %v3299_v8  ;;  %v827_v14 = vpop.f32.mrb[11].mxu0  ;;  %v1083_v15 = vpop.f32.mrb[11].mxu1  ;;  %v1313_v18 = vmax.f32 %v833_v3, 0.0  ;;  %v1377_v19 = vmax.f32 %v1089_v4, 0.0 }
 0x10d   : > { %v828_v16 = vadd.f32 %v3299_v8, %v827_v14  ;;  %v1084_v17 = vadd.f32 %v3299_v8, %v1083_v15  ;;  %v1311_v22 = vmax.f32 %v825_v7, 0.0  ;;  %v1375_v23 = vmax.f32 %v1081_v9, 0.0 }
 0x10e   : > { %v1314_v20 = vmax.f32 %v836_v12, 0.0  ;;  %v1378_v21 = vmax.f32 %v1092_v13, 0.0 }
 0x10f   : > { %v1312_v24 = vmax.f32 %v828_v16, 0.0  ;;  %v1376_v25 = vmax.f32 %v1084_v17, 0.0 }
 0x110   : > { %v2495_v26 = vpack.c.bf16 %v1314_v20, %v1313_v18  ;;  %v2655_v27 = vpack.c.bf16 %v1378_v21, %v1377_v19 }
 0x111   : > { %v2490_v28 = vpack.c.bf16 %v1312_v24, %v1311_v22  ;;  %v2650_v29 = vpack.c.bf16 %v1376_v25, %v1375_v23  ;;  %v2952_v30 = vpop.f32.mrb[12].mxu0  ;;  %v3016_v31 = vpop.f32.mrb[12].mxu1 }
 0x112   : > { %2791 = vst [vmem:[%s3314_s13 + $0x28] sm:$0xff] %v2495_v26   ;;  %2823 = vst [vmem:[%s3314_s13 + $0x128] sm:$0xff] %v2655_v27   ;;  %v849_v32 = vadd.f32 %v2952_v30, %v3299_v8  ;;  %v1105_v33 = vadd.f32 %v3016_v31, %v3299_v8  ;;  %v840_v34 = vpop.f32.mrb[13].mxu0  ;;  %v1096_v35 = vpop.f32.mrb[13].mxu1 }
 0x113   : > { %2790 = vst [vmem:[%s3314_s13 + $0x20] sm:$0xff] %v2490_v28   ;;  %2822 = vst [vmem:[%s3314_s13 + $0x120] sm:$0xff] %v2650_v29   ;;  %v841_v36 = vadd.f32 %v3299_v8, %v840_v34  ;;  %v1097_v37 = vadd.f32 %v3299_v8, %v1096_v35  ;;  %v2953_v38 = vpop.f32.mrb[14].mxu0  ;;  %v3017_v39 = vpop.f32.mrb[14].mxu1 }
 0x114   : > { %v852_v40 = vadd.f32 %v2953_v38, %v3299_v8  ;;  %v1108_v41 = vadd.f32 %v3017_v39, %v3299_v8  ;;  %v843_v42 = vpop.f32.mrb[15].mxu0  ;;  %v1099_v43 = vpop.f32.mrb[15].mxu1  ;;  %v1317_v46 = vmax.f32 %v849_v32, 0.0  ;;  %v1381_v47 = vmax.f32 %v1105_v33, 0.0 }
 0x115   : > { %v844_v44 = vadd.f32 %v3299_v8, %v843_v42  ;;  %v1100_v45 = vadd.f32 %v3299_v8, %v1099_v43  ;;  %v1315_v50 = vmax.f32 %v841_v36, 0.0  ;;  %v1379_v51 = vmax.f32 %v1097_v37, 0.0 }
 0x116   : > { %v1318_v48 = vmax.f32 %v852_v40, 0.0  ;;  %v1382_v49 = vmax.f32 %v1108_v41, 0.0 }
 0x117   : > { %v1316_v52 = vmax.f32 %v844_v44, 0.0  ;;  %v1380_v53 = vmax.f32 %v1100_v45, 0.0 }
 0x118   : > { %v2505_v54 = vpack.c.bf16 %v1318_v48, %v1317_v46  ;;  %v2665_v55 = vpack.c.bf16 %v1382_v49, %v1381_v47 }
 0x119   : > { %v2500_v56 = vpack.c.bf16 %v1316_v52, %v1315_v50  ;;  %v2660_v57 = vpack.c.bf16 %v1380_v53, %v1379_v51  ;;  %v2956_v58 = vpop.f32.mrb[16].mxu0  ;;  %v3020_v59 = vpop.f32.mrb[16].mxu1 }
 0x11a   : > { %2793 = vst [vmem:[%s3314_s13 + $0x38] sm:$0xff] %v2505_v54   ;;  %2825 = vst [vmem:[%s3314_s13 + $0x138] sm:$0xff] %v2665_v55   ;;  %v865_v60 = vadd.f32 %v2956_v58, %v3299_v8  ;;  %v1121_v61 = vadd.f32 %v3020_v59, %v3299_v8  ;;  %v856_v62 = vpop.f32.mrb[17].mxu0  ;;  %v1112_v63 = vpop.f32.mrb[17].mxu1 }
 0x11b   : > { %2792 = vst [vmem:[%s3314_s13 + $0x30] sm:$0xff] %v2500_v56   ;;  %2824 = vst [vmem:[%s3314_s13 + $0x130] sm:$0xff] %v2660_v57   ;;  %v857_v0 = vadd.f32 %v3299_v8, %v856_v62  ;;  %v1113_v1 = vadd.f32 %v3299_v8, %v1112_v63  ;;  %v2957_v2 = vpop.f32.mrb[18].mxu0  ;;  %v3021_v3 = vpop.f32.mrb[18].mxu1 }
 0x11c   : > { %v868_v4 = vadd.f32 %v2957_v2, %v3299_v8  ;;  %v1124_v5 = vadd.f32 %v3021_v3, %v3299_v8  ;;  %v859_v6 = vpop.f32.mrb[19].mxu0  ;;  %v1115_v7 = vpop.f32.mrb[19].mxu1  ;;  %v1321_v11 = vmax.f32 %v865_v60, 0.0  ;;  %v1385_v12 = vmax.f32 %v1121_v61, 0.0 }
 0x11d   : > { %v860_v9 = vadd.f32 %v3299_v8, %v859_v6  ;;  %v1116_v10 = vadd.f32 %v3299_v8, %v1115_v7  ;;  %v1319_v15 = vmax.f32 %v857_v0, 0.0  ;;  %v1383_v16 = vmax.f32 %v1113_v1, 0.0 }
 0x11e   : > { %v1322_v13 = vmax.f32 %v868_v4, 0.0  ;;  %v1386_v14 = vmax.f32 %v1124_v5, 0.0 }
 0x11f   : > { %v1320_v17 = vmax.f32 %v860_v9, 0.0  ;;  %v1384_v18 = vmax.f32 %v1116_v10, 0.0 }
 0x120   : > { %v2515_v19 = vpack.c.bf16 %v1322_v13, %v1321_v11  ;;  %v2675_v20 = vpack.c.bf16 %v1386_v14, %v1385_v12 }
 0x121   : > { %v2510_v21 = vpack.c.bf16 %v1320_v17, %v1319_v15  ;;  %v2670_v22 = vpack.c.bf16 %v1384_v18, %v1383_v16  ;;  %v2960_v23 = vpop.f32.mrb[20].mxu0  ;;  %v3024_v24 = vpop.f32.mrb[20].mxu1 }
 0x122   : > { %2795 = vst [vmem:[%s3314_s13 + $0x48] sm:$0xff] %v2515_v19   ;;  %2827 = vst [vmem:[%s3314_s13 + $0x148] sm:$0xff] %v2675_v20   ;;  %v881_v25 = vadd.f32 %v2960_v23, %v3299_v8  ;;  %v1137_v26 = vadd.f32 %v3024_v24, %v3299_v8  ;;  %v872_v27 = vpop.f32.mrb[21].mxu0  ;;  %v1128_v28 = vpop.f32.mrb[21].mxu1 }
 0x123   : > { %2794 = vst [vmem:[%s3314_s13 + $0x40] sm:$0xff] %v2510_v21   ;;  %2826 = vst [vmem:[%s3314_s13 + $0x140] sm:$0xff] %v2670_v22   ;;  %v873_v29 = vadd.f32 %v3299_v8, %v872_v27  ;;  %v1129_v30 = vadd.f32 %v3299_v8, %v1128_v28  ;;  %v2961_v31 = vpop.f32.mrb[22].mxu0  ;;  %v3025_v32 = vpop.f32.mrb[22].mxu1 }
 0x124   : > { %v884_v33 = vadd.f32 %v2961_v31, %v3299_v8  ;;  %v1140_v34 = vadd.f32 %v3025_v32, %v3299_v8  ;;  %v875_v35 = vpop.f32.mrb[23].mxu0  ;;  %v1131_v36 = vpop.f32.mrb[23].mxu1  ;;  %v1325_v39 = vmax.f32 %v881_v25, 0.0  ;;  %v1389_v40 = vmax.f32 %v1137_v26, 0.0 }
 0x125   : > { %v876_v37 = vadd.f32 %v3299_v8, %v875_v35  ;;  %v1132_v38 = vadd.f32 %v3299_v8, %v1131_v36  ;;  %v1323_v43 = vmax.f32 %v873_v29, 0.0  ;;  %v1387_v44 = vmax.f32 %v1129_v30, 0.0 }
 0x126   : > { %v1326_v41 = vmax.f32 %v884_v33, 0.0  ;;  %v1390_v42 = vmax.f32 %v1140_v34, 0.0 }
 0x127   : > { %v1324_v45 = vmax.f32 %v876_v37, 0.0  ;;  %v1388_v46 = vmax.f32 %v1132_v38, 0.0 }
 0x128   : > { %v2525_v47 = vpack.c.bf16 %v1326_v41, %v1325_v39  ;;  %v2685_v48 = vpack.c.bf16 %v1390_v42, %v1389_v40 }
 0x129   : > { %v2520_v49 = vpack.c.bf16 %v1324_v45, %v1323_v43  ;;  %v2680_v50 = vpack.c.bf16 %v1388_v46, %v1387_v44  ;;  %v2964_v51 = vpop.f32.mrb[24].mxu0  ;;  %v3028_v52 = vpop.f32.mrb[24].mxu1 }
 0x12a   : > { %2797 = vst [vmem:[%s3314_s13 + $0x58] sm:$0xff] %v2525_v47   ;;  %2829 = vst [vmem:[%s3314_s13 + $0x158] sm:$0xff] %v2685_v48   ;;  %v897_v53 = vadd.f32 %v2964_v51, %v3299_v8  ;;  %v1153_v54 = vadd.f32 %v3028_v52, %v3299_v8  ;;  %v888_v55 = vpop.f32.mrb[25].mxu0  ;;  %v1144_v56 = vpop.f32.mrb[25].mxu1 }
 0x12b   : > { %2796 = vst [vmem:[%s3314_s13 + $0x50] sm:$0xff] %v2520_v49   ;;  %2828 = vst [vmem:[%s3314_s13 + $0x150] sm:$0xff] %v2680_v50   ;;  %v889_v57 = vadd.f32 %v3299_v8, %v888_v55  ;;  %v1145_v58 = vadd.f32 %v3299_v8, %v1144_v56  ;;  %v2965_v59 = vpop.f32.mrb[26].mxu0  ;;  %v3029_v60 = vpop.f32.mrb[26].mxu1 }
 0x12c   : > { %v900_v61 = vadd.f32 %v2965_v59, %v3299_v8  ;;  %v1156_v62 = vadd.f32 %v3029_v60, %v3299_v8  ;;  %v891_v63 = vpop.f32.mrb[27].mxu0  ;;  %v1147_v0 = vpop.f32.mrb[27].mxu1  ;;  %v1329_v3 = vmax.f32 %v897_v53, 0.0  ;;  %v1393_v4 = vmax.f32 %v1153_v54, 0.0 }
 0x12d   : > { %v892_v1 = vadd.f32 %v3299_v8, %v891_v63  ;;  %v1148_v2 = vadd.f32 %v3299_v8, %v1147_v0  ;;  %v1327_v7 = vmax.f32 %v889_v57, 0.0  ;;  %v1391_v9 = vmax.f32 %v1145_v58, 0.0 }
 0x12e   : > { %v1330_v5 = vmax.f32 %v900_v61, 0.0  ;;  %v1394_v6 = vmax.f32 %v1156_v62, 0.0 }
 0x12f   : > { %v1328_v10 = vmax.f32 %v892_v1, 0.0  ;;  %v1392_v11 = vmax.f32 %v1148_v2, 0.0 }
 0x130   : > { %v2535_v12 = vpack.c.bf16 %v1330_v5, %v1329_v3  ;;  %v2695_v13 = vpack.c.bf16 %v1394_v6, %v1393_v4 }
 0x131   : > { %v2530_v14 = vpack.c.bf16 %v1328_v10, %v1327_v7  ;;  %v2690_v15 = vpack.c.bf16 %v1392_v11, %v1391_v9  ;;  %v2968_v16 = vpop.f32.mrb[28].mxu0  ;;  %v3032_v17 = vpop.f32.mrb[28].mxu1 }
 0x132   : > { %2799 = vst [vmem:[%s3314_s13 + $0x68] sm:$0xff] %v2535_v12   ;;  %2831 = vst [vmem:[%s3314_s13 + $0x168] sm:$0xff] %v2695_v13   ;;  %v913_v18 = vadd.f32 %v2968_v16, %v3299_v8  ;;  %v1169_v19 = vadd.f32 %v3032_v17, %v3299_v8  ;;  %v904_v20 = vpop.f32.mrb[29].mxu0  ;;  %v1160_v21 = vpop.f32.mrb[29].mxu1 }
 0x133   : > { %2798 = vst [vmem:[%s3314_s13 + $0x60] sm:$0xff] %v2530_v14   ;;  %2830 = vst [vmem:[%s3314_s13 + $0x160] sm:$0xff] %v2690_v15   ;;  %v905_v22 = vadd.f32 %v3299_v8, %v904_v20  ;;  %v1161_v23 = vadd.f32 %v3299_v8, %v1160_v21  ;;  %v2969_v24 = vpop.f32.mrb[30].mxu0  ;;  %v3033_v25 = vpop.f32.mrb[30].mxu1 }
 0x134   : > { %v916_v26 = vadd.f32 %v2969_v24, %v3299_v8  ;;  %v1172_v27 = vadd.f32 %v3033_v25, %v3299_v8  ;;  %v907_v28 = vpop.f32.mrb[31].mxu0  ;;  %v1163_v29 = vpop.f32.mrb[31].mxu1  ;;  %v1333_v32 = vmax.f32 %v913_v18, 0.0  ;;  %v1397_v33 = vmax.f32 %v1169_v19, 0.0 }
 0x135   : > { %v908_v30 = vadd.f32 %v3299_v8, %v907_v28  ;;  %v1164_v31 = vadd.f32 %v3299_v8, %v1163_v29  ;;  %v1331_v36 = vmax.f32 %v905_v22, 0.0  ;;  %v1395_v37 = vmax.f32 %v1161_v23, 0.0 }
 0x136   : > { %v1334_v34 = vmax.f32 %v916_v26, 0.0  ;;  %v1398_v35 = vmax.f32 %v1172_v27, 0.0 }
 0x137   : > { %v1332_v38 = vmax.f32 %v908_v30, 0.0  ;;  %v1396_v39 = vmax.f32 %v1164_v31, 0.0 }
 0x138   : > { %v2545_v40 = vpack.c.bf16 %v1334_v34, %v1333_v32  ;;  %v2705_v41 = vpack.c.bf16 %v1398_v35, %v1397_v33 }
 0x139   : > { %v2540_v42 = vpack.c.bf16 %v1332_v38, %v1331_v36  ;;  %v2700_v43 = vpack.c.bf16 %v1396_v39, %v1395_v37  ;;  %v2972_v44 = vpop.f32.mrb[32].mxu0  ;;  %v3036_v45 = vpop.f32.mrb[32].mxu1 }
 0x13a   : > { %2801 = vst [vmem:[%s3314_s13 + $0x78] sm:$0xff] %v2545_v40   ;;  %2833 = vst [vmem:[%s3314_s13 + $0x178] sm:$0xff] %v2705_v41   ;;  %v929_v46 = vadd.f32 %v2972_v44, %v3299_v8  ;;  %v1185_v47 = vadd.f32 %v3036_v45, %v3299_v8  ;;  %v920_v48 = vpop.f32.mrb[33].mxu0  ;;  %v1176_v49 = vpop.f32.mrb[33].mxu1 }
 0x13b   : > { %2800 = vst [vmem:[%s3314_s13 + $0x70] sm:$0xff] %v2540_v42   ;;  %2832 = vst [vmem:[%s3314_s13 + $0x170] sm:$0xff] %v2700_v43   ;;  %v921_v50 = vadd.f32 %v3299_v8, %v920_v48  ;;  %v1177_v51 = vadd.f32 %v3299_v8, %v1176_v49  ;;  %v2973_v52 = vpop.f32.mrb[34].mxu0  ;;  %v3037_v53 = vpop.f32.mrb[34].mxu1 }
 0x13c   : > { %v932_v54 = vadd.f32 %v2973_v52, %v3299_v8  ;;  %v1188_v55 = vadd.f32 %v3037_v53, %v3299_v8  ;;  %v923_v56 = vpop.f32.mrb[35].mxu0  ;;  %v1179_v57 = vpop.f32.mrb[35].mxu1  ;;  %v1337_v60 = vmax.f32 %v929_v46, 0.0  ;;  %v1401_v61 = vmax.f32 %v1185_v47, 0.0 }
 0x13d   : > { %v924_v58 = vadd.f32 %v3299_v8, %v923_v56  ;;  %v1180_v59 = vadd.f32 %v3299_v8, %v1179_v57  ;;  %v1335_v0 = vmax.f32 %v921_v50, 0.0  ;;  %v1399_v1 = vmax.f32 %v1177_v51, 0.0 }
 0x13e   : > { %v1338_v62 = vmax.f32 %v932_v54, 0.0  ;;  %v1402_v63 = vmax.f32 %v1188_v55, 0.0 }
 0x13f   : > { %v1336_v2 = vmax.f32 %v924_v58, 0.0  ;;  %v1400_v3 = vmax.f32 %v1180_v59, 0.0 }
 0x140   : > { %v2555_v4 = vpack.c.bf16 %v1338_v62, %v1337_v60  ;;  %v2715_v5 = vpack.c.bf16 %v1402_v63, %v1401_v61 }
 0x141   : > { %v2550_v6 = vpack.c.bf16 %v1336_v2, %v1335_v0  ;;  %v2710_v7 = vpack.c.bf16 %v1400_v3, %v1399_v1  ;;  %v2976_v9 = vpop.f32.mrb[36].mxu0  ;;  %v3040_v10 = vpop.f32.mrb[36].mxu1 }
 0x142   : > { %2803 = vst [vmem:[%s3314_s13 + $0x88] sm:$0xff] %v2555_v4   ;;  %2835 = vst [vmem:[%s3314_s13 + $0x188] sm:$0xff] %v2715_v5   ;;  %v945_v11 = vadd.f32 %v2976_v9, %v3299_v8  ;;  %v1201_v12 = vadd.f32 %v3040_v10, %v3299_v8  ;;  %v936_v13 = vpop.f32.mrb[37].mxu0  ;;  %v1192_v14 = vpop.f32.mrb[37].mxu1 }
 0x143   : > { %2802 = vst [vmem:[%s3314_s13 + $0x80] sm:$0xff] %v2550_v6   ;;  %2834 = vst [vmem:[%s3314_s13 + $0x180] sm:$0xff] %v2710_v7   ;;  %v937_v15 = vadd.f32 %v3299_v8, %v936_v13  ;;  %v1193_v16 = vadd.f32 %v3299_v8, %v1192_v14  ;;  %v2977_v17 = vpop.f32.mrb[38].mxu0  ;;  %v3041_v18 = vpop.f32.mrb[38].mxu1 }
 0x144   : > { %v948_v19 = vadd.f32 %v2977_v17, %v3299_v8  ;;  %v1204_v20 = vadd.f32 %v3041_v18, %v3299_v8  ;;  %v939_v21 = vpop.f32.mrb[39].mxu0  ;;  %v1195_v22 = vpop.f32.mrb[39].mxu1  ;;  %v1341_v25 = vmax.f32 %v945_v11, 0.0  ;;  %v1405_v26 = vmax.f32 %v1201_v12, 0.0 }
 0x145   : > { %v940_v23 = vadd.f32 %v3299_v8, %v939_v21  ;;  %v1196_v24 = vadd.f32 %v3299_v8, %v1195_v22  ;;  %v1339_v29 = vmax.f32 %v937_v15, 0.0  ;;  %v1403_v30 = vmax.f32 %v1193_v16, 0.0 }
 0x146   : > { %v1342_v27 = vmax.f32 %v948_v19, 0.0  ;;  %v1406_v28 = vmax.f32 %v1204_v20, 0.0 }
 0x147   : > { %v1340_v31 = vmax.f32 %v940_v23, 0.0  ;;  %v1404_v32 = vmax.f32 %v1196_v24, 0.0 }
 0x148   : > { %v2565_v33 = vpack.c.bf16 %v1342_v27, %v1341_v25  ;;  %v2725_v34 = vpack.c.bf16 %v1406_v28, %v1405_v26 }
 0x149   : > { %v2560_v35 = vpack.c.bf16 %v1340_v31, %v1339_v29  ;;  %v2720_v36 = vpack.c.bf16 %v1404_v32, %v1403_v30  ;;  %v2980_v37 = vpop.f32.mrb[40].mxu0  ;;  %v3044_v38 = vpop.f32.mrb[40].mxu1 }
 0x14a   : > { %2805 = vst [vmem:[%s3314_s13 + $0x98] sm:$0xff] %v2565_v33   ;;  %2837 = vst [vmem:[%s3314_s13 + $0x198] sm:$0xff] %v2725_v34   ;;  %v961_v39 = vadd.f32 %v2980_v37, %v3299_v8  ;;  %v1217_v40 = vadd.f32 %v3044_v38, %v3299_v8  ;;  %v952_v41 = vpop.f32.mrb[41].mxu0  ;;  %v1208_v42 = vpop.f32.mrb[41].mxu1 }
 0x14b   : > { %2804 = vst [vmem:[%s3314_s13 + $0x90] sm:$0xff] %v2560_v35   ;;  %2836 = vst [vmem:[%s3314_s13 + $0x190] sm:$0xff] %v2720_v36   ;;  %v953_v43 = vadd.f32 %v3299_v8, %v952_v41  ;;  %v1209_v44 = vadd.f32 %v3299_v8, %v1208_v42  ;;  %v2981_v45 = vpop.f32.mrb[42].mxu0  ;;  %v3045_v46 = vpop.f32.mrb[42].mxu1 }
 0x14c   : > { %v964_v47 = vadd.f32 %v2981_v45, %v3299_v8  ;;  %v1220_v48 = vadd.f32 %v3045_v46, %v3299_v8  ;;  %v955_v49 = vpop.f32.mrb[43].mxu0  ;;  %v1211_v50 = vpop.f32.mrb[43].mxu1  ;;  %v1345_v53 = vmax.f32 %v961_v39, 0.0  ;;  %v1409_v54 = vmax.f32 %v1217_v40, 0.0 }
 0x14d   : > { %v956_v51 = vadd.f32 %v3299_v8, %v955_v49  ;;  %v1212_v52 = vadd.f32 %v3299_v8, %v1211_v50  ;;  %v1343_v57 = vmax.f32 %v953_v43, 0.0  ;;  %v1407_v58 = vmax.f32 %v1209_v44, 0.0 }
 0x14e   : > { %v1346_v55 = vmax.f32 %v964_v47, 0.0  ;;  %v1410_v56 = vmax.f32 %v1220_v48, 0.0 }
 0x14f   : > { %v1344_v59 = vmax.f32 %v956_v51, 0.0  ;;  %v1408_v60 = vmax.f32 %v1212_v52, 0.0 }
 0x150   : > { %v2575_v61 = vpack.c.bf16 %v1346_v55, %v1345_v53  ;;  %v2735_v62 = vpack.c.bf16 %v1410_v56, %v1409_v54 }
 0x151   : > { %v2570_v63 = vpack.c.bf16 %v1344_v59, %v1343_v57  ;;  %v2730_v0 = vpack.c.bf16 %v1408_v60, %v1407_v58  ;;  %v2984_v1 = vpop.f32.mrb[44].mxu0  ;;  %v3048_v2 = vpop.f32.mrb[44].mxu1 }
 0x152   : > { %2807 = vst [vmem:[%s3314_s13 + $0xa8] sm:$0xff] %v2575_v61   ;;  %2839 = vst [vmem:[%s3314_s13 + $0x1a8] sm:$0xff] %v2735_v62   ;;  %v977_v3 = vadd.f32 %v2984_v1, %v3299_v8  ;;  %v1233_v4 = vadd.f32 %v3048_v2, %v3299_v8  ;;  %v968_v5 = vpop.f32.mrb[45].mxu0  ;;  %v1224_v6 = vpop.f32.mrb[45].mxu1 }
 0x153   : > { %2806 = vst [vmem:[%s3314_s13 + $0xa0] sm:$0xff] %v2570_v63   ;;  %2838 = vst [vmem:[%s3314_s13 + $0x1a0] sm:$0xff] %v2730_v0   ;;  %v969_v7 = vadd.f32 %v3299_v8, %v968_v5  ;;  %v1225_v9 = vadd.f32 %v3299_v8, %v1224_v6  ;;  %v2985_v10 = vpop.f32.mrb[46].mxu0  ;;  %v3049_v11 = vpop.f32.mrb[46].mxu1 }
 0x154   : > { %v980_v12 = vadd.f32 %v2985_v10, %v3299_v8  ;;  %v1236_v13 = vadd.f32 %v3049_v11, %v3299_v8  ;;  %v971_v14 = vpop.f32.mrb[47].mxu0  ;;  %v1227_v15 = vpop.f32.mrb[47].mxu1  ;;  %v1349_v18 = vmax.f32 %v977_v3, 0.0  ;;  %v1413_v19 = vmax.f32 %v1233_v4, 0.0 }
 0x155   : > { %v972_v16 = vadd.f32 %v3299_v8, %v971_v14  ;;  %v1228_v17 = vadd.f32 %v3299_v8, %v1227_v15  ;;  %v1347_v22 = vmax.f32 %v969_v7, 0.0  ;;  %v1411_v23 = vmax.f32 %v1225_v9, 0.0 }
 0x156   : > { %v1350_v20 = vmax.f32 %v980_v12, 0.0  ;;  %v1414_v21 = vmax.f32 %v1236_v13, 0.0 }
 0x157   : > { %v1348_v24 = vmax.f32 %v972_v16, 0.0  ;;  %v1412_v25 = vmax.f32 %v1228_v17, 0.0 }
 0x158   : > { %v2585_v26 = vpack.c.bf16 %v1350_v20, %v1349_v18  ;;  %v2745_v27 = vpack.c.bf16 %v1414_v21, %v1413_v19 }
 0x159   : > { %v2580_v28 = vpack.c.bf16 %v1348_v24, %v1347_v22  ;;  %v2740_v29 = vpack.c.bf16 %v1412_v25, %v1411_v23  ;;  %v2988_v30 = vpop.f32.mrb[48].mxu0  ;;  %v3052_v31 = vpop.f32.mrb[48].mxu1 }
 0x15a   : > { %2809 = vst [vmem:[%s3314_s13 + $0xb8] sm:$0xff] %v2585_v26   ;;  %2841 = vst [vmem:[%s3314_s13 + $0x1b8] sm:$0xff] %v2745_v27   ;;  %v993_v32 = vadd.f32 %v2988_v30, %v3299_v8  ;;  %v1249_v33 = vadd.f32 %v3052_v31, %v3299_v8  ;;  %v984_v34 = vpop.f32.mrb[49].mxu0  ;;  %v1240_v35 = vpop.f32.mrb[49].mxu1 }
 0x15b   : > { %2808 = vst [vmem:[%s3314_s13 + $0xb0] sm:$0xff] %v2580_v28   ;;  %2840 = vst [vmem:[%s3314_s13 + $0x1b0] sm:$0xff] %v2740_v29   ;;  %v985_v36 = vadd.f32 %v3299_v8, %v984_v34  ;;  %v1241_v37 = vadd.f32 %v3299_v8, %v1240_v35  ;;  %v2989_v38 = vpop.f32.mrb[50].mxu0  ;;  %v3053_v39 = vpop.f32.mrb[50].mxu1 }
 0x15c   : > { %v996_v40 = vadd.f32 %v2989_v38, %v3299_v8  ;;  %v1252_v41 = vadd.f32 %v3053_v39, %v3299_v8  ;;  %v987_v42 = vpop.f32.mrb[51].mxu0  ;;  %v1243_v43 = vpop.f32.mrb[51].mxu1  ;;  %v1353_v46 = vmax.f32 %v993_v32, 0.0  ;;  %v1417_v47 = vmax.f32 %v1249_v33, 0.0 }
 0x15d   : > { %v988_v44 = vadd.f32 %v3299_v8, %v987_v42  ;;  %v1244_v45 = vadd.f32 %v3299_v8, %v1243_v43  ;;  %v1351_v50 = vmax.f32 %v985_v36, 0.0  ;;  %v1415_v51 = vmax.f32 %v1241_v37, 0.0 }
 0x15e   : > { %v1354_v48 = vmax.f32 %v996_v40, 0.0  ;;  %v1418_v49 = vmax.f32 %v1252_v41, 0.0 }
 0x15f   : > { %v1352_v52 = vmax.f32 %v988_v44, 0.0  ;;  %v1416_v53 = vmax.f32 %v1244_v45, 0.0 }
 0x160   : > { %v2595_v54 = vpack.c.bf16 %v1354_v48, %v1353_v46  ;;  %v2755_v55 = vpack.c.bf16 %v1418_v49, %v1417_v47 }
 0x161   : > { %v2590_v56 = vpack.c.bf16 %v1352_v52, %v1351_v50  ;;  %v2750_v57 = vpack.c.bf16 %v1416_v53, %v1415_v51  ;;  %v2992_v58 = vpop.f32.mrb[52].mxu0  ;;  %v3056_v59 = vpop.f32.mrb[52].mxu1 }
 0x162   : > { %2811 = vst [vmem:[%s3314_s13 + $0xc8] sm:$0xff] %v2595_v54   ;;  %2843 = vst [vmem:[%s3314_s13 + $0x1c8] sm:$0xff] %v2755_v55   ;;  %v1009_v60 = vadd.f32 %v2992_v58, %v3299_v8  ;;  %v1265_v61 = vadd.f32 %v3056_v59, %v3299_v8  ;;  %v1000_v62 = vpop.f32.mrb[53].mxu0  ;;  %v1256_v63 = vpop.f32.mrb[53].mxu1 }
 0x163   : > { %2810 = vst [vmem:[%s3314_s13 + $0xc0] sm:$0xff] %v2590_v56   ;;  %2842 = vst [vmem:[%s3314_s13 + $0x1c0] sm:$0xff] %v2750_v57   ;;  %v1001_v0 = vadd.f32 %v3299_v8, %v1000_v62  ;;  %v1257_v1 = vadd.f32 %v3299_v8, %v1256_v63  ;;  %v2993_v2 = vpop.f32.mrb[54].mxu0  ;;  %v3057_v3 = vpop.f32.mrb[54].mxu1 }
 0x164   : > { %v1012_v4 = vadd.f32 %v2993_v2, %v3299_v8  ;;  %v1268_v5 = vadd.f32 %v3057_v3, %v3299_v8  ;;  %v1003_v6 = vpop.f32.mrb[55].mxu0  ;;  %v1259_v7 = vpop.f32.mrb[55].mxu1  ;;  %v1357_v11 = vmax.f32 %v1009_v60, 0.0  ;;  %v1421_v12 = vmax.f32 %v1265_v61, 0.0 }
 0x165   : > { %v1004_v9 = vadd.f32 %v3299_v8, %v1003_v6  ;;  %v1260_v10 = vadd.f32 %v3299_v8, %v1259_v7  ;;  %v1355_v15 = vmax.f32 %v1001_v0, 0.0  ;;  %v1419_v16 = vmax.f32 %v1257_v1, 0.0 }
 0x166   : > { %v1358_v13 = vmax.f32 %v1012_v4, 0.0  ;;  %v1422_v14 = vmax.f32 %v1268_v5, 0.0 }
 0x167   : > { %v1356_v17 = vmax.f32 %v1004_v9, 0.0  ;;  %v1420_v18 = vmax.f32 %v1260_v10, 0.0 }
 0x168   : > { %v2605_v19 = vpack.c.bf16 %v1358_v13, %v1357_v11  ;;  %v2765_v20 = vpack.c.bf16 %v1422_v14, %v1421_v12 }
 0x169   : > { %v2600_v21 = vpack.c.bf16 %v1356_v17, %v1355_v15  ;;  %v2760_v22 = vpack.c.bf16 %v1420_v18, %v1419_v16  ;;  %v2996_v23 = vpop.f32.mrb[56].mxu0  ;;  %v3060_v24 = vpop.f32.mrb[56].mxu1 }
 0x16a   : > { %2813 = vst [vmem:[%s3314_s13 + $0xd8] sm:$0xff] %v2605_v19   ;;  %2845 = vst [vmem:[%s3314_s13 + $0x1d8] sm:$0xff] %v2765_v20   ;;  %v1025_v25 = vadd.f32 %v2996_v23, %v3299_v8  ;;  %v1281_v26 = vadd.f32 %v3060_v24, %v3299_v8  ;;  %v1016_v27 = vpop.f32.mrb[57].mxu0  ;;  %v1272_v28 = vpop.f32.mrb[57].mxu1 }
 0x16b   : > { %2812 = vst [vmem:[%s3314_s13 + $0xd0] sm:$0xff] %v2600_v21   ;;  %2844 = vst [vmem:[%s3314_s13 + $0x1d0] sm:$0xff] %v2760_v22   ;;  %v1017_v29 = vadd.f32 %v3299_v8, %v1016_v27  ;;  %v1273_v30 = vadd.f32 %v3299_v8, %v1272_v28  ;;  %v2997_v31 = vpop.f32.mrb[58].mxu0  ;;  %v3061_v32 = vpop.f32.mrb[58].mxu1 }
 0x16c   : > { %v1028_v33 = vadd.f32 %v2997_v31, %v3299_v8  ;;  %v1284_v34 = vadd.f32 %v3061_v32, %v3299_v8  ;;  %v1019_v35 = vpop.f32.mrb[59].mxu0  ;;  %v1275_v36 = vpop.f32.mrb[59].mxu1  ;;  %v1361_v39 = vmax.f32 %v1025_v25, 0.0  ;;  %v1425_v40 = vmax.f32 %v1281_v26, 0.0 }
 0x16d   : > { %v1020_v37 = vadd.f32 %v3299_v8, %v1019_v35  ;;  %v1276_v38 = vadd.f32 %v3299_v8, %v1275_v36  ;;  %v1359_v43 = vmax.f32 %v1017_v29, 0.0  ;;  %v1423_v44 = vmax.f32 %v1273_v30, 0.0 }
 0x16e   : > { %v1362_v41 = vmax.f32 %v1028_v33, 0.0  ;;  %v1426_v42 = vmax.f32 %v1284_v34, 0.0 }
 0x16f   : > { %v1360_v45 = vmax.f32 %v1020_v37, 0.0  ;;  %v1424_v46 = vmax.f32 %v1276_v38, 0.0 }
 0x170   : > { %v2615_v47 = vpack.c.bf16 %v1362_v41, %v1361_v39  ;;  %v2775_v48 = vpack.c.bf16 %v1426_v42, %v1425_v40 }
 0x171   : > { %v2610_v49 = vpack.c.bf16 %v1360_v45, %v1359_v43  ;;  %v2770_v50 = vpack.c.bf16 %v1424_v46, %v1423_v44  ;;  %v3000_v51 = vpop.f32.mrb[60].mxu0  ;;  %v3064_v52 = vpop.f32.mrb[60].mxu1 }
 0x172   : > { %2815 = vst [vmem:[%s3314_s13 + $0xe8] sm:$0xff] %v2615_v47   ;;  %2847 = vst [vmem:[%s3314_s13 + $0x1e8] sm:$0xff] %v2775_v48   ;;  %v1041_v53 = vadd.f32 %v3000_v51, %v3299_v8  ;;  %v1297_v54 = vadd.f32 %v3064_v52, %v3299_v8  ;;  %v1032_v55 = vpop.f32.mrb[61].mxu0  ;;  %v1288_v56 = vpop.f32.mrb[61].mxu1 }
 0x173   : > { %2814 = vst [vmem:[%s3314_s13 + $0xe0] sm:$0xff] %v2610_v49   ;;  %2846 = vst [vmem:[%s3314_s13 + $0x1e0] sm:$0xff] %v2770_v50   ;;  %v1033_v57 = vadd.f32 %v3299_v8, %v1032_v55  ;;  %v1289_v58 = vadd.f32 %v3299_v8, %v1288_v56  ;;  %v3001_v59 = vpop.f32.mrb[62].mxu0  ;;  %v3065_v60 = vpop.f32.mrb[62].mxu1 }
 0x174   : > { %v1044_v61 = vadd.f32 %v3001_v59, %v3299_v8  ;;  %v1300_v62 = vadd.f32 %v3065_v60, %v3299_v8  ;;  %v1035_v63 = vpop.f32.mrb[63].mxu0  ;;  %v1291_v0 = vpop.f32.mrb[63].mxu1  ;;  %v1365_v3 = vmax.f32 %v1041_v53, 0.0  ;;  %v1429_v4 = vmax.f32 %v1297_v54, 0.0 }
 0x175   : > { %v1036_v1 = vadd.f32 %v3299_v8, %v1035_v63  ;;  %v1292_v2 = vadd.f32 %v3299_v8, %v1291_v0  ;;  %v1363_v7 = vmax.f32 %v1033_v57, 0.0  ;;  %v1427_v9 = vmax.f32 %v1289_v58, 0.0 }
 0x176   : > { %v1366_v5 = vmax.f32 %v1044_v61, 0.0  ;;  %v1430_v6 = vmax.f32 %v1300_v62, 0.0 }
 0x177   : > { %v1364_v10 = vmax.f32 %v1036_v1, 0.0  ;;  %v1428_v11 = vmax.f32 %v1292_v2, 0.0 }
 0x178   : > { %v2625_v12 = vpack.c.bf16 %v1366_v5, %v1365_v3  ;;  %v2785_v13 = vpack.c.bf16 %v1430_v6, %v1429_v4 }
 0x179   : > { %v2620_v14 = vpack.c.bf16 %v1364_v10, %v1363_v7  ;;  %v2780_v15 = vpack.c.bf16 %v1428_v11, %v1427_v9 }
 0x17a   : > { %2817 = vst [vmem:[%s3314_s13 + $0xf8] sm:$0xff] %v2625_v12   ;;  %2849 = vst [vmem:[%s3314_s13 + $0x1f8] sm:$0xff] %v2785_v13  }
 0x17b   : > { %2816 = vst [vmem:[%s3314_s13 + $0xf0] sm:$0xff] %v2620_v14   ;;  %2848 = vst [vmem:[%s3314_s13 + $0x1f0] sm:$0xff] %v2780_v15  }
 0x17c PF: > { %s13_s12 = sadd.s32 1, %s3168_s12  }
 0x17d   : > { %p10_p4 = scmp.ge.s32.totalorder %s13_s12, 4  }
 0x17f   :  { %12 = sbr.rel (!%p10_p4) target bundleno = 1 (0x1), region = 62 }

// kernel: feature_extractor_forward.10
= control target key start
LH: loop header
LB: loop body
LE: loop exit
PB: predicated region body
PF: predicated region fallthrough
CT: control target
= control target key end

     0   :  { %v2846_v0 = vmov 0   ;;  %s3543_s1 = inlined_call_operand.vmem [shape: bf16[512,128], index: 1, kind: input, shape index: {}]   ;;  %s3544_s0 = inlined_call_operand.vmem [shape: bf16[512,512], index: 0, kind: input, shape index: {}]   ;;  %s3545_s2 = inlined_call_operand.vmem [shape: f32[1,128], index: 2, kind: input, shape index: {}]   ;;  %s3546_s3 = inlined_call_operand.vmem [shape: bf16[512,128], index: 3, kind: output, shape index: {}]  }
   0x1   :  { %1046 = vmatprep.subr.bf16.mxu1 %v2846_v0  ;;  %1335 = vmatprep.subr.bf16.mxu0 %v2846_v0  ;;  %v2621_v1 = vld [vmem:[%s3543_s1] sm:$0xff]   ;;  %v2623_v3 = vld [vmem:[%s3543_s1 + $0x8] sm:$0xff]   ;;  %v2625_v5 = vld [vmem:[%s3543_s1 + $0x10] sm:$0xff]  }
   0x2   :  { %v2622_v2 = vld [vmem:[%s3543_s1 + $0x80] sm:$0xff]   ;;  %1047 = vmatpush1.bf16.msra.mxu1 %v2621_v1  ;;  %v2624_v4 = vld [vmem:[%s3543_s1 + $0x88] sm:$0xff]   ;;  %v2626_v6 = vld [vmem:[%s3543_s1 + $0x90] sm:$0xff]  }
   0x3   :  { %1336 = vmatpush1.bf16.msra.mxu0 %v2622_v2  ;;  %1048 = vmatprep.subr.bf16.mxu1 %v2846_v0  ;;  %v2627_v7 = vld [vmem:[%s3543_s1 + $0x18] sm:$0xff]   ;;  %v2629_v9 = vld [vmem:[%s3543_s1 + $0x20] sm:$0xff]   ;;  %v2631_v11 = vld [vmem:[%s3543_s1 + $0x28] sm:$0xff]  }
   0x4   :  { %1337 = vmatprep.subr.bf16.mxu0 %v2846_v0  ;;  %v2628_v8 = vld [vmem:[%s3543_s1 + $0x98] sm:$0xff]   ;;  %v2630_v10 = vld [vmem:[%s3543_s1 + $0xa0] sm:$0xff]   ;;  %v2632_v12 = vld [vmem:[%s3543_s1 + $0xa8] sm:$0xff]  }
   0x5   :  { %v2633_v13 = vld [vmem:[%s3543_s1 + $0x30] sm:$0xff]   ;;  %v2635_v15 = vld [vmem:[%s3543_s1 + $0x38] sm:$0xff]   ;;  %v2637_v17 = vld [vmem:[%s3543_s1 + $0x40] sm:$0xff]  }
   0x6   :  { %1049 = vmatpush1.bf16.msra.mxu1 %v2623_v3  ;;  %v2634_v14 = vld [vmem:[%s3543_s1 + $0xb0] sm:$0xff]   ;;  %v2636_v16 = vld [vmem:[%s3543_s1 + $0xb8] sm:$0xff]   ;;  %v2638_v18 = vld [vmem:[%s3543_s1 + $0xc0] sm:$0xff]  }
   0x7   :  { %1338 = vmatpush1.bf16.msra.mxu0 %v2624_v4  ;;  %1050 = vmatprep.subr.bf16.mxu1 %v2846_v0  ;;  %v2655_v19 = vld [vmem:[%s3544_s0 + $0x4] ss:$16 sps:$4 sm:$0xff]   ;;  %v2639_v20 = vld [vmem:[%s3543_s1 + $0x48] sm:$0xff]   ;;  %v2643_v25 = vld [vmem:[%s3543_s1 + $0x58] sm:$0xff]  }
   0x8   :  { %1339 = vmatprep.subr.bf16.mxu0 %v2846_v0  ;;  %v2658_v21 = vld [vmem:[%s3544_s0 + $0xc] ss:$16 sps:$4 sm:$0xff]   ;;  %1078 = vmatprep.mubr.bf16.mxu1 %v2655_v19  ;;  %v2641_v23 = vld [vmem:[%s3543_s1 + $0x50] sm:$0xff]   ;;  %v2645_v27 = vld [vmem:[%s3543_s1 + $0x60] sm:$0xff]  }
   0x9   :  { %v2640_v22 = vld [vmem:[%s3543_s1 + $0xc8] sm:$0xff]   ;;  %1367 = vmatprep.mubr.bf16.mxu0 %v2658_v21  ;;  %v2642_v24 = vld [vmem:[%s3543_s1 + $0xd0] sm:$0xff]   ;;  %v2644_v26 = vld [vmem:[%s3543_s1 + $0xd8] sm:$0xff]  }
   0xa   :  { %1051 = vmatpush1.bf16.msra.mxu1 %v2625_v5  ;;  %v2646_v28 = vld [vmem:[%s3543_s1 + $0xe0] sm:$0xff]   ;;  %v2647_v29 = vld [vmem:[%s3543_s1 + $0x68] sm:$0xff]   ;;  %v2649_v31 = vld [vmem:[%s3543_s1 + $0x70] sm:$0xff]  }
   0xb   :  { %1340 = vmatpush1.bf16.msra.mxu0 %v2626_v6  ;;  %1052 = vmatprep.subr.bf16.mxu1 %v2846_v0  ;;  %v2648_v30 = vld [vmem:[%s3543_s1 + $0xe8] sm:$0xff]   ;;  %v2650_v32 = vld [vmem:[%s3543_s1 + $0xf0] sm:$0xff]   ;;  %v2651_v33 = vld [vmem:[%s3543_s1 + $0x78] sm:$0xff]  }
   0xc   :  { %1341 = vmatprep.subr.bf16.mxu0 %v2846_v0  ;;  %v2652_v34 = vld [vmem:[%s3543_s1 + $0xf8] sm:$0xff]   ;;  %v2653_v35 = vld [vmem:[%s3544_s0] ss:$16 sps:$4 sm:$0xff]   ;;  %v2659_v37 = vld [vmem:[%s3544_s0 + $0x24] ss:$16 sps:$4 sm:$0xff]  }
   0xd   :  { %v2656_v36 = vld [vmem:[%s3544_s0 + $0x8] ss:$16 sps:$4 sm:$0xff]   ;;  %v2661_v38 = vld [vmem:[%s3544_s0 + $0x2c] ss:$16 sps:$4 sm:$0xff]   ;;  %v2663_v39 = vld [vmem:[%s3544_s0 + $0x20] ss:$16 sps:$4 sm:$0xff]  }
   0xe   :  { %1053 = vmatpush1.bf16.msra.mxu1 %v2627_v7  ;;  %v2664_v40 = vld [vmem:[%s3544_s0 + $0x28] ss:$16 sps:$4 sm:$0xff]   ;;  %v2665_v41 = vld [vmem:[%s3544_s0 + $0x44] ss:$16 sps:$4 sm:$0xff]   ;;  %v2667_v42 = vld [vmem:[%s3544_s0 + $0x4c] ss:$16 sps:$4 sm:$0xff]  }
   0xf   :  { %1342 = vmatpush1.bf16.msra.mxu0 %v2628_v8  ;;  %1054 = vmatprep.subr.bf16.mxu1 %v2846_v0  ;;  %v2669_v43 = vld [vmem:[%s3544_s0 + $0x40] ss:$16 sps:$4 sm:$0xff]   ;;  %v2670_v44 = vld [vmem:[%s3544_s0 + $0x48] ss:$16 sps:$4 sm:$0xff]   ;;  %v2671_v45 = vld [vmem:[%s3544_s0 + $0x64] ss:$16 sps:$4 sm:$0xff]  }
  0x10   :  { %1343 = vmatprep.subr.bf16.mxu0 %v2846_v0  ;;  %v2673_v46 = vld [vmem:[%s3544_s0 + $0x6c] ss:$16 sps:$4 sm:$0xff]   ;;  %v2675_v47 = vld [vmem:[%s3544_s0 + $0x60] ss:$16 sps:$4 sm:$0xff]   ;;  %v2676_v48 = vld [vmem:[%s3544_s0 + $0x68] ss:$16 sps:$4 sm:$0xff]  }
  0x11   :  { %v2677_v49 = vld [vmem:[%s3544_s0 + $0x84] ss:$16 sps:$4 sm:$0xff]   ;;  %v2679_v50 = vld [vmem:[%s3544_s0 + $0x8c] ss:$16 sps:$4 sm:$0xff]   ;;  %v2681_v51 = vld [vmem:[%s3544_s0 + $0x80] ss:$16 sps:$4 sm:$0xff]  }
  0x12   :  { %1055 = vmatpush1.bf16.msra.mxu1 %v2629_v9  ;;  %v2682_v52 = vld [vmem:[%s3544_s0 + $0x88] ss:$16 sps:$4 sm:$0xff]   ;;  %v2683_v53 = vld [vmem:[%s3544_s0 + $0xa4] ss:$16 sps:$4 sm:$0xff]   ;;  %v2685_v54 = vld [vmem:[%s3544_s0 + $0xac] ss:$16 sps:$4 sm:$0xff]  }
  0x13   :  { %1344 = vmatpush1.bf16.msra.mxu0 %v2630_v10  ;;  %1056 = vmatprep.subr.bf16.mxu1 %v2846_v0  ;;  %v2687_v55 = vld [vmem:[%s3544_s0 + $0xa0] ss:$16 sps:$4 sm:$0xff]   ;;  %v2688_v56 = vld [vmem:[%s3544_s0 + $0xa8] ss:$16 sps:$4 sm:$0xff]   ;;  %v2689_v57 = vld [vmem:[%s3544_s0 + $0xc4] ss:$16 sps:$4 sm:$0xff]  }
  0x14   :  { %1345 = vmatprep.subr.bf16.mxu0 %v2846_v0  ;;  %v2691_v58 = vld [vmem:[%s3544_s0 + $0xcc] ss:$16 sps:$4 sm:$0xff]   ;;  %v2693_v59 = vld [vmem:[%s3544_s0 + $0xc0] ss:$16 sps:$4 sm:$0xff]   ;;  %v2694_v60 = vld [vmem:[%s3544_s0 + $0xc8] ss:$16 sps:$4 sm:$0xff]  }
  0x15   :  { %v2695_v61 = vld [vmem:[%s3544_s0 + $0xe4] ss:$16 sps:$4 sm:$0xff]   ;;  %v2697_v62 = vld [vmem:[%s3544_s0 + $0xec] ss:$16 sps:$4 sm:$0xff]   ;;  %v2699_v63 = vld [vmem:[%s3544_s0 + $0xe0] ss:$16 sps:$4 sm:$0xff]  }
  0x16   :  { %1057 = vmatpush1.bf16.msra.mxu1 %v2631_v11  ;;  %v2701_v1 = vld [vmem:[%s3544_s0 + $0x104] ss:$16 sps:$4 sm:$0xff]   ;;  %v2703_v2 = vld [vmem:[%s3544_s0 + $0x10c] ss:$16 sps:$4 sm:$0xff]   ;;  %v2705_v3 = vld [vmem:[%s3544_s0 + $0x100] ss:$16 sps:$4 sm:$0xff]  }
  0x17   :  { %1346 = vmatpush1.bf16.msra.mxu0 %v2632_v12  ;;  %1058 = vmatprep.subr.bf16.mxu1 %v2846_v0  ;;  %v2706_v4 = vld [vmem:[%s3544_s0 + $0x108] ss:$16 sps:$4 sm:$0xff]   ;;  %v2707_v5 = vld [vmem:[%s3544_s0 + $0x124] ss:$16 sps:$4 sm:$0xff]   ;;  %v2709_v6 = vld [vmem:[%s3544_s0 + $0x12c] ss:$16 sps:$4 sm:$0xff]  }
  0x18   :  { %1347 = vmatprep.subr.bf16.mxu0 %v2846_v0  ;;  %v2711_v7 = vld [vmem:[%s3544_s0 + $0x120] ss:$16 sps:$4 sm:$0xff]   ;;  %v2712_v8 = vld [vmem:[%s3544_s0 + $0x128] ss:$16 sps:$4 sm:$0xff]   ;;  %v2713_v9 = vld [vmem:[%s3544_s0 + $0x144] ss:$16 sps:$4 sm:$0xff]  }
  0x19   :  { %v2715_v10 = vld [vmem:[%s3544_s0 + $0x14c] ss:$16 sps:$4 sm:$0xff]   ;;  %v2717_v11 = vld [vmem:[%s3544_s0 + $0x140] ss:$16 sps:$4 sm:$0xff]   ;;  %v2718_v12 = vld [vmem:[%s3544_s0 + $0x148] ss:$16 sps:$4 sm:$0xff]  }
  0x1a   :  { %1059 = vmatpush1.bf16.msra.mxu1 %v2633_v13  ;;  %v2719_v13 = vld [vmem:[%s3544_s0 + $0x164] ss:$16 sps:$4 sm:$0xff]   ;;  %v2729_v19 = vld [vmem:[%s3544_s0 + $0x180] ss:$16 sps:$4 sm:$0xff]  }
  0x1b   :  { %1348 = vmatpush1.bf16.msra.mxu0 %v2634_v14  ;;  %1060 = vmatprep.subr.bf16.mxu1 %v2846_v0  ;;  %v2721_v14 = vld [vmem:[%s3544_s0 + $0x16c] ss:$16 sps:$4 sm:$0xff]   ;;  %v2731_v21 = vld [vmem:[%s3544_s0 + $0x1a4] ss:$16 sps:$4 sm:$0xff]  }
  0x1c   :  { %1349 = vmatprep.subr.bf16.mxu0 %v2846_v0 }
  0x1e   :  { %1061 = vmatpush1.bf16.msra.mxu1 %v2635_v15  ;;  %v2723_v15 = vld [vmem:[%s3544_s0 + $0x160] ss:$16 sps:$4 sm:$0xff]  }
  0x1f   :  { %1350 = vmatpush1.bf16.msra.mxu0 %v2636_v16  ;;  %1062 = vmatprep.subr.bf16.mxu1 %v2846_v0  ;;  %v2724_v16 = vld [vmem:[%s3544_s0 + $0x168] ss:$16 sps:$4 sm:$0xff]  }
  0x20   :  { %1351 = vmatprep.subr.bf16.mxu0 %v2846_v0 }
  0x22   :  { %1063 = vmatpush1.bf16.msra.mxu1 %v2637_v17  ;;  %v2725_v17 = vld [vmem:[%s3544_s0 + $0x184] ss:$16 sps:$4 sm:$0xff]  }
  0x23   :  { %1352 = vmatpush1.bf16.msra.mxu0 %v2638_v18  ;;  %1064 = vmatprep.subr.bf16.mxu1 %v2846_v0  ;;  %v2727_v18 = vld [vmem:[%s3544_s0 + $0x18c] ss:$16 sps:$4 sm:$0xff]  }
  0x24   :  { %1353 = vmatprep.subr.bf16.mxu0 %v2846_v0 }
  0x26   :  { %1065 = vmatpush1.bf16.msra.mxu1 %v2639_v20  ;;  %v2730_v20 = vld [vmem:[%s3544_s0 + $0x188] ss:$16 sps:$4 sm:$0xff]  }
  0x27   :  { %1354 = vmatpush1.bf16.msra.mxu0 %v2640_v22  ;;  %1066 = vmatprep.subr.bf16.mxu1 %v2846_v0  ;;  %v2733_v22 = vld [vmem:[%s3544_s0 + $0x1ac] ss:$16 sps:$4 sm:$0xff]  }
  0x28   :  { %1355 = vmatprep.subr.bf16.mxu0 %v2846_v0 }
  0x2a   :  { %1067 = vmatpush1.bf16.msra.mxu1 %v2641_v23  ;;  %v2735_v23 = vld [vmem:[%s3544_s0 + $0x1a0] ss:$16 sps:$4 sm:$0xff]  }
  0x2b   :  { %1356 = vmatpush1.bf16.msra.mxu0 %v2642_v24  ;;  %1068 = vmatprep.subr.bf16.mxu1 %v2846_v0  ;;  %v2736_v24 = vld [vmem:[%s3544_s0 + $0x1a8] ss:$16 sps:$4 sm:$0xff]  }
  0x2c   :  { %1357 = vmatprep.subr.bf16.mxu0 %v2846_v0 }
  0x2e   :  { %1069 = vmatpush1.bf16.msra.mxu1 %v2643_v25  ;;  %v2737_v25 = vld [vmem:[%s3544_s0 + $0x1c4] ss:$16 sps:$4 sm:$0xff]  }
  0x2f   :  { %1358 = vmatpush1.bf16.msra.mxu0 %v2644_v26  ;;  %1070 = vmatprep.subr.bf16.mxu1 %v2846_v0  ;;  %v2739_v26 = vld [vmem:[%s3544_s0 + $0x1cc] ss:$16 sps:$4 sm:$0xff]  }
  0x30   :  { %1359 = vmatprep.subr.bf16.mxu0 %v2846_v0 }
  0x32   :  { %1071 = vmatpush1.bf16.msra.mxu1 %v2645_v27  ;;  %v2741_v27 = vld [vmem:[%s3544_s0 + $0x1c0] ss:$16 sps:$4 sm:$0xff]  }
  0x33   :  { %1360 = vmatpush1.bf16.msra.mxu0 %v2646_v28  ;;  %1072 = vmatprep.subr.bf16.mxu1 %v2846_v0  ;;  %v2742_v28 = vld [vmem:[%s3544_s0 + $0x1c8] ss:$16 sps:$4 sm:$0xff]  }
  0x34   :  { %1361 = vmatprep.subr.bf16.mxu0 %v2846_v0 }
  0x36   :  { %1073 = vmatpush1.bf16.msra.mxu1 %v2647_v29  ;;  %v2743_v29 = vld [vmem:[%s3544_s0 + $0x1e4] ss:$16 sps:$4 sm:$0xff]  }
  0x37   :  { %1362 = vmatpush1.bf16.msra.mxu0 %v2648_v30  ;;  %1074 = vmatprep.subr.bf16.mxu1 %v2846_v0  ;;  %v2745_v30 = vld [vmem:[%s3544_s0 + $0x1ec] ss:$16 sps:$4 sm:$0xff]  }
  0x38   :  { %1363 = vmatprep.subr.bf16.mxu0 %v2846_v0 }
  0x3a   :  { %1075 = vmatpush1.bf16.msra.mxu1 %v2649_v31  ;;  %v2747_v31 = vld [vmem:[%s3544_s0 + $0x1e0] ss:$16 sps:$4 sm:$0xff]  }
  0x3b   :  { %1364 = vmatpush1.bf16.msra.mxu0 %v2650_v32  ;;  %1076 = vmatprep.subr.bf16.mxu1 %v2846_v0  ;;  %v2748_v32 = vld [vmem:[%s3544_s0 + $0x1e8] ss:$16 sps:$4 sm:$0xff]  }
  0x3c   :  { %1365 = vmatprep.subr.bf16.mxu0 %v2846_v0  ;;  %v2700_v0 = vld [vmem:[%s3544_s0 + $0xe8] ss:$16 sps:$4 sm:$0xff]  }
  0x3e   :  { %1077 = vmatpush1.bf16.msra.mxu1 %v2651_v33  ;;  %v2749_v33 = vld [vmem:[%s3544_s0 + $0x204] ss:$16 sps:$4 sm:$0xff]  }
  0x3f   :  { %1366 = vmatpush1.bf16.msra.mxu0 %v2652_v34  ;;  %v2751_v34 = vld [vmem:[%s3544_s0 + $0x20c] ss:$16 sps:$4 sm:$0xff]  }
  0x41   :  { %1079 = vmatmul.mubr.bf16.vlgmr.msra.gmra.mrb[0].mxu1 %v2653_v35  ;;  %v2753_v35 = vld [vmem:[%s3544_s0 + $0x200] ss:$16 sps:$4 sm:$0xff]  }
  0x42   :  { %1368 = vmatmul.mubr.bf16.vlgmr.msra.gmra.mrb[0].mxu0 %v2656_v36  ;;  %1086 = vmatprep.mubr.bf16.mxu1 %v2659_v37  ;;  %v2754_v36 = vld [vmem:[%s3544_s0 + $0x208] ss:$16 sps:$4 sm:$0xff]   ;;  %v2755_v37 = vld [vmem:[%s3544_s0 + $0x224] ss:$16 sps:$4 sm:$0xff]  }
  0x43   :  { %1375 = vmatprep.mubr.bf16.mxu0 %v2661_v38  ;;  %v2757_v38 = vld [vmem:[%s3544_s0 + $0x22c] ss:$16 sps:$4 sm:$0xff]  }
  0x49   :  { %1087 = vmatmul.mubr.bf16.gmra.mrb[4].mxu1 %v2663_v39  ;;  %v2759_v39 = vld [vmem:[%s3544_s0 + $0x220] ss:$16 sps:$4 sm:$0xff]  }
  0x4a   :  { %1376 = vmatmul.mubr.bf16.gmra.mrb[4].mxu0 %v2664_v40  ;;  %1094 = vmatprep.mubr.bf16.mxu1 %v2665_v41  ;;  %v2760_v40 = vld [vmem:[%s3544_s0 + $0x228] ss:$16 sps:$4 sm:$0xff]   ;;  %v2761_v41 = vld [vmem:[%s3544_s0 + $0x244] ss:$16 sps:$4 sm:$0xff]  }
  0x4b   :  { %1383 = vmatprep.mubr.bf16.mxu0 %v2667_v42  ;;  %v2763_v42 = vld [vmem:[%s3544_s0 + $0x24c] ss:$16 sps:$4 sm:$0xff]  }
  0x51   :  { %1095 = vmatmul.mubr.bf16.gmra.mrb[8].mxu1 %v2669_v43  ;;  %v2765_v43 = vld [vmem:[%s3544_s0 + $0x240] ss:$16 sps:$4 sm:$0xff]  }
  0x52   :  { %1384 = vmatmul.mubr.bf16.gmra.mrb[8].mxu0 %v2670_v44  ;;  %1102 = vmatprep.mubr.bf16.mxu1 %v2671_v45  ;;  %v2766_v44 = vld [vmem:[%s3544_s0 + $0x248] ss:$16 sps:$4 sm:$0xff]   ;;  %v2767_v45 = vld [vmem:[%s3544_s0 + $0x264] ss:$16 sps:$4 sm:$0xff]  }
  0x53   :  { %1391 = vmatprep.mubr.bf16.mxu0 %v2673_v46  ;;  %v2769_v46 = vld [vmem:[%s3544_s0 + $0x26c] ss:$16 sps:$4 sm:$0xff]  }
  0x59   :  { %1103 = vmatmul.mubr.bf16.gmra.mrb[12].mxu1 %v2675_v47  ;;  %v2771_v47 = vld [vmem:[%s3544_s0 + $0x260] ss:$16 sps:$4 sm:$0xff]  }
  0x5a   :  { %1392 = vmatmul.mubr.bf16.gmra.mrb[12].mxu0 %v2676_v48  ;;  %1110 = vmatprep.mubr.bf16.mxu1 %v2677_v49  ;;  %v2772_v48 = vld [vmem:[%s3544_s0 + $0x268] ss:$16 sps:$4 sm:$0xff]   ;;  %v2773_v49 = vld [vmem:[%s3544_s0 + $0x284] ss:$16 sps:$4 sm:$0xff]  }
  0x5b   :  { %1399 = vmatprep.mubr.bf16.mxu0 %v2679_v50  ;;  %v2775_v50 = vld [vmem:[%s3544_s0 + $0x28c] ss:$16 sps:$4 sm:$0xff]  }
  0x61   :  { %1111 = vmatmul.mubr.bf16.gmra.mrb[16].mxu1 %v2681_v51  ;;  %v2777_v51 = vld [vmem:[%s3544_s0 + $0x280] ss:$16 sps:$4 sm:$0xff]  }
  0x62   :  { %1400 = vmatmul.mubr.bf16.gmra.mrb[16].mxu0 %v2682_v52  ;;  %1118 = vmatprep.mubr.bf16.mxu1 %v2683_v53  ;;  %v2778_v52 = vld [vmem:[%s3544_s0 + $0x288] ss:$16 sps:$4 sm:$0xff]   ;;  %v2779_v53 = vld [vmem:[%s3544_s0 + $0x2a4] ss:$16 sps:$4 sm:$0xff]  }
  0x63   :  { %1407 = vmatprep.mubr.bf16.mxu0 %v2685_v54  ;;  %v2781_v54 = vld [vmem:[%s3544_s0 + $0x2ac] ss:$16 sps:$4 sm:$0xff]  }
  0x69   :  { %1119 = vmatmul.mubr.bf16.gmra.mrb[20].mxu1 %v2687_v55  ;;  %v2783_v55 = vld [vmem:[%s3544_s0 + $0x2a0] ss:$16 sps:$4 sm:$0xff]  }
  0x6a   :  { %1408 = vmatmul.mubr.bf16.gmra.mrb[20].mxu0 %v2688_v56  ;;  %1126 = vmatprep.mubr.bf16.mxu1 %v2689_v57  ;;  %v2784_v56 = vld [vmem:[%s3544_s0 + $0x2a8] ss:$16 sps:$4 sm:$0xff]   ;;  %v2785_v57 = vld [vmem:[%s3544_s0 + $0x2c4] ss:$16 sps:$4 sm:$0xff]  }
  0x6b   :  { %1415 = vmatprep.mubr.bf16.mxu0 %v2691_v58  ;;  %v2787_v58 = vld [vmem:[%s3544_s0 + $0x2cc] ss:$16 sps:$4 sm:$0xff]  }
  0x71   :  { %1127 = vmatmul.mubr.bf16.gmra.mrb[24].mxu1 %v2693_v59  ;;  %v2789_v59 = vld [vmem:[%s3544_s0 + $0x2c0] ss:$16 sps:$4 sm:$0xff]  }
  0x72   :  { %1416 = vmatmul.mubr.bf16.gmra.mrb[24].mxu0 %v2694_v60  ;;  %1134 = vmatprep.mubr.bf16.mxu1 %v2695_v61  ;;  %v2790_v60 = vld [vmem:[%s3544_s0 + $0x2c8] ss:$16 sps:$4 sm:$0xff]   ;;  %v2791_v61 = vld [vmem:[%s3544_s0 + $0x2e4] ss:$16 sps:$4 sm:$0xff]  }
  0x73   :  { %1423 = vmatprep.mubr.bf16.mxu0 %v2697_v62  ;;  %v2793_v62 = vld [vmem:[%s3544_s0 + $0x2ec] ss:$16 sps:$4 sm:$0xff]  }
  0x79   :  { %1135 = vmatmul.mubr.bf16.gmra.mrb[28].mxu1 %v2699_v63  ;;  %v2795_v63 = vld [vmem:[%s3544_s0 + $0x2e0] ss:$16 sps:$4 sm:$0xff]  }
  0x7a   :  { %1424 = vmatmul.mubr.bf16.gmra.mrb[28].mxu0 %v2700_v0  ;;  %1142 = vmatprep.mubr.bf16.mxu1 %v2701_v1  ;;  %v2796_v0 = vld [vmem:[%s3544_s0 + $0x2e8] ss:$16 sps:$4 sm:$0xff]   ;;  %v2797_v1 = vld [vmem:[%s3544_s0 + $0x304] ss:$16 sps:$4 sm:$0xff]  }
  0x7b   :  { %1431 = vmatprep.mubr.bf16.mxu0 %v2703_v2  ;;  %v2799_v2 = vld [vmem:[%s3544_s0 + $0x30c] ss:$16 sps:$4 sm:$0xff]  }
  0x81   :  { %1143 = vmatmul.mubr.bf16.gmra.mrb[32].mxu1 %v2705_v3  ;;  %v2801_v3 = vld [vmem:[%s3544_s0 + $0x300] ss:$16 sps:$4 sm:$0xff]  }
  0x82   :  { %1432 = vmatmul.mubr.bf16.gmra.mrb[32].mxu0 %v2706_v4  ;;  %1150 = vmatprep.mubr.bf16.mxu1 %v2707_v5  ;;  %v2802_v4 = vld [vmem:[%s3544_s0 + $0x308] ss:$16 sps:$4 sm:$0xff]   ;;  %v2803_v5 = vld [vmem:[%s3544_s0 + $0x324] ss:$16 sps:$4 sm:$0xff]  }
  0x83   :  { %1439 = vmatprep.mubr.bf16.mxu0 %v2709_v6  ;;  %v2805_v6 = vld [vmem:[%s3544_s0 + $0x32c] ss:$16 sps:$4 sm:$0xff]  }
  0x89   :  { %1151 = vmatmul.mubr.bf16.gmra.mrb[36].mxu1 %v2711_v7  ;;  %v2807_v7 = vld [vmem:[%s3544_s0 + $0x320] ss:$16 sps:$4 sm:$0xff]  }
  0x8a   :  { %1440 = vmatmul.mubr.bf16.gmra.mrb[36].mxu0 %v2712_v8  ;;  %1158 = vmatprep.mubr.bf16.mxu1 %v2713_v9  ;;  %v2808_v8 = vld [vmem:[%s3544_s0 + $0x328] ss:$16 sps:$4 sm:$0xff]   ;;  %v2809_v9 = vld [vmem:[%s3544_s0 + $0x344] ss:$16 sps:$4 sm:$0xff]  }
  0x8b   :  { %1447 = vmatprep.mubr.bf16.mxu0 %v2715_v10  ;;  %v2811_v10 = vld [vmem:[%s3544_s0 + $0x34c] ss:$16 sps:$4 sm:$0xff]  }
  0x91   :  { %1159 = vmatmul.mubr.bf16.gmra.mrb[40].mxu1 %v2717_v11  ;;  %v2813_v11 = vld [vmem:[%s3544_s0 + $0x340] ss:$16 sps:$4 sm:$0xff]  }
  0x92   :  { %1448 = vmatmul.mubr.bf16.gmra.mrb[40].mxu0 %v2718_v12  ;;  %1166 = vmatprep.mubr.bf16.mxu1 %v2719_v13  ;;  %v2814_v12 = vld [vmem:[%s3544_s0 + $0x348] ss:$16 sps:$4 sm:$0xff]   ;;  %v2815_v13 = vld [vmem:[%s3544_s0 + $0x364] ss:$16 sps:$4 sm:$0xff]  }
  0x93   :  { %1455 = vmatprep.mubr.bf16.mxu0 %v2721_v14  ;;  %v2817_v14 = vld [vmem:[%s3544_s0 + $0x36c] ss:$16 sps:$4 sm:$0xff]  }
  0x99   :  { %1167 = vmatmul.mubr.bf16.gmra.mrb[44].mxu1 %v2723_v15  ;;  %v3328_v15 = vld [vmem:[%s3545_s2] ss:$0 sm:$0xff] }
  0x9a   :  { %1456 = vmatmul.mubr.bf16.gmra.mrb[44].mxu0 %v2724_v16  ;;  %1174 = vmatprep.mubr.bf16.mxu1 %v2725_v17 }
  0x9b   :  { %1463 = vmatprep.mubr.bf16.mxu0 %v2727_v18 }
  0xa1   :  { %1175 = vmatmul.mubr.bf16.gmra.mrb[48].mxu1 %v2729_v19 }
  0xa2   :  { %1464 = vmatmul.mubr.bf16.gmra.mrb[48].mxu0 %v2730_v20  ;;  %1182 = vmatprep.mubr.bf16.mxu1 %v2731_v21  ;;  %v2819_v20 = vld [vmem:[%s3544_s0 + $0x360] ss:$16 sps:$4 sm:$0xff]  }
  0xa3   :  { %1471 = vmatprep.mubr.bf16.mxu0 %v2733_v22 }
  0xa9   :  { %1183 = vmatmul.mubr.bf16.gmra.mrb[52].mxu1 %v2735_v23  ;;  %v2820_v23 = vld [vmem:[%s3544_s0 + $0x368] ss:$16 sps:$4 sm:$0xff]  }
  0xaa   :  { %1472 = vmatmul.mubr.bf16.gmra.mrb[52].mxu0 %v2736_v24  ;;  %1190 = vmatprep.mubr.bf16.mxu1 %v2737_v25  ;;  %v2821_v24 = vld [vmem:[%s3544_s0 + $0x384] ss:$16 sps:$4 sm:$0xff]  }
  0xab   :  { %1479 = vmatprep.mubr.bf16.mxu0 %v2739_v26 }
  0xb1   :  { %1191 = vmatmul.mubr.bf16.gmra.mrb[56].mxu1 %v2741_v27 }
  0xb2   :  { %1480 = vmatmul.mubr.bf16.gmra.mrb[56].mxu0 %v2742_v28  ;;  %1198 = vmatprep.mubr.bf16.mxu1 %v2743_v29  ;;  %v2823_v29 = vld [vmem:[%s3544_s0 + $0x38c] ss:$16 sps:$4 sm:$0xff]  }
  0xb3   :  { %1487 = vmatprep.mubr.bf16.mxu0 %v2745_v30 }
  0xb9   :  { %1199 = vmatmul.mubr.bf16.gmra.mrb[60].mxu1 %v2747_v31 }
  0xba   :  { %1488 = vmatmul.mubr.bf16.gmra.mrb[60].mxu0 %v2748_v32  ;;  %1206 = vmatprep.mubr.bf16.mxu1 %v2749_v33 }
  0xbb   :  { %1495 = vmatprep.mubr.bf16.mxu0 %v2751_v34 }
  0xc1   :  { %1207 = vmatmul.mubr.bf16.gmra.mrb[64].mxu1 %v2753_v35 }
  0xc2   :  { %1496 = vmatmul.mubr.bf16.gmra.mrb[64].mxu0 %v2754_v36  ;;  %1214 = vmatprep.mubr.bf16.mxu1 %v2755_v37 }
  0xc3   :  { %1503 = vmatprep.mubr.bf16.mxu0 %v2757_v38 }
  0xc9   :  { %1215 = vmatmul.mubr.bf16.gmra.mrb[68].mxu1 %v2759_v39  ;;  %v2825_v39 = vld [vmem:[%s3544_s0 + $0x380] ss:$16 sps:$4 sm:$0xff]  }
  0xca   :  { %1504 = vmatmul.mubr.bf16.gmra.mrb[68].mxu0 %v2760_v40  ;;  %1222 = vmatprep.mubr.bf16.mxu1 %v2761_v41 }
  0xcb   :  { %1511 = vmatprep.mubr.bf16.mxu0 %v2763_v42  ;;  %v2826_v42 = vld [vmem:[%s3544_s0 + $0x388] ss:$16 sps:$4 sm:$0xff]  }
  0xd1   :  { %1223 = vmatmul.mubr.bf16.gmra.mrb[72].mxu1 %v2765_v43  ;;  %v2827_v43 = vld [vmem:[%s3544_s0 + $0x3a4] ss:$16 sps:$4 sm:$0xff]  }
  0xd2   :  { %1512 = vmatmul.mubr.bf16.gmra.mrb[72].mxu0 %v2766_v44  ;;  %1230 = vmatprep.mubr.bf16.mxu1 %v2767_v45 }
  0xd3   :  { %1519 = vmatprep.mubr.bf16.mxu0 %v2769_v46 }
  0xd9   :  { %1231 = vmatmul.mubr.bf16.gmra.mrb[76].mxu1 %v2771_v47 }
  0xda   :  { %1520 = vmatmul.mubr.bf16.gmra.mrb[76].mxu0 %v2772_v48  ;;  %1238 = vmatprep.mubr.bf16.mxu1 %v2773_v49  ;;  %v2829_v48 = vld [vmem:[%s3544_s0 + $0x3ac] ss:$16 sps:$4 sm:$0xff]  }
  0xdb   :  { %1527 = vmatprep.mubr.bf16.mxu0 %v2775_v50 }
  0xe1   :  { %1239 = vmatmul.mubr.bf16.gmra.mrb[80].mxu1 %v2777_v51 }
  0xe2   :  { %1528 = vmatmul.mubr.bf16.gmra.mrb[80].mxu0 %v2778_v52  ;;  %1246 = vmatprep.mubr.bf16.mxu1 %v2779_v53 }
  0xe3   :  { %1535 = vmatprep.mubr.bf16.mxu0 %v2781_v54 }
  0xe9   :  { %1247 = vmatmul.mubr.bf16.gmra.mrb[84].mxu1 %v2783_v55 }
  0xea   :  { %1536 = vmatmul.mubr.bf16.gmra.mrb[84].mxu0 %v2784_v56  ;;  %1254 = vmatprep.mubr.bf16.mxu1 %v2785_v57 }
  0xeb   :  { %1543 = vmatprep.mubr.bf16.mxu0 %v2787_v58  ;;  %v2831_v58 = vld [vmem:[%s3544_s0 + $0x3a0] ss:$16 sps:$4 sm:$0xff]  }
  0xf1   :  { %1255 = vmatmul.mubr.bf16.gmra.mrb[88].mxu1 %v2789_v59 }
  0xf2   :  { %1544 = vmatmul.mubr.bf16.gmra.mrb[88].mxu0 %v2790_v60  ;;  %1262 = vmatprep.mubr.bf16.mxu1 %v2791_v61  ;;  %v2832_v61 = vld [vmem:[%s3544_s0 + $0x3a8] ss:$16 sps:$4 sm:$0xff]  }
  0xf3   :  { %1551 = vmatprep.mubr.bf16.mxu0 %v2793_v62  ;;  %v2833_v62 = vld [vmem:[%s3544_s0 + $0x3c4] ss:$16 sps:$4 sm:$0xff]  }
  0xf9   :  { %1263 = vmatmul.mubr.bf16.gmra.mrb[92].mxu1 %v2795_v63 }
  0xfa   :  { %1552 = vmatmul.mubr.bf16.gmra.mrb[92].mxu0 %v2796_v0  ;;  %1270 = vmatprep.mubr.bf16.mxu1 %v2797_v1 }
  0xfb   :  { %1559 = vmatprep.mubr.bf16.mxu0 %v2799_v2 }
 0x101   :  { %1271 = vmatmul.mubr.bf16.gmra.mrb[96].mxu1 %v2801_v3  ;;  %v2835_v3 = vld [vmem:[%s3544_s0 + $0x3cc] ss:$16 sps:$4 sm:$0xff]  }
 0x102   :  { %1560 = vmatmul.mubr.bf16.gmra.mrb[96].mxu0 %v2802_v4  ;;  %1278 = vmatprep.mubr.bf16.mxu1 %v2803_v5 }
 0x103   :  { %1567 = vmatprep.mubr.bf16.mxu0 %v2805_v6 }
 0x109   :  { %1279 = vmatmul.mubr.bf16.gmra.mrb[100].mxu1 %v2807_v7 }
 0x10a   :  { %1568 = vmatmul.mubr.bf16.gmra.mrb[100].mxu0 %v2808_v8  ;;  %1286 = vmatprep.mubr.bf16.mxu1 %v2809_v9 }
 0x10b   :  { %1575 = vmatprep.mubr.bf16.mxu0 %v2811_v10 }
 0x111   :  { %1287 = vmatmul.mubr.bf16.gmra.mrb[104].mxu1 %v2813_v11 }
 0x112   :  { %1576 = vmatmul.mubr.bf16.gmra.mrb[104].mxu0 %v2814_v12  ;;  %1294 = vmatprep.mubr.bf16.mxu1 %v2815_v13  ;;  %v2837_v13 = vld [vmem:[%s3544_s0 + $0x3c0] ss:$16 sps:$4 sm:$0xff]  }
 0x113   :  { %1583 = vmatprep.mubr.bf16.mxu0 %v2817_v14 }
 0x114   :  { %v1080_v16 = vpop.f32.mrb[0].mxu1 }
 0x115   :  { %v1081_v17 = vadd.f32 %v3328_v15, %v1080_v16  ;;  %v1369_v18 = vpop.f32.mrb[0].mxu0  ;;  %v1082_v19 = vpop.f32.mrb[1].mxu1 }
 0x116   :  { %v1371_v21 = vpop.f32.mrb[1].mxu0  ;;  %v1083_v22 = vpop.f32.mrb[2].mxu1 }
 0x117   :  { %v1370_v25 = vadd.f32 %v1369_v18, %v1081_v17  ;;  %v1084_v26 = vadd.f32 %v3328_v15, %v1083_v22  ;;  %v1372_v27 = vpop.f32.mrb[2].mxu0  ;;  %v1085_v28 = vpop.f32.mrb[3].mxu1  ;;  %v2838_v17 = vld [vmem:[%s3544_s0 + $0x3c8] ss:$16 sps:$4 sm:$0xff]   ;;  %v2839_v18 = vld [vmem:[%s3544_s0 + $0x3e4] ss:$16 sps:$4 sm:$0xff]  }
 0x118   :  { %v1374_v30 = vpop.f32.mrb[3].mxu0 }
 0x119   :  { %v1373_v31 = vadd.f32 %v1372_v27, %v1084_v26  ;;  %1295 = vmatmul.mubr.bf16.gmra.mrb[108].mxu1 %v2819_v20  ;;  %v1624_v32 = vmax.f32 %v1370_v25, 0.0 }
 0x11a   :  { %1584 = vmatmul.mubr.bf16.gmra.mrb[108].mxu0 %v2820_v23  ;;  %1302 = vmatprep.mubr.bf16.mxu1 %v2821_v24  ;;  %v2841_v23 = vld [vmem:[%s3544_s0 + $0x3ec] ss:$16 sps:$4 sm:$0xff]  }
 0x11b   :  { %v1625_v33 = vmax.f32 %v1373_v31, 0.0  ;;  %1591 = vmatprep.mubr.bf16.mxu0 %v2823_v29 }
 0x11c   :  { %v1088_v34 = vpop.f32.mrb[4].mxu1 }
 0x11d   :  { %v2304_v35 = vpack.c.bf16 %v1625_v33, %v1624_v32  ;;  %v1089_v36 = vadd.f32 %v3328_v15, %v1088_v34  ;;  %v1377_v37 = vpop.f32.mrb[4].mxu0  ;;  %v1090_v38 = vpop.f32.mrb[5].mxu1  ;;  %v2843_v33 = vld [vmem:[%s3544_s0 + $0x3e0] ss:$16 sps:$4 sm:$0xff]  }
 0x11e   :  { %v1379_v40 = vpop.f32.mrb[5].mxu0  ;;  %v1091_v41 = vpop.f32.mrb[6].mxu1 }
 0x11f   :  { %2305 = vst [vmem:[%s3546_s3] sm:$0xff] %v2304_v35   ;;  %v1378_v44 = vadd.f32 %v1377_v37, %v1089_v36  ;;  %v1092_v45 = vadd.f32 %v3328_v15, %v1091_v41  ;;  %v1380_v46 = vpop.f32.mrb[6].mxu0  ;;  %v1093_v47 = vpop.f32.mrb[7].mxu1  ;;  %v2844_v36 = vld [vmem:[%s3544_s0 + $0x3e8] ss:$16 sps:$4 sm:$0xff]  }
 0x120   :  { %v1382_v49 = vpop.f32.mrb[7].mxu0 }
 0x121   :  { %v1381_v50 = vadd.f32 %v1380_v46, %v1092_v45  ;;  %1303 = vmatmul.mubr.bf16.gmra.mrb[112].mxu1 %v2825_v39  ;;  %v1626_v51 = vmax.f32 %v1378_v44, 0.0 }
 0x122   :  { %1592 = vmatmul.mubr.bf16.gmra.mrb[112].mxu0 %v2826_v42  ;;  %1310 = vmatprep.mubr.bf16.mxu1 %v2827_v43 }
 0x123   :  { %v1627_v52 = vmax.f32 %v1381_v50, 0.0  ;;  %1599 = vmatprep.mubr.bf16.mxu0 %v2829_v48 }
 0x124   :  { %v1096_v53 = vpop.f32.mrb[8].mxu1 }
 0x125   :  { %v2309_v54 = vpack.c.bf16 %v1627_v52, %v1626_v51  ;;  %v1097_v55 = vadd.f32 %v3328_v15, %v1096_v53  ;;  %v1385_v56 = vpop.f32.mrb[8].mxu0  ;;  %v1098_v57 = vpop.f32.mrb[9].mxu1 }
 0x126   :  { %v1387_v59 = vpop.f32.mrb[9].mxu0  ;;  %v1099_v60 = vpop.f32.mrb[10].mxu1 }
 0x127   :  { %2461 = vst [vmem:[%s3546_s3 + $0x8] sm:$0xff] %v2309_v54   ;;  %v1386_v63 = vadd.f32 %v1385_v56, %v1097_v55  ;;  %v1100_v0 = vadd.f32 %v3328_v15, %v1099_v60  ;;  %v1388_v1 = vpop.f32.mrb[10].mxu0  ;;  %v1101_v2 = vpop.f32.mrb[11].mxu1 }
 0x128   :  { %v1390_v4 = vpop.f32.mrb[11].mxu0 }
 0x129   :  { %v1389_v5 = vadd.f32 %v1388_v1, %v1100_v0  ;;  %1311 = vmatmul.mubr.bf16.gmra.mrb[116].mxu1 %v2831_v58  ;;  %v1628_v6 = vmax.f32 %v1386_v63, 0.0 }
 0x12a   :  { %1600 = vmatmul.mubr.bf16.gmra.mrb[116].mxu0 %v2832_v61  ;;  %1318 = vmatprep.mubr.bf16.mxu1 %v2833_v62 }
 0x12b   :  { %v1629_v7 = vmax.f32 %v1389_v5, 0.0  ;;  %1607 = vmatprep.mubr.bf16.mxu0 %v2835_v3 }
 0x12c   :  { %v1104_v8 = vpop.f32.mrb[12].mxu1 }
 0x12d   :  { %v2314_v9 = vpack.c.bf16 %v1629_v7, %v1628_v6  ;;  %v1105_v10 = vadd.f32 %v3328_v15, %v1104_v8  ;;  %v1393_v11 = vpop.f32.mrb[12].mxu0  ;;  %v1106_v12 = vpop.f32.mrb[13].mxu1 }
 0x12e   :  { %v1395_v14 = vpop.f32.mrb[13].mxu0  ;;  %v1107_v16 = vpop.f32.mrb[14].mxu1 }
 0x12f   :  { %2462 = vst [vmem:[%s3546_s3 + $0x10] sm:$0xff] %v2314_v9   ;;  %v1394_v19 = vadd.f32 %v1393_v11, %v1105_v10  ;;  %v1108_v20 = vadd.f32 %v3328_v15, %v1107_v16  ;;  %v1396_v21 = vpop.f32.mrb[14].mxu0  ;;  %v1109_v22 = vpop.f32.mrb[15].mxu1 }
 0x130   :  { %v1398_v24 = vpop.f32.mrb[15].mxu0 }
 0x131   :  { %v1397_v25 = vadd.f32 %v1396_v21, %v1108_v20  ;;  %1319 = vmatmul.mubr.bf16.gmra.mrb[120].mxu1 %v2837_v13  ;;  %v1630_v26 = vmax.f32 %v1394_v19, 0.0 }
 0x132   :  { %1608 = vmatmul.mubr.bf16.gmra.mrb[120].mxu0 %v2838_v17  ;;  %1326 = vmatprep.mubr.bf16.mxu1 %v2839_v18 }
 0x133   :  { %v1631_v27 = vmax.f32 %v1397_v25, 0.0  ;;  %1615 = vmatprep.mubr.bf16.mxu0 %v2841_v23 }
 0x134   :  { %v1112_v28 = vpop.f32.mrb[16].mxu1 }
 0x135   :  { %v2319_v29 = vpack.c.bf16 %v1631_v27, %v1630_v26  ;;  %v1113_v30 = vadd.f32 %v3328_v15, %v1112_v28  ;;  %v1401_v31 = vpop.f32.mrb[16].mxu0  ;;  %v1114_v32 = vpop.f32.mrb[17].mxu1 }
 0x136   :  { %v1403_v34 = vpop.f32.mrb[17].mxu0  ;;  %v1115_v35 = vpop.f32.mrb[18].mxu1 }
 0x137   :  { %2463 = vst [vmem:[%s3546_s3 + $0x18] sm:$0xff] %v2319_v29   ;;  %v1402_v37 = vadd.f32 %v1401_v31, %v1113_v30  ;;  %v1116_v38 = vadd.f32 %v3328_v15, %v1115_v35  ;;  %v1404_v39 = vpop.f32.mrb[18].mxu0  ;;  %v1117_v40 = vpop.f32.mrb[19].mxu1 }
 0x138   :  { %v1406_v41 = vpop.f32.mrb[19].mxu0 }
 0x139   :  { %v1405_v42 = vadd.f32 %v1404_v39, %v1116_v38  ;;  %1327 = vmatmul.mubr.bf16.gmra.mrb[124].mxu1 %v2843_v33  ;;  %v1632_v43 = vmax.f32 %v1402_v37, 0.0 }
 0x13a   :  { %1616 = vmatmul.mubr.bf16.gmra.mrb[124].mxu0 %v2844_v36 }
 0x13b   :  { %v1633_v44 = vmax.f32 %v1405_v42, 0.0 }
 0x13c   :  { %v1120_v45 = vpop.f32.mrb[20].mxu1 }
 0x13d   :  { %v2324_v46 = vpack.c.bf16 %v1633_v44, %v1632_v43  ;;  %v1121_v47 = vadd.f32 %v3328_v15, %v1120_v45  ;;  %v1409_v48 = vpop.f32.mrb[20].mxu0  ;;  %v1122_v49 = vpop.f32.mrb[21].mxu1 }
 0x13e   :  { %v1411_v50 = vpop.f32.mrb[21].mxu0  ;;  %v1123_v51 = vpop.f32.mrb[22].mxu1 }
 0x13f   :  { %2464 = vst [vmem:[%s3546_s3 + $0x20] sm:$0xff] %v2324_v46   ;;  %v1410_v52 = vadd.f32 %v1409_v48, %v1121_v47  ;;  %v1124_v53 = vadd.f32 %v3328_v15, %v1123_v51  ;;  %v1412_v54 = vpop.f32.mrb[22].mxu0  ;;  %v1125_v55 = vpop.f32.mrb[23].mxu1 }
 0x140   :  { %v1414_v56 = vpop.f32.mrb[23].mxu0 }
 0x141   :  { %v1413_v57 = vadd.f32 %v1412_v54, %v1124_v53  ;;  %v1634_v58 = vmax.f32 %v1410_v52, 0.0 }
 0x143   :  { %v1635_v59 = vmax.f32 %v1413_v57, 0.0 }
 0x144   :  { %v1128_v60 = vpop.f32.mrb[24].mxu1 }
 0x145   :  { %v2329_v61 = vpack.c.bf16 %v1635_v59, %v1634_v58  ;;  %v1129_v62 = vadd.f32 %v3328_v15, %v1128_v60  ;;  %v1417_v63 = vpop.f32.mrb[24].mxu0  ;;  %v1130_v0 = vpop.f32.mrb[25].mxu1 }
 0x146   :  { %v1419_v1 = vpop.f32.mrb[25].mxu0  ;;  %v1131_v2 = vpop.f32.mrb[26].mxu1 }
 0x147   :  { %2465 = vst [vmem:[%s3546_s3 + $0x28] sm:$0xff] %v2329_v61   ;;  %v1418_v3 = vadd.f32 %v1417_v63, %v1129_v62  ;;  %v1132_v4 = vadd.f32 %v3328_v15, %v1131_v2  ;;  %v1420_v5 = vpop.f32.mrb[26].mxu0  ;;  %v1133_v6 = vpop.f32.mrb[27].mxu1 }
 0x148   :  { %v1422_v7 = vpop.f32.mrb[27].mxu0 }
 0x149   :  { %v1421_v8 = vadd.f32 %v1420_v5, %v1132_v4  ;;  %v1636_v9 = vmax.f32 %v1418_v3, 0.0 }
 0x14b   :  { %v1637_v10 = vmax.f32 %v1421_v8, 0.0 }
 0x14c   :  { %v1136_v11 = vpop.f32.mrb[28].mxu1 }
 0x14d   :  { %v2334_v12 = vpack.c.bf16 %v1637_v10, %v1636_v9  ;;  %v1137_v13 = vadd.f32 %v3328_v15, %v1136_v11  ;;  %v1425_v14 = vpop.f32.mrb[28].mxu0  ;;  %v1138_v16 = vpop.f32.mrb[29].mxu1 }
 0x14e   :  { %v1427_v17 = vpop.f32.mrb[29].mxu0  ;;  %v1139_v18 = vpop.f32.mrb[30].mxu1 }
 0x14f   :  { %2466 = vst [vmem:[%s3546_s3 + $0x30] sm:$0xff] %v2334_v12   ;;  %v1426_v19 = vadd.f32 %v1425_v14, %v1137_v13  ;;  %v1140_v20 = vadd.f32 %v3328_v15, %v1139_v18  ;;  %v1428_v21 = vpop.f32.mrb[30].mxu0  ;;  %v1141_v22 = vpop.f32.mrb[31].mxu1 }
 0x150   :  { %v1430_v23 = vpop.f32.mrb[31].mxu0 }
 0x151   :  { %v1429_v24 = vadd.f32 %v1428_v21, %v1140_v20  ;;  %v1638_v25 = vmax.f32 %v1426_v19, 0.0 }
 0x153   :  { %v1639_v26 = vmax.f32 %v1429_v24, 0.0 }
 0x154   :  { %v1144_v27 = vpop.f32.mrb[32].mxu1 }
 0x155   :  { %v2339_v28 = vpack.c.bf16 %v1639_v26, %v1638_v25  ;;  %v1145_v29 = vadd.f32 %v3328_v15, %v1144_v27  ;;  %v1433_v30 = vpop.f32.mrb[32].mxu0  ;;  %v1146_v31 = vpop.f32.mrb[33].mxu1 }
 0x156   :  { %v1435_v32 = vpop.f32.mrb[33].mxu0  ;;  %v1147_v33 = vpop.f32.mrb[34].mxu1 }
 0x157   :  { %2467 = vst [vmem:[%s3546_s3 + $0x38] sm:$0xff] %v2339_v28   ;;  %v1434_v34 = vadd.f32 %v1433_v30, %v1145_v29  ;;  %v1148_v35 = vadd.f32 %v3328_v15, %v1147_v33  ;;  %v1436_v36 = vpop.f32.mrb[34].mxu0  ;;  %v1149_v37 = vpop.f32.mrb[35].mxu1 }
 0x158   :  { %v1438_v38 = vpop.f32.mrb[35].mxu0 }
 0x159   :  { %v1437_v39 = vadd.f32 %v1436_v36, %v1148_v35  ;;  %v1640_v40 = vmax.f32 %v1434_v34, 0.0 }
 0x15b   :  { %v1641_v41 = vmax.f32 %v1437_v39, 0.0 }
 0x15c   :  { %v1152_v42 = vpop.f32.mrb[36].mxu1 }
 0x15d   :  { %v2344_v43 = vpack.c.bf16 %v1641_v41, %v1640_v40  ;;  %v1153_v44 = vadd.f32 %v3328_v15, %v1152_v42  ;;  %v1441_v45 = vpop.f32.mrb[36].mxu0  ;;  %v1154_v46 = vpop.f32.mrb[37].mxu1 }
 0x15e   :  { %v1443_v47 = vpop.f32.mrb[37].mxu0  ;;  %v1155_v48 = vpop.f32.mrb[38].mxu1 }
 0x15f   :  { %2468 = vst [vmem:[%s3546_s3 + $0x40] sm:$0xff] %v2344_v43   ;;  %v1442_v49 = vadd.f32 %v1441_v45, %v1153_v44  ;;  %v1156_v50 = vadd.f32 %v3328_v15, %v1155_v48  ;;  %v1444_v51 = vpop.f32.mrb[38].mxu0  ;;  %v1157_v52 = vpop.f32.mrb[39].mxu1 }
 0x160   :  { %v1446_v53 = vpop.f32.mrb[39].mxu0 }
 0x161   :  { %v1445_v54 = vadd.f32 %v1444_v51, %v1156_v50  ;;  %v1642_v55 = vmax.f32 %v1442_v49, 0.0 }
 0x163   :  { %v1643_v56 = vmax.f32 %v1445_v54, 0.0 }
 0x164   :  { %v1160_v57 = vpop.f32.mrb[40].mxu1 }
 0x165   :  { %v2349_v58 = vpack.c.bf16 %v1643_v56, %v1642_v55  ;;  %v1161_v59 = vadd.f32 %v3328_v15, %v1160_v57  ;;  %v1449_v60 = vpop.f32.mrb[40].mxu0  ;;  %v1162_v61 = vpop.f32.mrb[41].mxu1 }
 0x166   :  { %v1451_v62 = vpop.f32.mrb[41].mxu0  ;;  %v1163_v63 = vpop.f32.mrb[42].mxu1 }
 0x167   :  { %2469 = vst [vmem:[%s3546_s3 + $0x48] sm:$0xff] %v2349_v58   ;;  %v1450_v0 = vadd.f32 %v1449_v60, %v1161_v59  ;;  %v1164_v1 = vadd.f32 %v3328_v15, %v1163_v63  ;;  %v1452_v2 = vpop.f32.mrb[42].mxu0  ;;  %v1165_v3 = vpop.f32.mrb[43].mxu1 }
 0x168   :  { %v1454_v4 = vpop.f32.mrb[43].mxu0 }
 0x169   :  { %v1453_v5 = vadd.f32 %v1452_v2, %v1164_v1  ;;  %v1644_v6 = vmax.f32 %v1450_v0, 0.0 }
 0x16b   :  { %v1645_v7 = vmax.f32 %v1453_v5, 0.0 }
 0x16c   :  { %v1168_v8 = vpop.f32.mrb[44].mxu1 }
 0x16d   :  { %v2354_v9 = vpack.c.bf16 %v1645_v7, %v1644_v6  ;;  %v1169_v10 = vadd.f32 %v3328_v15, %v1168_v8  ;;  %v1457_v11 = vpop.f32.mrb[44].mxu0  ;;  %v1170_v12 = vpop.f32.mrb[45].mxu1 }
 0x16e   :  { %v1459_v13 = vpop.f32.mrb[45].mxu0  ;;  %v1171_v14 = vpop.f32.mrb[46].mxu1 }
 0x16f   :  { %2470 = vst [vmem:[%s3546_s3 + $0x50] sm:$0xff] %v2354_v9   ;;  %v1458_v16 = vadd.f32 %v1457_v11, %v1169_v10  ;;  %v1172_v17 = vadd.f32 %v3328_v15, %v1171_v14  ;;  %v1460_v18 = vpop.f32.mrb[46].mxu0  ;;  %v1173_v19 = vpop.f32.mrb[47].mxu1 }
 0x170   :  { %v1462_v20 = vpop.f32.mrb[47].mxu0 }
 0x171   :  { %v1461_v21 = vadd.f32 %v1460_v18, %v1172_v17  ;;  %v1646_v22 = vmax.f32 %v1458_v16, 0.0 }
 0x173   :  { %v1647_v23 = vmax.f32 %v1461_v21, 0.0 }
 0x174   :  { %v1176_v24 = vpop.f32.mrb[48].mxu1 }
 0x175   :  { %v2359_v25 = vpack.c.bf16 %v1647_v23, %v1646_v22  ;;  %v1177_v26 = vadd.f32 %v3328_v15, %v1176_v24  ;;  %v1465_v27 = vpop.f32.mrb[48].mxu0  ;;  %v1178_v28 = vpop.f32.mrb[49].mxu1 }
 0x176   :  { %v1467_v29 = vpop.f32.mrb[49].mxu0  ;;  %v1179_v30 = vpop.f32.mrb[50].mxu1 }
 0x177   :  { %2471 = vst [vmem:[%s3546_s3 + $0x58] sm:$0xff] %v2359_v25   ;;  %v1466_v31 = vadd.f32 %v1465_v27, %v1177_v26  ;;  %v1180_v32 = vadd.f32 %v3328_v15, %v1179_v30  ;;  %v1468_v33 = vpop.f32.mrb[50].mxu0  ;;  %v1181_v34 = vpop.f32.mrb[51].mxu1 }
 0x178   :  { %v1470_v35 = vpop.f32.mrb[51].mxu0 }
 0x179   :  { %v1469_v36 = vadd.f32 %v1468_v33, %v1180_v32  ;;  %v1648_v37 = vmax.f32 %v1466_v31, 0.0 }
 0x17b   :  { %v1649_v38 = vmax.f32 %v1469_v36, 0.0 }
 0x17c   :  { %v1184_v39 = vpop.f32.mrb[52].mxu1 }
 0x17d   :  { %v2364_v40 = vpack.c.bf16 %v1649_v38, %v1648_v37  ;;  %v1185_v41 = vadd.f32 %v3328_v15, %v1184_v39  ;;  %v1473_v42 = vpop.f32.mrb[52].mxu0  ;;  %v1186_v43 = vpop.f32.mrb[53].mxu1 }
 0x17e   :  { %v1475_v44 = vpop.f32.mrb[53].mxu0  ;;  %v1187_v45 = vpop.f32.mrb[54].mxu1 }
 0x17f   :  { %2472 = vst [vmem:[%s3546_s3 + $0x60] sm:$0xff] %v2364_v40   ;;  %v1474_v46 = vadd.f32 %v1473_v42, %v1185_v41  ;;  %v1188_v47 = vadd.f32 %v3328_v15, %v1187_v45  ;;  %v1476_v48 = vpop.f32.mrb[54].mxu0  ;;  %v1189_v49 = vpop.f32.mrb[55].mxu1 }
 0x180   :  { %v1478_v50 = vpop.f32.mrb[55].mxu0 }
 0x181   :  { %v1477_v51 = vadd.f32 %v1476_v48, %v1188_v47  ;;  %v1650_v52 = vmax.f32 %v1474_v46, 0.0 }
 0x183   :  { %v1651_v53 = vmax.f32 %v1477_v51, 0.0 }
 0x184   :  { %v1192_v54 = vpop.f32.mrb[56].mxu1 }
 0x185   :  { %v2369_v55 = vpack.c.bf16 %v1651_v53, %v1650_v52  ;;  %v1193_v56 = vadd.f32 %v3328_v15, %v1192_v54  ;;  %v1481_v57 = vpop.f32.mrb[56].mxu0  ;;  %v1194_v58 = vpop.f32.mrb[57].mxu1 }
 0x186   :  { %v1483_v59 = vpop.f32.mrb[57].mxu0  ;;  %v1195_v60 = vpop.f32.mrb[58].mxu1 }
 0x187   :  { %2473 = vst [vmem:[%s3546_s3 + $0x68] sm:$0xff] %v2369_v55   ;;  %v1482_v61 = vadd.f32 %v1481_v57, %v1193_v56  ;;  %v1196_v62 = vadd.f32 %v3328_v15, %v1195_v60  ;;  %v1484_v63 = vpop.f32.mrb[58].mxu0  ;;  %v1197_v0 = vpop.f32.mrb[59].mxu1 }
 0x188   :  { %v1486_v1 = vpop.f32.mrb[59].mxu0 }
 0x189   :  { %v1485_v2 = vadd.f32 %v1484_v63, %v1196_v62  ;;  %v1652_v3 = vmax.f32 %v1482_v61, 0.0 }
 0x18b   :  { %v1653_v4 = vmax.f32 %v1485_v2, 0.0 }
 0x18c   :  { %v1200_v5 = vpop.f32.mrb[60].mxu1 }
 0x18d   :  { %v2374_v6 = vpack.c.bf16 %v1653_v4, %v1652_v3  ;;  %v1201_v7 = vadd.f32 %v3328_v15, %v1200_v5  ;;  %v1489_v8 = vpop.f32.mrb[60].mxu0  ;;  %v1202_v9 = vpop.f32.mrb[61].mxu1 }
 0x18e   :  { %v1491_v10 = vpop.f32.mrb[61].mxu0  ;;  %v1203_v11 = vpop.f32.mrb[62].mxu1 }
 0x18f   :  { %2474 = vst [vmem:[%s3546_s3 + $0x70] sm:$0xff] %v2374_v6   ;;  %v1490_v12 = vadd.f32 %v1489_v8, %v1201_v7  ;;  %v1204_v13 = vadd.f32 %v3328_v15, %v1203_v11  ;;  %v1492_v14 = vpop.f32.mrb[62].mxu0  ;;  %v1205_v16 = vpop.f32.mrb[63].mxu1 }
 0x190   :  { %v1494_v17 = vpop.f32.mrb[63].mxu0 }
 0x191   :  { %v1493_v18 = vadd.f32 %v1492_v14, %v1204_v13  ;;  %v1654_v19 = vmax.f32 %v1490_v12, 0.0 }
 0x193   :  { %v1655_v20 = vmax.f32 %v1493_v18, 0.0 }
 0x194   :  { %v1208_v21 = vpop.f32.mrb[64].mxu1 }
 0x195   :  { %v2379_v22 = vpack.c.bf16 %v1655_v20, %v1654_v19  ;;  %v1209_v23 = vadd.f32 %v3328_v15, %v1208_v21  ;;  %v1497_v24 = vpop.f32.mrb[64].mxu0  ;;  %v1210_v25 = vpop.f32.mrb[65].mxu1 }
 0x196   :  { %v1499_v26 = vpop.f32.mrb[65].mxu0  ;;  %v1211_v27 = vpop.f32.mrb[66].mxu1 }
 0x197   :  { %2475 = vst [vmem:[%s3546_s3 + $0x78] sm:$0xff] %v2379_v22   ;;  %v1498_v28 = vadd.f32 %v1497_v24, %v1209_v23  ;;  %v1212_v29 = vadd.f32 %v3328_v15, %v1211_v27  ;;  %v1500_v30 = vpop.f32.mrb[66].mxu0  ;;  %v1213_v31 = vpop.f32.mrb[67].mxu1 }
 0x198   :  { %v1502_v32 = vpop.f32.mrb[67].mxu0 }
 0x199   :  { %v1501_v33 = vadd.f32 %v1500_v30, %v1212_v29  ;;  %v1656_v34 = vmax.f32 %v1498_v28, 0.0 }
 0x19b   :  { %v1657_v35 = vmax.f32 %v1501_v33, 0.0 }
 0x19c   :  { %v1216_v36 = vpop.f32.mrb[68].mxu1 }
 0x19d   :  { %v2384_v37 = vpack.c.bf16 %v1657_v35, %v1656_v34  ;;  %v1217_v38 = vadd.f32 %v3328_v15, %v1216_v36  ;;  %v1505_v39 = vpop.f32.mrb[68].mxu0  ;;  %v1218_v40 = vpop.f32.mrb[69].mxu1 }
 0x19e   :  { %v1507_v41 = vpop.f32.mrb[69].mxu0  ;;  %v1219_v42 = vpop.f32.mrb[70].mxu1 }
 0x19f   :  { %2476 = vst [vmem:[%s3546_s3 + $0x80] sm:$0xff] %v2384_v37   ;;  %v1506_v43 = vadd.f32 %v1505_v39, %v1217_v38  ;;  %v1220_v44 = vadd.f32 %v3328_v15, %v1219_v42  ;;  %v1508_v45 = vpop.f32.mrb[70].mxu0  ;;  %v1221_v46 = vpop.f32.mrb[71].mxu1 }
 0x1a0   :  { %v1510_v47 = vpop.f32.mrb[71].mxu0 }
 0x1a1   :  { %v1509_v48 = vadd.f32 %v1508_v45, %v1220_v44  ;;  %v1658_v49 = vmax.f32 %v1506_v43, 0.0 }
 0x1a3   :  { %v1659_v50 = vmax.f32 %v1509_v48, 0.0 }
 0x1a4   :  { %v1224_v51 = vpop.f32.mrb[72].mxu1 }
 0x1a5   :  { %v2389_v52 = vpack.c.bf16 %v1659_v50, %v1658_v49  ;;  %v1225_v53 = vadd.f32 %v3328_v15, %v1224_v51  ;;  %v1513_v54 = vpop.f32.mrb[72].mxu0  ;;  %v1226_v55 = vpop.f32.mrb[73].mxu1 }
 0x1a6   :  { %v1515_v56 = vpop.f32.mrb[73].mxu0  ;;  %v1227_v57 = vpop.f32.mrb[74].mxu1 }
 0x1a7   :  { %2477 = vst [vmem:[%s3546_s3 + $0x88] sm:$0xff] %v2389_v52   ;;  %v1514_v58 = vadd.f32 %v1513_v54, %v1225_v53  ;;  %v1228_v59 = vadd.f32 %v3328_v15, %v1227_v57  ;;  %v1516_v60 = vpop.f32.mrb[74].mxu0  ;;  %v1229_v61 = vpop.f32.mrb[75].mxu1 }
 0x1a8   :  { %v1518_v62 = vpop.f32.mrb[75].mxu0 }
 0x1a9   :  { %v1517_v63 = vadd.f32 %v1516_v60, %v1228_v59  ;;  %v1660_v0 = vmax.f32 %v1514_v58, 0.0 }
 0x1ab   :  { %v1661_v1 = vmax.f32 %v1517_v63, 0.0 }
 0x1ac   :  { %v1232_v2 = vpop.f32.mrb[76].mxu1 }
 0x1ad   :  { %v2394_v3 = vpack.c.bf16 %v1661_v1, %v1660_v0  ;;  %v1233_v4 = vadd.f32 %v3328_v15, %v1232_v2  ;;  %v1521_v5 = vpop.f32.mrb[76].mxu0  ;;  %v1234_v6 = vpop.f32.mrb[77].mxu1 }
 0x1ae   :  { %v1523_v7 = vpop.f32.mrb[77].mxu0  ;;  %v1235_v8 = vpop.f32.mrb[78].mxu1 }
 0x1af   :  { %2478 = vst [vmem:[%s3546_s3 + $0x90] sm:$0xff] %v2394_v3   ;;  %v1522_v9 = vadd.f32 %v1521_v5, %v1233_v4  ;;  %v1236_v10 = vadd.f32 %v3328_v15, %v1235_v8  ;;  %v1524_v11 = vpop.f32.mrb[78].mxu0  ;;  %v1237_v12 = vpop.f32.mrb[79].mxu1 }
 0x1b0   :  { %v1526_v13 = vpop.f32.mrb[79].mxu0 }
 0x1b1   :  { %v1525_v14 = vadd.f32 %v1524_v11, %v1236_v10  ;;  %v1662_v16 = vmax.f32 %v1522_v9, 0.0 }
 0x1b3   :  { %v1663_v17 = vmax.f32 %v1525_v14, 0.0 }
 0x1b4   :  { %v1240_v18 = vpop.f32.mrb[80].mxu1 }
 0x1b5   :  { %v2399_v19 = vpack.c.bf16 %v1663_v17, %v1662_v16  ;;  %v1241_v20 = vadd.f32 %v3328_v15, %v1240_v18  ;;  %v1529_v21 = vpop.f32.mrb[80].mxu0  ;;  %v1242_v22 = vpop.f32.mrb[81].mxu1 }
 0x1b6   :  { %v1531_v23 = vpop.f32.mrb[81].mxu0  ;;  %v1243_v24 = vpop.f32.mrb[82].mxu1 }
 0x1b7   :  { %2479 = vst [vmem:[%s3546_s3 + $0x98] sm:$0xff] %v2399_v19   ;;  %v1530_v25 = vadd.f32 %v1529_v21, %v1241_v20  ;;  %v1244_v26 = vadd.f32 %v3328_v15, %v1243_v24  ;;  %v1532_v27 = vpop.f32.mrb[82].mxu0  ;;  %v1245_v28 = vpop.f32.mrb[83].mxu1 }
 0x1b8   :  { %v1534_v29 = vpop.f32.mrb[83].mxu0 }
 0x1b9   :  { %v1533_v30 = vadd.f32 %v1532_v27, %v1244_v26  ;;  %v1664_v31 = vmax.f32 %v1530_v25, 0.0 }
 0x1bb   :  { %v1665_v32 = vmax.f32 %v1533_v30, 0.0 }
 0x1bc   :  { %v1248_v33 = vpop.f32.mrb[84].mxu1 }
 0x1bd   :  { %v2404_v34 = vpack.c.bf16 %v1665_v32, %v1664_v31  ;;  %v1249_v35 = vadd.f32 %v3328_v15, %v1248_v33  ;;  %v1537_v36 = vpop.f32.mrb[84].mxu0  ;;  %v1250_v37 = vpop.f32.mrb[85].mxu1 }
 0x1be   :  { %v1539_v38 = vpop.f32.mrb[85].mxu0  ;;  %v1251_v39 = vpop.f32.mrb[86].mxu1 }
 0x1bf   :  { %2480 = vst [vmem:[%s3546_s3 + $0xa0] sm:$0xff] %v2404_v34   ;;  %v1538_v40 = vadd.f32 %v1537_v36, %v1249_v35  ;;  %v1252_v41 = vadd.f32 %v3328_v15, %v1251_v39  ;;  %v1540_v42 = vpop.f32.mrb[86].mxu0  ;;  %v1253_v43 = vpop.f32.mrb[87].mxu1 }
 0x1c0   :  { %v1542_v44 = vpop.f32.mrb[87].mxu0 }
 0x1c1   :  { %v1541_v45 = vadd.f32 %v1540_v42, %v1252_v41  ;;  %v1666_v46 = vmax.f32 %v1538_v40, 0.0 }
 0x1c3   :  { %v1667_v47 = vmax.f32 %v1541_v45, 0.0 }
 0x1c4   :  { %v1256_v48 = vpop.f32.mrb[88].mxu1 }
 0x1c5   :  { %v2409_v49 = vpack.c.bf16 %v1667_v47, %v1666_v46  ;;  %v1257_v50 = vadd.f32 %v3328_v15, %v1256_v48  ;;  %v1545_v51 = vpop.f32.mrb[88].mxu0  ;;  %v1258_v52 = vpop.f32.mrb[89].mxu1 }
 0x1c6   :  { %v1547_v53 = vpop.f32.mrb[89].mxu0  ;;  %v1259_v54 = vpop.f32.mrb[90].mxu1 }
 0x1c7   :  { %2481 = vst [vmem:[%s3546_s3 + $0xa8] sm:$0xff] %v2409_v49   ;;  %v1546_v55 = vadd.f32 %v1545_v51, %v1257_v50  ;;  %v1260_v56 = vadd.f32 %v3328_v15, %v1259_v54  ;;  %v1548_v57 = vpop.f32.mrb[90].mxu0  ;;  %v1261_v58 = vpop.f32.mrb[91].mxu1 }
 0x1c8   :  { %v1550_v59 = vpop.f32.mrb[91].mxu0 }
 0x1c9   :  { %v1549_v60 = vadd.f32 %v1548_v57, %v1260_v56  ;;  %v1668_v61 = vmax.f32 %v1546_v55, 0.0 }
 0x1cb   :  { %v1669_v62 = vmax.f32 %v1549_v60, 0.0 }
 0x1cc   :  { %v1264_v63 = vpop.f32.mrb[92].mxu1 }
 0x1cd   :  { %v2414_v0 = vpack.c.bf16 %v1669_v62, %v1668_v61  ;;  %v1265_v1 = vadd.f32 %v3328_v15, %v1264_v63  ;;  %v1553_v2 = vpop.f32.mrb[92].mxu0  ;;  %v1266_v3 = vpop.f32.mrb[93].mxu1 }
 0x1ce   :  { %v1555_v4 = vpop.f32.mrb[93].mxu0  ;;  %v1267_v5 = vpop.f32.mrb[94].mxu1 }
 0x1cf   :  { %2482 = vst [vmem:[%s3546_s3 + $0xb0] sm:$0xff] %v2414_v0   ;;  %v1554_v6 = vadd.f32 %v1553_v2, %v1265_v1  ;;  %v1268_v7 = vadd.f32 %v3328_v15, %v1267_v5  ;;  %v1556_v8 = vpop.f32.mrb[94].mxu0  ;;  %v1269_v9 = vpop.f32.mrb[95].mxu1 }
 0x1d0   :  { %v1558_v10 = vpop.f32.mrb[95].mxu0 }
 0x1d1   :  { %v1557_v11 = vadd.f32 %v1556_v8, %v1268_v7  ;;  %v1670_v12 = vmax.f32 %v1554_v6, 0.0 }
 0x1d3   :  { %v1671_v13 = vmax.f32 %v1557_v11, 0.0 }
 0x1d4   :  { %v1272_v14 = vpop.f32.mrb[96].mxu1 }
 0x1d5   :  { %v2419_v16 = vpack.c.bf16 %v1671_v13, %v1670_v12  ;;  %v1273_v17 = vadd.f32 %v3328_v15, %v1272_v14  ;;  %v1561_v18 = vpop.f32.mrb[96].mxu0  ;;  %v1274_v19 = vpop.f32.mrb[97].mxu1 }
 0x1d6   :  { %v1563_v20 = vpop.f32.mrb[97].mxu0  ;;  %v1275_v21 = vpop.f32.mrb[98].mxu1 }
 0x1d7   :  { %2483 = vst [vmem:[%s3546_s3 + $0xb8] sm:$0xff] %v2419_v16   ;;  %v1562_v22 = vadd.f32 %v1561_v18, %v1273_v17  ;;  %v1276_v23 = vadd.f32 %v3328_v15, %v1275_v21  ;;  %v1564_v24 = vpop.f32.mrb[98].mxu0  ;;  %v1277_v25 = vpop.f32.mrb[99].mxu1 }
 0x1d8   :  { %v1566_v26 = vpop.f32.mrb[99].mxu0 }
 0x1d9   :  { %v1565_v27 = vadd.f32 %v1564_v24, %v1276_v23  ;;  %v1672_v28 = vmax.f32 %v1562_v22, 0.0 }
 0x1db   :  { %v1673_v29 = vmax.f32 %v1565_v27, 0.0 }
 0x1dc   :  { %v1280_v30 = vpop.f32.mrb[100].mxu1 }
 0x1dd   :  { %v2424_v31 = vpack.c.bf16 %v1673_v29, %v1672_v28  ;;  %v1281_v32 = vadd.f32 %v3328_v15, %v1280_v30  ;;  %v1569_v33 = vpop.f32.mrb[100].mxu0  ;;  %v1282_v34 = vpop.f32.mrb[101].mxu1 }
 0x1de   :  { %v1571_v35 = vpop.f32.mrb[101].mxu0  ;;  %v1283_v36 = vpop.f32.mrb[102].mxu1 }
 0x1df   :  { %2484 = vst [vmem:[%s3546_s3 + $0xc0] sm:$0xff] %v2424_v31   ;;  %v1570_v37 = vadd.f32 %v1569_v33, %v1281_v32  ;;  %v1284_v38 = vadd.f32 %v3328_v15, %v1283_v36  ;;  %v1572_v39 = vpop.f32.mrb[102].mxu0  ;;  %v1285_v40 = vpop.f32.mrb[103].mxu1 }
 0x1e0   :  { %v1574_v41 = vpop.f32.mrb[103].mxu0 }
 0x1e1   :  { %v1573_v42 = vadd.f32 %v1572_v39, %v1284_v38  ;;  %v1674_v43 = vmax.f32 %v1570_v37, 0.0 }
 0x1e3   :  { %v1675_v44 = vmax.f32 %v1573_v42, 0.0 }
 0x1e4   :  { %v1288_v45 = vpop.f32.mrb[104].mxu1 }
 0x1e5   :  { %v2429_v46 = vpack.c.bf16 %v1675_v44, %v1674_v43  ;;  %v1289_v47 = vadd.f32 %v3328_v15, %v1288_v45  ;;  %v1577_v48 = vpop.f32.mrb[104].mxu0  ;;  %v1290_v49 = vpop.f32.mrb[105].mxu1  ;;  %v2845_v44 = vld [vmem:[%s3545_s2] ss:$0 sm:$0xff] }
 0x1e6   :  { %v1579_v50 = vpop.f32.mrb[105].mxu0  ;;  %v1291_v51 = vpop.f32.mrb[106].mxu1 }
 0x1e7   :  { %2485 = vst [vmem:[%s3546_s3 + $0xc8] sm:$0xff] %v2429_v46   ;;  %v1578_v52 = vadd.f32 %v1577_v48, %v1289_v47  ;;  %v1292_v53 = vadd.f32 %v3328_v15, %v1291_v51  ;;  %v1580_v54 = vpop.f32.mrb[106].mxu0  ;;  %v1293_v55 = vpop.f32.mrb[107].mxu1 }
 0x1e8   :  { %v1582_v56 = vpop.f32.mrb[107].mxu0 }
 0x1e9   :  { %v1581_v57 = vadd.f32 %v1580_v54, %v1292_v53  ;;  %v1676_v58 = vmax.f32 %v1578_v52, 0.0 }
 0x1eb   :  { %v1677_v59 = vmax.f32 %v1581_v57, 0.0 }
 0x1ec   :  { %v1296_v60 = vpop.f32.mrb[108].mxu1 }
 0x1ed   :  { %v2434_v61 = vpack.c.bf16 %v1677_v59, %v1676_v58  ;;  %v1297_v62 = vadd.f32 %v3328_v15, %v1296_v60  ;;  %v1585_v63 = vpop.f32.mrb[108].mxu0  ;;  %v1298_v0 = vpop.f32.mrb[109].mxu1 }
 0x1ee   :  { %v1587_v1 = vpop.f32.mrb[109].mxu0  ;;  %v1299_v2 = vpop.f32.mrb[110].mxu1 }
 0x1ef   :  { %2486 = vst [vmem:[%s3546_s3 + $0xd0] sm:$0xff] %v2434_v61   ;;  %v1586_v3 = vadd.f32 %v1585_v63, %v1297_v62  ;;  %v1300_v4 = vadd.f32 %v3328_v15, %v1299_v2  ;;  %v1588_v5 = vpop.f32.mrb[110].mxu0  ;;  %v1301_v6 = vpop.f32.mrb[111].mxu1 }
 0x1f0   :  { %v1590_v7 = vpop.f32.mrb[111].mxu0 }
 0x1f1   :  { %v1589_v8 = vadd.f32 %v1588_v5, %v1300_v4  ;;  %v1678_v9 = vmax.f32 %v1586_v3, 0.0 }
 0x1f3   :  { %v1679_v10 = vmax.f32 %v1589_v8, 0.0 }
 0x1f4   :  { %v1304_v11 = vpop.f32.mrb[112].mxu1 }
 0x1f5   :  { %v2439_v12 = vpack.c.bf16 %v1679_v10, %v1678_v9  ;;  %v1305_v13 = vadd.f32 %v3328_v15, %v1304_v11  ;;  %v1593_v14 = vpop.f32.mrb[112].mxu0  ;;  %v1306_v16 = vpop.f32.mrb[113].mxu1 }
 0x1f6   :  { %v1595_v17 = vpop.f32.mrb[113].mxu0  ;;  %v1307_v18 = vpop.f32.mrb[114].mxu1 }
 0x1f7   :  { %2487 = vst [vmem:[%s3546_s3 + $0xd8] sm:$0xff] %v2439_v12   ;;  %v1594_v19 = vadd.f32 %v1593_v14, %v1305_v13  ;;  %v1308_v20 = vadd.f32 %v3328_v15, %v1307_v18  ;;  %v1596_v21 = vpop.f32.mrb[114].mxu0  ;;  %v1309_v22 = vpop.f32.mrb[115].mxu1 }
 0x1f8   :  { %v1598_v23 = vpop.f32.mrb[115].mxu0 }
 0x1f9   :  { %v1597_v24 = vadd.f32 %v1596_v21, %v1308_v20  ;;  %v1680_v25 = vmax.f32 %v1594_v19, 0.0 }
 0x1fb   :  { %v1681_v26 = vmax.f32 %v1597_v24, 0.0 }
 0x1fc   :  { %v1312_v27 = vpop.f32.mrb[116].mxu1 }
 0x1fd   :  { %v2444_v28 = vpack.c.bf16 %v1681_v26, %v1680_v25  ;;  %v1313_v29 = vadd.f32 %v3328_v15, %v1312_v27  ;;  %v1601_v30 = vpop.f32.mrb[116].mxu0  ;;  %v1314_v31 = vpop.f32.mrb[117].mxu1 }
 0x1fe   :  { %v1603_v32 = vpop.f32.mrb[117].mxu0  ;;  %v1315_v33 = vpop.f32.mrb[118].mxu1 }
 0x1ff   :  { %2488 = vst [vmem:[%s3546_s3 + $0xe0] sm:$0xff] %v2444_v28   ;;  %v1602_v34 = vadd.f32 %v1601_v30, %v1313_v29  ;;  %v1316_v35 = vadd.f32 %v3328_v15, %v1315_v33  ;;  %v1604_v36 = vpop.f32.mrb[118].mxu0  ;;  %v1317_v37 = vpop.f32.mrb[119].mxu1 }
 0x200   :  { %v1606_v38 = vpop.f32.mrb[119].mxu0 }
 0x201   :  { %v1605_v39 = vadd.f32 %v1604_v36, %v1316_v35  ;;  %v1682_v40 = vmax.f32 %v1602_v34, 0.0 }
 0x203   :  { %v1683_v41 = vmax.f32 %v1605_v39, 0.0 }
 0x204   :  { %v1320_v42 = vpop.f32.mrb[120].mxu1 }
 0x205   :  { %v2449_v43 = vpack.c.bf16 %v1683_v41, %v1682_v40  ;;  %v1321_v45 = vadd.f32 %v2845_v44, %v1320_v42  ;;  %v1609_v46 = vpop.f32.mrb[120].mxu0  ;;  %v1322_v47 = vpop.f32.mrb[121].mxu1 }
 0x206   :  { %v1611_v48 = vpop.f32.mrb[121].mxu0  ;;  %v1323_v49 = vpop.f32.mrb[122].mxu1 }
 0x207   :  { %2489 = vst [vmem:[%s3546_s3 + $0xe8] sm:$0xff] %v2449_v43   ;;  %v1610_v15 = vadd.f32 %v1609_v46, %v1321_v45  ;;  %v1324_v50 = vadd.f32 %v2845_v44, %v1323_v49  ;;  %v1612_v51 = vpop.f32.mrb[122].mxu0  ;;  %v1325_v52 = vpop.f32.mrb[123].mxu1 }
 0x208   :  { %v1614_v53 = vpop.f32.mrb[123].mxu0 }
 0x209   :  { %v1613_v54 = vadd.f32 %v1612_v51, %v1324_v50  ;;  %v1684_v55 = vmax.f32 %v1610_v15, 0.0 }
 0x20b   :  { %v1685_v56 = vmax.f32 %v1613_v54, 0.0 }
 0x20c   :  { %v1328_v57 = vpop.f32.mrb[124].mxu1 }
 0x20d   :  { %v2454_v58 = vpack.c.bf16 %v1685_v56, %v1684_v55  ;;  %v1329_v59 = vadd.f32 %v2845_v44, %v1328_v57  ;;  %v1617_v60 = vpop.f32.mrb[124].mxu0  ;;  %v1330_v61 = vpop.f32.mrb[125].mxu1 }
 0x20e   :  { %v1619_v62 = vpop.f32.mrb[125].mxu0  ;;  %v1331_v63 = vpop.f32.mrb[126].mxu1 }
 0x20f   :  { %2490 = vst [vmem:[%s3546_s3 + $0xf0] sm:$0xff] %v2454_v58   ;;  %v1618_v0 = vadd.f32 %v1617_v60, %v1329_v59  ;;  %v1332_v1 = vadd.f32 %v2845_v44, %v1331_v63  ;;  %v1620_v2 = vpop.f32.mrb[126].mxu0  ;;  %v1333_v3 = vpop.f32.mrb[127].mxu1 }
 0x210   :  { %v1622_v4 = vpop.f32.mrb[127].mxu0 }
 0x211   :  { %v1621_v5 = vadd.f32 %v1620_v2, %v1332_v1  ;;  %v1686_v6 = vmax.f32 %v1618_v0, 0.0 }
 0x213   :  { %v1687_v7 = vmax.f32 %v1621_v5, 0.0 }
 0x215   :  { %v2459_v8 = vpack.c.bf16 %v1687_v7, %v1686_v6 }
 0x217   :  { %2491 = vst [vmem:[%s3546_s3 + $0xf8] sm:$0xff] %v2459_v8  }

// kernel: feature_extractor_forward.11
= control target key start
LH: loop header
LB: loop body
LE: loop exit
PB: predicated region body
PF: predicated region fallthrough
CT: control target
= control target key end

     0   :  { %s1373_s1 = inlined_call_operand.vmem [shape: bf16[512,128], index: 1, kind: input, shape index: {}]   ;;  %s1374_s0 = inlined_call_operand.vmem [shape: bf16[128,512], index: 0, kind: input, shape index: {}]   ;;  %s1375_s2 = inlined_call_operand.vmem [shape: f32[1,128], index: 2, kind: input, shape index: {}]   ;;  %s1376_s3 = inlined_call_operand.vmem [shape: bf16[128,128], index: 3, kind: output, shape index: {}]  }
   0x1   :  { %v1036_v0 = vld [vmem:[%s1373_s1 + $0x40] sm:$0xff]   ;;  %v1040_v4 = vld [vmem:[%s1373_s1 + $0x48] sm:$0xff]   ;;  %v1044_v8 = vld [vmem:[%s1373_s1 + $0x50] sm:$0xff]  }
   0x2   :  { %v1037_v1 = vld [vmem:[%s1373_s1 + $0xc0] sm:$0xff]   ;;  %908 = vmatprep.subr.bf16.mxu0 %v1036_v0  ;;  %v1041_v5 = vld [vmem:[%s1373_s1 + $0xc8] sm:$0xff]   ;;  %v1045_v9 = vld [vmem:[%s1373_s1 + $0xd0] sm:$0xff]  }
   0x3   :  { %v1038_v2 = vld [vmem:[%s1373_s1] sm:$0xff]   ;;  %972 = vmatprep.subr.bf16.mxu1 %v1037_v1  ;;  %v1042_v6 = vld [vmem:[%s1373_s1 + $0x8] sm:$0xff]   ;;  %v1046_v10 = vld [vmem:[%s1373_s1 + $0x10] sm:$0xff]  }
   0x4   :  { %v1039_v3 = vld [vmem:[%s1373_s1 + $0x80] sm:$0xff]   ;;  %909 = vmatpush3.bf16.msra.mxu0 %v1038_v2  ;;  %v1043_v7 = vld [vmem:[%s1373_s1 + $0x88] sm:$0xff]   ;;  %v1047_v11 = vld [vmem:[%s1373_s1 + $0x90] sm:$0xff]  }
   0x5   :  { %973 = vmatpush3.bf16.msra.mxu1 %v1039_v3  ;;  %910 = vmatprep.subr.bf16.mxu0 %v1040_v4  ;;  %v1048_v12 = vld [vmem:[%s1373_s1 + $0x58] sm:$0xff]   ;;  %v1052_v16 = vld [vmem:[%s1373_s1 + $0x60] sm:$0xff]   ;;  %v1056_v20 = vld [vmem:[%s1373_s1 + $0x68] sm:$0xff]  }
   0x6   :  { %974 = vmatprep.subr.bf16.mxu1 %v1041_v5  ;;  %v1049_v13 = vld [vmem:[%s1373_s1 + $0xd8] sm:$0xff]   ;;  %v1053_v17 = vld [vmem:[%s1373_s1 + $0xe0] sm:$0xff]   ;;  %v1057_v21 = vld [vmem:[%s1373_s1 + $0xe8] sm:$0xff]  }
   0x7   :  { %v1050_v14 = vld [vmem:[%s1373_s1 + $0x18] sm:$0xff]   ;;  %v1054_v18 = vld [vmem:[%s1373_s1 + $0x20] sm:$0xff]   ;;  %v1058_v22 = vld [vmem:[%s1373_s1 + $0x28] sm:$0xff]  }
   0x8   :  { %911 = vmatpush3.bf16.msra.mxu0 %v1042_v6  ;;  %v1051_v15 = vld [vmem:[%s1373_s1 + $0x98] sm:$0xff]   ;;  %v1055_v19 = vld [vmem:[%s1373_s1 + $0xa0] sm:$0xff]   ;;  %v1059_v23 = vld [vmem:[%s1373_s1 + $0xa8] sm:$0xff]  }
   0x9   :  { %975 = vmatpush3.bf16.msra.mxu1 %v1043_v7  ;;  %912 = vmatprep.subr.bf16.mxu0 %v1044_v8  ;;  %v1060_v24 = vld [vmem:[%s1373_s1 + $0x70] sm:$0xff]   ;;  %v1064_v28 = vld [vmem:[%s1373_s1 + $0x78] sm:$0xff]   ;;  %v1331_v2 = vld [vmem:[%s1375_s2] ss:$0 sm:$0xff] }
   0xa   :  { %976 = vmatprep.subr.bf16.mxu1 %v1045_v9  ;;  %v1061_v25 = vld [vmem:[%s1373_s1 + $0xf0] sm:$0xff]   ;;  %v1065_v29 = vld [vmem:[%s1373_s1 + $0xf8] sm:$0xff]  }
   0xb   :  { %v1062_v26 = vld [vmem:[%s1373_s1 + $0x30] sm:$0xff]   ;;  %v1066_v30 = vld [vmem:[%s1373_s1 + $0x38] sm:$0xff]  }
   0xc   :  { %913 = vmatpush3.bf16.msra.mxu0 %v1046_v10  ;;  %v1063_v27 = vld [vmem:[%s1373_s1 + $0xb0] sm:$0xff]   ;;  %v1067_v31 = vld [vmem:[%s1373_s1 + $0xb8] sm:$0xff]  }
   0xd   :  { %977 = vmatpush3.bf16.msra.mxu1 %v1047_v11  ;;  %914 = vmatprep.subr.bf16.mxu0 %v1048_v12  ;;  %v1068_v32 = vld [vmem:[%s1374_s0] ss:$16 sps:$4 sm:$0xff]   ;;  %v1070_v33 = vld [vmem:[%s1374_s0 + $0x4] ss:$16 sps:$4 sm:$0xff]   ;;  %v1071_v34 = vld [vmem:[%s1374_s0 + $0x8] ss:$16 sps:$4 sm:$0xff]  }
   0xe   :  { %978 = vmatprep.subr.bf16.mxu1 %v1049_v13  ;;  %v1073_v35 = vld [vmem:[%s1374_s0 + $0xc] ss:$16 sps:$4 sm:$0xff]   ;;  %502 = vmatprep.mubr.bf16.mxu0 %v1070_v33  ;;  %v1074_v36 = vld [vmem:[%s1374_s0 + $0x24] ss:$16 sps:$4 sm:$0xff]   ;;  %v1078_v38 = vld [vmem:[%s1374_s0 + $0x20] ss:$16 sps:$4 sm:$0xff]  }
   0xf   :  { %599 = vmatprep.mubr.bf16.mxu1 %v1073_v35  ;;  %v1076_v37 = vld [vmem:[%s1374_s0 + $0x2c] ss:$16 sps:$4 sm:$0xff]   ;;  %v1079_v39 = vld [vmem:[%s1374_s0 + $0x28] ss:$16 sps:$4 sm:$0xff]   ;;  %v1080_v40 = vld [vmem:[%s1374_s0 + $0x44] ss:$16 sps:$4 sm:$0xff]  }
  0x10   :  { %915 = vmatpush3.bf16.msra.mxu0 %v1050_v14  ;;  %v1082_v41 = vld [vmem:[%s1374_s0 + $0x4c] ss:$16 sps:$4 sm:$0xff]   ;;  %v1084_v42 = vld [vmem:[%s1374_s0 + $0x40] ss:$16 sps:$4 sm:$0xff]   ;;  %v1085_v43 = vld [vmem:[%s1374_s0 + $0x48] ss:$16 sps:$4 sm:$0xff]  }
  0x11   :  { %979 = vmatpush3.bf16.msra.mxu1 %v1051_v15  ;;  %916 = vmatprep.subr.bf16.mxu0 %v1052_v16  ;;  %v1086_v44 = vld [vmem:[%s1374_s0 + $0x64] ss:$16 sps:$4 sm:$0xff]   ;;  %v1088_v45 = vld [vmem:[%s1374_s0 + $0x6c] ss:$16 sps:$4 sm:$0xff]   ;;  %v1090_v46 = vld [vmem:[%s1374_s0 + $0x60] ss:$16 sps:$4 sm:$0xff]  }
  0x12   :  { %980 = vmatprep.subr.bf16.mxu1 %v1053_v17  ;;  %v1091_v47 = vld [vmem:[%s1374_s0 + $0x68] ss:$16 sps:$4 sm:$0xff]   ;;  %v1092_v48 = vld [vmem:[%s1374_s0 + $0x84] ss:$16 sps:$4 sm:$0xff]   ;;  %v1094_v49 = vld [vmem:[%s1374_s0 + $0x8c] ss:$16 sps:$4 sm:$0xff]  }
  0x13   :  { %v1096_v50 = vld [vmem:[%s1374_s0 + $0x80] ss:$16 sps:$4 sm:$0xff]   ;;  %v1097_v51 = vld [vmem:[%s1374_s0 + $0x88] ss:$16 sps:$4 sm:$0xff]   ;;  %v1098_v52 = vld [vmem:[%s1374_s0 + $0xa4] ss:$16 sps:$4 sm:$0xff]  }
  0x14   :  { %917 = vmatpush3.bf16.msra.mxu0 %v1054_v18  ;;  %v1100_v53 = vld [vmem:[%s1374_s0 + $0xac] ss:$16 sps:$4 sm:$0xff]   ;;  %v1102_v54 = vld [vmem:[%s1374_s0 + $0xa0] ss:$16 sps:$4 sm:$0xff]   ;;  %v1103_v55 = vld [vmem:[%s1374_s0 + $0xa8] ss:$16 sps:$4 sm:$0xff]  }
  0x15   :  { %981 = vmatpush3.bf16.msra.mxu1 %v1055_v19  ;;  %918 = vmatprep.subr.bf16.mxu0 %v1056_v20  ;;  %v1104_v56 = vld [vmem:[%s1374_s0 + $0xc4] ss:$16 sps:$4 sm:$0xff]   ;;  %v1106_v57 = vld [vmem:[%s1374_s0 + $0xcc] ss:$16 sps:$4 sm:$0xff]   ;;  %v1108_v58 = vld [vmem:[%s1374_s0 + $0xc0] ss:$16 sps:$4 sm:$0xff]  }
  0x16   :  { %982 = vmatprep.subr.bf16.mxu1 %v1057_v21  ;;  %v1109_v59 = vld [vmem:[%s1374_s0 + $0xc8] ss:$16 sps:$4 sm:$0xff]   ;;  %v1110_v60 = vld [vmem:[%s1374_s0 + $0xe4] ss:$16 sps:$4 sm:$0xff]   ;;  %v1112_v61 = vld [vmem:[%s1374_s0 + $0xec] ss:$16 sps:$4 sm:$0xff]  }
  0x17   :  { %v1114_v62 = vld [vmem:[%s1374_s0 + $0xe0] ss:$16 sps:$4 sm:$0xff]   ;;  %v1115_v63 = vld [vmem:[%s1374_s0 + $0xe8] ss:$16 sps:$4 sm:$0xff]  }
  0x18   :  { %919 = vmatpush3.bf16.msra.mxu0 %v1058_v22 }
  0x19   :  { %983 = vmatpush3.bf16.msra.mxu1 %v1059_v23  ;;  %920 = vmatprep.subr.bf16.mxu0 %v1060_v24 }
  0x1a   :  { %984 = vmatprep.subr.bf16.mxu1 %v1061_v25 }
  0x1c   :  { %921 = vmatpush3.bf16.msra.mxu0 %v1062_v26 }
  0x1d   :  { %985 = vmatpush3.bf16.msra.mxu1 %v1063_v27  ;;  %922 = vmatprep.subr.bf16.mxu0 %v1064_v28 }
  0x1e   :  { %986 = vmatprep.subr.bf16.mxu1 %v1065_v29 }
  0x20   :  { %923 = vmatpush3.bf16.msra.mxu0 %v1066_v30 }
  0x21   :  { %987 = vmatpush3.bf16.msra.mxu1 %v1067_v31 }
  0x23   :  { %503 = vmatmul.mubr.bf16.vlgmr.msra.gmra.mrb[0].mxu0 %v1068_v32 }
  0x24   :  { %600 = vmatmul.mubr.bf16.vlgmr.msra.gmra.mrb[0].mxu1 %v1071_v34  ;;  %510 = vmatprep.mubr.bf16.mxu0 %v1074_v36 }
  0x25   :  { %607 = vmatprep.mubr.bf16.mxu1 %v1076_v37 }
  0x2b   :  { %511 = vmatmul.mubr.bf16.gmra.mrb[4].mxu0 %v1078_v38 }
  0x2c   :  { %608 = vmatmul.mubr.bf16.gmra.mrb[4].mxu1 %v1079_v39  ;;  %518 = vmatprep.mubr.bf16.mxu0 %v1080_v40 }
  0x2d   :  { %615 = vmatprep.mubr.bf16.mxu1 %v1082_v41 }
  0x33   :  { %519 = vmatmul.mubr.bf16.gmra.mrb[8].mxu0 %v1084_v42 }
  0x34   :  { %616 = vmatmul.mubr.bf16.gmra.mrb[8].mxu1 %v1085_v43  ;;  %526 = vmatprep.mubr.bf16.mxu0 %v1086_v44 }
  0x35   :  { %623 = vmatprep.mubr.bf16.mxu1 %v1088_v45 }
  0x3b   :  { %527 = vmatmul.mubr.bf16.gmra.mrb[12].mxu0 %v1090_v46 }
  0x3c   :  { %624 = vmatmul.mubr.bf16.gmra.mrb[12].mxu1 %v1091_v47  ;;  %534 = vmatprep.mubr.bf16.mxu0 %v1092_v48 }
  0x3d   :  { %631 = vmatprep.mubr.bf16.mxu1 %v1094_v49 }
  0x43   :  { %535 = vmatmul.mubr.bf16.gmra.mrb[16].mxu0 %v1096_v50 }
  0x44   :  { %632 = vmatmul.mubr.bf16.gmra.mrb[16].mxu1 %v1097_v51  ;;  %542 = vmatprep.mubr.bf16.mxu0 %v1098_v52 }
  0x45   :  { %639 = vmatprep.mubr.bf16.mxu1 %v1100_v53 }
  0x4b   :  { %543 = vmatmul.mubr.bf16.gmra.mrb[20].mxu0 %v1102_v54 }
  0x4c   :  { %640 = vmatmul.mubr.bf16.gmra.mrb[20].mxu1 %v1103_v55  ;;  %550 = vmatprep.mubr.bf16.mxu0 %v1104_v56 }
  0x4d   :  { %647 = vmatprep.mubr.bf16.mxu1 %v1106_v57 }
  0x53   :  { %551 = vmatmul.mubr.bf16.gmra.mrb[24].mxu0 %v1108_v58 }
  0x54   :  { %648 = vmatmul.mubr.bf16.gmra.mrb[24].mxu1 %v1109_v59  ;;  %558 = vmatprep.mubr.bf16.mxu0 %v1110_v60 }
  0x55   :  { %655 = vmatprep.mubr.bf16.mxu1 %v1112_v61 }
  0x5b   :  { %559 = vmatmul.mubr.bf16.gmra.mrb[28].mxu0 %v1114_v62 }
  0x5c   :  { %656 = vmatmul.mubr.bf16.gmra.mrb[28].mxu1 %v1115_v63 }
  0xf6   :  { %v924_v0 = vpop.f32.mrb[0].mxu0 }
  0xf7   :  { %v988_v1 = vpop.f32.mrb[0].mxu1  ;;  %v925_v3 = vpop.f32.mrb[1].mxu0 }
  0xf8   :  { %v926_v4 = vadd.f32 %v925_v3, %v924_v0  ;;  %v989_v5 = vpop.f32.mrb[1].mxu1  ;;  %v927_v6 = vpop.f32.mrb[2].mxu0 }
  0xf9   :  { %v990_v7 = vadd.f32 %v989_v5, %v988_v1  ;;  %v991_v8 = vpop.f32.mrb[2].mxu1  ;;  %v928_v9 = vpop.f32.mrb[3].mxu0 }
  0xfa   :  { %v505_v10 = vadd.f32 %v926_v4, %v1331_v2  ;;  %v929_v11 = vadd.f32 %v928_v9, %v927_v6  ;;  %v992_v12 = vpop.f32.mrb[3].mxu1 }
  0xfb   :  { %v993_v13 = vadd.f32 %v992_v12, %v991_v8 }
  0xfc   :  { %v602_v14 = vadd.f32 %v990_v7, %v505_v10  ;;  %v508_v15 = vadd.f32 %v929_v11, %v1331_v2 }
  0xfe   :  { %v605_v16 = vadd.f32 %v993_v13, %v508_v15  ;;  %v930_v17 = vpop.f32.mrb[4].mxu0  ;;  %v664_v20 = vmax.f32 %v602_v14, 0.0 }
  0xff   :  { %v994_v18 = vpop.f32.mrb[4].mxu1  ;;  %v931_v19 = vpop.f32.mrb[5].mxu0 }
 0x100   :  { %v665_v21 = vmax.f32 %v605_v16, 0.0  ;;  %v932_v22 = vadd.f32 %v931_v19, %v930_v17  ;;  %v995_v23 = vpop.f32.mrb[5].mxu1  ;;  %v933_v24 = vpop.f32.mrb[6].mxu0 }
 0x101   :  { %v996_v25 = vadd.f32 %v995_v23, %v994_v18  ;;  %v997_v26 = vpop.f32.mrb[6].mxu1  ;;  %v934_v27 = vpop.f32.mrb[7].mxu0 }
 0x102   :  { %v864_v28 = vpack.c.bf16 %v665_v21, %v664_v20  ;;  %v513_v29 = vadd.f32 %v932_v22, %v1331_v2  ;;  %v935_v30 = vadd.f32 %v934_v27, %v933_v24  ;;  %v998_v31 = vpop.f32.mrb[7].mxu1 }
 0x103   :  { %v999_v32 = vadd.f32 %v998_v31, %v997_v26 }
 0x104   :  { %865 = vst [vmem:[%s1376_s3] sm:$0xff] %v864_v28   ;;  %v610_v33 = vadd.f32 %v996_v25, %v513_v29  ;;  %v516_v34 = vadd.f32 %v935_v30, %v1331_v2 }
 0x106   :  { %v613_v35 = vadd.f32 %v999_v32, %v516_v34  ;;  %v936_v36 = vpop.f32.mrb[8].mxu0  ;;  %v666_v39 = vmax.f32 %v610_v33, 0.0 }
 0x107   :  { %v1000_v37 = vpop.f32.mrb[8].mxu1  ;;  %v937_v38 = vpop.f32.mrb[9].mxu0 }
 0x108   :  { %v667_v40 = vmax.f32 %v613_v35, 0.0  ;;  %v938_v41 = vadd.f32 %v937_v38, %v936_v36  ;;  %v1001_v42 = vpop.f32.mrb[9].mxu1  ;;  %v939_v43 = vpop.f32.mrb[10].mxu0 }
 0x109   :  { %v1002_v44 = vadd.f32 %v1001_v42, %v1000_v37  ;;  %v1003_v45 = vpop.f32.mrb[10].mxu1  ;;  %v940_v46 = vpop.f32.mrb[11].mxu0 }
 0x10a   :  { %v869_v47 = vpack.c.bf16 %v667_v40, %v666_v39  ;;  %v521_v48 = vadd.f32 %v938_v41, %v1331_v2  ;;  %v941_v49 = vadd.f32 %v940_v46, %v939_v43  ;;  %v1004_v50 = vpop.f32.mrb[11].mxu1 }
 0x10b   :  { %v1005_v51 = vadd.f32 %v1004_v50, %v1003_v45 }
 0x10c   :  { %901 = vst [vmem:[%s1376_s3 + $0x8] sm:$0xff] %v869_v47   ;;  %v618_v52 = vadd.f32 %v1002_v44, %v521_v48  ;;  %v524_v53 = vadd.f32 %v941_v49, %v1331_v2 }
 0x10e   :  { %v621_v54 = vadd.f32 %v1005_v51, %v524_v53  ;;  %v942_v55 = vpop.f32.mrb[12].mxu0  ;;  %v668_v58 = vmax.f32 %v618_v52, 0.0 }
 0x10f   :  { %v1006_v56 = vpop.f32.mrb[12].mxu1  ;;  %v943_v57 = vpop.f32.mrb[13].mxu0 }
 0x110   :  { %v669_v59 = vmax.f32 %v621_v54, 0.0  ;;  %v944_v60 = vadd.f32 %v943_v57, %v942_v55  ;;  %v1007_v61 = vpop.f32.mrb[13].mxu1  ;;  %v945_v62 = vpop.f32.mrb[14].mxu0 }
 0x111   :  { %v1008_v63 = vadd.f32 %v1007_v61, %v1006_v56  ;;  %v1009_v0 = vpop.f32.mrb[14].mxu1  ;;  %v946_v1 = vpop.f32.mrb[15].mxu0 }
 0x112   :  { %v874_v3 = vpack.c.bf16 %v669_v59, %v668_v58  ;;  %v529_v4 = vadd.f32 %v944_v60, %v1331_v2  ;;  %v947_v5 = vadd.f32 %v946_v1, %v945_v62  ;;  %v1010_v6 = vpop.f32.mrb[15].mxu1 }
 0x113   :  { %v1011_v7 = vadd.f32 %v1010_v6, %v1009_v0 }
 0x114   :  { %902 = vst [vmem:[%s1376_s3 + $0x10] sm:$0xff] %v874_v3   ;;  %v626_v8 = vadd.f32 %v1008_v63, %v529_v4  ;;  %v532_v9 = vadd.f32 %v947_v5, %v1331_v2 }
 0x116   :  { %v629_v10 = vadd.f32 %v1011_v7, %v532_v9  ;;  %v948_v11 = vpop.f32.mrb[16].mxu0  ;;  %v670_v14 = vmax.f32 %v626_v8, 0.0 }
 0x117   :  { %v1012_v12 = vpop.f32.mrb[16].mxu1  ;;  %v949_v13 = vpop.f32.mrb[17].mxu0 }
 0x118   :  { %v671_v15 = vmax.f32 %v629_v10, 0.0  ;;  %v950_v16 = vadd.f32 %v949_v13, %v948_v11  ;;  %v1013_v17 = vpop.f32.mrb[17].mxu1  ;;  %v951_v18 = vpop.f32.mrb[18].mxu0 }
 0x119   :  { %v1014_v19 = vadd.f32 %v1013_v17, %v1012_v12  ;;  %v1015_v20 = vpop.f32.mrb[18].mxu1  ;;  %v952_v21 = vpop.f32.mrb[19].mxu0 }
 0x11a   :  { %v879_v22 = vpack.c.bf16 %v671_v15, %v670_v14  ;;  %v537_v23 = vadd.f32 %v950_v16, %v1331_v2  ;;  %v953_v24 = vadd.f32 %v952_v21, %v951_v18  ;;  %v1016_v25 = vpop.f32.mrb[19].mxu1 }
 0x11b   :  { %v1017_v26 = vadd.f32 %v1016_v25, %v1015_v20 }
 0x11c   :  { %903 = vst [vmem:[%s1376_s3 + $0x18] sm:$0xff] %v879_v22   ;;  %v634_v27 = vadd.f32 %v1014_v19, %v537_v23  ;;  %v540_v28 = vadd.f32 %v953_v24, %v1331_v2 }
 0x11e   :  { %v637_v29 = vadd.f32 %v1017_v26, %v540_v28  ;;  %v954_v30 = vpop.f32.mrb[20].mxu0  ;;  %v672_v33 = vmax.f32 %v634_v27, 0.0 }
 0x11f   :  { %v1018_v31 = vpop.f32.mrb[20].mxu1  ;;  %v955_v32 = vpop.f32.mrb[21].mxu0 }
 0x120   :  { %v673_v34 = vmax.f32 %v637_v29, 0.0  ;;  %v956_v35 = vadd.f32 %v955_v32, %v954_v30  ;;  %v1019_v36 = vpop.f32.mrb[21].mxu1  ;;  %v957_v37 = vpop.f32.mrb[22].mxu0 }
 0x121   :  { %v1020_v38 = vadd.f32 %v1019_v36, %v1018_v31  ;;  %v1021_v39 = vpop.f32.mrb[22].mxu1  ;;  %v958_v40 = vpop.f32.mrb[23].mxu0 }
 0x122   :  { %v884_v41 = vpack.c.bf16 %v673_v34, %v672_v33  ;;  %v545_v42 = vadd.f32 %v956_v35, %v1331_v2  ;;  %v959_v43 = vadd.f32 %v958_v40, %v957_v37  ;;  %v1022_v44 = vpop.f32.mrb[23].mxu1 }
 0x123   :  { %v1023_v45 = vadd.f32 %v1022_v44, %v1021_v39 }
 0x124   :  { %904 = vst [vmem:[%s1376_s3 + $0x20] sm:$0xff] %v884_v41   ;;  %v642_v46 = vadd.f32 %v1020_v38, %v545_v42  ;;  %v548_v47 = vadd.f32 %v959_v43, %v1331_v2 }
 0x126   :  { %v645_v48 = vadd.f32 %v1023_v45, %v548_v47  ;;  %v960_v49 = vpop.f32.mrb[24].mxu0  ;;  %v674_v52 = vmax.f32 %v642_v46, 0.0 }
 0x127   :  { %v1024_v50 = vpop.f32.mrb[24].mxu1  ;;  %v961_v51 = vpop.f32.mrb[25].mxu0 }
 0x128   :  { %v675_v53 = vmax.f32 %v645_v48, 0.0  ;;  %v962_v54 = vadd.f32 %v961_v51, %v960_v49  ;;  %v1025_v55 = vpop.f32.mrb[25].mxu1  ;;  %v963_v56 = vpop.f32.mrb[26].mxu0 }
 0x129   :  { %v1026_v57 = vadd.f32 %v1025_v55, %v1024_v50  ;;  %v1027_v58 = vpop.f32.mrb[26].mxu1  ;;  %v964_v59 = vpop.f32.mrb[27].mxu0 }
 0x12a   :  { %v889_v60 = vpack.c.bf16 %v675_v53, %v674_v52  ;;  %v553_v61 = vadd.f32 %v962_v54, %v1331_v2  ;;  %v965_v62 = vadd.f32 %v964_v59, %v963_v56  ;;  %v1028_v63 = vpop.f32.mrb[27].mxu1 }
 0x12b   :  { %v1029_v0 = vadd.f32 %v1028_v63, %v1027_v58 }
 0x12c   :  { %905 = vst [vmem:[%s1376_s3 + $0x28] sm:$0xff] %v889_v60   ;;  %v650_v1 = vadd.f32 %v1026_v57, %v553_v61  ;;  %v556_v3 = vadd.f32 %v965_v62, %v1331_v2 }
 0x12e   :  { %v653_v4 = vadd.f32 %v1029_v0, %v556_v3  ;;  %v966_v5 = vpop.f32.mrb[28].mxu0  ;;  %v676_v8 = vmax.f32 %v650_v1, 0.0 }
 0x12f   :  { %v1030_v6 = vpop.f32.mrb[28].mxu1  ;;  %v967_v7 = vpop.f32.mrb[29].mxu0 }
 0x130   :  { %v677_v9 = vmax.f32 %v653_v4, 0.0  ;;  %v968_v10 = vadd.f32 %v967_v7, %v966_v5  ;;  %v1031_v11 = vpop.f32.mrb[29].mxu1  ;;  %v969_v12 = vpop.f32.mrb[30].mxu0 }
 0x131   :  { %v1032_v13 = vadd.f32 %v1031_v11, %v1030_v6  ;;  %v1033_v14 = vpop.f32.mrb[30].mxu1  ;;  %v970_v15 = vpop.f32.mrb[31].mxu0 }
 0x132   :  { %v894_v16 = vpack.c.bf16 %v677_v9, %v676_v8  ;;  %v561_v17 = vadd.f32 %v968_v10, %v1331_v2  ;;  %v971_v18 = vadd.f32 %v970_v15, %v969_v12  ;;  %v1034_v19 = vpop.f32.mrb[31].mxu1 }
 0x133   :  { %v1035_v20 = vadd.f32 %v1034_v19, %v1033_v14 }
 0x134   :  { %906 = vst [vmem:[%s1376_s3 + $0x30] sm:$0xff] %v894_v16   ;;  %v658_v21 = vadd.f32 %v1032_v13, %v561_v17  ;;  %v564_v22 = vadd.f32 %v971_v18, %v1331_v2 }
 0x136   :  { %v661_v23 = vadd.f32 %v1035_v20, %v564_v22  ;;  %v678_v24 = vmax.f32 %v658_v21, 0.0 }
 0x138   :  { %v679_v25 = vmax.f32 %v661_v23, 0.0 }
 0x13a   :  { %v899_v26 = vpack.c.bf16 %v679_v25, %v678_v24 }
 0x13c   :  { %907 = vst [vmem:[%s1376_s3 + $0x38] sm:$0xff] %v899_v26  }

// kernel: feature_extractor_forward.12
= control target key start
LH: loop header
LB: loop body
LE: loop exit
PB: predicated region body
PF: predicated region fallthrough
CT: control target
= control target key end

     0   :  { %s761_s1 = inlined_call_operand.vmem [shape: bf16[512,128], index: 1, kind: input, shape index: {}]   ;;  %s762_s0 = inlined_call_operand.vmem [shape: bf16[32,512], index: 0, kind: input, shape index: {}]   ;;  %s763_s2 = inlined_call_operand.vmem [shape: f32[1,128], index: 2, kind: input, shape index: {}]   ;;  %s764_s3 = inlined_call_operand.vmem [shape: bf16[32,128], index: 3, kind: output, shape index: {}]  }
   0x1   :  { %v568_v0 = vld [vmem:[%s761_s1 + $0x40] sm:$0xff]   ;;  %v572_v4 = vld [vmem:[%s761_s1 + $0x48] sm:$0xff]   ;;  %v576_v8 = vld [vmem:[%s761_s1 + $0x50] sm:$0xff]  }
   0x2   :  { %v569_v1 = vld [vmem:[%s761_s1 + $0xc0] sm:$0xff]   ;;  %512 = vmatprep.subr.bf16.mxu0 %v568_v0  ;;  %v573_v5 = vld [vmem:[%s761_s1 + $0xc8] sm:$0xff]   ;;  %v577_v9 = vld [vmem:[%s761_s1 + $0xd0] sm:$0xff]  }
   0x3   :  { %v570_v2 = vld [vmem:[%s761_s1] sm:$0xff]   ;;  %540 = vmatprep.subr.bf16.mxu1 %v569_v1  ;;  %v574_v6 = vld [vmem:[%s761_s1 + $0x8] sm:$0xff]   ;;  %v578_v10 = vld [vmem:[%s761_s1 + $0x10] sm:$0xff]  }
   0x4   :  { %v571_v3 = vld [vmem:[%s761_s1 + $0x80] sm:$0xff]   ;;  %513 = vmatpush3.bf16.msra.mxu0 %v570_v2  ;;  %v575_v7 = vld [vmem:[%s761_s1 + $0x88] sm:$0xff]   ;;  %v579_v11 = vld [vmem:[%s761_s1 + $0x90] sm:$0xff]  }
   0x5   :  { %541 = vmatpush3.bf16.msra.mxu1 %v571_v3  ;;  %514 = vmatprep.subr.bf16.mxu0 %v572_v4  ;;  %v580_v12 = vld [vmem:[%s761_s1 + $0x58] sm:$0xff]   ;;  %v584_v16 = vld [vmem:[%s761_s1 + $0x60] sm:$0xff]   ;;  %v588_v20 = vld [vmem:[%s761_s1 + $0x68] sm:$0xff]  }
   0x6   :  { %542 = vmatprep.subr.bf16.mxu1 %v573_v5  ;;  %v581_v13 = vld [vmem:[%s761_s1 + $0xd8] sm:$0xff]   ;;  %v585_v17 = vld [vmem:[%s761_s1 + $0xe0] sm:$0xff]   ;;  %v589_v21 = vld [vmem:[%s761_s1 + $0xe8] sm:$0xff]  }
   0x7   :  { %v582_v14 = vld [vmem:[%s761_s1 + $0x18] sm:$0xff]   ;;  %v586_v18 = vld [vmem:[%s761_s1 + $0x20] sm:$0xff]   ;;  %v590_v22 = vld [vmem:[%s761_s1 + $0x28] sm:$0xff]  }
   0x8   :  { %515 = vmatpush3.bf16.msra.mxu0 %v574_v6  ;;  %v583_v15 = vld [vmem:[%s761_s1 + $0x98] sm:$0xff]   ;;  %v587_v19 = vld [vmem:[%s761_s1 + $0xa0] sm:$0xff]   ;;  %v591_v23 = vld [vmem:[%s761_s1 + $0xa8] sm:$0xff]  }
   0x9   :  { %543 = vmatpush3.bf16.msra.mxu1 %v575_v7  ;;  %516 = vmatprep.subr.bf16.mxu0 %v576_v8  ;;  %v592_v24 = vld [vmem:[%s761_s1 + $0x70] sm:$0xff]   ;;  %v596_v28 = vld [vmem:[%s761_s1 + $0x78] sm:$0xff]   ;;  %v452_v42 = vld [vmem:[%s763_s2] ss:$0 sm:$0xff] }
   0xa   :  { %544 = vmatprep.subr.bf16.mxu1 %v577_v9  ;;  %v593_v25 = vld [vmem:[%s761_s1 + $0xf0] sm:$0xff]   ;;  %v597_v29 = vld [vmem:[%s761_s1 + $0xf8] sm:$0xff]  }
   0xb   :  { %v594_v26 = vld [vmem:[%s761_s1 + $0x30] sm:$0xff]   ;;  %v598_v30 = vld [vmem:[%s761_s1 + $0x38] sm:$0xff]  }
   0xc   :  { %517 = vmatpush3.bf16.msra.mxu0 %v578_v10  ;;  %v595_v27 = vld [vmem:[%s761_s1 + $0xb0] sm:$0xff]   ;;  %v599_v31 = vld [vmem:[%s761_s1 + $0xb8] sm:$0xff]  }
   0xd   :  { %545 = vmatpush3.bf16.msra.mxu1 %v579_v11  ;;  %518 = vmatprep.subr.bf16.mxu0 %v580_v12  ;;  %v600_v32 = vld [vmem:[%s762_s0] ss:$16 sps:$4 sm:$0xff]   ;;  %v602_v33 = vld [vmem:[%s762_s0 + $0x4] ss:$16 sps:$4 sm:$0xff]   ;;  %v603_v34 = vld [vmem:[%s762_s0 + $0x8] ss:$16 sps:$4 sm:$0xff]  }
   0xe   :  { %546 = vmatprep.subr.bf16.mxu1 %v581_v13  ;;  %v605_v35 = vld [vmem:[%s762_s0 + $0xc] ss:$16 sps:$4 sm:$0xff]   ;;  %358 = vmatprep.mubr.bf16.mxu0 %v602_v33  ;;  %v606_v36 = vld [vmem:[%s762_s0 + $0x24] ss:$16 sps:$4 sm:$0xff]   ;;  %v610_v38 = vld [vmem:[%s762_s0 + $0x20] ss:$16 sps:$4 sm:$0xff]  }
   0xf   :  { %407 = vmatprep.mubr.bf16.mxu1 %v605_v35  ;;  %v608_v37 = vld [vmem:[%s762_s0 + $0x2c] ss:$16 sps:$4 sm:$0xff]   ;;  %v611_v39 = vld [vmem:[%s762_s0 + $0x28] ss:$16 sps:$4 sm:$0xff]  }
  0x10   :  { %519 = vmatpush3.bf16.msra.mxu0 %v582_v14 }
  0x11   :  { %547 = vmatpush3.bf16.msra.mxu1 %v583_v15  ;;  %520 = vmatprep.subr.bf16.mxu0 %v584_v16 }
  0x12   :  { %548 = vmatprep.subr.bf16.mxu1 %v585_v17 }
  0x14   :  { %521 = vmatpush3.bf16.msra.mxu0 %v586_v18 }
  0x15   :  { %549 = vmatpush3.bf16.msra.mxu1 %v587_v19  ;;  %522 = vmatprep.subr.bf16.mxu0 %v588_v20 }
  0x16   :  { %550 = vmatprep.subr.bf16.mxu1 %v589_v21 }
  0x18   :  { %523 = vmatpush3.bf16.msra.mxu0 %v590_v22 }
  0x19   :  { %551 = vmatpush3.bf16.msra.mxu1 %v591_v23  ;;  %524 = vmatprep.subr.bf16.mxu0 %v592_v24 }
  0x1a   :  { %552 = vmatprep.subr.bf16.mxu1 %v593_v25 }
  0x1c   :  { %525 = vmatpush3.bf16.msra.mxu0 %v594_v26 }
  0x1d   :  { %553 = vmatpush3.bf16.msra.mxu1 %v595_v27  ;;  %526 = vmatprep.subr.bf16.mxu0 %v596_v28 }
  0x1e   :  { %554 = vmatprep.subr.bf16.mxu1 %v597_v29 }
  0x20   :  { %527 = vmatpush3.bf16.msra.mxu0 %v598_v30 }
  0x21   :  { %555 = vmatpush3.bf16.msra.mxu1 %v599_v31 }
  0x23   :  { %359 = vmatmul.mubr.bf16.vlgmr.msra.gmra.mrb[0].mxu0 %v600_v32 }
  0x24   :  { %408 = vmatmul.mubr.bf16.vlgmr.msra.gmra.mrb[0].mxu1 %v603_v34  ;;  %366 = vmatprep.mubr.bf16.mxu0 %v606_v36 }
  0x25   :  { %415 = vmatprep.mubr.bf16.mxu1 %v608_v37 }
  0x2b   :  { %367 = vmatmul.mubr.bf16.gmra.mrb[4].mxu0 %v610_v38 }
  0x2c   :  { %416 = vmatmul.mubr.bf16.gmra.mrb[4].mxu1 %v611_v39 }
  0xf6   :  { %v528_v40 = vpop.f32.mrb[0].mxu0 }
  0xf7   :  { %v556_v41 = vpop.f32.mrb[0].mxu1  ;;  %v529_v43 = vpop.f32.mrb[1].mxu0 }
  0xf8   :  { %v530_v44 = vadd.f32 %v529_v43, %v528_v40  ;;  %v557_v45 = vpop.f32.mrb[1].mxu1  ;;  %v531_v46 = vpop.f32.mrb[2].mxu0 }
  0xf9   :  { %v558_v47 = vadd.f32 %v557_v45, %v556_v41  ;;  %v559_v48 = vpop.f32.mrb[2].mxu1  ;;  %v532_v49 = vpop.f32.mrb[3].mxu0 }
  0xfa   :  { %v361_v50 = vadd.f32 %v530_v44, %v452_v42  ;;  %v533_v51 = vadd.f32 %v532_v49, %v531_v46  ;;  %v560_v52 = vpop.f32.mrb[3].mxu1 }
  0xfb   :  { %v561_v53 = vadd.f32 %v560_v52, %v559_v48 }
  0xfc   :  { %v410_v54 = vadd.f32 %v558_v47, %v361_v50  ;;  %v364_v55 = vadd.f32 %v533_v51, %v452_v42 }
  0xfe   :  { %v413_v56 = vadd.f32 %v561_v53, %v364_v55  ;;  %v534_v57 = vpop.f32.mrb[4].mxu0  ;;  %v424_v60 = vmax.f32 %v410_v54, 0.0 }
  0xff   :  { %v562_v58 = vpop.f32.mrb[4].mxu1  ;;  %v535_v59 = vpop.f32.mrb[5].mxu0 }
 0x100   :  { %v425_v61 = vmax.f32 %v413_v56, 0.0  ;;  %v536_v62 = vadd.f32 %v535_v59, %v534_v57  ;;  %v563_v63 = vpop.f32.mrb[5].mxu1  ;;  %v537_v0 = vpop.f32.mrb[6].mxu0 }
 0x101   :  { %v564_v1 = vadd.f32 %v563_v63, %v562_v58  ;;  %v565_v2 = vpop.f32.mrb[6].mxu1  ;;  %v538_v3 = vpop.f32.mrb[7].mxu0 }
 0x102   :  { %v504_v4 = vpack.c.bf16 %v425_v61, %v424_v60  ;;  %v369_v5 = vadd.f32 %v536_v62, %v452_v42  ;;  %v539_v6 = vadd.f32 %v538_v3, %v537_v0  ;;  %v566_v7 = vpop.f32.mrb[7].mxu1 }
 0x103   :  { %v567_v8 = vadd.f32 %v566_v7, %v565_v2 }
 0x104   :  { %505 = vst [vmem:[%s764_s3] sm:$0xff] %v504_v4   ;;  %v418_v9 = vadd.f32 %v564_v1, %v369_v5  ;;  %v372_v10 = vadd.f32 %v539_v6, %v452_v42 }
 0x106   :  { %v421_v11 = vadd.f32 %v567_v8, %v372_v10  ;;  %v426_v12 = vmax.f32 %v418_v9, 0.0 }
 0x108   :  { %v427_v13 = vmax.f32 %v421_v11, 0.0 }
 0x10a   :  { %v509_v14 = vpack.c.bf16 %v427_v13, %v426_v12 }
 0x10c   :  { %511 = vst [vmem:[%s764_s3 + $0x8] sm:$0xff] %v509_v14  }

// kernel: feature_extractor_forward.13
= control target key start
LH: loop header
LB: loop body
LE: loop exit
PB: predicated region body
PF: predicated region fallthrough
CT: control target
= control target key end

     0   :  { %s1487_s1 = inlined_call_operand.vmem [shape: bf16[512,384], index: 1, kind: input, shape index: {}]   ;;  %s1488_s0 = inlined_call_operand.vmem [shape: bf16[8,512], index: 0, kind: input, shape index: {}]   ;;  %s1489_s2 = inlined_call_operand.vmem [shape: f32[1,384], index: 2, kind: input, shape index: {}]   ;;  %s1490_s3 = inlined_call_operand.vmem [shape: bf16[8,384], index: 3, kind: output, shape index: {}]  }
   0x1   :  { %v1026_v0 = vld [vmem:[%s1487_s1 + $0x4] ss:$12 sps:$4 sm:$0xff]   ;;  %v1028_v1 = vld [vmem:[%s1487_s1] ss:$12 sps:$4 sm:$0xff]   ;;  %v1029_v2 = vld [vmem:[%s1487_s1 + $0x1c] ss:$12 sps:$4 sm:$0xff]  }
   0x2   :  { %688 = vmatprep.subr.bf16.mxu0 %v1026_v0  ;;  %v1031_v3 = vld [vmem:[%s1487_s1 + $0x18] ss:$12 sps:$4 sm:$0xff]   ;;  %v1032_v4 = vld [vmem:[%s1487_s1 + $0x34] ss:$12 sps:$4 sm:$0xff]   ;;  %v1034_v5 = vld [vmem:[%s1487_s1 + $0x30] ss:$12 sps:$4 sm:$0xff]  }
   0x3   :  { %689 = vmatpush1.bf16.msra.mxu0 %v1028_v1  ;;  %v1035_v6 = vld [vmem:[%s1487_s1 + $0x4c] ss:$12 sps:$4 sm:$0xff]   ;;  %v1037_v7 = vld [vmem:[%s1487_s1 + $0x48] ss:$12 sps:$4 sm:$0xff]   ;;  %v1038_v8 = vld [vmem:[%s1487_s1 + $0x64] ss:$12 sps:$4 sm:$0xff]  }
   0x4   :  { %690 = vmatprep.subr.bf16.mxu0 %v1029_v2  ;;  %v1052_v9 = vld [vmem:[%s1487_s1 + $0xc8] ss:$12 sps:$4 sm:$0xff]   ;;  %v1040_v11 = vld [vmem:[%s1487_s1 + $0x60] ss:$12 sps:$4 sm:$0xff]   ;;  %v1043_v15 = vld [vmem:[%s1487_s1 + $0x78] ss:$12 sps:$4 sm:$0xff]  }
   0x5   :  { %v1054_v10 = vld [vmem:[%s1487_s1 + $0x8] ss:$12 sps:$4 sm:$0xff]   ;;  %976 = vmatprep.subr.bf16.mxu1 %v1052_v9  ;;  %v1057_v12 = vld [vmem:[%s1487_s1 + $0xe0] ss:$12 sps:$4 sm:$0xff]   ;;  %v1062_v17 = vld [vmem:[%s1487_s1 + $0xf8] ss:$12 sps:$4 sm:$0xff]  }
   0x6   :  { %977 = vmatpush3.bf16.msra.mxu1 %v1054_v10  ;;  %v1041_v13 = vld [vmem:[%s1487_s1 + $0x7c] ss:$12 sps:$4 sm:$0xff]   ;;  %v1059_v14 = vld [vmem:[%s1487_s1 + $0x20] ss:$12 sps:$4 sm:$0xff]   ;;  %v1064_v18 = vld [vmem:[%s1487_s1 + $0x38] ss:$12 sps:$4 sm:$0xff]  }
   0x7   :  { %691 = vmatpush1.bf16.msra.mxu0 %v1031_v3  ;;  %978 = vmatprep.subr.bf16.mxu1 %v1057_v12  ;;  %v1044_v16 = vld [vmem:[%s1487_s1 + $0x94] ss:$12 sps:$4 sm:$0xff]   ;;  %v1046_v19 = vld [vmem:[%s1487_s1 + $0x90] ss:$12 sps:$4 sm:$0xff]   ;;  %v1047_v22 = vld [vmem:[%s1487_s1 + $0xac] ss:$12 sps:$4 sm:$0xff]  }
   0x8   :  { %692 = vmatprep.subr.bf16.mxu0 %v1032_v4  ;;  %v1067_v20 = vld [vmem:[%s1487_s1 + $0x110] ss:$12 sps:$4 sm:$0xff]   ;;  %v1072_v23 = vld [vmem:[%s1487_s1 + $0x128] ss:$12 sps:$4 sm:$0xff]   ;;  %v1077_v27 = vld [vmem:[%s1487_s1 + $0x140] ss:$12 sps:$4 sm:$0xff]  }
   0x9   :  { %v1069_v21 = vld [vmem:[%s1487_s1 + $0x50] ss:$12 sps:$4 sm:$0xff]   ;;  %v1049_v24 = vld [vmem:[%s1487_s1 + $0xa8] ss:$12 sps:$4 sm:$0xff]   ;;  %v1053_v28 = vld [vmem:[%s1487_s1 + $0xc0] ss:$12 sps:$4 sm:$0xff]  }
   0xa   :  { %979 = vmatpush3.bf16.msra.mxu1 %v1059_v14  ;;  %v1074_v25 = vld [vmem:[%s1487_s1 + $0x68] ss:$12 sps:$4 sm:$0xff]   ;;  %v1050_v26 = vld [vmem:[%s1487_s1 + $0xc4] ss:$12 sps:$4 sm:$0xff]   ;;  %v1079_v29 = vld [vmem:[%s1487_s1 + $0x80] ss:$12 sps:$4 sm:$0xff]  }
   0xb   :  { %693 = vmatpush1.bf16.msra.mxu0 %v1034_v5  ;;  %980 = vmatprep.subr.bf16.mxu1 %v1062_v17  ;;  %v1055_v30 = vld [vmem:[%s1487_s1 + $0xdc] ss:$12 sps:$4 sm:$0xff]   ;;  %v1082_v31 = vld [vmem:[%s1487_s1 + $0x158] ss:$12 sps:$4 sm:$0xff]   ;;  %v1060_v33 = vld [vmem:[%s1487_s1 + $0xf4] ss:$12 sps:$4 sm:$0xff]  }
   0xc   :  { %694 = vmatprep.subr.bf16.mxu0 %v1035_v6  ;;  %v1058_v32 = vld [vmem:[%s1487_s1 + $0xd8] ss:$12 sps:$4 sm:$0xff]   ;;  %v1087_v35 = vld [vmem:[%s1487_s1 + $0x170] ss:$12 sps:$4 sm:$0xff]   ;;  %v1096_v41 = vld [vmem:[%s1487_s1 + $0x248] ss:$12 sps:$4 sm:$0xff]  }
   0xd   :  { %v1084_v34 = vld [vmem:[%s1487_s1 + $0x98] ss:$12 sps:$4 sm:$0xff]   ;;  %v1063_v36 = vld [vmem:[%s1487_s1 + $0xf0] ss:$12 sps:$4 sm:$0xff]   ;;  %v1068_v42 = vld [vmem:[%s1487_s1 + $0x108] ss:$12 sps:$4 sm:$0xff]  }
   0xe   :  { %981 = vmatpush3.bf16.msra.mxu1 %v1064_v18  ;;  %v15_v37 = vld [vmem:[%s1488_s0] sm:$0xff]  ;;  %v1065_v38 = vld [vmem:[%s1487_s1 + $0x10c] ss:$12 sps:$4 sm:$0xff]   ;;  %v1089_v40 = vld [vmem:[%s1487_s1 + $0xb0] ss:$12 sps:$4 sm:$0xff]  }
   0xf   :  { %695 = vmatpush1.bf16.msra.mxu0 %v1037_v7  ;;  %982 = vmatprep.subr.bf16.mxu1 %v1067_v20  ;;  %v873_v39 = vcombine.high %v15_v37, %v15_v37  ;;  %v1070_v43 = vld [vmem:[%s1487_s1 + $0x124] ss:$12 sps:$4 sm:$0xff]   ;;  %v1310_v44 = vld [vmem:[%s1488_s0 + $0x8] sm:$0xff]  ;;  %v872_v45 = vcombine.low %v15_v37, %v15_v37  ;;  %v1080_v55 = vld [vmem:[%s1487_s1 + $0x154] ss:$12 sps:$4 sm:$0xff]  }
  0x10   :  { %696 = vmatprep.subr.bf16.mxu0 %v1038_v8  ;;  %v1097_v46 = vld [vmem:[%s1487_s1 + $0x188] ss:$12 sps:$4 sm:$0xff]   ;;  %v1101_v47 = vld [vmem:[%s1487_s1 + $0x260] ss:$12 sps:$4 sm:$0xff]   ;;  %v875_v49 = vcombine.high %v1310_v44, %v1310_v44  ;;  %v1106_v52 = vld [vmem:[%s1487_s1 + $0x278] ss:$12 sps:$4 sm:$0xff]   ;;  %v874_v12 = vcombine.low %v1310_v44, %v1310_v44 }
  0x11   :  { %720 = vmatprep.mubr.bf16.mxu0 %v873_v39  ;;  %802 = vmatprep.mubr.bf16.mxu1 %v873_v39  ;;  %v1073_v48 = vld [vmem:[%s1487_s1 + $0x120] ss:$12 sps:$4 sm:$0xff]   ;;  %v1075_v50 = vld [vmem:[%s1487_s1 + $0x13c] ss:$12 sps:$4 sm:$0xff]   ;;  %v1078_v53 = vld [vmem:[%s1487_s1 + $0x138] ss:$12 sps:$4 sm:$0xff]  }
  0x12   :  { %983 = vmatpush3.bf16.msra.mxu1 %v1069_v21  ;;  %v1102_v51 = vld [vmem:[%s1487_s1 + $0x1a0] ss:$12 sps:$4 sm:$0xff]   ;;  %v1107_v54 = vld [vmem:[%s1487_s1 + $0x1b8] ss:$12 sps:$4 sm:$0xff]   ;;  %v1111_v56 = vld [vmem:[%s1487_s1 + $0x290] ss:$12 sps:$4 sm:$0xff]  }
  0x13   :  { %697 = vmatpush1.bf16.msra.mxu0 %v1040_v11  ;;  %984 = vmatprep.subr.bf16.mxu1 %v1072_v23  ;;  %v1083_v57 = vld [vmem:[%s1487_s1 + $0x150] ss:$12 sps:$4 sm:$0xff]   ;;  %v1085_v58 = vld [vmem:[%s1487_s1 + $0x16c] ss:$12 sps:$4 sm:$0xff]   ;;  %v1116_v60 = vld [vmem:[%s1487_s1 + $0x2a8] ss:$12 sps:$4 sm:$0xff]  }
  0x14   :  { %698 = vmatprep.subr.bf16.mxu0 %v1041_v13  ;;  %v1112_v59 = vld [vmem:[%s1487_s1 + $0x1d0] ss:$12 sps:$4 sm:$0xff]   ;;  %v1088_v61 = vld [vmem:[%s1487_s1 + $0x168] ss:$12 sps:$4 sm:$0xff]   ;;  %v1121_v0 = vld [vmem:[%s1487_s1 + $0x2c0] ss:$12 sps:$4 sm:$0xff]  }
  0x15   :  { %v1095_v62 = vld [vmem:[%s1487_s1 + $0x184] ss:$12 sps:$4 sm:$0xff]   ;;  %v1117_v63 = vld [vmem:[%s1487_s1 + $0x1e8] ss:$12 sps:$4 sm:$0xff]   ;;  %v1093_v1 = vld [vmem:[%s1487_s1 + $0x180] ss:$12 sps:$4 sm:$0xff]  }
  0x16   :  { %985 = vmatpush3.bf16.msra.mxu1 %v1074_v25  ;;  %v1100_v2 = vld [vmem:[%s1487_s1 + $0x19c] ss:$12 sps:$4 sm:$0xff]   ;;  %v1122_v3 = vld [vmem:[%s1487_s1 + $0x200] ss:$12 sps:$4 sm:$0xff]   ;;  %v1126_v4 = vld [vmem:[%s1487_s1 + $0x2d8] ss:$12 sps:$4 sm:$0xff]  }
  0x17   :  { %699 = vmatpush1.bf16.msra.mxu0 %v1043_v15  ;;  %986 = vmatprep.subr.bf16.mxu1 %v1077_v27  ;;  %v1098_v5 = vld [vmem:[%s1487_s1 + $0x198] ss:$12 sps:$4 sm:$0xff]   ;;  %v1105_v7 = vld [vmem:[%s1487_s1 + $0x1b4] ss:$12 sps:$4 sm:$0xff]   ;;  %v1131_v8 = vld [vmem:[%s1487_s1 + $0x2f0] ss:$12 sps:$4 sm:$0xff]  }
  0x18   :  { %700 = vmatprep.subr.bf16.mxu0 %v1044_v16  ;;  %v1127_v6 = vld [vmem:[%s1487_s1 + $0x218] ss:$12 sps:$4 sm:$0xff]   ;;  %v1103_v9 = vld [vmem:[%s1487_s1 + $0x1b0] ss:$12 sps:$4 sm:$0xff]   ;;  %v1108_v13 = vld [vmem:[%s1487_s1 + $0x1c8] ss:$12 sps:$4 sm:$0xff]  }
  0x19   :  { %v1132_v10 = vld [vmem:[%s1487_s1 + $0x230] ss:$12 sps:$4 sm:$0xff]   ;;  %v1110_v11 = vld [vmem:[%s1487_s1 + $0x1cc] ss:$12 sps:$4 sm:$0xff]   ;;  %v1125_v18 = vld [vmem:[%s1487_s1 + $0x214] ss:$12 sps:$4 sm:$0xff]  }
  0x1a   :  { %987 = vmatpush3.bf16.msra.mxu1 %v1079_v29  ;;  %v1115_v14 = vld [vmem:[%s1487_s1 + $0x1e4] ss:$12 sps:$4 sm:$0xff]   ;;  %v1113_v15 = vld [vmem:[%s1487_s1 + $0x1e0] ss:$12 sps:$4 sm:$0xff]   ;;  %v1120_v16 = vld [vmem:[%s1487_s1 + $0x1fc] ss:$12 sps:$4 sm:$0xff]  }
  0x1b   :  { %701 = vmatpush1.bf16.msra.mxu0 %v1046_v19  ;;  %988 = vmatprep.subr.bf16.mxu1 %v1082_v31  ;;  %v1118_v17 = vld [vmem:[%s1487_s1 + $0x1f8] ss:$12 sps:$4 sm:$0xff]   ;;  %v1123_v19 = vld [vmem:[%s1487_s1 + $0x210] ss:$12 sps:$4 sm:$0xff]   ;;  %v1128_v21 = vld [vmem:[%s1487_s1 + $0x228] ss:$12 sps:$4 sm:$0xff]  }
  0x1c   :  { %702 = vmatprep.subr.bf16.mxu0 %v1047_v22  ;;  %v1130_v20 = vld [vmem:[%s1487_s1 + $0x22c] ss:$12 sps:$4 sm:$0xff]   ;;  %v1136_v22 = vld [vmem:[%s1487_s1 + $0x244] ss:$12 sps:$4 sm:$0xff]   ;;  %v1143_v29 = vld [vmem:[%s1487_s1 + $0x288] ss:$12 sps:$4 sm:$0xff]  }
  0x1d   :  { %v1134_v23 = vld [vmem:[%s1487_s1 + $0x240] ss:$12 sps:$4 sm:$0xff]   ;;  %v1137_v25 = vld [vmem:[%s1487_s1 + $0x258] ss:$12 sps:$4 sm:$0xff]   ;;  %v1140_v27 = vld [vmem:[%s1487_s1 + $0x270] ss:$12 sps:$4 sm:$0xff]  }
  0x1e   :  { %989 = vmatpush3.bf16.msra.mxu1 %v1084_v34  ;;  %v1146_v31 = vld [vmem:[%s1487_s1 + $0x2a0] ss:$12 sps:$4 sm:$0xff]   ;;  %v1155_v37 = vld [vmem:[%s1487_s1 + $0x2e8] ss:$12 sps:$4 sm:$0xff]  }
  0x1f   :  { %703 = vmatpush1.bf16.msra.mxu0 %v1049_v24  ;;  %990 = vmatprep.subr.bf16.mxu1 %v1087_v35  ;;  %v1139_v24 = vld [vmem:[%s1487_s1 + $0x25c] ss:$12 sps:$4 sm:$0xff]   ;;  %v1154_v34 = vld [vmem:[%s1487_s1 + $0x2d4] ss:$12 sps:$4 sm:$0xff]  }
  0x20   :  { %704 = vmatprep.subr.bf16.mxu0 %v1050_v26  ;;  %v1142_v26 = vld [vmem:[%s1487_s1 + $0x274] ss:$12 sps:$4 sm:$0xff]   ;;  %v1152_v35 = vld [vmem:[%s1487_s1 + $0x2d0] ss:$12 sps:$4 sm:$0xff]  }
  0x22   :  { %991 = vmatpush3.bf16.msra.mxu1 %v1089_v40 }
  0x23   :  { %705 = vmatpush1.bf16.msra.mxu0 %v1053_v28  ;;  %998 = vmatprep.subr.bf16.mxu1 %v1096_v41  ;;  %v1145_v28 = vld [vmem:[%s1487_s1 + $0x28c] ss:$12 sps:$4 sm:$0xff]  }
  0x24   :  { %706 = vmatprep.subr.bf16.mxu0 %v1055_v30  ;;  %v1148_v30 = vld [vmem:[%s1487_s1 + $0x2a4] ss:$12 sps:$4 sm:$0xff]  }
  0x25   :  { %803 = vmatmul.mubr.bf16.vlgmr.msra.gmra.mrb[0].mxu1 %v872_v45 }
  0x26   :  { %999 = vmatpush3.bf16.msra.mxu1 %v1097_v46  ;;  %842 = vmatprep.mubr.bf16.mxu1 %v875_v49  ;;  %v145_v46 = vld [vmem:[%s1489_s2] sm:$0x7] }
  0x27   :  { %707 = vmatpush1.bf16.msra.mxu0 %v1058_v32  ;;  %1000 = vmatprep.subr.bf16.mxu1 %v1101_v47  ;;  %v1151_v32 = vld [vmem:[%s1487_s1 + $0x2bc] ss:$12 sps:$4 sm:$0xff]  }
  0x28   :  { %708 = vmatprep.subr.bf16.mxu0 %v1060_v33  ;;  %v1149_v33 = vld [vmem:[%s1487_s1 + $0x2b8] ss:$12 sps:$4 sm:$0xff]  }
  0x2a   :  { %1001 = vmatpush3.bf16.msra.mxu1 %v1102_v51 }
  0x2b   :  { %709 = vmatpush1.bf16.msra.mxu0 %v1063_v36  ;;  %1002 = vmatprep.subr.bf16.mxu1 %v1106_v52  ;;  %v1157_v36 = vld [vmem:[%s1487_s1 + $0x2ec] ss:$12 sps:$4 sm:$0xff]  }
  0x2c   :  { %710 = vmatprep.subr.bf16.mxu0 %v1065_v38 }
  0x2e   :  { %1003 = vmatpush3.bf16.msra.mxu1 %v1107_v54 }
  0x2f   :  { %711 = vmatpush1.bf16.msra.mxu0 %v1068_v42  ;;  %1004 = vmatprep.subr.bf16.mxu1 %v1111_v56 }
  0x30   :  { %712 = vmatprep.subr.bf16.mxu0 %v1070_v43  ;;  %v147_v43 = vlaneseq }
  0x32   :  { %1005 = vmatpush3.bf16.msra.mxu1 %v1112_v59  ;;  %v148_v44 = vshrl.u32 %v147_v43, 7 }
  0x33   :  { %713 = vmatpush1.bf16.msra.mxu0 %v1073_v48  ;;  %1006 = vmatprep.subr.bf16.mxu1 %v1116_v60 }
  0x34   :  { %714 = vmatprep.subr.bf16.mxu0 %v1075_v50 }
  0x36   :  { %1007 = vmatpush3.bf16.msra.mxu1 %v1117_v63 }
  0x37   :  { %715 = vmatpush1.bf16.msra.mxu0 %v1078_v53  ;;  %1008 = vmatprep.subr.bf16.mxu1 %v1121_v0 }
  0x38   :  { %716 = vmatprep.subr.bf16.mxu0 %v1080_v55 }
  0x3a   :  { %1009 = vmatpush3.bf16.msra.mxu1 %v1122_v3 }
  0x3b   :  { %717 = vmatpush1.bf16.msra.mxu0 %v1083_v57  ;;  %1010 = vmatprep.subr.bf16.mxu1 %v1126_v4  ;;  %v149_v57 = vsub.s32 0, %v148_v44 }
  0x3c   :  { %718 = vmatprep.subr.bf16.mxu0 %v1085_v58  ;;  %v153_v58 = vsub.s32 1, %v148_v44 }
  0x3d   :  { %v150_v59 = vrot.slane %v145_v46, %v149_v57 }
  0x3e   :  { %1011 = vmatpush3.bf16.msra.mxu1 %v1127_v6  ;;  %v154_v60 = vrot.slane %v145_v46, %v153_v58 }
  0x3f   :  { %719 = vmatpush1.bf16.msra.mxu0 %v1088_v61  ;;  %1012 = vmatprep.subr.bf16.mxu1 %v1131_v8 }
  0x40   :  { %729 = vmatprep.subr.bf16.mxu0 %v1095_v62 }
  0x42   :  { %721 = vmatmul.mubr.bf16.vlgmr.msra.gmra.mrb[0].mxu0 %v872_v45  ;;  %1013 = vmatpush3.bf16.msra.mxu1 %v1132_v10  ;;  %v157_v45 = vsub.s32 2, %v148_v44 }
  0x43   :  { %730 = vmatpush1.bf16.msra.mxu0 %v1093_v1  ;;  %761 = vmatprep.mubr.bf16.mxu0 %v875_v49 }
  0x44   :  { %731 = vmatprep.subr.bf16.mxu0 %v1100_v2  ;;  %v158_v47 = vrot.slane %v145_v46, %v157_v45 }
  0x45   :  { %843 = vmatmul.mubr.bf16.vlgmr.msra.gmra.mrb[4].mxu1 %v874_v12 }
  0x47   :  { %732 = vmatpush1.bf16.msra.mxu0 %v1098_v5 }
  0x48   :  { %733 = vmatprep.subr.bf16.mxu0 %v1105_v7 }
  0x4b   :  { %734 = vmatpush1.bf16.msra.mxu0 %v1103_v9 }
  0x4c   :  { %735 = vmatprep.subr.bf16.mxu0 %v1110_v11 }
  0x4f   :  { %736 = vmatpush1.bf16.msra.mxu0 %v1108_v13 }
  0x50   :  { %737 = vmatprep.subr.bf16.mxu0 %v1115_v14 }
  0x53   :  { %738 = vmatpush1.bf16.msra.mxu0 %v1113_v15 }
  0x54   :  { %739 = vmatprep.subr.bf16.mxu0 %v1120_v16 }
  0x57   :  { %740 = vmatpush1.bf16.msra.mxu0 %v1118_v17 }
  0x58   :  { %741 = vmatprep.subr.bf16.mxu0 %v1125_v18 }
  0x5b   :  { %742 = vmatpush1.bf16.msra.mxu0 %v1123_v19 }
  0x5c   :  { %743 = vmatprep.subr.bf16.mxu0 %v1130_v20 }
  0x5f   :  { %744 = vmatpush1.bf16.msra.mxu0 %v1128_v21 }
  0x60   :  { %745 = vmatprep.subr.bf16.mxu0 %v1136_v22 }
  0x63   :  { %746 = vmatpush1.bf16.msra.mxu0 %v1134_v23 }
  0x64   :  { %747 = vmatprep.subr.bf16.mxu0 %v1139_v24 }
  0x67   :  { %748 = vmatpush1.bf16.msra.mxu0 %v1137_v25 }
  0x68   :  { %749 = vmatprep.subr.bf16.mxu0 %v1142_v26 }
  0x6b   :  { %750 = vmatpush1.bf16.msra.mxu0 %v1140_v27 }
  0x6c   :  { %751 = vmatprep.subr.bf16.mxu0 %v1145_v28 }
  0x6f   :  { %752 = vmatpush1.bf16.msra.mxu0 %v1143_v29 }
  0x70   :  { %753 = vmatprep.subr.bf16.mxu0 %v1148_v30 }
  0x73   :  { %754 = vmatpush1.bf16.msra.mxu0 %v1146_v31 }
  0x74   :  { %755 = vmatprep.subr.bf16.mxu0 %v1151_v32 }
  0x77   :  { %756 = vmatpush1.bf16.msra.mxu0 %v1149_v33 }
  0x78   :  { %757 = vmatprep.subr.bf16.mxu0 %v1154_v34 }
  0x7b   :  { %758 = vmatpush1.bf16.msra.mxu0 %v1152_v35 }
  0x7c   :  { %759 = vmatprep.subr.bf16.mxu0 %v1157_v36 }
  0x7f   :  { %760 = vmatpush1.bf16.msra.mxu0 %v1155_v37 }
  0x82   :  { %762 = vmatmul.mubr.bf16.vlgmr.msra.gmra.mrb[0].mxu0 %v874_v12 }
  0xf8   :  { %v992_v38 = vpop.f32.mrb[0].mxu1 }
  0xf9   :  { %v993_v39 = vpop.f32.mrb[1].mxu1 }
  0xfa   :  { %v994_v40 = vadd.f32 %v993_v39, %v992_v38  ;;  %v995_v41 = vpop.f32.mrb[2].mxu1 }
  0xfb   :  { %v996_v42 = vpop.f32.mrb[3].mxu1 }
  0xfc   :  { %v805_v48 = vadd.f32 %v994_v40, %v158_v47 }
 0x118   :  { %v1014_v49 = vpop.f32.mrb[4].mxu1 }
 0x119   :  { %v1015_v50 = vpop.f32.mrb[5].mxu1 }
 0x11a   :  { %v1016_v51 = vadd.f32 %v1015_v50, %v1014_v49  ;;  %v1017_v52 = vpop.f32.mrb[6].mxu1 }
 0x11b   :  { %v1018_v53 = vpop.f32.mrb[7].mxu1 }
 0x11c   :  { %v845_v54 = vadd.f32 %v1016_v51, %v805_v48 }
 0x11e   :  { %v852_v55 = vmax.f32 %v845_v54, 0.0 }
 0x120   :  { %v975_v56 = vpack.c.bf16 %v852_v55, %v852_v55 }
 0x122   :  { %867 = vst [vmem:[%s1490_s3 + $0x8] sm:$0xf] %v975_v56 }
 0x155   :  { %v763_v61 = vpop.f32.mrb[0].mxu0 }
 0x156   :  { %v1020_v62 = vadd.f32 %v763_v61, %v150_v59  ;;  %v765_v63 = vpop.f32.mrb[1].mxu0 }
 0x157   :  { %v1021_v0 = vadd.f32 %v765_v63, %v154_v60  ;;  %v767_v1 = vpop.f32.mrb[2].mxu0 }
 0x158   :  { %v850_v2 = vmax.f32 %v1020_v62, 0.0  ;;  %v768_v3 = vpop.f32.mrb[3].mxu0 }
 0x159   :  { %v851_v4 = vmax.f32 %v1021_v0, 0.0 }
 0x15b   :  { %v974_v5 = vpack.c.bf16 %v851_v4, %v850_v2 }
 0x15d   :  { %866 = vst [vmem:[%s1490_s3] sm:$0xff] %v974_v5 }

// kernel: feature_extractor_forward.16
= control target key start
LH: loop header
LB: loop body
LE: loop exit
PB: predicated region body
PF: predicated region fallthrough
CT: control target
= control target key end

     0   :  { %v420_v1 = vmov 0.0   ;;  %vm421_vm0 = vmmov 0   ;;  %s526_s1 = inlined_call_operand.vmem [shape: bf16[384,128], index: 1, kind: input, shape index: {}]   ;;  %s527_s0 = inlined_call_operand.vmem [shape: bf16[8,384], index: 0, kind: input, shape index: {}]   ;;  %s528_s2 = inlined_call_operand.vmem [shape: f32[1,128], index: 2, kind: input, shape index: {}]   ;;  %s529_s3 = inlined_call_operand.vmem [shape: f32[8,128], index: 3, kind: output, shape index: {}]  }
   0x1   :  { %v393_v0 = vld [vmem:[%s526_s1 + $0x40] sm:$0xff]   ;;  %371 = vmatprep.subr.bf16.mxu1 %v420_v1  ;;  %387 = vmatprep.mubr.msk.bf16.mxu1 %vm421_vm0, %v420_v1  ;;  %v396_v4 = vld [vmem:[%s526_s1 + $0x48] sm:$0xff]   ;;  %v399_v7 = vld [vmem:[%s526_s1 + $0x50] sm:$0xff]  }
   0x2   :  { %v394_v2 = vld [vmem:[%s526_s1] sm:$0xff]   ;;  %340 = vmatprep.subr.bf16.mxu0 %v393_v0  ;;  %v397_v5 = vld [vmem:[%s526_s1 + $0x8] sm:$0xff]   ;;  %v400_v8 = vld [vmem:[%s526_s1 + $0x10] sm:$0xff]  }
   0x3   :  { %v395_v3 = vld [vmem:[%s526_s1 + $0x80] sm:$0xff]   ;;  %341 = vmatpush3.bf16.msra.mxu0 %v394_v2  ;;  %v398_v6 = vld [vmem:[%s526_s1 + $0x88] sm:$0xff]   ;;  %v401_v9 = vld [vmem:[%s526_s1 + $0x90] sm:$0xff]  }
   0x4   :  { %372 = vmatpush3.bf16.msra.mxu1 %v395_v3  ;;  %342 = vmatprep.subr.bf16.mxu0 %v396_v4  ;;  %v402_v10 = vld [vmem:[%s526_s1 + $0x58] sm:$0xff]   ;;  %v405_v13 = vld [vmem:[%s526_s1 + $0x60] sm:$0xff]   ;;  %v408_v16 = vld [vmem:[%s526_s1 + $0x68] sm:$0xff]  }
   0x5   :  { %373 = vmatprep.subr.bf16.mxu1 %v420_v1  ;;  %v403_v11 = vld [vmem:[%s526_s1 + $0x18] sm:$0xff]   ;;  %v406_v14 = vld [vmem:[%s526_s1 + $0x20] sm:$0xff]   ;;  %v409_v17 = vld [vmem:[%s526_s1 + $0x28] sm:$0xff]  }
   0x6   :  { %v404_v12 = vld [vmem:[%s526_s1 + $0x98] sm:$0xff]   ;;  %v407_v15 = vld [vmem:[%s526_s1 + $0xa0] sm:$0xff]   ;;  %v410_v18 = vld [vmem:[%s526_s1 + $0xa8] sm:$0xff]  }
   0x7   :  { %343 = vmatpush3.bf16.msra.mxu0 %v397_v5  ;;  %v411_v19 = vld [vmem:[%s526_s1 + $0x70] sm:$0xff]   ;;  %v15_v22 = vld [vmem:[%s527_s0] sm:$0xff]  ;;  %v414_v23 = vld [vmem:[%s526_s1 + $0x78] sm:$0xff]  }
   0x8   :  { %374 = vmatpush3.bf16.msra.mxu1 %v398_v6  ;;  %344 = vmatprep.subr.bf16.mxu0 %v399_v7  ;;  %v412_v20 = vld [vmem:[%s526_s1 + $0x30] sm:$0xff]   ;;  %v314_v24 = vcombine.high %v15_v22, %v15_v22  ;;  %v415_v25 = vld [vmem:[%s526_s1 + $0x38] sm:$0xff]   ;;  %v313_v27 = vcombine.low %v15_v22, %v15_v22  ;;  %v418_v28 = vld [vmem:[%s527_s0 + $0x8] ss:$0 sps:$4 sm:$0xff]  }
   0x9   :  { %375 = vmatprep.subr.bf16.mxu1 %v420_v1  ;;  %v413_v21 = vld [vmem:[%s526_s1 + $0xb0] sm:$0xff]   ;;  %v419_v26 = vld [vmem:[%s526_s1 + $0xb8] sm:$0xff]   ;;  %v312_v31 = vld [vmem:[%s528_s2] ss:$0 sm:$0xff] }
   0xa   :  { %259 = vmatprep.mubr.bf16.mxu0 %v314_v24 }
   0xb   :  { %345 = vmatpush3.bf16.msra.mxu0 %v400_v8 }
   0xc   :  { %376 = vmatpush3.bf16.msra.mxu1 %v401_v9  ;;  %346 = vmatprep.subr.bf16.mxu0 %v402_v10 }
   0xd   :  { %377 = vmatprep.subr.bf16.mxu1 %v420_v1 }
   0xf   :  { %347 = vmatpush3.bf16.msra.mxu0 %v403_v11 }
  0x10   :  { %378 = vmatpush3.bf16.msra.mxu1 %v404_v12  ;;  %348 = vmatprep.subr.bf16.mxu0 %v405_v13 }
  0x11   :  { %379 = vmatprep.subr.bf16.mxu1 %v420_v1 }
  0x13   :  { %349 = vmatpush3.bf16.msra.mxu0 %v406_v14 }
  0x14   :  { %380 = vmatpush3.bf16.msra.mxu1 %v407_v15  ;;  %350 = vmatprep.subr.bf16.mxu0 %v408_v16 }
  0x15   :  { %381 = vmatprep.subr.bf16.mxu1 %v420_v1 }
  0x17   :  { %351 = vmatpush3.bf16.msra.mxu0 %v409_v17 }
  0x18   :  { %382 = vmatpush3.bf16.msra.mxu1 %v410_v18  ;;  %352 = vmatprep.subr.bf16.mxu0 %v411_v19 }
  0x19   :  { %383 = vmatprep.subr.bf16.mxu1 %v420_v1 }
  0x1b   :  { %353 = vmatpush3.bf16.msra.mxu0 %v412_v20 }
  0x1c   :  { %384 = vmatpush3.bf16.msra.mxu1 %v413_v21  ;;  %354 = vmatprep.subr.bf16.mxu0 %v414_v23 }
  0x1d   :  { %385 = vmatprep.subr.bf16.mxu1 %v420_v1 }
  0x1f   :  { %355 = vmatpush3.bf16.msra.mxu0 %v415_v25 }
  0x20   :  { %386 = vmatpush3.bf16.msra.mxu1 %v419_v26 }
  0x22   :  { %260 = vmatmul.mubr.bf16.vlgmr.msra.gmra.mrb[0].mxu0 %v313_v27 }
  0x23   :  { %388 = vmatmul.mubr.bf16.vlgmr.msra.gmra.mrb[0].mxu1 %v418_v28 }
  0xf5   :  { %v356_v29 = vpop.f32.mrb[0].mxu0 }
  0xf6   :  { %v357_v30 = vpop.f32.mrb[1].mxu0  ;;  %v301_v32 = vpop.f32.mrb[0].mxu1 }
  0xf7   :  { %v358_v33 = vadd.f32 %v357_v30, %v356_v29  ;;  %v359_v34 = vpop.f32.mrb[2].mxu0  ;;  %v389_v35 = vpop.f32.mrb[1].mxu1 }
  0xf8   :  { %v360_v36 = vpop.f32.mrb[3].mxu0  ;;  %v304_v37 = vpop.f32.mrb[2].mxu1 }
  0xf9   :  { %v262_v38 = vadd.f32 %v358_v33, %v312_v31  ;;  %v390_v39 = vpop.f32.mrb[3].mxu1 }
  0xfb   :  { %v302_v40 = vadd.f32 %v301_v32, %v262_v38 }
  0xfd   :  { %307 = vst [vmem:[%s529_s3] sm:$0xff] %v302_v40 }

// kernel: feature_extractor_forward.15
= control target key start
LH: loop header
LB: loop body
LE: loop exit
PB: predicated region body
PF: predicated region fallthrough
CT: control target
= control target key end

     0   :  { %s275_s1 = inlined_call_operand.vmem [shape: bf16[128,128], index: 1, kind: input, shape index: {}]   ;;  %s276_s0 = inlined_call_operand.vmem [shape: bf16[32,128], index: 0, kind: input, shape index: {}]   ;;  %s277_s2 = inlined_call_operand.vmem [shape: f32[1,128], index: 2, kind: input, shape index: {}]   ;;  %s278_s3 = inlined_call_operand.vmem [shape: f32[32,128], index: 3, kind: output, shape index: {}]  }
   0x1   :  { %v200_v0 = vld [vmem:[%s275_s1] sm:$0xff]   ;;  %v201_v1 = vld [vmem:[%s275_s1 + $0x8] sm:$0xff]   ;;  %v202_v2 = vld [vmem:[%s275_s1 + $0x10] sm:$0xff]  }
   0x2   :  { %180 = vmatprep.subr.bf16.mxu0 %v200_v0  ;;  %v203_v3 = vld [vmem:[%s275_s1 + $0x18] sm:$0xff]   ;;  %v208_v4 = vld [vmem:[%s276_s0] sm:$0xff]   ;;  %v205_v6 = vld [vmem:[%s275_s1 + $0x28] sm:$0xff]  }
   0x3   :  { %181 = vmatpush3.bf16.msra.mxu0 %v200_v0  ;;  %196 = vmatprep.mubr.bf16.mxu0 %v208_v4  ;;  %v204_v5 = vld [vmem:[%s275_s1 + $0x20] sm:$0xff]   ;;  %v206_v7 = vld [vmem:[%s275_s1 + $0x30] sm:$0xff]   ;;  %v207_v8 = vld [vmem:[%s275_s1 + $0x38] sm:$0xff]  }
   0x4   :  { %182 = vmatprep.subr.bf16.mxu0 %v201_v1  ;;  %v209_v9 = vld [vmem:[%s276_s0 + $0x8] sm:$0xff]   ;;  %v159_v10 = vld [vmem:[%s277_s2] ss:$0 sm:$0xff] }
   0x7   :  { %183 = vmatpush3.bf16.msra.mxu0 %v201_v1 }
   0x8   :  { %184 = vmatprep.subr.bf16.mxu0 %v202_v2 }
   0xb   :  { %185 = vmatpush3.bf16.msra.mxu0 %v202_v2 }
   0xc   :  { %186 = vmatprep.subr.bf16.mxu0 %v203_v3 }
   0xf   :  { %187 = vmatpush3.bf16.msra.mxu0 %v203_v3 }
  0x10   :  { %188 = vmatprep.subr.bf16.mxu0 %v204_v5 }
  0x13   :  { %189 = vmatpush3.bf16.msra.mxu0 %v204_v5 }
  0x14   :  { %190 = vmatprep.subr.bf16.mxu0 %v205_v6 }
  0x17   :  { %191 = vmatpush3.bf16.msra.mxu0 %v205_v6 }
  0x18   :  { %192 = vmatprep.subr.bf16.mxu0 %v206_v7 }
  0x1b   :  { %193 = vmatpush3.bf16.msra.mxu0 %v206_v7 }
  0x1c   :  { %194 = vmatprep.subr.bf16.mxu0 %v207_v8 }
  0x1f   :  { %195 = vmatpush3.bf16.msra.mxu0 %v207_v8 }
  0x22   :  { %197 = vmatmul.mubr.bf16.vlgmr.msra.gmra.mrb[0].mxu0 %v209_v9 }
  0xf5   :  { %v198_v11 = vpop.f32.mrb[0].mxu0 }
  0xf6   :  { %v145_v12 = vadd.f32 %v198_v11, %v159_v10  ;;  %v136_v13 = vpop.f32.mrb[1].mxu0 }
  0xf7   :  { %v137_v14 = vadd.f32 %v159_v10, %v136_v13  ;;  %v199_v15 = vpop.f32.mrb[2].mxu0 }
  0xf8   :  { %153 = vst [vmem:[%s278_s3 + $0x10] sm:$0xff] %v145_v12  ;;  %v148_v16 = vadd.f32 %v199_v15, %v159_v10  ;;  %v139_v17 = vpop.f32.mrb[3].mxu0 }
  0xf9   :  { %151 = vst [vmem:[%s278_s3] sm:$0xff] %v137_v14  ;;  %v140_v18 = vadd.f32 %v159_v10, %v139_v17 }
  0xfa   :  { %154 = vst [vmem:[%s278_s3 + $0x18] sm:$0xff] %v148_v16 }
  0xfb   :  { %152 = vst [vmem:[%s278_s3 + $0x8] sm:$0xff] %v140_v18 }

// kernel: feature_extractor_forward.14
= control target key start
LH: loop header
LB: loop body
LE: loop exit
PB: predicated region body
PF: predicated region fallthrough
CT: control target
= control target key end

     0   :  { %s483_s1 = inlined_call_operand.vmem [shape: bf16[128,128], index: 1, kind: input, shape index: {}]   ;;  %s484_s0 = inlined_call_operand.vmem [shape: bf16[128,128], index: 0, kind: input, shape index: {}]   ;;  %s485_s2 = inlined_call_operand.vmem [shape: f32[1,128], index: 2, kind: input, shape index: {}]   ;;  %s486_s3 = inlined_call_operand.vmem [shape: f32[128,128], index: 3, kind: output, shape index: {}]  }
   0x1   :  { %v348_v0 = vld [vmem:[%s483_s1] sm:$0xff]   ;;  %v349_v1 = vld [vmem:[%s483_s1 + $0x8] sm:$0xff]   ;;  %v350_v2 = vld [vmem:[%s483_s1 + $0x10] sm:$0xff]  }
   0x2   :  { %300 = vmatprep.subr.bf16.mxu0 %v348_v0  ;;  %332 = vmatprep.subr.bf16.mxu1 %v348_v0  ;;  %v351_v3 = vld [vmem:[%s483_s1 + $0x18] sm:$0xff]   ;;  %v356_v4 = vld [vmem:[%s484_s0] sm:$0xff]   ;;  %v353_v7 = vld [vmem:[%s483_s1 + $0x28] sm:$0xff]  }
   0x3   :  { %301 = vmatpush3.bf16.msra.mxu0 %v348_v0  ;;  %340 = vmatpush3.bf16.msra.mxu1 %v348_v0  ;;  %v357_v5 = vld [vmem:[%s484_s0 + $0x20] sm:$0xff]   ;;  %v354_v8 = vld [vmem:[%s483_s1 + $0x30] sm:$0xff]   ;;  %v355_v9 = vld [vmem:[%s483_s1 + $0x38] sm:$0xff]  }
   0x4   :  { %302 = vmatprep.subr.bf16.mxu0 %v349_v1  ;;  %333 = vmatprep.subr.bf16.mxu1 %v349_v1  ;;  %v352_v6 = vld [vmem:[%s483_s1 + $0x20] sm:$0xff]   ;;  %v358_v10 = vld [vmem:[%s484_s0 + $0x8] sm:$0xff]   ;;  %v360_v12 = vld [vmem:[%s484_s0 + $0x10] sm:$0xff]  }
   0x5   :  { %316 = vmatprep.mubr.bf16.mxu0 %v356_v4  ;;  %324 = vmatprep.mubr.bf16.mxu1 %v357_v5  ;;  %v359_v11 = vld [vmem:[%s484_s0 + $0x28] sm:$0xff]   ;;  %v361_v13 = vld [vmem:[%s484_s0 + $0x30] sm:$0xff]   ;;  %v362_v14 = vld [vmem:[%s484_s0 + $0x18] sm:$0xff]  }
   0x6   :  { %v363_v15 = vld [vmem:[%s484_s0 + $0x38] sm:$0xff]   ;;  %v267_v16 = vld [vmem:[%s485_s2] ss:$0 sm:$0xff] }
   0x7   :  { %303 = vmatpush3.bf16.msra.mxu0 %v349_v1  ;;  %341 = vmatpush3.bf16.msra.mxu1 %v349_v1 }
   0x8   :  { %304 = vmatprep.subr.bf16.mxu0 %v350_v2  ;;  %334 = vmatprep.subr.bf16.mxu1 %v350_v2 }
   0xb   :  { %305 = vmatpush3.bf16.msra.mxu0 %v350_v2  ;;  %342 = vmatpush3.bf16.msra.mxu1 %v350_v2 }
   0xc   :  { %306 = vmatprep.subr.bf16.mxu0 %v351_v3  ;;  %335 = vmatprep.subr.bf16.mxu1 %v351_v3 }
   0xf   :  { %307 = vmatpush3.bf16.msra.mxu0 %v351_v3  ;;  %343 = vmatpush3.bf16.msra.mxu1 %v351_v3 }
  0x10   :  { %308 = vmatprep.subr.bf16.mxu0 %v352_v6  ;;  %336 = vmatprep.subr.bf16.mxu1 %v352_v6 }
  0x13   :  { %309 = vmatpush3.bf16.msra.mxu0 %v352_v6  ;;  %344 = vmatpush3.bf16.msra.mxu1 %v352_v6 }
  0x14   :  { %310 = vmatprep.subr.bf16.mxu0 %v353_v7  ;;  %337 = vmatprep.subr.bf16.mxu1 %v353_v7 }
  0x17   :  { %311 = vmatpush3.bf16.msra.mxu0 %v353_v7  ;;  %345 = vmatpush3.bf16.msra.mxu1 %v353_v7 }
  0x18   :  { %312 = vmatprep.subr.bf16.mxu0 %v354_v8  ;;  %338 = vmatprep.subr.bf16.mxu1 %v354_v8 }
  0x1b   :  { %313 = vmatpush3.bf16.msra.mxu0 %v354_v8  ;;  %346 = vmatpush3.bf16.msra.mxu1 %v354_v8 }
  0x1c   :  { %314 = vmatprep.subr.bf16.mxu0 %v355_v9  ;;  %339 = vmatprep.subr.bf16.mxu1 %v355_v9 }
  0x1f   :  { %315 = vmatpush3.bf16.msra.mxu0 %v355_v9  ;;  %347 = vmatpush3.bf16.msra.mxu1 %v355_v9 }
  0x22   :  { %317 = vmatmul.mubr.bf16.vlgmr.msra.gmra.mrb[0].mxu0 %v358_v10  ;;  %325 = vmatmul.mubr.bf16.vlgmr.msra.gmra.mrb[0].mxu1 %v359_v11 }
  0x23   :  { %320 = vmatprep.mubr.bf16.mxu0 %v360_v12  ;;  %328 = vmatprep.mubr.bf16.mxu1 %v361_v13 }
  0x2a   :  { %321 = vmatmul.mubr.bf16.gmra.mrb[4].mxu0 %v362_v14  ;;  %329 = vmatmul.mubr.bf16.gmra.mrb[4].mxu1 %v363_v15 }
  0xf5   :  { %v318_v17 = vpop.f32.mrb[0].mxu0  ;;  %v326_v18 = vpop.f32.mrb[0].mxu1 }
  0xf6   :  { %v193_v19 = vadd.f32 %v318_v17, %v267_v16  ;;  %v225_v20 = vadd.f32 %v326_v18, %v267_v16  ;;  %v184_v21 = vpop.f32.mrb[1].mxu0  ;;  %v216_v22 = vpop.f32.mrb[1].mxu1 }
  0xf7   :  { %v185_v23 = vadd.f32 %v267_v16, %v184_v21  ;;  %v217_v24 = vadd.f32 %v267_v16, %v216_v22  ;;  %v319_v25 = vpop.f32.mrb[2].mxu0  ;;  %v327_v26 = vpop.f32.mrb[2].mxu1 }
  0xf8   :  { %249 = vst [vmem:[%s486_s3 + $0x10] sm:$0xff] %v193_v19  ;;  %257 = vst [vmem:[%s486_s3 + $0x50] sm:$0xff] %v225_v20  ;;  %v196_v27 = vadd.f32 %v319_v25, %v267_v16  ;;  %v228_v28 = vadd.f32 %v327_v26, %v267_v16  ;;  %v187_v29 = vpop.f32.mrb[3].mxu0  ;;  %v219_v30 = vpop.f32.mrb[3].mxu1 }
  0xf9   :  { %247 = vst [vmem:[%s486_s3] sm:$0xff] %v185_v23  ;;  %255 = vst [vmem:[%s486_s3 + $0x40] sm:$0xff] %v217_v24  ;;  %v188_v31 = vadd.f32 %v267_v16, %v187_v29  ;;  %v220_v32 = vadd.f32 %v267_v16, %v219_v30 }
  0xfa   :  { %250 = vst [vmem:[%s486_s3 + $0x18] sm:$0xff] %v196_v27  ;;  %258 = vst [vmem:[%s486_s3 + $0x58] sm:$0xff] %v228_v28 }
  0xfb   :  { %248 = vst [vmem:[%s486_s3 + $0x8] sm:$0xff] %v188_v31  ;;  %256 = vst [vmem:[%s486_s3 + $0x48] sm:$0xff] %v220_v32 }
  0xfd   :  { %v322_v33 = vpop.f32.mrb[4].mxu0  ;;  %v330_v34 = vpop.f32.mrb[4].mxu1 }
  0xfe   :  { %v209_v35 = vadd.f32 %v322_v33, %v267_v16  ;;  %v241_v36 = vadd.f32 %v330_v34, %v267_v16  ;;  %v200_v37 = vpop.f32.mrb[5].mxu0  ;;  %v232_v38 = vpop.f32.mrb[5].mxu1 }
  0xff   :  { %v201_v39 = vadd.f32 %v267_v16, %v200_v37  ;;  %v233_v40 = vadd.f32 %v267_v16, %v232_v38  ;;  %v323_v41 = vpop.f32.mrb[6].mxu0  ;;  %v331_v42 = vpop.f32.mrb[6].mxu1 }
 0x100   :  { %253 = vst [vmem:[%s486_s3 + $0x30] sm:$0xff] %v209_v35  ;;  %261 = vst [vmem:[%s486_s3 + $0x70] sm:$0xff] %v241_v36  ;;  %v212_v43 = vadd.f32 %v323_v41, %v267_v16  ;;  %v244_v44 = vadd.f32 %v331_v42, %v267_v16  ;;  %v203_v45 = vpop.f32.mrb[7].mxu0  ;;  %v235_v46 = vpop.f32.mrb[7].mxu1 }
 0x101   :  { %251 = vst [vmem:[%s486_s3 + $0x20] sm:$0xff] %v201_v39  ;;  %259 = vst [vmem:[%s486_s3 + $0x60] sm:$0xff] %v233_v40  ;;  %v204_v47 = vadd.f32 %v267_v16, %v203_v45  ;;  %v236_v48 = vadd.f32 %v267_v16, %v235_v46 }
 0x102   :  { %254 = vst [vmem:[%s486_s3 + $0x38] sm:$0xff] %v212_v43  ;;  %262 = vst [vmem:[%s486_s3 + $0x78] sm:$0xff] %v244_v44 }
 0x103   :  { %252 = vst [vmem:[%s486_s3 + $0x28] sm:$0xff] %v204_v47  ;;  %260 = vst [vmem:[%s486_s3 + $0x68] sm:$0xff] %v236_v48 }

// kernel: feature_extractor_forward.17
= control target key start
LH: loop header
LB: loop body
LE: loop exit
PB: predicated region body
PF: predicated region fallthrough
CT: control target
= control target key end

     0   :  { %s5270_s13 = smov 0   ;;  %s5272_s14 = smov 0   ;;  %s6080_s0 = inlined_call_operand.vmem [shape: bf16[2,16,16,128], index: 0, kind: input, shape index: {}, may-alias: {0,1,2}]   ;;  %s6081_s1 = inlined_call_operand.vmem [shape: bf16[2,16,16,128], index: 1, kind: input, shape index: {}, may-alias: {0,1,2}]   ;;  %s6082_s2 = inlined_call_operand.vmem [shape: bf16[2,16,16,128], index: 2, kind: input, shape index: {}, may-alias: {0,1,2}]   ;;  %s6083_s3 = inlined_call_operand.vmem [shape: bf16[2,8,16,128], index: 3, kind: input, shape index: {}, may-alias: {3,4,5}]   ;;  %s6084_s4 = inlined_call_operand.vmem [shape: bf16[2,8,16,128], index: 4, kind: input, shape index: {}, may-alias: {3,4,5}]   ;;  %s6085_s5 = inlined_call_operand.vmem [shape: bf16[2,8,16,128], index: 5, kind: input, shape index: {}, may-alias: {3,4,5}]   ;;  %s6086_s6 = inlined_call_operand.vmem [shape: bf16[128,128], index: 6, kind: input, shape index: {}]   ;;  %s6087_s7 = inlined_call_operand.vmem [shape: f32[1,128], index: 7, kind: input, shape index: {}]   ;;  %s6088_s8 = inlined_call_operand.vmem [shape: bf16[1152,128], index: 8, kind: input, shape index: {}]   ;;  %s6089_s9 = inlined_call_operand.vmem [shape: f32[1,128], index: 9, kind: input, shape index: {}]   ;;  %s6090_s10 = inlined_call_operand.vmem [shape: bf16[2,16,16,128], index: 10, kind: output, shape index: {}]  }
   0x1   :  { %6092 = sst [smem:[#allocation6_spill]] %s6080_s0  ;;  %s5274_s15 = smov 0  }
   0x2   :  { %6093 = sst [smem:[#allocation7_spill]] %s6081_s1  ;;  %s5276_s16 = smov 0  }
   0x3   :  { %6094 = sst [smem:[#allocation8_spill]] %s6082_s2  ;;  %s5278_s17 = smov 0  }
   0x4 LB: > { %s29_s18 = sadd.s32 1, %s5202_s15  ;;  %s32_s19 = sadd.s32 1, %s5206_s16  ;;  %s5210_s17 = sphi %s5278_s17, %s20_s17   ;;  %s5206_s16 = sphi %s5276_s16, %s6114_s16   ;;  %s5202_s15 = sphi %s5274_s15, %s6113_s15   ;;  %s5198_s14 = sphi %s5272_s14, %s6112_s14   ;;  %s5194_s13 = sphi %s5270_s13, %s6111_s13  }
   0x5   : > { %p30_p0 = scmp.ge.s32.totalorder %s29_s18, 2  ;;  %p4091_p1 = scmp.ge.s32.totalorder %s5210_s17, 1 }
   0x6   : > { %p480_p2 = scmp.lt.s32.totalorder %s5210_s17, 5 }
   0x7   : > { %s6116_s18 = smov (%p30_p0, %s29_s18), 0  ;;  %s6118_s19 = smov (!%p30_p0, %s32_s19), %s5206_s16 }
   0x8   : > { %6095 = sst [smem:[#allocation4_spill]] %s6116_s18  ;;  %p481_p3 = pnand %p4091_p1, %p480_p2 }
   0x9   : > { %p34_p4 = scmp.ge.s32.totalorder %s6118_s19, 2  ;;  %v5307_v0 = vld [vmem:[%s6086_s6] sm:$0xff] (!%p481_p3)   ;;  %v5212_v1 = vmov (!%p481_p3), 0.0   ;;  %v5313_v2 = vld [vmem:[%s6086_s6 + $0x8] sm:$0xff] (!%p481_p3)   ;;  %s5320_s24 = sshll.u32 (!%p481_p3), %s5194_s13, 3  ;;  %v5327_v3 = vld [vmem:[%s6086_s6 + $0x10] sm:$0xff] (!%p481_p3)  }
   0xa   : > { %484 = sbr.rel (%p481_p3) target bundleno = 665 (0x299), region = 60  ;;  %4846 = vmatprep.subr.bf16.mxu1 (!%p481_p3), %v5212_v1  ;;  %4814 = vmatprep.subr.bf16.mxu0 (!%p481_p3), %v5307_v0  ;;  %p591_p5 = scmp.lt.s32.totalorder (!%p481_p3), %s5198_s14, 1  ;;  %vm5213_vm0 = vmmov (!%p481_p3), 0   ;;  %v5342_v4 = vld [vmem:[%s6086_s6 + $0x18] sm:$0xff] (!%p481_p3)   ;;  %v4965_v5 = vld [vmem:[%s6086_s6 + $0x20] sm:$0xff] (!%p481_p3)   ;;  %v4966_v7 = vld [vmem:[%s6086_s6 + $0x28] sm:$0xff] (!%p481_p3)  }
   0xb   : > { %s6120_s19 = smov (%p34_p4, %s6118_s19), 0  ;;  %4847 = vmatpush3.bf16.msra.mxu1 (!%p481_p3), %v5307_v0  ;;  %4815 = vmatpush3.bf16.msra.mxu0 (!%p481_p3), %v5307_v0  ;;  %p593_p6 = scmp.lt.s32.totalorder (!%p481_p3), %s5320_s24, 15  ;;  %v4967_v8 = vld [vmem:[%s6086_s6 + $0x30] sm:$0xff] (!%p481_p3)   ;;  %v4968_v9 = vld [vmem:[%s6086_s6 + $0x38] sm:$0xff] (!%p481_p3)   ;;  %v4979_v18 = vld [vmem:[%s6088_s8 + $0xc0] sm:$0xff] (!%p481_p3)   ;;  %v5214_v25 = vmov (!%p481_p3), 0  }
   0xc   : > { %6096 = sst [smem:[#allocation5_spill]] %s6120_s19  ;;  %4848 = vmatprep.subr.bf16.mxu1 (!%p481_p3), %v5212_v1  ;;  %4816 = vmatprep.subr.bf16.mxu0 (!%p481_p3), %v5313_v2  ;;  %s4097_s12 = sadd.s32 (!%p481_p3), 4294967295, %s5320_s24  ;;  %v4980_v20 = vld [vmem:[%s6088_s8 + $0x80] sm:$0xff] (!%p481_p3)   ;;  %v4982_v21 = vld [vmem:[%s6088_s8 + $0xc8] sm:$0xff] (!%p481_p3)   ;;  %1078 = vst [vmem:[#allocation2] sm:$0xf] (!%p481_p3), %v5214_v25 }
   0xd   : > { %4862 = vmatprep.mubr.msk.bf16.mxu1 (!%p481_p3), %vm5213_vm0, %v5212_v1  ;;  %p603_p7 = scmp.gt.s32.totalorder (!%p481_p3), %s4097_s12, 0  ;;  %p4098_p8 = scmp.lt.s32.totalorder (!%p481_p3), %s4097_s12, 15  ;;  %v4981_v22 = vld [vmem:[%s6088_s8 + $0x40] sm:$0xff] (!%p481_p3)   ;;  %v4984_v23 = vld [vmem:[%s6088_s8 + $0x88] sm:$0xff] (!%p481_p3)   ;;  %1079 = vst [vmem:[#allocation2 + $0x4] sm:$0xf] (!%p481_p3), %v5214_v25 }
   0xe   : > { %s6097_s0 = sld [smem:[#allocation6_spill]] (!%p481_p3)  ;;  %s619_s28 = sadd.s32 (!%p481_p3), 8, %s5320_s24  ;;  %v4983_v24 = vld [vmem:[%s6088_s8] sm:$0xff] (!%p481_p3)   ;;  %1080 = vst [vmem:[#allocation2 + $0x8] sm:$0x1] (!%p481_p3), %v5214_v25  ;;  %v4986_v26 = vld [vmem:[%s6088_s8 + $0xd0] sm:$0xff] (!%p481_p3)  }
   0xf   : > { %4849 = vmatpush3.bf16.msra.mxu1 (!%p481_p3), %v5313_v2  ;;  %4817 = vmatpush3.bf16.msra.mxu0 (!%p481_p3), %v5313_v2  ;;  %p5369_p9 = scmp.lt.s32.totalorder (!%p481_p3), %s619_s28, 15  ;;  %s6099_s1 = sld [smem:[#allocation7_spill]] (!%p481_p3)  ;;  %1081 = vst [vmem:[#allocation2 + $0xc] sm:$0xf] (!%p481_p3), %v5214_v25  ;;  %1082 = vst [vmem:[#allocation2 + $0x10] sm:$0xf] (!%p481_p3), %v5214_v25 }
  0x10   : > { %4850 = vmatprep.subr.bf16.mxu1 (!%p481_p3), %v5212_v1  ;;  %4818 = vmatprep.subr.bf16.mxu0 (!%p481_p3), %v5327_v3  ;;  %s6100_s2 = sld [smem:[#allocation8_spill]] (!%p481_p3)  ;;  %1083 = vst [vmem:[#allocation2 + $0x14] sm:$0x1] (!%p481_p3), %v5214_v25  ;;  %1084 = vst [vmem:[#allocation2 + $0x18] sm:$0xf] (!%p481_p3), %v5214_v25  ;;  %v4985_v27 = vld [vmem:[%s6088_s8 + $0x48] sm:$0xff] (!%p481_p3)  }
  0x11   : > { %s6122_s14 = smov (!%p591_p5, %s5198_s14), 1  ;;  %s6124_s12 = smov (!%p603_p7, %s4097_s12), 0  ;;  %1085 = vst [vmem:[#allocation2 + $0x1c] sm:$0xf] %v5214_v25  ;;  %1086 = vst [vmem:[#allocation2 + $0x20] sm:$0x1] %v5214_v25 }
  0x12   : > { %s594_s27 = scalar_select %p593_p6, %s5320_s24, 15  ;;  %1087 = vst [vmem:[#allocation2 + $0x24] sm:$0xf] %v5214_v25  ;;  %1088 = vst [vmem:[#allocation2 + $0x28] sm:$0xf] %v5214_v25  ;;  %v4988_v28 = vld [vmem:[%s6088_s8 + $0x90] sm:$0xff]  }
  0x13   : > { %s5345_s30 = sshll.u32 %s6122_s14, 5  ;;  %4851 = vmatpush3.bf16.msra.mxu1 %v5327_v3  ;;  %4819 = vmatpush3.bf16.msra.mxu0 %v5327_v3  ;;  %s6126_s12 = smov (!%p4098_p8, %s6124_s12), 15  ;;  %1089 = vst [vmem:[#allocation2 + $0x2c] sm:$0x1] %v5214_v25  ;;  %1090 = vst [vmem:[#allocation2 + $0x30] sm:$0xf] %v5214_v25 }
  0x14   : > { %s4093_s11 = sshll.u32 %s594_s27, 1  ;;  %4852 = vmatprep.subr.bf16.mxu1 %v5212_v1  ;;  %4820 = vmatprep.subr.bf16.mxu0 %v5342_v4  ;;  %s6128_s28 = smov (!%p5369_p9, %s619_s28), 15  ;;  %1091 = vst [vmem:[#allocation2 + $0x34] sm:$0xf] %v5214_v25  ;;  %1092 = vst [vmem:[#allocation2 + $0x38] sm:$0x1] %v5214_v25 }
  0x15   : > { %s5350_s20 = sadd.s32 %s5345_s30, %s4093_s11  ;;  %s4103_s22 = sshll.u32 %s6126_s12, 1  ;;  %1093 = vst [vmem:[#allocation2 + $0x3c] sm:$0xf] %v5214_v25  ;;  %1094 = vst [vmem:[#allocation2 + $0x40] sm:$0xf] %v5214_v25  ;;  %v4987_v29 = vld [vmem:[%s6088_s8 + $0x8] sm:$0xff]  }
  0x16   : > { %s6091_s21 = sshll.u32 %s5350_s20, 2  ;;  %s611_s23 = sadd.s32 %s4103_s22, %s5345_s30  ;;  %1095 = vst [vmem:[#allocation2 + $0x44] sm:$0x1] %v5214_v25  ;;  %1096 = vst [vmem:[#allocation2 + $0x48] sm:$0xf] %v5214_v25  ;;  %v4990_v30 = vld [vmem:[%s6088_s8 + $0xd8] sm:$0xff]  }
  0x17   : > { %s5364_s27 = scalar_lea.vmem %s6097_s0, %s6091_s21  ;;  %4853 = vmatpush3.bf16.msra.mxu1 %v5342_v4  ;;  %4821 = vmatpush3.bf16.msra.mxu0 %v5342_v4  ;;  %s4105_s25 = sshll.u32 %s611_s23, 2  ;;  %1097 = vst [vmem:[#allocation2 + $0x4c] sm:$0xf] %v5214_v25  ;;  %1098 = vst [vmem:[#allocation2 + $0x50] sm:$0x1] %v5214_v25  ;;  %v4989_v31 = vld [vmem:[%s6088_s8 + $0x50] sm:$0xff]  }
  0x18   : > { %v4970_v6 = vld [vmem:[%s5364_s27] sm:$0xff]   ;;  %4854 = vmatprep.subr.bf16.mxu1 %v5212_v1  ;;  %4822 = vmatprep.subr.bf16.mxu0 %v4965_v5  ;;  %s613_s0 = scalar_lea.vmem %s6099_s1, %s4105_s25  ;;  %s6130_s28 = smov (!%p5369_p9, %s6128_s28), 15  ;;  %v4971_v11 = vld [vmem:[%s5364_s27 + $0x8] sm:$0xff]   ;;  %v4972_v12 = vld [vmem:[%s5364_s27 + $0x10] sm:$0xff]   ;;  %1099 = vst [vmem:[#allocation2 + $0x54] sm:$0xf] %v5214_v25 }
  0x19   : > { %4830 = vmatprep.mubr.bf16.mxu0 %v4970_v6  ;;  %s4110_s12 = sshll.u32 %s6130_s28, 1  ;;  %v4969_v10 = vld [vmem:[%s613_s0] sm:$0xff]   ;;  %v4973_v13 = vld [vmem:[%s5364_s27 + $0x18] sm:$0xff]   ;;  %v4975_v15 = vld [vmem:[%s5364_s27 + $0x28] sm:$0xff]   ;;  %1100 = vst [vmem:[#allocation2 + $0x58] sm:$0xf] %v5214_v25 }
  0x1a   : > { %s628_s24 = sadd.s32 %s4110_s12, %s5345_s30  ;;  %v4974_v14 = vld [vmem:[%s5364_s27 + $0x20] sm:$0xff]   ;;  %v4976_v16 = vld [vmem:[%s5364_s27 + $0x30] sm:$0xff]   ;;  %v4977_v17 = vld [vmem:[%s5364_s27 + $0x38] sm:$0xff]   ;;  %1101 = vst [vmem:[#allocation2 + $0x5c] sm:$0x1] %v5214_v25  ;;  %s5532_s22 = sshll.u32 %s5194_s13, 2 }
  0x1b   : > { %4855 = vmatpush3.bf16.msra.mxu1 %v4965_v5  ;;  %4823 = vmatpush3.bf16.msra.mxu0 %v4965_v5  ;;  %s5396_s21 = sshll.u32 %s628_s24, 2  ;;  %1102 = vst [vmem:[#allocation2 + $0x60] sm:$0xf] %v5214_v25  ;;  %1103 = vst [vmem:[#allocation2 + $0x64] sm:$0xf] %v5214_v25  ;;  %v4992_v32 = vld [vmem:[%s6088_s8 + $0x98] sm:$0xff]  }
  0x1c   : > { %4856 = vmatprep.subr.bf16.mxu1 %v5212_v1  ;;  %4824 = vmatprep.subr.bf16.mxu0 %v4966_v7  ;;  %s630_s29 = scalar_lea.vmem %s6100_s2, %s5396_s21  ;;  %1104 = vst [vmem:[#allocation2 + $0x68] sm:$0x1] %v5214_v25  ;;  %1105 = vst [vmem:[#allocation2 + $0x6c] sm:$0xf] %v5214_v25  ;;  %v4991_v33 = vld [vmem:[%s6088_s8 + $0x10] sm:$0xff]   ;;  %v4993_v34 = vld [vmem:[%s6088_s8 + $0x58] sm:$0xff]  }
  0x1d   : > { %v4978_v19 = vld [vmem:[%s630_s29] sm:$0xff]   ;;  %1106 = vst [vmem:[#allocation2 + $0x70] sm:$0xf] %v5214_v25  ;;  %1107 = vst [vmem:[#allocation2 + $0x74] sm:$0x1] %v5214_v25  ;;  %v4995_v36 = vld [vmem:[%s6088_s8 + $0x18] sm:$0xff]  }
  0x1e   : > { %v4994_v35 = vld [vmem:[%s6088_s8 + $0xe0] sm:$0xff]   ;;  %v4998_v38 = vld [vmem:[%s6088_s8 + $0xe8] sm:$0xff]   ;;  %v5002_v42 = vld [vmem:[%s6088_s8 + $0xf0] sm:$0xff]   ;;  %s4118_s18 = sadd.s32 4294967295, %s5532_s22  ;;  %p638_p12 = scmp.lt.s32.totalorder %s5532_s22, 7  ;;  %vm1320_vm1 = vcmask 1043456  }
  0x1f   : > { %4857 = vmatpush3.bf16.msra.mxu1 %v4966_v7  ;;  %4825 = vmatpush3.bf16.msra.mxu0 %v4966_v7  ;;  %v4996_v37 = vld [vmem:[%s6088_s8 + $0xa0] sm:$0xff]   ;;  %v5000_v40 = vld [vmem:[%s6088_s8 + $0xa8] sm:$0xff]   ;;  %v5004_v44 = vld [vmem:[%s6088_s8 + $0xb0] sm:$0xff]   ;;  %p648_p10 = scmp.gt.s32.totalorder %s4118_s18, 0  ;;  %p4119_p11 = scmp.lt.s32.totalorder %s4118_s18, 7  ;;  %vm1327_vm5 = vcmask 1040384  }
  0x20   : > { %4858 = vmatprep.subr.bf16.mxu1 %v5212_v1  ;;  %4826 = vmatprep.subr.bf16.mxu0 %v4967_v8  ;;  %v4997_v39 = vld [vmem:[%s6088_s8 + $0x60] sm:$0xff]   ;;  %v5001_v43 = vld [vmem:[%s6088_s8 + $0x68] sm:$0xff]   ;;  %v5006_v46 = vld [vmem:[%s6088_s8 + $0xf8] sm:$0xff]   ;;  %s639_s21 = scalar_select %p638_p12, %s5532_s22, 7  ;;  %vm1321_vm2 = vsmask.f32 7938 }
  0x21   : > { %v4999_v41 = vld [vmem:[%s6088_s8 + $0x20] sm:$0xff]   ;;  %v5003_v45 = vld [vmem:[%s6088_s8 + $0x28] sm:$0xff]   ;;  %v5005_v47 = vld [vmem:[%s6088_s8 + $0x70] sm:$0xff]   ;;  %s6132_s18 = smov (!%p648_p10, %s4118_s18), 0  ;;  %s5538_s19 = sshll.u32 %s6122_s14, 4  ;;  %vm1809_vm9 = vcmask 1046528  }
  0x22   : > { %v5008_v48 = vld [vmem:[%s6088_s8 + $0xb8] sm:$0xff]   ;;  %v5007_v49 = vld [vmem:[%s6088_s8 + $0x30] sm:$0xff]   ;;  %v5017_v52 = vld [vmem:[%s6088_s8 + $0x140] sm:$0xff]   ;;  %s6134_s18 = smov (!%p4119_p11, %s6132_s18), 7  ;;  %s4114_s0 = sshll.u32 %s639_s21, 1 }
  0x23   : > { %4859 = vmatpush3.bf16.msra.mxu1 %v4967_v8  ;;  %4827 = vmatpush3.bf16.msra.mxu0 %v4967_v8  ;;  %v5010_v50 = vld [vmem:[%s6088_s8 + $0x78] sm:$0xff]   ;;  %v5048_v53 = vld [vmem:[%s6088_s8 + $0x1c0] sm:$0xff]   ;;  %s4124_s29 = sshll.u32 %s6134_s18, 1  ;;  %s642_s28 = sadd.s32 %s5538_s19, %s4114_s0  ;;  %vm1156_vm3 = vsmask.f32 256  ;;  %vm5576_vm6 = vmand %vm1320_vm1, %vm1321_vm2 }
  0x24   : > { %4860 = vmatprep.subr.bf16.mxu1 %v5212_v1  ;;  %4828 = vmatprep.subr.bf16.mxu0 %v4968_v9  ;;  %v5013_v51 = vld [vmem:[%s6088_s8 + $0x38] sm:$0xff]   ;;  %s656_s30 = sadd.s32 %s4124_s29, %s5538_s19  ;;  %p1054_p13 = scmp.gt.s32.totalorder %s5194_s13, 0  ;;  %v5555_v56 = vld [vmem:[%s6087_s7] ss:$0 sm:$0xff]  ;;  %vm1157_vm4 = vsmask.f32 4368  ;;  %vm5591_vm8 = vmand %vm1327_vm5, %vm1156_vm3 }
  0x25   : > { %s4126_s23 = sshll.u32 %s656_s30, 2  ;;  %s4116_s27 = sshll.u32 %s642_s28, 2  ;;  %vm5582_vm7 = vmor %vm1156_vm3, %vm1157_vm4  ;;  %vm1608_vm10 = vsmask.f32 7424 }
  0x26   : > { %s658_s12 = scalar_lea.vmem %s6084_s4, %s4126_s23  ;;  %s5549_s2 = scalar_lea.vmem %s6083_s3, %s4116_s27 }
  0x27   : > { %4861 = vmatpush3.bf16.msra.mxu1 %v4968_v9  ;;  %4829 = vmatpush3.bf16.msra.mxu0 %v4968_v9  ;;  %s1055_s24 = scalar_select %p1054_p13, 1, 0  ;;  %v4451_v54 = vld [vmem:[%s658_s12] sm:$0xff]  }
  0x28   : > { %4866 = vmatprep.subr.bf16.mxu0 %v5212_v1  ;;  %4542 = vmatprep.subr.bf16.mxu1 %v4981_v22  ;;  %v4435_v55 = vld [vmem:[%s5549_s2] sm:$0xff]   ;;  %v4452_v57 = vunpack.c.l.bf16 %v4451_v54  ;;  %p1057_p0 = scmp.lt.s32.totalorder %s5194_s13, 1  ;;  %s4397_s12 = sadd.s32 4, %s5532_s22 }
  0x29   : > { %s1056_s14 = scvt.s32.f32 %s1055_s24  ;;  %v4436_v59 = vunpack.c.l.bf16 %v4435_v55  ;;  %p5709_p1 = scmp.lt.s32.totalorder %s4397_s12, 7 }
  0x2a   : > { %4863 = vmatmul.mubr.bf16.vlgmr.msra.gmra.mrb[0].mxu1 %v4969_v10  ;;  %4831 = vmatmul.mubr.bf16.vlgmr.msra.gmra.mrb[0].mxu0 %v4971_v11  ;;  %v5562_v10 = vld [vmem:[%s5549_s2 + $0x8] sm:$0xff]   ;;  %s5630_s1 = scalar_select %p1057_p0, 1, 0 }
  0x2b   : > { %4834 = vmatprep.mubr.bf16.mxu0 %v4972_v12  ;;  %4867 = vmatpush3.bf16.msra.mxu0 %v5307_v0  ;;  %v1066_v61 = vstv %s1056_s14  ;;  %v4453_v0 = vunpack.c.h.bf16 %v4451_v54  ;;  %v4441_v22 = vunpack.c.h.bf16 %v5562_v10  ;;  %s6136_s12 = smov (!%p5709_p1, %s4397_s12), 7 }
  0x2c   : > { %4868 = vmatprep.subr.bf16.mxu0 %v5212_v1  ;;  %4543 = vmatpush3.bf16.msra.mxu1 %v4983_v24  ;;  %s670_s18 = scalar_select %p5709_p1, %s6136_s12, 7 }
  0x2d   : > { %4544 = vmatprep.subr.bf16.mxu1 %v4985_v27  ;;  %s1059_s24 = scvt.s32.f32 %s5630_s1 }
  0x2e   : > { %s4131_s23 = sshll.u32 %s670_s18, 1 }
  0x2f   : > { %4869 = vmatpush3.bf16.msra.mxu0 %v5313_v2  ;;  %s673_s27 = sadd.s32 %s4131_s23, %s5538_s19 }
  0x30   : > { %4870 = vmatprep.subr.bf16.mxu0 %v5212_v1  ;;  %4545 = vmatpush3.bf16.msra.mxu1 %v4987_v29  ;;  %s5859_s12 = sshll.u32 %s673_s27, 2 }
  0x31   : > { %4546 = vmatprep.subr.bf16.mxu1 %v4989_v31  ;;  %s675_s25 = scalar_lea.vmem %s6085_s5, %s5859_s12 }
  0x32   : > { %4835 = vmatmul.mubr.bf16.gmra.mrb[4].mxu0 %v4973_v13 }
  0x33   : > { %4838 = vmatprep.mubr.bf16.mxu0 %v4974_v14  ;;  %4871 = vmatpush3.bf16.msra.mxu0 %v5327_v3  ;;  %v5566_v14 = vld [vmem:[%s5549_s2 + $0x10] sm:$0xff]  }
  0x34   : > { %4872 = vmatprep.subr.bf16.mxu0 %v5212_v1  ;;  %4547 = vmatpush3.bf16.msra.mxu1 %v4991_v33  ;;  %v1332_v33 = vld [vmem:[#allocation2 + $0x18] sm:$0xf] }
  0x35   : > { %4548 = vmatprep.subr.bf16.mxu1 %v4993_v34 }
  0x37   : > { %4873 = vmatpush3.bf16.msra.mxu0 %v5342_v4  ;;  %v4437_v4 = vunpack.c.h.bf16 %v4435_v55 }
  0x38   : > { %4874 = vmatprep.subr.bf16.mxu0 %v5212_v1  ;;  %4549 = vmatpush3.bf16.msra.mxu1 %v4995_v36 }
  0x39   : > { %4550 = vmatprep.subr.bf16.mxu1 %v4997_v39 }
  0x3a   : > { %4839 = vmatmul.mubr.bf16.gmra.mrb[8].mxu0 %v4975_v15 }
  0x3b   : > { %4842 = vmatprep.mubr.bf16.mxu0 %v4976_v16  ;;  %4875 = vmatpush3.bf16.msra.mxu0 %v4965_v5 }
  0x3c   : > { %4876 = vmatprep.subr.bf16.mxu0 %v5212_v1  ;;  %4551 = vmatpush3.bf16.msra.mxu1 %v4999_v41 }
  0x3d   : > { %4552 = vmatprep.subr.bf16.mxu1 %v5001_v43 }
  0x3f   : > { %4877 = vmatpush3.bf16.msra.mxu0 %v4966_v7 }
  0x40   : > { %4878 = vmatprep.subr.bf16.mxu0 %v5212_v1  ;;  %4553 = vmatpush3.bf16.msra.mxu1 %v5003_v45 }
  0x41   : > { %4554 = vmatprep.subr.bf16.mxu1 %v5005_v47 }
  0x42   : > { %4843 = vmatmul.mubr.bf16.gmra.mrb[12].mxu0 %v4977_v17 }
  0x43   : > { %4879 = vmatpush3.bf16.msra.mxu0 %v4967_v8  ;;  %4882 = vmatprep.mubr.msk.bf16.mxu0 %vm5213_vm0, %v5212_v1 }
  0x44   : > { %4880 = vmatprep.subr.bf16.mxu0 %v5212_v1  ;;  %4555 = vmatpush3.bf16.msra.mxu1 %v5007_v49 }
  0x45   : > { %4556 = vmatprep.subr.bf16.mxu1 %v5010_v50 }
  0x47   : > { %4881 = vmatpush3.bf16.msra.mxu0 %v4968_v9 }
  0x48   : > { %4606 = vmatprep.subr.bf16.mxu0 %v4979_v18  ;;  %4557 = vmatpush3.bf16.msra.mxu1 %v5013_v51  ;;  %v1323_v51 = vld [vmem:[#allocation2 + $0xc] sm:$0xf] }
  0x49   : > { %4670 = vmatprep.subr.bf16.mxu1 %v5017_v52 }
  0x4a   : > { %4883 = vmatmul.mubr.bf16.vlgmr.msra.gmra.mrb[16].mxu0 %v4978_v19 }
  0x4b   : > { %4607 = vmatpush3.bf16.msra.mxu0 %v4980_v20 }
  0x4c   : > { %4608 = vmatprep.subr.bf16.mxu0 %v4982_v21  ;;  %v4440_v21 = vunpack.c.l.bf16 %v5562_v10 }
  0x4f   : > { %4609 = vmatpush3.bf16.msra.mxu0 %v4984_v23 }
  0x50   : > { %4610 = vmatprep.subr.bf16.mxu0 %v4986_v26  ;;  %v4444_v26 = vunpack.c.l.bf16 %v5566_v14 }
  0x53   : > { %4611 = vmatpush3.bf16.msra.mxu0 %v4988_v28 }
  0x54   : > { %4612 = vmatprep.subr.bf16.mxu0 %v4990_v30 }
  0x57   : > { %4613 = vmatpush3.bf16.msra.mxu0 %v4992_v32 }
  0x58   : > { %4614 = vmatprep.subr.bf16.mxu0 %v4994_v35 }
  0x5b   : > { %4615 = vmatpush3.bf16.msra.mxu0 %v4996_v37  ;;  %v1407_v37 = vld [vmem:[#allocation2] sm:$0xf] }
  0x5c   : > { %4616 = vmatprep.subr.bf16.mxu0 %v4998_v38 }
  0x5f   : > { %4617 = vmatpush3.bf16.msra.mxu0 %v5000_v40 }
  0x60   : > { %4618 = vmatprep.subr.bf16.mxu0 %v5002_v42 }
  0x63   : > { %4619 = vmatpush3.bf16.msra.mxu0 %v5004_v44 }
  0x64   : > { %4620 = vmatprep.subr.bf16.mxu0 %v5006_v46 }
  0x67   : > { %4621 = vmatpush3.bf16.msra.mxu0 %v5008_v48  ;;  %v5144_v48 = vld [vmem:[%s6088_s8 + $0x230] sm:$0xff]  }
  0x68   : > { %4734 = vmatprep.subr.bf16.mxu0 %v5048_v53 }
  0xfd   : > { %v966_v58 = vpop.f32.mrb[0].mxu1  ;;  %v4832_v63 = vpop.f32.mrb[0].mxu0 }
  0xfe   : > { %v967_v60 = vadd.f32 %v5555_v56, %v966_v58  ;;  %v4864_v62 = vpop.f32.mrb[1].mxu1  ;;  %v870_v1 = vadd.f32 %v4832_v63, %v5555_v56  ;;  %v861_v3 = vpop.f32.mrb[1].mxu0 }
  0xff   : > { %v969_v2 = vpop.f32.mrb[2].mxu1  ;;  %v862_v7 = vadd.f32 %v5555_v56, %v861_v3  ;;  %v4833_v9 = vpop.f32.mrb[2].mxu0 }
 0x100   : > { %v1064_v5 = vadd.f32 %v4452_v57, %v967_v60  ;;  %v970_v6 = vadd.f32 %v5555_v56, %v969_v2  ;;  %v4865_v8 = vpop.f32.mrb[3].mxu1  ;;  %v1040_v11 = vadd.f32 %v4436_v59, %v870_v1  ;;  %v873_v12 = vadd.f32 %v4833_v9, %v5555_v56  ;;  %v864_v13 = vpop.f32.mrb[3].mxu0 }
 0x101   : > { %v1038_v17 = vadd.f32 %v4436_v59, %v862_v7  ;;  %v865_v18 = vadd.f32 %v5555_v56, %v864_v13 }
 0x102   : > { %v1067_v15 = vmul.f32 %v1066_v61, %v1064_v5  ;;  %v1065_v16 = vadd.f32 %v4453_v0, %v970_v6  ;;  %v4400_v19 = vpack.c.bf16 %v1040_v11, %v1040_v11  ;;  %v1041_v20 = vadd.f32 %v4437_v4, %v873_v12  ;;  %v1411_v0 = vld [vmem:[#allocation2 + $0x8] sm:$0x1] }
 0x103   : > { %v4398_v25 = vpack.c.bf16 %v1038_v17, %v1038_v17  ;;  %v1039_v30 = vadd.f32 %v4437_v4, %v865_v18 }
 0x104   : > { %v4414_v23 = vpack.c.bf16 %v1067_v15, %v1067_v15  ;;  %v1068_v24 = vmul.f32 %v1066_v61, %v1065_v16  ;;  %v1177_v27 = vshrl.u32 %v4400_v19, 16  ;;  %v1180_v28 = vshll.u32 %v4400_v19, 16  ;;  %v1336_v61 = vld [vmem:[#allocation2 + $0x20] sm:$0x1] }
 0x105   : > { %v4401_v29 = vpack.c.bf16 %v1041_v20, %v1041_v20  ;;  %v1160_v35 = vshrl.u32 %v4398_v25, 16  ;;  %v4836_v36 = vpop.f32.mrb[4].mxu0  ;;  %v1163_v39 = vshll.u32 %v4398_v25, 16  ;;  %v4399_v53 = vpack.c.bf16 %v1039_v30, %v1039_v30 }
 0x106   : > { %v1388_v31 = vshrl.u32 %v4414_v23, 16  ;;  %v1391_v32 = vshll.u32 %v4414_v23, 16  ;;  %v4415_v34 = vpack.c.bf16 %v1068_v24, %v1068_v24  ;;  %v1179_v38 = vrot.slane %v1177_v27, 7  ;;  %v877_v42 = vpop.f32.mrb[5].mxu0  ;;  %v1329_v27 = vld [vmem:[#allocation2 + $0x14] sm:$0x1] }
 0x107   : > { %v1185_v40 = vshrl.u32 %v4401_v29, 16  ;;  %v1188_v41 = vshll.u32 %v4401_v29, 16  ;;  %v5572_v46 = vrot.slane %v1160_v35, 7  ;;  %v4837_v47 = vpop.f32.mrb[6].mxu0  ;;  %v1168_v11 = vshrl.u32 %v4399_v53, 16 }
 0x108   : > { %v1390_v43 = vrot.slane %v1388_v31, 7  ;;  %v1396_v44 = vshrl.u32 %v4415_v34, 16  ;;  %v1399_v45 = vshll.u32 %v4415_v34, 16  ;;  %v1182_v49 = vor.u32 %v1180_v28, %v1179_v38  ;;  %v880_v54 = vpop.f32.mrb[7].mxu0 }
 0x109   : > { %v1183_v50 = vrot.slane %v1179_v38, 4  ;;  %v1187_v52 = vrot.slane %v1185_v40, 7  ;;  %v1165_v60 = vor.u32 %v1163_v39, %v5572_v46  ;;  %v1166_v1 = vrot.slane %v5572_v46, 4 }
 0x10a   : > { %v1393_v55 = vor.u32 %v1391_v32, %v1390_v43  ;;  %v1394_v57 = vrot.slane %v1390_v43, 4  ;;  %v1398_v59 = vrot.slane %v1396_v44, 7  ;;  %v1333_v62 = vsel %vm5576_vm6, %v1182_v49, %v1332_v33  ;;  %v1339_v49 = vld [vmem:[#allocation2 + $0x24] sm:$0xf] }
 0x10b   : > { %v1190_v2 = vor.u32 %v1188_v41, %v1187_v52  ;;  %v1192_v3 = vrot.slane %v1187_v52, 4  ;;  %1334 = vst [vmem:[#allocation2 + $0x18] sm:$0xf] %v1333_v62  ;;  %v1324_v7 = vsel %vm5576_vm6, %v1165_v60, %v1323_v51  ;;  %v1171_v12 = vshll.u32 %v4399_v53, 16 }
 0x10c   : > { %v1408_v4 = vsel %vm5576_vm6, %v1393_v55, %v1407_v37  ;;  %v1401_v5 = vor.u32 %v1399_v45, %v1398_v59  ;;  %v1403_v6 = vrot.slane %v1398_v59, 4  ;;  %1325 = vst [vmem:[#allocation2 + $0xc] sm:$0xf] %v1324_v7  ;;  %v886_v16 = vadd.f32 %v4836_v36, %v5555_v56  ;;  %v1350_v55 = vld [vmem:[#allocation2 + $0x38] sm:$0x1] }
 0x10d   : > { %1409 = vst [vmem:[#allocation2] sm:$0xf] %v1408_v4  ;;  %v1191_v8 = vsel %vm5582_vm7, %v1183_v50, %v1190_v2  ;;  %v1337_v9 = vsel %vm5591_vm8, %v1192_v3, %v1336_v61  ;;  %v878_v17 = vadd.f32 %v5555_v56, %v877_v42  ;;  %v4840_v18 = vpop.f32.mrb[8].mxu0  ;;  %v1170_v19 = vrot.slane %v1168_v11, 7 }
 0x10e   : > { %v1402_v13 = vsel %vm5582_vm7, %v1394_v57, %v1401_v5  ;;  %v1412_v15 = vsel %vm5591_vm8, %v1403_v6, %v1411_v0  ;;  %1335 = vst [vmem:[#allocation2 + $0x1c] sm:$0xf] %v1191_v8  ;;  %1338 = vst [vmem:[#allocation2 + $0x20] sm:$0x1] %v1337_v9  ;;  %v889_v20 = vadd.f32 %v4837_v47, %v5555_v56  ;;  %v893_v25 = vpop.f32.mrb[9].mxu0  ;;  %v4445_v32 = vunpack.c.h.bf16 %v5566_v14 }
 0x10f   : > { %1410 = vst [vmem:[#allocation2 + $0x4] sm:$0xf] %v1402_v13  ;;  %1413 = vst [vmem:[#allocation2 + $0x8] sm:$0x1] %v1412_v15  ;;  %v881_v23 = vadd.f32 %v5555_v56, %v880_v54  ;;  %v902_v24 = vadd.f32 %v4840_v18, %v5555_v56  ;;  %v1044_v28 = vadd.f32 %v4440_v21, %v886_v16  ;;  %v4841_v31 = vpop.f32.mrb[10].mxu0  ;;  %v1175_v34 = vrot.slane %v1170_v19, 4 }
 0x110   : > { %v1042_v29 = vadd.f32 %v4440_v21, %v878_v17  ;;  %v894_v30 = vadd.f32 %v5555_v56, %v893_v25  ;;  %v1173_v33 = vor.u32 %v1171_v12, %v1170_v19  ;;  %v1045_v35 = vadd.f32 %v4441_v22, %v889_v20  ;;  %v896_v37 = vpop.f32.mrb[11].mxu0  ;;  %v1346_v47 = vld [vmem:[#allocation2 + $0x30] sm:$0xf]  ;;  %v1343_v57 = vld [vmem:[#allocation2 + $0x2c] sm:$0x1]  ;;  %v5050_v13 = vld [vmem:[%s6088_s8 + $0x180] sm:$0xff]  }
 0x111   : > { %v1043_v36 = vadd.f32 %v4441_v22, %v881_v23  ;;  %v4404_v38 = vpack.c.bf16 %v1044_v28, %v1044_v28  ;;  %v1048_v21 = vadd.f32 %v4444_v26, %v902_v24  ;;  %v1330_v10 = vsel %vm5591_vm8, %v1175_v34, %v1329_v27  ;;  %v5052_v23 = vld [vmem:[%s6088_s8 + $0x1c8] sm:$0xff]  }
 0x112   : > { %v4402_v39 = vpack.c.bf16 %v1042_v29, %v1042_v29  ;;  %v1046_v40 = vadd.f32 %v4444_v26, %v894_v30  ;;  %v1174_v41 = vsel %vm5582_vm7, %v1166_v1, %v1173_v33  ;;  %v4405_v22 = vpack.c.bf16 %v1045_v35, %v1045_v35  ;;  %1331 = vst [vmem:[#allocation2 + $0x14] sm:$0x1] %v1330_v10  ;;  %v5666_v10 = vld [vmem:[%s5549_s2 + $0x18] sm:$0xff]   ;;  %s6108_s2 = sshll.u32 %s5350_s20, 2 }
 0x113   : > { %v4403_v42 = vpack.c.bf16 %v1043_v36, %v1043_v36  ;;  %1326 = vst [vmem:[#allocation2 + $0x10] sm:$0xf] %v1174_v41  ;;  %v1211_v43 = vshrl.u32 %v4404_v38, 16  ;;  %v1214_v44 = vshll.u32 %v4404_v38, 16  ;;  %v5636_v59 = vpack.c.bf16 %v1048_v21, %v1048_v21  ;;  %s6048_s11 = scalar_lea.vmem %s6090_s10, %s6108_s2 }
 0x114   : > { %v1194_v45 = vshrl.u32 %v4402_v39, 16  ;;  %v1197_v46 = vshll.u32 %v4402_v39, 16  ;;  %v1219_v26 = vshrl.u32 %v4405_v22, 16  ;;  %v1222_v50 = vshll.u32 %v4405_v22, 16  ;;  %v1353_v39 = vld [vmem:[#allocation2 + $0x3c] sm:$0xf] }
 0x115   : > { %v1202_v51 = vshrl.u32 %v4403_v42, 16  ;;  %v1205_v52 = vshll.u32 %v4403_v42, 16  ;;  %v1213_v53 = vrot.slane %v1211_v43, 7  ;;  %v5638_v60 = vpack.c.bf16 %v1046_v40, %v1046_v40  ;;  %v5014_v19 = vld [vmem:[#allocation2 + $0x18] sm:$0xff]   ;;  %v5055_v22 = vld [vmem:[%s6088_s8 + $0x188] sm:$0xff]  }
 0x116   : > { %v1196_v54 = vrot.slane %v1194_v45, 7  ;;  %v1221_v61 = vrot.slane %v1219_v26, 7  ;;  %v5011_v0 = vld [vmem:[#allocation2] sm:$0xfe]   ;;  %v905_v1 = vadd.f32 %v4841_v31, %v5555_v56  ;;  %v897_v2 = vadd.f32 %v5555_v56, %v896_v37  ;;  %v1360_v37 = vld [vmem:[#allocation2 + $0x48] sm:$0xf] }
 0x117   : > { %v1204_v62 = vrot.slane %v1202_v51, 7  ;;  %v1216_v3 = vor.u32 %v1214_v44, %v1213_v53  ;;  %v1217_v4 = vrot.slane %v1213_v53, 4  ;;  %v5012_v7 = vld [vmem:[#allocation2 + $0x8] ss:$0 sps:$4 sm:$0x11]   ;;  %v1810_v17 = vrot.slane %v5011_v0, 1 }
 0x118   : > { %v1199_v5 = vor.u32 %v1197_v46, %v1196_v54  ;;  %v1200_v6 = vrot.slane %v1196_v54, 4  ;;  %v1224_v8 = vor.u32 %v1222_v50, %v1221_v61  ;;  %v1226_v9 = vrot.slane %v1221_v61, 4  ;;  %v5015_v20 = vld [vmem:[#allocation2] sm:$0xff]   ;;  %v5016_v30 = vld [vmem:[#allocation2 + $0x8] ss:$0 sps:$4 sm:$0x11]  }
 0x119   : > { %v1207_v11 = vor.u32 %v1205_v52, %v1204_v62  ;;  %v1209_v12 = vrot.slane %v1204_v62, 4  ;;  %v1347_v15 = vsel %vm5576_vm6, %v1216_v3, %v1346_v47  ;;  %v1811_v18 = vrot.slane %v5012_v7, 1  ;;  %v5060_v46 = vld [vmem:[%s6088_s8 + $0x1d0] sm:$0xff]   ;;  %v5024_v62 = vld [vmem:[%s6088_s8 + $0x148] sm:$0xff]   ;;  %v5693_v0 = vld [vmem:[#allocation2 + $0x18] sm:$0xff]  }
 0x11a   : > { %v1340_v16 = vsel %vm5576_vm6, %v1199_v5, %v1339_v49  ;;  %1348 = vst [vmem:[#allocation2 + $0x30] sm:$0xf] %v1347_v15  ;;  %v1225_v24 = vsel %vm5582_vm7, %v1217_v4, %v1224_v8  ;;  %v1351_v25 = vsel %vm5591_vm8, %v1226_v9, %v1350_v55  ;;  %v5009_v29 = vld [vmem:[#allocation2 + $0xc] sm:$0xff]   ;;  %v1245_v33 = vshrl.u32 %v5636_v59, 16  ;;  %v4844_v5 = vpop.f32.mrb[12].mxu0 }
 0x11b   : > { %1341 = vst [vmem:[#allocation2 + $0x24] sm:$0xf] %v1340_v16  ;;  %v1208_v27 = vsel %vm5582_vm7, %v1200_v6, %v1207_v11  ;;  %v1344_v28 = vsel %vm5591_vm8, %v1209_v12, %v1343_v57  ;;  %1349 = vst [vmem:[#allocation2 + $0x34] sm:$0xf] %v1225_v24  ;;  %v1812_v31 = vsel %vm1809_vm9, %v1810_v17, %v1811_v18  ;;  %v1248_v34 = vshll.u32 %v5636_v59, 16  ;;  %v5020_v36 = vld [vmem:[#allocation2 + $0xc] sm:$0xff]  }
 0x11c   : > { %1352 = vst [vmem:[#allocation2 + $0x38] sm:$0x1] %v1351_v25  ;;  %1342 = vst [vmem:[#allocation2 + $0x28] sm:$0xf] %v1208_v27  ;;  %v1228_v35 = vshrl.u32 %v5638_v60, 16  ;;  %3435 = vmatprep.mubr.bf16.mxu0 %v5009_v29  ;;  %v1231_v38 = vshll.u32 %v5638_v60, 16  ;;  %v1049_v44 = vadd.f32 %v4445_v32, %v905_v1  ;;  %v1047_v45 = vadd.f32 %v4445_v32, %v897_v2 }
 0x11d   : > { %1345 = vst [vmem:[#allocation2 + $0x2c] sm:$0x1] %v1344_v28  ;;  %v1610_v21 = vshrl.u32 %v5015_v20, 16  ;;  %v1612_v40 = vshll.u32 %v5015_v20, 16  ;;  %v1617_v41 = vshll.u32 %v5016_v30, 16  ;;  %3436 = vmatmul.mubr.bf16.vlgmr.msra.gmra.mrb[20].mxu0 %v1812_v31  ;;  %v5671_v42 = vrot.slane %v1245_v33, 7 }
 0x11e   : > { %v5673_v43 = vrot.slane %v1228_v35, 7  ;;  %3443 = vmatprep.mubr.bf16.mxu0 %v5014_v19  ;;  %v1622_v26 = vshrl.u32 %v5020_v36, 16  ;;  %v1624_v50 = vshll.u32 %v5020_v36, 16  ;;  %4735 = vmatpush3.bf16.msra.mxu0 %v5050_v13  ;;  %v5019_v32 = vld [vmem:[%s6088_s8 + $0x100] sm:$0xff]   ;;  %v4409_v57 = vpack.c.bf16 %v1049_v44, %v1049_v44  ;;  %v5022_v4 = vld [vmem:[#allocation2 + $0xc] sm:$0xfe]  }
 0x11f   : > { %v1614_v47 = vrot.slane %v1612_v40, 1  ;;  %v1619_v49 = vrot.slane %v1617_v41, 1  ;;  %v1250_v51 = vor.u32 %v1248_v34, %v5671_v42  ;;  %v1251_v52 = vrot.slane %v5671_v42, 4  ;;  %v5021_v54 = vld [vmem:[#allocation2 + $0x14] ss:$0 sps:$4 sm:$0x11]   ;;  %4736 = vmatprep.subr.bf16.mxu0 %v5052_v23 }
 0x120   : > { %v1233_v53 = vor.u32 %v1231_v38, %v5673_v43  ;;  %v1234_v14 = vrot.slane %v5673_v43, 4  ;;  %v5018_v59 = vld [vmem:[#allocation2] sm:$0xff]   ;;  %v4407_v60 = vpack.c.bf16 %v1047_v45, %v1047_v45  ;;  %v1626_v61 = vrot.slane %v1624_v50, 1  ;;  %v5061_v7 = vld [vmem:[%s6088_s8 + $0x190] sm:$0xff]   ;;  %v5026_v23 = vld [vmem:[%s6088_s8 + $0x108] sm:$0xff]  }
 0x121   : > { %v1615_v55 = vor.u32 %v1614_v47, %v1610_v21  ;;  %v1361_v1 = vsel %vm5576_vm6, %v1250_v51, %v1360_v37  ;;  %v1629_v3 = vshll.u32 %v5021_v54, 16  ;;  %v4448_v6 = vunpack.c.l.bf16 %v5666_v10  ;;  %v5023_v13 = vld [vmem:[#allocation2 + $0x14] ss:$0 sps:$4 sm:$0x11]   ;;  %v1364_v15 = vld [vmem:[#allocation2 + $0x50] sm:$0x1] }
 0x122   : > { %v1354_v2 = vsel %vm5576_vm6, %v1233_v53, %v1353_v39  ;;  %1362 = vst [vmem:[#allocation2 + $0x48] sm:$0xf] %v1361_v1  ;;  %v1253_v9 = vshrl.u32 %v4409_v57, 16  ;;  %v1256_v11 = vshll.u32 %v4409_v57, 16  ;;  %v1236_v12 = vshrl.u32 %v4407_v60, 16  ;;  %4737 = vmatpush3.bf16.msra.mxu0 %v5055_v22  ;;  %v5033_v29 = vld [vmem:[%s6088_s8 + $0x150] sm:$0xff]  }
 0x123   : > { %1355 = vst [vmem:[#allocation2 + $0x3c] sm:$0xf] %v1354_v2  ;;  %v1620_v8 = vsel %vm1608_vm10, %v1615_v55, %v1619_v49  ;;  %v1239_v16 = vshll.u32 %v4407_v60, 16  ;;  %v1357_v17 = vld [vmem:[#allocation2 + $0x44] sm:$0x1]  ;;  %v1627_v18 = vor.u32 %v1626_v61, %v1622_v26  ;;  %v1631_v19 = vrot.slane %v1629_v3, 1  ;;  %4738 = vmatprep.subr.bf16.mxu0 %v5060_v46 }
 0x124   : > { %3338 = vmatprep.mubr.bf16.mxu1 %v1620_v8  ;;  %v1813_v20 = vrot.slane %v5022_v4, 1  ;;  %v1255_v24 = vrot.slane %v1253_v9, 7  ;;  %v1238_v25 = vrot.slane %v1236_v12, 7  ;;  %v1814_v27 = vrot.slane %v5023_v13, 1  ;;  %v5029_v28 = vld [vmem:[#allocation2 + $0x24] sm:$0xff]   ;;  %v5063_v31 = vld [vmem:[%s6088_s8 + $0x1d8] sm:$0xff]  }
 0x125   : > { %3339 = vmatmul.mubr.bf16.vlgmr.msra.gmra.mrb[4].mxu1 %v5018_v59  ;;  %v4449_v30 = vunpack.c.h.bf16 %v5666_v10  ;;  %v1632_v33 = vsel %vm1608_vm10, %v1627_v18, %v1631_v19  ;;  %v1634_v34 = vshrl.u32 %v5693_v0, 16  ;;  %v1636_v35 = vshll.u32 %v5693_v0, 16  ;;  %v5066_v37 = vld [vmem:[%s6088_s8 + $0x198] sm:$0xff]   ;;  %v5028_v41 = vld [vmem:[#allocation2 + $0x20] ss:$0 sps:$4 sm:$0x11]  }
 0x126   : > { %4671 = vmatpush3.bf16.msra.mxu1 %v5019_v32  ;;  %v918_v36 = vadd.f32 %v4844_v5, %v5555_v56  ;;  %v1258_v38 = vor.u32 %v1256_v11, %v1255_v24  ;;  %v1260_v39 = vrot.slane %v1255_v24, 4  ;;  %v1241_v21 = vor.u32 %v1239_v16, %v1238_v25  ;;  %3346 = vmatprep.mubr.bf16.mxu1 %v1632_v33  ;;  %v909_v22 = vpop.f32.mrb[13].mxu0  ;;  %v5072_v44 = vld [vmem:[%s6088_s8 + $0x1e0] sm:$0xff]   ;;  %v5035_v50 = vld [vmem:[%s6088_s8 + $0x110] sm:$0xff]   ;;  %v5030_v55 = vld [vmem:[#allocation2 + $0x18] sm:$0xfe]  }
 0x127   : > { %v1243_v40 = vrot.slane %v1238_v25, 4  ;;  %4672 = vmatprep.subr.bf16.mxu1 %v5024_v62  ;;  %v1815_v45 = vsel %vm1809_vm9, %v1813_v20, %v1814_v27  ;;  %v1638_v46 = vrot.slane %v1636_v35, 1  ;;  %v910_v49 = vadd.f32 %v5555_v56, %v909_v22  ;;  %v4845_v26 = vpop.f32.mrb[14].mxu0  ;;  %4739 = vmatpush3.bf16.msra.mxu0 %v5061_v7  ;;  %v5040_v42 = vld [vmem:[%s6088_s8 + $0x158] sm:$0xff]   ;;  %v5074_v60 = vld [vmem:[%s6088_s8 + $0x1a0] sm:$0xff]   ;;  %v5025_v61 = vld [vmem:[#allocation2 + $0xc] sm:$0xff]  }
 0x128   : > { %v1052_v47 = vadd.f32 %v4448_v6, %v918_v36  ;;  %v1259_v51 = vsel %vm5582_vm7, %v1251_v52, %v1258_v38  ;;  %v1365_v53 = vsel %vm5591_vm8, %v1260_v39, %v1364_v15  ;;  %v1242_v32 = vsel %vm5582_vm7, %v1234_v14, %v1241_v21  ;;  %3444 = vmatmul.mubr.bf16.gmra.mrb[24].mxu0 %v1815_v45  ;;  %v5031_v43 = vld [vmem:[#allocation2 + $0x20] ss:$0 sps:$4 sm:$0x11]   ;;  %v5076_v1 = vld [vmem:[%s6088_s8 + $0x1e8] sm:$0xff]   ;;  %v5032_v4 = vld [vmem:[#allocation2 + $0x30] sm:$0xff]   ;;  %v912_v12 = vpop.f32.mrb[15].mxu0 }
 0x129   : > { %v1358_v54 = vsel %vm5591_vm8, %v1243_v40, %v1357_v17  ;;  %1363 = vst [vmem:[#allocation2 + $0x4c] sm:$0xf] %v1259_v51  ;;  %1366 = vst [vmem:[#allocation2 + $0x50] sm:$0x1] %v1365_v53  ;;  %v1639_v52 = vor.u32 %v1638_v46, %v1634_v34  ;;  %v1641_v57 = vshll.u32 %v5028_v41, 16  ;;  %3451 = vmatprep.mubr.bf16.mxu0 %v5029_v28  ;;  %v1816_v62 = vrot.slane %v5030_v55, 1 }
 0x12a   : > { %1356 = vst [vmem:[#allocation2 + $0x40] sm:$0xf] %v1242_v32  ;;  %1359 = vst [vmem:[#allocation2 + $0x44] sm:$0x1] %v1358_v54  ;;  %4673 = vmatpush3.bf16.msra.mxu1 %v5026_v23  ;;  %v4412_v59 = vpack.c.bf16 %v1052_v47, %v1052_v47  ;;  %v1050_v14 = vadd.f32 %v4448_v6, %v910_v49  ;;  %v921_v0 = vadd.f32 %v4845_v26, %v5555_v56  ;;  %v5042_v6 = vld [vmem:[%s6088_s8 + $0x118] sm:$0xff]   ;;  %v5036_v13 = vld [vmem:[#allocation2 + $0x24] sm:$0xff]  }
 0x12b   : > { %4674 = vmatprep.subr.bf16.mxu1 %v5033_v29  ;;  %4740 = vmatprep.subr.bf16.mxu0 %v5063_v31  ;;  %v1643_v2 = vrot.slane %v1641_v57, 1  ;;  %v1817_v3 = vrot.slane %v5031_v43, 1  ;;  %v1374_v8 = vld [vmem:[#allocation2 + $0x60] sm:$0xf]  ;;  %v913_v19 = vadd.f32 %v5555_v56, %v912_v12  ;;  %v5079_v23 = vld [vmem:[%s6088_s8 + $0x1a8] sm:$0xff]   ;;  %v1646_v28 = vshrl.u32 %v5036_v13, 16 }
 0x12c   : > { %v1279_v5 = vshrl.u32 %v4412_v59, 16  ;;  %v1282_v7 = vshll.u32 %v4412_v59, 16  ;;  %4741 = vmatpush3.bf16.msra.mxu0 %v5066_v37  ;;  %v4410_v9 = vpack.c.bf16 %v1050_v14, %v1050_v14  ;;  %v1053_v11 = vadd.f32 %v4449_v30, %v921_v0  ;;  %v5051_v15 = vld [vmem:[%s6088_s8 + $0x160] sm:$0xff]   ;;  %v5037_v20 = vld [vmem:[#allocation2 + $0x2c] ss:$0 sps:$4 sm:$0x11]  }
 0x12d   : > { %3347 = vmatmul.mubr.bf16.gmra.mrb[8].mxu1 %v5025_v61  ;;  %4742 = vmatprep.subr.bf16.mxu0 %v5072_v44  ;;  %v1644_v16 = vsel %vm1608_vm10, %v1639_v52, %v1643_v2  ;;  %v1818_v17 = vsel %vm1809_vm9, %v1816_v62, %v1817_v3  ;;  %v5084_v29 = vld [vmem:[%s6088_s8 + $0x1f0] sm:$0xff]   ;;  %v1051_v34 = vadd.f32 %v4449_v30, %v913_v19  ;;  %v1648_v35 = vshll.u32 %v5036_v13, 16  ;;  %v5054_v36 = vld [vmem:[%s6088_s8 + $0x120] sm:$0xff]   ;;  %v5034_v21 = vld [vmem:[#allocation2 + $0x18] sm:$0xff]  }
 0x12e   : > { %v5771_v18 = vrot.slane %v1279_v5, 7  ;;  %4675 = vmatpush3.bf16.msra.mxu1 %v5035_v50  ;;  %3354 = vmatprep.mubr.bf16.mxu1 %v1644_v16  ;;  %v1262_v24 = vshrl.u32 %v4410_v9, 16  ;;  %v1265_v25 = vshll.u32 %v4410_v9, 16  ;;  %v4413_v27 = vpack.c.bf16 %v1053_v11, %v1053_v11  ;;  %v1367_v33 = vld [vmem:[#allocation2 + $0x54] sm:$0xf]  ;;  %v5062_v22 = vld [vmem:[%s6088_s8 + $0x168] sm:$0xff]  }
 0x12f   : > { %4676 = vmatprep.subr.bf16.mxu1 %v5040_v42  ;;  %v1653_v40 = vshll.u32 %v5037_v20, 16  ;;  %v5038_v41 = vld [vmem:[#allocation2 + $0x24] sm:$0xfe]   ;;  %v4411_v44 = vpack.c.bf16 %v1051_v34, %v1051_v34  ;;  %v1650_v45 = vrot.slane %v1648_v35, 1  ;;  %v5085_v47 = vld [vmem:[%s6088_s8 + $0x1b0] sm:$0xff]   ;;  %v5089_v32 = vld [vmem:[%s6088_s8 + $0x1f8] sm:$0xff]  }
 0x130   : > { %v1284_v56 = vor.u32 %v1282_v7, %v5771_v18  ;;  %v1285_v31 = vrot.slane %v5771_v18, 4  ;;  %4743 = vmatpush3.bf16.msra.mxu0 %v5074_v60  ;;  %v5793_v37 = vrot.slane %v1262_v24, 7  ;;  %v1287_v38 = vshrl.u32 %v4413_v27, 16  ;;  %v1378_v30 = vld [vmem:[#allocation2 + $0x68] sm:$0x1]  ;;  %v5043_v53 = vld [vmem:[#allocation2 + $0x30] sm:$0xff]  }
 0x131   : > { %3452 = vmatmul.mubr.bf16.gmra.mrb[28].mxu0 %v1818_v17  ;;  %v1290_v39 = vshll.u32 %v4413_v27, 16  ;;  %4744 = vmatprep.subr.bf16.mxu0 %v5076_v1  ;;  %v5039_v46 = vld [vmem:[#allocation2 + $0x2c] ss:$0 sps:$4 sm:$0x11]   ;;  %v1655_v51 = vrot.slane %v1653_v40, 1  ;;  %v1270_v54 = vshrl.u32 %v4411_v44, 16  ;;  %v1651_v42 = vor.u32 %v1650_v45, %v1646_v28 }
 0x132   : > { %3459 = vmatprep.mubr.bf16.mxu0 %v5032_v4  ;;  %v1375_v10 = vsel %vm5576_vm6, %v1284_v56, %v1374_v8  ;;  %4677 = vmatpush3.bf16.msra.mxu1 %v5042_v6  ;;  %v1267_v49 = vor.u32 %v1265_v25, %v5793_v37  ;;  %v1268_v26 = vrot.slane %v5793_v37, 4  ;;  %v1289_v50 = vrot.slane %v1287_v38, 7  ;;  %v5045_v57 = vld [vmem:[#allocation2 + $0x3c] sm:$0xff]   ;;  %v5065_v43 = vld [vmem:[%s6088_s8 + $0x128] sm:$0xff]   ;;  %v5075_v0 = vld [vmem:[%s6088_s8 + $0x170] sm:$0xff]  }
 0x133   : > { %1376 = vst [vmem:[#allocation2 + $0x60] sm:$0xf] %v1375_v10  ;;  %4678 = vmatprep.subr.bf16.mxu1 %v5051_v15  ;;  %v1273_v55 = vshll.u32 %v4411_v44, 16  ;;  %v1819_v52 = vrot.slane %v5038_v41, 1  ;;  %v1371_v61 = vld [vmem:[#allocation2 + $0x5c] sm:$0x1]  ;;  %v1656_v2 = vsel %vm1608_vm10, %v1651_v42, %v1655_v51 }
 0x134   : > { %4745 = vmatpush3.bf16.msra.mxu0 %v5079_v23  ;;  %v1368_v59 = vsel %vm5576_vm6, %v1267_v49, %v1367_v33  ;;  %v1292_v14 = vor.u32 %v1290_v39, %v1289_v50  ;;  %v1294_v60 = vrot.slane %v1289_v50, 4  ;;  %v1820_v62 = vrot.slane %v5039_v46, 1  ;;  %v5044_v3 = vld [vmem:[#allocation2 + $0x38] ss:$0 sps:$4 sm:$0x11]   ;;  %v5078_v16 = vld [vmem:[%s6088_s8 + $0x130] sm:$0xff]  }
 0x135   : > { %3355 = vmatmul.mubr.bf16.gmra.mrb[12].mxu1 %v5034_v21  ;;  %4746 = vmatprep.subr.bf16.mxu0 %v5084_v29  ;;  %1369 = vst [vmem:[#allocation2 + $0x54] sm:$0xf] %v1368_v59  ;;  %v1272_v1 = vrot.slane %v1270_v54, 7  ;;  %v1658_v4 = vshrl.u32 %v5043_v53, 16  ;;  %v1660_v5 = vshll.u32 %v5043_v53, 16  ;;  %v5092_v7 = vld [vmem:[%s6088_s8 + $0x1b8] sm:$0xff]  }
 0x136   : > { %4679 = vmatpush3.bf16.msra.mxu1 %v5054_v36  ;;  %v1293_v6 = vsel %vm5582_vm7, %v1285_v31, %v1292_v14  ;;  %v1379_v8 = vsel %vm5591_vm8, %v1294_v60, %v1378_v30  ;;  %3362 = vmatprep.mubr.bf16.mxu1 %v1656_v2  ;;  %v1821_v9 = vsel %vm1809_vm9, %v1819_v52, %v1820_v62  ;;  %v1665_v15 = vshll.u32 %v5044_v3, 16  ;;  %v5046_v17 = vld [vmem:[#allocation2 + $0x30] sm:$0xfe]   ;;  %v5088_v18 = vld [vmem:[%s6088_s8 + $0x178] sm:$0xff]   ;;  %v5041_v27 = vld [vmem:[#allocation2 + $0x24] sm:$0xff]   ;;  %v5850_v53 = vpop.f32.mrb[16].mxu0 }
 0x137   : > { %4680 = vmatprep.subr.bf16.mxu1 %v5062_v22  ;;  %1377 = vst [vmem:[#allocation2 + $0x64] sm:$0xf] %v1293_v6  ;;  %1380 = vst [vmem:[#allocation2 + $0x68] sm:$0x1] %v1379_v8  ;;  %v1275_v11 = vor.u32 %v1273_v55, %v1272_v1  ;;  %v1277_v12 = vrot.slane %v1272_v1, 4  ;;  %v1662_v13 = vrot.slane %v1660_v5, 1 }
 0x138   : > { %4747 = vmatpush3.bf16.msra.mxu0 %v5085_v47  ;;  %v1667_v24 = vrot.slane %v1665_v15, 1  ;;  %v5047_v25 = vld [vmem:[#allocation2 + $0x38] ss:$0 sps:$4 sm:$0x11]   ;;  %v1822_v28 = vrot.slane %v5046_v17, 1  ;;  %v5056_v56 = vld [vmem:[#allocation2 + $0x3c] sm:$0xff]  }
 0x139   : > { %3460 = vmatmul.mubr.bf16.gmra.mrb[32].mxu0 %v1821_v9  ;;  %4748 = vmatprep.subr.bf16.mxu0 %v5089_v32  ;;  %v1276_v19 = vsel %vm5582_vm7, %v1268_v26, %v1275_v11  ;;  %v1372_v20 = vsel %vm5591_vm8, %v1277_v12, %v1371_v61  ;;  %v1663_v23 = vor.u32 %v1662_v13, %v1658_v4  ;;  %v1823_v29 = vrot.slane %v5047_v25, 1  ;;  %v5091_v31 = vld [vmem:[%s6088_s8 + $0x138] sm:$0xff]   ;;  %v5049_v34 = vld [vmem:[#allocation2 + $0x48] sm:$0xff]   ;;  %v5057_v35 = vld [vmem:[#allocation2 + $0x44] ss:$0 sps:$4 sm:$0x11]  }
 0x13a   : > { %3467 = vmatprep.mubr.bf16.mxu0 %v5045_v57  ;;  %4681 = vmatpush3.bf16.msra.mxu1 %v5065_v43  ;;  %1370 = vst [vmem:[#allocation2 + $0x58] sm:$0xf] %v1276_v19  ;;  %1373 = vst [vmem:[#allocation2 + $0x5c] sm:$0x1] %v1372_v20  ;;  %v5845_v36 = vld [vmem:[%s6088_s8 + $0x200] sm:$0xff]   ;;  %v1670_v37 = vshrl.u32 %v5056_v56, 16 }
 0x13b   : > { %4682 = vmatprep.subr.bf16.mxu1 %v5075_v0  ;;  %v1668_v33 = vsel %vm1608_vm10, %v1663_v23, %v1667_v24  ;;  %v1672_v38 = vshll.u32 %v5056_v56, 16  ;;  %v1677_v39 = vshll.u32 %v5057_v35, 16  ;;  %v5058_v21 = vld [vmem:[#allocation2 + $0x3c] sm:$0xfe]   ;;  %v5067_v40 = vld [vmem:[#allocation2 + $0x48] sm:$0xff]   ;;  %v1824_v41 = vsel %vm1809_vm9, %v1822_v28, %v1823_v29  ;;  %v5053_v30 = vld [vmem:[#allocation2 + $0x30] sm:$0xff]  }
 0x13c   : > { %4749 = vmatpush3.bf16.msra.mxu0 %v5092_v7  ;;  %v5059_v10 = vld [vmem:[#allocation2 + $0x44] ss:$0 sps:$4 sm:$0x11]   ;;  %v1825_v46 = vrot.slane %v5058_v21, 1  ;;  %v1684_v26 = vshll.u32 %v5067_v40, 16  ;;  %v1682_v51 = vshrl.u32 %v5067_v40, 16 }
 0x13d   : > { %3363 = vmatmul.mubr.bf16.gmra.mrb[16].mxu1 %v5041_v27  ;;  %v1674_v22 = vrot.slane %v1672_v38, 1  ;;  %v1679_v44 = vrot.slane %v1677_v39, 1  ;;  %v1826_v47 = vrot.slane %v5059_v10, 1  ;;  %v5068_v49 = vld [vmem:[#allocation2 + $0x50] ss:$0 sps:$4 sm:$0x11]  }
 0x13e   : > { %3370 = vmatprep.mubr.bf16.mxu1 %v1668_v33  ;;  %4683 = vmatpush3.bf16.msra.mxu1 %v5078_v16  ;;  %v1686_v32 = vrot.slane %v1684_v26, 1  ;;  %v1689_v54 = vshll.u32 %v5068_v49, 16  ;;  %v5071_v42 = vld [vmem:[#allocation2 + $0x50] ss:$0 sps:$4 sm:$0x11]   ;;  %v5064_v61 = vld [vmem:[#allocation2 + $0x3c] sm:$0xff]  }
 0x13f   : > { %4684 = vmatprep.subr.bf16.mxu1 %v5088_v18  ;;  %v1675_v45 = vor.u32 %v1674_v22, %v1670_v37  ;;  %v5070_v52 = vld [vmem:[#allocation2 + $0x48] sm:$0xfe]   ;;  %v1827_v57 = vsel %vm1809_vm9, %v1825_v46, %v1826_v47  ;;  %v1829_v0 = vrot.slane %v5071_v42, 1  ;;  %v5073_v1 = vld [vmem:[#allocation2 + $0x60] sm:$0xff]   ;;  %v5086_v6 = vld [vmem:[#allocation2 + $0x18] sm:$0xff]  }
 0x140   : > { %v1691_v43 = vrot.slane %v1689_v54, 1  ;;  %v1687_v59 = vor.u32 %v1686_v32, %v1682_v51  ;;  %v1828_v62 = vrot.slane %v5070_v52, 1  ;;  %v5087_v12 = vld [vmem:[#allocation2 + $0x20] ss:$0 sps:$4 sm:$0x11]   ;;  %v2412_v13 = vshrl.u32 %v5086_v6, 16 }
 0x141   : > { %3468 = vmatmul.mubr.bf16.gmra.mrb[36].mxu0 %v1824_v41  ;;  %v1680_v50 = vsel %vm1608_vm10, %v1675_v45, %v1679_v44  ;;  %v5069_v55 = vld [vmem:[#allocation2 + $0x54] sm:$0xff]   ;;  %v5081_v60 = vld [vmem:[#allocation2 + $0x5c] ss:$0 sps:$4 sm:$0x11]   ;;  %v2414_v15 = vshll.u32 %v5086_v6, 16  ;;  %v5077_v18 = vld [vmem:[#allocation2 + $0x48] sm:$0xff]  }
 0x142   : > { %3475 = vmatprep.mubr.bf16.mxu0 %v5049_v34  ;;  %4685 = vmatpush3.bf16.msra.mxu1 %v5091_v31  ;;  %v5080_v14 = vld [vmem:[#allocation2 + $0x54] sm:$0xff]   ;;  %v1701_v4 = vshll.u32 %v5081_v60, 16  ;;  %v1692_v5 = vsel %vm1608_vm10, %v1687_v59, %v1691_v43  ;;  %v5083_v9 = vld [vmem:[#allocation2 + $0x5c] ss:$0 sps:$4 sm:$0x11]   ;;  %v1830_v16 = vsel %vm1809_vm9, %v1828_v62, %v1829_v0  ;;  %v2419_v20 = vshll.u32 %v5087_v12, 16 }
 0x143   : > { %4886 = vmatprep.subr.bf16.mxu1 %v5845_v36  ;;  %v1694_v2 = vshrl.u32 %v5080_v14, 16  ;;  %v1696_v3 = vshll.u32 %v5080_v14, 16  ;;  %v5082_v7 = vld [vmem:[#allocation2 + $0x54] sm:$0xfe]   ;;  %v2416_v19 = vrot.slane %v2414_v15, 1  ;;  %v5096_v25 = vld [vmem:[#allocation2 + $0x24] sm:$0xff]  }
 0x144   : > { %v1703_v11 = vrot.slane %v1701_v4, 1  ;;  %v5093_v23 = vld [vmem:[#allocation2 + $0xc] sm:$0xfe]   ;;  %v5094_v24 = vld [vmem:[#allocation2 + $0x14] ss:$0 sps:$4 sm:$0x11]  }
 0x145   : > { %3371 = vmatmul.mubr.bf16.gmra.mrb[20].mxu1 %v5053_v30  ;;  %v1698_v8 = vrot.slane %v1696_v3, 1  ;;  %v1831_v28 = vrot.slane %v5082_v7, 1  ;;  %v1832_v29 = vrot.slane %v5083_v9, 1  ;;  %v2421_v56 = vrot.slane %v2419_v20, 1  ;;  %v5099_v31 = vld [vmem:[#allocation2 + $0xc] sm:$0xff]   ;;  %v5867_v40 = vld [vmem:[%s675_s25] sm:$0xff]  }
 0x146   : > { %3378 = vmatprep.mubr.bf16.mxu1 %v1680_v50  ;;  %v2417_v33 = vor.u32 %v2416_v19, %v2412_v13  ;;  %v2210_v34 = vrot.slane %v5093_v23, 1  ;;  %v5097_v35 = vld [vmem:[#allocation2 + $0x2c] ss:$0 sps:$4 sm:$0x11]   ;;  %v2211_v37 = vrot.slane %v5094_v24, 1  ;;  %v2426_v38 = vshll.u32 %v5096_v25, 16 }
 0x147   : > { %v1699_v17 = vor.u32 %v1698_v8, %v1694_v2  ;;  %v2431_v39 = vshll.u32 %v5097_v35, 16  ;;  %v5100_v21 = vld [vmem:[#allocation2 + $0x14] ss:$0 sps:$4 sm:$0x11]   ;;  %v1833_v41 = vsel %vm1809_vm9, %v1831_v28, %v1832_v29  ;;  %v2424_v22 = vshrl.u32 %v5096_v25, 16  ;;  %v5095_v59 = vld [vmem:[#allocation2 + $0x18] sm:$0xff]  }
 0x148   : > { %v2013_v10 = vshll.u32 %v5099_v31, 16  ;;  %v2422_v30 = vsel %vm1608_vm10, %v2417_v33, %v2421_v56  ;;  %v2428_v44 = vrot.slane %v2426_v38, 1  ;;  %v2018_v45 = vshll.u32 %v5100_v21, 16  ;;  %v5101_v46 = vld [vmem:[#allocation2 + $0x18] sm:$0xfe]   ;;  %v5104_v32 = vld [vmem:[#allocation2 + $0x30] sm:$0xff]  }
 0x149   : > { %3476 = vmatmul.mubr.bf16.gmra.mrb[40].mxu0 %v1827_v57  ;;  %v1704_v27 = vsel %vm1608_vm10, %v1699_v17, %v1703_v11  ;;  %v5090_v47 = vld [vmem:[#allocation2 + $0x54] sm:$0xff]   ;;  %v5102_v49 = vld [vmem:[#allocation2 + $0x20] ss:$0 sps:$4 sm:$0x11]   ;;  %v2433_v26 = vrot.slane %v2431_v39, 1  ;;  %v2011_v50 = vshrl.u32 %v5099_v31, 16  ;;  %v4456_v57 = vunpack.c.l.bf16 %v5867_v40 }
 0x14a   : > { %3483 = vmatprep.mubr.bf16.mxu0 %v5069_v55  ;;  %v2015_v51 = vrot.slane %v2013_v10, 1  ;;  %v2020_v54 = vrot.slane %v2018_v45, 1  ;;  %v5107_v55 = vld [vmem:[#allocation2 + $0x18] sm:$0xff]   ;;  %v5874_v42 = vld [vmem:[%s6087_s7] ss:$0 sm:$0xff]  ;;  %v2212_v43 = vsel %vm1809_vm9, %v2210_v34, %v2211_v37  ;;  %v2429_v14 = vor.u32 %v2428_v44, %v2424_v22  ;;  %v5106_v12 = vld [vmem:[%s6088_s8 + $0x208] sm:$0xff]  }
 0x14b   : > { %v1016_v52 = vadd.f32 %v5874_v42, %v5850_v53  ;;  %v2213_v60 = vrot.slane %v5101_v46, 1  ;;  %v2214_v62 = vrot.slane %v5102_v49, 1  ;;  %v2438_v0 = vshll.u32 %v5104_v32, 16  ;;  %v5108_v2 = vld [vmem:[#allocation2 + $0x20] ss:$0 sps:$4 sm:$0x11]  }
 0x14c   : > { %v2016_v3 = vor.u32 %v2015_v51, %v2011_v50  ;;  %v2436_v4 = vshrl.u32 %v5104_v32, 16  ;;  %v2434_v53 = vsel %vm1608_vm10, %v2429_v14, %v2433_v26  ;;  %v2030_v8 = vshll.u32 %v5108_v2, 16  ;;  %v5109_v9 = vld [vmem:[#allocation2 + $0x24] sm:$0xfe]   ;;  %v5114_v31 = vld [vmem:[%s6088_s8 + $0x210] sm:$0xff]  }
 0x14d   : > { %3379 = vmatmul.mubr.bf16.gmra.mrb[24].mxu1 %v5064_v61  ;;  %v5105_v61 = vld [vmem:[#allocation2 + $0x38] ss:$0 sps:$4 sm:$0x11]   ;;  %v1073_v7 = vadd.f32 %v4456_v57, %v1016_v52  ;;  %v2440_v6 = vrot.slane %v2438_v0, 1  ;;  %v5882_v11 = vstv %s1059_s24  ;;  %v5115_v23 = vld [vmem:[#allocation2 + $0x24] sm:$0xff]   ;;  %v2215_v25 = vsel %vm1809_vm9, %v2213_v60, %v2214_v62  ;;  %v4884_v62 = vpop.f32.mrb[17].mxu0 }
 0x14e   : > { %3386 = vmatprep.mubr.bf16.mxu1 %v1692_v5  ;;  %v2025_v5 = vshll.u32 %v5107_v55, 16  ;;  %v5110_v13 = vld [vmem:[#allocation2 + $0x2c] ss:$0 sps:$4 sm:$0x11]   ;;  %v2021_v19 = vsel %vm1608_vm10, %v2016_v3, %v2020_v54  ;;  %v2032_v20 = vrot.slane %v2030_v8, 1  ;;  %v2216_v29 = vrot.slane %v5109_v9, 1 }
 0x14f   : > { %v1076_v24 = vmul.f32 %v5882_v11, %v1073_v7  ;;  %v2441_v28 = vor.u32 %v2440_v6, %v2436_v4  ;;  %v5113_v56 = vld [vmem:[#allocation2 + $0x44] ss:$0 sps:$4 sm:$0x11]   ;;  %v2217_v33 = vrot.slane %v5110_v13, 1  ;;  %v2037_v21 = vshll.u32 %v5115_v23, 16  ;;  %v5120_v26 = vld [vmem:[#allocation2 + $0x48] sm:$0xff]  }
 0x150   : > { %v2027_v17 = vrot.slane %v2025_v5, 1  ;;  %v2455_v35 = vshll.u32 %v5113_v56, 16  ;;  %v5116_v37 = vld [vmem:[#allocation2 + $0x2c] ss:$0 sps:$4 sm:$0x11]   ;;  %v2462_v14 = vshll.u32 %v5120_v26, 16  ;;  %v4457_v0 = vunpack.c.h.bf16 %v5867_v40 }
 0x151   : > { %3484 = vmatmul.mubr.bf16.gmra.mrb[44].mxu0 %v1830_v16  ;;  %v2023_v16 = vshrl.u32 %v5107_v55, 16  ;;  %v5117_v44 = vld [vmem:[#allocation2 + $0x30] sm:$0xfe]   ;;  %v2039_v46 = vrot.slane %v2037_v21, 1  ;;  %v2218_v54 = vsel %vm1809_vm9, %v2216_v29, %v2217_v33  ;;  %v2460_v4 = vshrl.u32 %v5120_v26, 16  ;;  %v1018_v7 = vpop.f32.mrb[18].mxu0 }
 0x152   : > { %3491 = vmatprep.mubr.bf16.mxu0 %v5073_v1  ;;  %v2443_v1 = vshll.u32 %v5105_v61, 16  ;;  %v2457_v45 = vrot.slane %v2455_v35, 1  ;;  %v5118_v49 = vld [vmem:[#allocation2 + $0x38] ss:$0 sps:$4 sm:$0x11]   ;;  %v5111_v55 = vld [vmem:[#allocation2 + $0x30] sm:$0xff]   ;;  %v1019_v9 = vadd.f32 %v5874_v42, %v1018_v7 }
 0x153   : > { %v2028_v38 = vor.u32 %v2027_v17, %v2023_v16  ;;  %v2219_v57 = vrot.slane %v5117_v44, 1  ;;  %v1441_v61 = vld [vmem:[#allocation2 + $0x6c] sm:$0xf]  ;;  %v2220_v3 = vrot.slane %v5118_v49, 1  ;;  %v5128_v17 = vld [vmem:[#allocation2 + $0x54] sm:$0xff]   ;;  %v5131_v35 = vld [vmem:[#allocation2 + $0x3c] sm:$0xff]  }
 0x154   : > { %v2445_v15 = vrot.slane %v2443_v1, 1  ;;  %v5123_v1 = vld [vmem:[#allocation2 + $0x30] sm:$0xff]   ;;  %v5126_v29 = vld [vmem:[#allocation2 + $0x44] ss:$0 sps:$4 sm:$0x11]   ;;  %v2059_v44 = vshrl.u32 %v5131_v35, 16 }
 0x155   : > { %3387 = vmatmul.mubr.bf16.gmra.mrb[28].mxu1 %v5077_v18  ;;  %v5112_v18 = vld [vmem:[#allocation2 + $0x3c] sm:$0xff]   ;;  %v2033_v50 = vsel %vm1608_vm10, %v2028_v38, %v2032_v20  ;;  %v2047_v40 = vshrl.u32 %v5123_v1, 16  ;;  %v2049_v16 = vshll.u32 %v5123_v1, 16  ;;  %v2221_v56 = vsel %vm1809_vm9, %v2219_v57, %v2220_v3  ;;  %v5132_v49 = vld [vmem:[#allocation2 + $0x44] ss:$0 sps:$4 sm:$0x11]  }
 0x156   : > { %3394 = vmatprep.mubr.bf16.mxu1 %v1704_v27  ;;  %v5103_v27 = vld [vmem:[#allocation2 + $0x24] sm:$0xff]   ;;  %v2450_v34 = vshll.u32 %v5112_v18, 16  ;;  %v2448_v39 = vshrl.u32 %v5112_v18, 16  ;;  %v2446_v22 = vsel %vm1608_vm10, %v2441_v28, %v2445_v15  ;;  %v5124_v15 = vld [vmem:[#allocation2 + $0x38] ss:$0 sps:$4 sm:$0x11]  }
 0x157   : > { %v5138_v18 = vld [vmem:[%s6088_s8 + $0x228] sm:$0xff]   ;;  %v2051_v42 = vrot.slane %v2049_v16, 1  ;;  %v2061_v26 = vshll.u32 %v5131_v35, 16 }
 0x158   : > { %v2452_v10 = vrot.slane %v2450_v34, 1  ;;  %v2472_v34 = vshrl.u32 %v5128_v17, 16  ;;  %v5137_v7 = vld [vmem:[#allocation2 + $0x68] ss:$0 sps:$4 sm:$0x11]  }
 0x159   : > { %3492 = vmatmul.mubr.bf16.gmra.mrb[48].mxu0 %v1833_v41  ;;  %v4416_v41 = vpack.c.bf16 %v1076_v24, %v1076_v24  ;;  %v5125_v24 = vld [vmem:[#allocation2 + $0x3c] sm:$0xfe]   ;;  %v2052_v21 = vor.u32 %v2051_v42, %v2047_v40 }
 0x15a   : > { %3629 = vmatprep.mubr.bf16.mxu0 %v2422_v30  ;;  %v2042_v30 = vshll.u32 %v5116_v37, 16  ;;  %v2453_v52 = vor.u32 %v2452_v10, %v2448_v39  ;;  %v5129_v39 = vld [vmem:[#allocation2 + $0x5c] ss:$0 sps:$4 sm:$0x11]  }
 0x15b   : > { %v1421_v32 = vshrl.u32 %v4416_v41, 16  ;;  %v1424_v5 = vshll.u32 %v4416_v41, 16  ;;  %v2222_v41 = vrot.slane %v5125_v24, 1 }
 0x15c   : > { %v2044_v51 = vrot.slane %v2042_v30, 1  ;;  %v2223_v30 = vrot.slane %v5126_v29, 1  ;;  %v5149_v29 = vld [vmem:[%s6088_s8 + $0x238] sm:$0xff]  }
 0x15d   : > { %3395 = vmatmul.mubr.bf16.gmra.mrb[32].mxu1 %v5090_v47  ;;  %v5122_v47 = vld [vmem:[%s6088_s8 + $0x218] sm:$0xff]   ;;  %v5903_v60 = vrot.slane %v1421_v32, 7  ;;  %v2063_v32 = vrot.slane %v2061_v26, 1 }
 0x15e   : > { %3532 = vmatprep.mubr.bf16.mxu1 %v2212_v43  ;;  %v5121_v43 = vld [vmem:[#allocation2 + $0x50] ss:$0 sps:$4 sm:$0x11]  }
 0x15f   : > { %v2467_v6 = vshll.u32 %v5121_v43, 16  ;;  %v1427_v8 = vrot.slane %v5903_v60, 4  ;;  %v1426_v13 = vor.u32 %v1424_v5, %v5903_v60 }
 0x161   : > { %3630 = vmatmul.mubr.bf16.vlgmr.msra.gmra.mrb[52].mxu0 %v5095_v59  ;;  %v5130_v59 = vld [vmem:[%s6088_s8 + $0x220] sm:$0xff]   ;;  %v1442_v20 = vsel %vm5576_vm6, %v1426_v13, %v1441_v61  ;;  %v5127_v61 = vld [vmem:[#allocation2 + $0x48] sm:$0xff]  }
 0x162   : > { %3637 = vmatprep.mubr.bf16.mxu0 %v2434_v53  ;;  %v2464_v53 = vrot.slane %v2462_v14, 1  ;;  %1443 = vst [vmem:[#allocation2 + $0x6c] sm:$0xf] %v1442_v20  ;;  %v2224_v14 = vsel %vm1809_vm9, %v2222_v41, %v2223_v30  ;;  %v5142_v20 = vld [vmem:[#allocation2 + $0x5c] ss:$0 sps:$4 sm:$0x11]  }
 0x164   : > { %v2465_v33 = vor.u32 %v2464_v53, %v2460_v4 }
 0x165   : > { %3533 = vmatmul.mubr.bf16.vlgmr.msra.gmra.mrb[36].mxu1 %v2021_v19  ;;  %v1074_v19 = vadd.f32 %v4457_v0, %v1019_v9  ;;  %v5139_v9 = vld [vmem:[#allocation2 + $0x48] sm:$0xff]  }
 0x166   : > { %4887 = vmatpush3.bf16.msra.mxu1 %v5845_v36  ;;  %3540 = vmatprep.mubr.bf16.mxu1 %v2215_v25  ;;  %v2035_v36 = vshrl.u32 %v5115_v23, 16  ;;  %v2054_v23 = vshll.u32 %v5124_v15, 16  ;;  %v5140_v15 = vld [vmem:[#allocation2 + $0x50] ss:$0 sps:$4 sm:$0x11]   ;;  %v2073_v63 = vshll.u32 %v5139_v9, 16 }
 0x167   : > { %4888 = vmatprep.subr.bf16.mxu1 %v5106_v12  ;;  %v1077_v28 = vmul.f32 %v5882_v11, %v1074_v19  ;;  %v2474_v11 = vshll.u32 %v5128_v17, 16  ;;  %v2071_v16 = vshrl.u32 %v5139_v9, 16  ;;  %v2078_v17 = vshll.u32 %v5140_v15, 16  ;;  %v5158_v9 = vld [vmem:[#allocation2 + $0x2c] ss:$0 sps:$4 sm:$0x11]  }
 0x168   : > { %v2040_v2 = vor.u32 %v2039_v46, %v2035_v36  ;;  %v2056_v38 = vrot.slane %v2054_v23, 1  ;;  %v1445_v36 = vld [vmem:[#allocation2 + $0x74] sm:$0x1]  ;;  %v2075_v19 = vrot.slane %v2073_v63, 1  ;;  %v2615_v15 = vrot.slane %v5158_v9, 1 }
 0x169   : > { %3638 = vmatmul.mubr.bf16.gmra.mrb[56].mxu0 %v5103_v27  ;;  %v2469_v27 = vrot.slane %v2467_v6, 1  ;;  %v4417_v37 = vpack.c.bf16 %v1077_v28, %v1077_v28  ;;  %v2476_v46 = vrot.slane %v2474_v11, 1  ;;  %v2064_v6 = vor.u32 %v2063_v32, %v2059_v44  ;;  %v5135_v23 = vld [vmem:[#allocation2 + $0x54] sm:$0xff]   ;;  %v5146_v28 = vld [vmem:[#allocation2 + $0x5c] ss:$0 sps:$4 sm:$0x11]  }
 0x16a   : > { %3645 = vmatprep.mubr.bf16.mxu0 %v2446_v22  ;;  %4889 = vmatpush3.bf16.msra.mxu1 %v5106_v12  ;;  %v2458_v12 = vsel %vm1608_vm10, %v2453_v52, %v2457_v45  ;;  %v2045_v25 = vsel %vm1608_vm10, %v2040_v2, %v2044_v51  ;;  %v5136_v51 = vld [vmem:[#allocation2 + $0x60] sm:$0xff]   ;;  %v2057_v43 = vsel %vm1608_vm10, %v2052_v21, %v2056_v38 }
 0x16b   : > { %4890 = vmatprep.subr.bf16.mxu1 %v5114_v31  ;;  %v1429_v22 = vshrl.u32 %v4417_v37, 16  ;;  %v1432_v10 = vshll.u32 %v4417_v37, 16  ;;  %v2470_v45 = vsel %vm1608_vm10, %v2465_v33, %v2469_v27  ;;  %v2477_v62 = vor.u32 %v2476_v46, %v2472_v34  ;;  %v5145_v27 = vld [vmem:[#allocation2 + $0x54] sm:$0xff]   ;;  %v5150_v38 = vld [vmem:[#allocation2 + $0x60] sm:$0xff]  }
 0x16c   : > { %v2486_v53 = vshll.u32 %v5136_v51, 16  ;;  %v2484_v13 = vshrl.u32 %v5136_v51, 16  ;;  %v2085_v33 = vshll.u32 %v5145_v27, 16  ;;  %v2090_v37 = vshll.u32 %v5146_v28, 16  ;;  %v5143_v44 = vld [vmem:[#allocation2 + $0x60] sm:$0xff]  }
 0x16d   : > { %3541 = vmatmul.mubr.bf16.gmra.mrb[40].mxu1 %v2033_v50  ;;  %v1431_v50 = vrot.slane %v1429_v22, 7  ;;  %v5147_v22 = vld [vmem:[#allocation2 + $0x60] sm:$0xfe]  }
 0x16e   : > { %3548 = vmatprep.mubr.bf16.mxu1 %v2218_v54  ;;  %4891 = vmatpush3.bf16.msra.mxu1 %v5114_v31  ;;  %v5119_v31 = vld [vmem:[#allocation2 + $0x3c] sm:$0xff]   ;;  %v2066_v54 = vshll.u32 %v5132_v49, 16  ;;  %v2488_v58 = vrot.slane %v2486_v53, 1  ;;  %v2087_v11 = vrot.slane %v2085_v33, 1  ;;  %v2231_v32 = vrot.slane %v5147_v22, 1 }
 0x16f   : > { %4892 = vmatprep.subr.bf16.mxu1 %v5122_v47  ;;  %v1434_v52 = vor.u32 %v1432_v10, %v1431_v50  ;;  %v1436_v57 = vrot.slane %v1431_v50, 4  ;;  %v5148_v10 = vld [vmem:[#allocation2 + $0x68] ss:$0 sps:$4 sm:$0x11]   ;;  %v5167_v33 = vld [vmem:[#allocation2 + $0x60] sm:$0xfe]  }
 0x170   : > { %v2068_v1 = vrot.slane %v2066_v54, 1  ;;  %v2489_v24 = vor.u32 %v2488_v58, %v2484_v13  ;;  %v5151_v50 = vld [vmem:[#allocation2 + $0x68] ss:$0 sps:$4 sm:$0x11]   ;;  %v2232_v54 = vrot.slane %v5148_v10, 1 }
 0x171   : > { %3646 = vmatmul.mubr.bf16.gmra.mrb[60].mxu0 %v5111_v55  ;;  %v5133_v55 = vld [vmem:[#allocation2 + $0x48] sm:$0xfe]   ;;  %v1435_v2 = vsel %vm5582_vm7, %v1427_v8, %v1434_v52  ;;  %v1446_v3 = vsel %vm5591_vm8, %v1436_v57, %v1445_v36  ;;  %v2491_v8 = vshll.u32 %v5137_v7, 16  ;;  %v2097_v36 = vshll.u32 %v5150_v38, 16 }
 0x172   : > { %3653 = vmatprep.mubr.bf16.mxu0 %v2458_v12  ;;  %4893 = vmatpush3.bf16.msra.mxu1 %v5122_v47  ;;  %v2479_v47 = vshll.u32 %v5129_v39, 16  ;;  %v2225_v4 = vrot.slane %v5133_v55, 1  ;;  %1444 = vst [vmem:[#allocation2 + $0x70] sm:$0xf] %v1435_v2  ;;  %1447 = vst [vmem:[#allocation2 + $0x74] sm:$0x1] %v1446_v3  ;;  %v2233_v2 = vsel %vm1809_vm9, %v2231_v32, %v2232_v54 }
 0x173   : > { %4894 = vmatprep.subr.bf16.mxu1 %v5130_v59  ;;  %v4885_v12 = vpop.f32.mrb[19].mxu0  ;;  %v2493_v40 = vrot.slane %v2491_v8, 1  ;;  %v2083_v39 = vshrl.u32 %v5145_v27, 16  ;;  %v2095_v52 = vshrl.u32 %v5150_v38, 16 }
 0x174   : > { %v2481_v0 = vrot.slane %v2479_v47, 1  ;;  %v5159_v12 = vld [vmem:[#allocation2 + $0x30] sm:$0xfe]   ;;  %v5160_v58 = vld [vmem:[#allocation2 + $0x38] ss:$0 sps:$4 sm:$0x11]  }
 0x175   : > { %3549 = vmatmul.mubr.bf16.gmra.mrb[44].mxu1 %v2045_v25  ;;  %v5141_v25 = vld [vmem:[#allocation2 + $0x54] sm:$0xfe]   ;;  %v2494_v34 = vsel %vm1608_vm10, %v2489_v24, %v2493_v40  ;;  %v2088_v26 = vor.u32 %v2087_v11, %v2083_v39  ;;  %v2617_v63 = vrot.slane %v5159_v12, 1  ;;  %v2618_v40 = vrot.slane %v5160_v58, 1 }
 0x176   : > { %3556 = vmatprep.mubr.bf16.mxu1 %v2221_v56  ;;  %4895 = vmatpush3.bf16.msra.mxu1 %v5130_v59  ;;  %v5134_v59 = vld [vmem:[#allocation2 + $0x50] ss:$0 sps:$4 sm:$0x11]   ;;  %v2482_v60 = vsel %vm1608_vm10, %v2477_v62, %v2481_v0  ;;  %v2076_v56 = vor.u32 %v2075_v19, %v2071_v16  ;;  %v2228_v35 = vrot.slane %v5141_v25, 1  ;;  %v2102_v62 = vshll.u32 %v5151_v50, 16 }
 0x177   : > { %4896 = vmatprep.subr.bf16.mxu1 %v5138_v18  ;;  %v2226_v5 = vrot.slane %v5134_v59, 1  ;;  %v5154_v0 = vld [vmem:[#allocation2 + $0x18] sm:$0xfe]   ;;  %v2619_v19 = vsel %vm1809_vm9, %v2617_v63, %v2618_v40  ;;  %v5954_v50 = vld [vmem:[%s6089_s9] ss:$0 sm:$0xff] }
 0x178   : > { %v2611_v7 = vrot.slane %v5154_v0, 1 }
 0x179   : > { %3654 = vmatmul.mubr.bf16.gmra.mrb[64].mxu0 %v5119_v31  ;;  %v2227_v42 = vsel %vm1809_vm9, %v2225_v4, %v2226_v5  ;;  %v2080_v31 = vrot.slane %v2078_v17, 1  ;;  %v5152_v21 = vld [vmem:[#allocation2 + $0x6c] sm:$0xff]   ;;  %v5153_v46 = vld [vmem:[#allocation2 + $0x74] ss:$0 sps:$4 sm:$0x11]   ;;  %v2104_v5 = vrot.slane %v2102_v62, 1 }
 0x17a   : > { %3661 = vmatprep.mubr.bf16.mxu0 %v2470_v45  ;;  %4897 = vmatpush3.bf16.msra.mxu1 %v5138_v18  ;;  %v2069_v18 = vsel %vm1608_vm10, %v2064_v6, %v2068_v1  ;;  %v2092_v45 = vrot.slane %v2090_v37, 1  ;;  %v2496_v47 = vshrl.u32 %v5152_v21, 16  ;;  %v2498_v49 = vshll.u32 %v5152_v21, 16  ;;  %v5155_v1 = vld [vmem:[#allocation2 + $0x20] ss:$0 sps:$4 sm:$0x11]  }
 0x17b   : > { %4898 = vmatprep.subr.bf16.mxu1 %v5144_v48  ;;  %v2081_v41 = vsel %vm1608_vm10, %v2076_v56, %v2080_v31  ;;  %v2503_v51 = vshll.u32 %v5153_v46, 16  ;;  %v2612_v53 = vrot.slane %v5155_v1, 1  ;;  %v5157_v6 = vld [vmem:[#allocation2 + $0x24] sm:$0xfe]   ;;  %v5161_v17 = vld [vmem:[#allocation2 + $0x3c] sm:$0xfe]  }
 0x17c   : > { %v2500_v55 = vrot.slane %v2498_v49, 1  ;;  %v2614_v8 = vrot.slane %v5157_v6, 1  ;;  %v5166_v56 = vld [vmem:[#allocation2 + $0x5c] ss:$0 sps:$4 sm:$0x11]   ;;  %v2629_v37 = vrot.slane %v5167_v33, 1 }
 0x17d   : > { %3557 = vmatmul.mubr.bf16.gmra.mrb[48].mxu1 %v2057_v43  ;;  %v2505_v57 = vrot.slane %v2503_v51, 1  ;;  %v2099_v43 = vrot.slane %v2097_v36, 1  ;;  %v2613_v13 = vsel %vm1809_vm9, %v2611_v7, %v2612_v53  ;;  %v5169_v21 = vld [vmem:[#allocation2 + $0x6c] sm:$0xfe]  }
 0x17e   : > { %3564 = vmatprep.mubr.bf16.mxu1 %v2224_v14  ;;  %4899 = vmatpush3.bf16.msra.mxu1 %v5144_v48  ;;  %v2229_v48 = vrot.slane %v5142_v20, 1  ;;  %v2501_v59 = vor.u32 %v2500_v55, %v2496_v47  ;;  %v5156_v14 = vld [vmem:[#allocation2 + $0x6c] sm:$0xff]   ;;  %v2616_v16 = vsel %vm1809_vm9, %v2614_v8, %v2615_v15  ;;  %v2632_v22 = vrot.slane %v5169_v21, 1 }
 0x17f   : > { %4900 = vmatprep.subr.bf16.mxu1 %v5149_v29  ;;  %v2100_v4 = vor.u32 %v2099_v43, %v2095_v52  ;;  %v5163_v20 = vld [vmem:[#allocation2 + $0x48] sm:$0xfe]  }
 0x180   : > { %v2230_v30 = vsel %vm1809_vm9, %v2228_v35, %v2229_v48  ;;  %v2506_v3 = vsel %vm1608_vm10, %v2501_v59, %v2505_v57  ;;  %v2623_v25 = vrot.slane %v5163_v20, 1  ;;  %v2627_v48 = vrot.slane %v5166_v56, 1 }
 0x181   : > { %3662 = vmatmul.mubr.bf16.gmra.mrb[68].mxu0 %v5127_v61  ;;  %v2093_v61 = vsel %vm1608_vm10, %v2088_v26, %v2092_v45 }
 0x182   : > { %3669 = vmatprep.mubr.bf16.mxu0 %v2482_v60  ;;  %4901 = vmatpush3.bf16.msra.mxu1 %v5149_v29  ;;  %v2105_v60 = vsel %vm1608_vm10, %v2100_v4, %v2104_v5  ;;  %v5165_v29 = vld [vmem:[#allocation2 + $0x54] sm:$0xfe]  }
 0x183   : > { %v2626_v35 = vrot.slane %v5165_v29, 1 }
 0x185   : > { %3565 = vmatmul.mubr.bf16.gmra.mrb[52].mxu1 %v2069_v18  ;;  %v5162_v18 = vld [vmem:[#allocation2 + $0x44] ss:$0 sps:$4 sm:$0x11]   ;;  %v2628_v39 = vsel %vm1809_vm9, %v2626_v35, %v2627_v48 }
 0x186   : > { %3572 = vmatprep.mubr.bf16.mxu1 %v2227_v42  ;;  %v5164_v42 = vld [vmem:[#allocation2 + $0x50] ss:$0 sps:$4 sm:$0x11]   ;;  %v2621_v24 = vrot.slane %v5162_v18, 1 }
 0x187   : > { %v2624_v27 = vrot.slane %v5164_v42, 1 }
 0x189   : > { %3670 = vmatmul.mubr.bf16.gmra.mrb[72].mxu0 %v5135_v23  ;;  %v2620_v23 = vrot.slane %v5161_v17, 1  ;;  %v2625_v31 = vsel %vm1809_vm9, %v2623_v25, %v2624_v27 }
 0x18a   : > { %3677 = vmatprep.mubr.bf16.mxu0 %v2494_v34  ;;  %v5168_v34 = vld [vmem:[#allocation2 + $0x68] ss:$0 sps:$4 sm:$0x11]  }
 0x18b   : > { %v2622_v28 = vsel %vm1809_vm9, %v2620_v23, %v2621_v24  ;;  %v2630_v38 = vrot.slane %v5168_v34, 1 }
 0x18d   : > { %3573 = vmatmul.mubr.bf16.gmra.mrb[56].mxu1 %v2081_v41  ;;  %v5170_v41 = vld [vmem:[#allocation2 + $0x74] ss:$0 sps:$4 sm:$0x11]   ;;  %v2631_v11 = vsel %vm1809_vm9, %v2629_v37, %v2630_v38 }
 0x18e   : > { %3580 = vmatprep.mubr.bf16.mxu1 %v2230_v30  ;;  %v2633_v10 = vrot.slane %v5170_v41, 1 }
 0x190   : > { %v2634_v30 = vsel %vm1809_vm9, %v2632_v22, %v2633_v10 }
 0x191   : > { %3678 = vmatmul.mubr.bf16.gmra.mrb[76].mxu0 %v5143_v44 }
 0x192   : > { %3685 = vmatprep.mubr.bf16.mxu0 %v2506_v3 }
 0x195   : > { %3581 = vmatmul.mubr.bf16.gmra.mrb[60].mxu1 %v2093_v61 }
 0x196   : > { %3588 = vmatprep.mubr.bf16.mxu1 %v2233_v2 }
 0x199   : > { %3686 = vmatmul.mubr.bf16.gmra.mrb[80].mxu0 %v5156_v14 }
 0x19d   : > { %3589 = vmatmul.mubr.bf16.gmra.mrb[64].mxu1 %v2105_v60 }
 0x19e   : > { %4902 = vmatprep.mubr.bf16.mxu1 %v2613_v13 }
 0x1a5   : > { %4903 = vmatmul.mubr.bf16.vlgmr.msra.gmra.mrb[68].mxu1 %v2616_v16 }
 0x1a6   : > { %4906 = vmatprep.mubr.bf16.mxu1 %v2619_v19 }
 0x1ad   : > { %4907 = vmatmul.mubr.bf16.gmra.mrb[72].mxu1 %v2622_v28 }
 0x1ae   : > { %4910 = vmatprep.mubr.bf16.mxu1 %v2625_v31 }
 0x1b5   : > { %4911 = vmatmul.mubr.bf16.gmra.mrb[76].mxu1 %v2628_v39 }
 0x1b6   : > { %4914 = vmatprep.mubr.bf16.mxu1 %v2631_v11 }
 0x1bd   : > { %4915 = vmatmul.mubr.bf16.gmra.mrb[80].mxu1 %v2634_v30 }
 0x1f0   : > { %v4622_v44 = vpop.f32.mrb[20].mxu0 }
 0x1f1   : > { %v4623_v45 = vpop.f32.mrb[21].mxu0 }
 0x1f2   : > { %v4624_v36 = vadd.f32 %v4623_v45, %v4622_v44  ;;  %v4625_v46 = vpop.f32.mrb[22].mxu0 }
 0x1f3   : > { %v4626_v47 = vpop.f32.mrb[23].mxu0 }
 0x1f4   : > { %v4627_v49 = vadd.f32 %v4626_v47, %v4625_v46 }
 0x1f8   : > { %v4558_v26 = vpop.f32.mrb[4].mxu1 }
 0x1f9   : > { %v4559_v51 = vpop.f32.mrb[5].mxu1 }
 0x1fa   : > { %v4560_v32 = vadd.f32 %v4559_v51, %v4558_v26  ;;  %v4561_v54 = vpop.f32.mrb[6].mxu1 }
 0x1fb   : > { %v4562_v55 = vpop.f32.mrb[7].mxu1  ;;  %v4628_v43 = vpop.f32.mrb[24].mxu0 }
 0x1fc   : > { %v3341_v52 = vadd.f32 %v4560_v32, %v5954_v50  ;;  %v4563_v57 = vadd.f32 %v4562_v55, %v4561_v54  ;;  %v4629_v59 = vpop.f32.mrb[25].mxu0 }
 0x1fd   : > { %v4630_v61 = vadd.f32 %v4629_v59, %v4628_v43  ;;  %v4631_v62 = vpop.f32.mrb[26].mxu0 }
 0x1fe   : > { %v3344_v14 = vadd.f32 %v4563_v57, %v5954_v50  ;;  %v5958_v0 = vadd.f32 %v4624_v36, %v3341_v52  ;;  %v4632_v1 = vpop.f32.mrb[27].mxu0 }
 0x1ff   : > { %v4633_v2 = vadd.f32 %v4632_v1, %v4631_v62 }
 0x200   : > { %v4564_v3 = vpop.f32.mrb[8].mxu1  ;;  %v5960_v4 = vadd.f32 %v4627_v49, %v3344_v14 }
 0x201   : > { %v4565_v5 = vpop.f32.mrb[9].mxu1 }
 0x202   : > { %v4566_v7 = vadd.f32 %v4565_v5, %v4564_v3  ;;  %v4567_v53 = vpop.f32.mrb[10].mxu1 }
 0x203   : > { %v4568_v6 = vpop.f32.mrb[11].mxu1 }
 0x204   : > { %v3349_v9 = vadd.f32 %v4566_v7, %v5954_v50  ;;  %v4569_v12 = vadd.f32 %v4568_v6, %v4567_v53  ;;  %v4634_v60 = vpop.f32.mrb[28].mxu0 }
 0x205   : > { %v4635_v13 = vpop.f32.mrb[29].mxu0 }
 0x206   : > { %v3352_v58 = vadd.f32 %v4569_v12, %v5954_v50  ;;  %v4636_v8 = vadd.f32 %v4635_v13, %v4634_v60  ;;  %v4637_v15 = vpop.f32.mrb[30].mxu0  ;;  %v5964_v63 = vadd.f32 %v4630_v61, %v3349_v9 }
 0x207   : > { %v4638_v40 = vpop.f32.mrb[31].mxu0 }
 0x208   : > { %v4639_v16 = vadd.f32 %v4638_v40, %v4637_v15  ;;  %v4570_v17 = vpop.f32.mrb[12].mxu1  ;;  %v5966_v18 = vadd.f32 %v4633_v2, %v3352_v58 }
 0x209   : > { %v4571_v19 = vpop.f32.mrb[13].mxu1 }
 0x20a   : > { %v4572_v20 = vadd.f32 %v4571_v19, %v4570_v17  ;;  %v4573_v42 = vpop.f32.mrb[14].mxu1 }
 0x20b   : > { %v4574_v23 = vpop.f32.mrb[15].mxu1 }
 0x20c   : > { %v3357_v24 = vadd.f32 %v4572_v20, %v5954_v50  ;;  %v4575_v25 = vadd.f32 %v4574_v23, %v4573_v42  ;;  %v4640_v27 = vpop.f32.mrb[32].mxu0 }
 0x20d   : > { %v4641_v28 = vpop.f32.mrb[33].mxu0 }
 0x20e   : > { %v3360_v29 = vadd.f32 %v4575_v25, %v5954_v50  ;;  %v4642_v56 = vadd.f32 %v4641_v28, %v4640_v27  ;;  %v4643_v31 = vpop.f32.mrb[34].mxu0  ;;  %v5970_v33 = vadd.f32 %v4636_v8, %v3357_v24 }
 0x20f   : > { %v4644_v34 = vpop.f32.mrb[35].mxu0 }
 0x210   : > { %v4645_v35 = vadd.f32 %v4644_v34, %v4643_v31  ;;  %v4576_v48 = vpop.f32.mrb[16].mxu1  ;;  %v5972_v37 = vadd.f32 %v4639_v16, %v3360_v29 }
 0x211   : > { %v4577_v38 = vpop.f32.mrb[17].mxu1 }
 0x212   : > { %v4578_v39 = vadd.f32 %v4577_v38, %v4576_v48  ;;  %v4579_v21 = vpop.f32.mrb[18].mxu1 }
 0x213   : > { %v4580_v41 = vpop.f32.mrb[19].mxu1 }
 0x214   : > { %v3365_v11 = vadd.f32 %v4578_v39, %v5954_v50  ;;  %v4581_v22 = vadd.f32 %v4580_v41, %v4579_v21  ;;  %v4646_v10 = vpop.f32.mrb[36].mxu0 }
 0x215   : > { %v4647_v30 = vpop.f32.mrb[37].mxu0 }
 0x216   : > { %v3368_v44 = vadd.f32 %v4581_v22, %v5954_v50  ;;  %v4648_v45 = vadd.f32 %v4647_v30, %v4646_v10  ;;  %v4649_v36 = vpop.f32.mrb[38].mxu0  ;;  %v5976_v46 = vadd.f32 %v4642_v56, %v3365_v11 }
 0x217   : > { %v4650_v47 = vpop.f32.mrb[39].mxu0 }
 0x218   : > { %v4651_v49 = vadd.f32 %v4650_v47, %v4649_v36  ;;  %v4582_v26 = vpop.f32.mrb[20].mxu1  ;;  %v5978_v51 = vadd.f32 %v4645_v35, %v3368_v44 }
 0x219   : > { %v4583_v32 = vpop.f32.mrb[21].mxu1 }
 0x21a   : > { %v4584_v54 = vadd.f32 %v4583_v32, %v4582_v26  ;;  %v4585_v55 = vpop.f32.mrb[22].mxu1 }
 0x21b   : > { %v4586_v52 = vpop.f32.mrb[23].mxu1 }
 0x21c   : > { %v3373_v57 = vadd.f32 %v4584_v54, %v5954_v50  ;;  %v4587_v43 = vadd.f32 %v4586_v52, %v4585_v55  ;;  %v4652_v59 = vpop.f32.mrb[40].mxu0 }
 0x21d   : > { %v4653_v14 = vpop.f32.mrb[41].mxu0 }
 0x21e   : > { %v3376_v61 = vadd.f32 %v4587_v43, %v5954_v50  ;;  %v4654_v62 = vadd.f32 %v4653_v14, %v4652_v59  ;;  %v4655_v1 = vpop.f32.mrb[42].mxu0  ;;  %v5982_v2 = vadd.f32 %v4648_v45, %v3373_v57 }
 0x21f   : > { %v4656_v3 = vpop.f32.mrb[43].mxu0 }
 0x220   : > { %v4657_v5 = vadd.f32 %v4656_v3, %v4655_v1  ;;  %v4588_v7 = vpop.f32.mrb[24].mxu1  ;;  %v5984_v53 = vadd.f32 %v4651_v49, %v3376_v61 }
 0x221   : > { %v4589_v6 = vpop.f32.mrb[25].mxu1 }
 0x222   : > { %v4590_v9 = vadd.f32 %v4589_v6, %v4588_v7  ;;  %v4591_v12 = vpop.f32.mrb[26].mxu1 }
 0x223   : > { %v4592_v60 = vpop.f32.mrb[27].mxu1 }
 0x224   : > { %v3381_v13 = vadd.f32 %v4590_v9, %v5954_v50  ;;  %v4593_v58 = vadd.f32 %v4592_v60, %v4591_v12  ;;  %v4658_v8 = vpop.f32.mrb[44].mxu0 }
 0x225   : > { %v4659_v15 = vpop.f32.mrb[45].mxu0 }
 0x226   : > { %v3384_v40 = vadd.f32 %v4593_v58, %v5954_v50  ;;  %v4660_v16 = vadd.f32 %v4659_v15, %v4658_v8  ;;  %v4661_v17 = vpop.f32.mrb[46].mxu0  ;;  %v5988_v19 = vadd.f32 %v4654_v62, %v3381_v13 }
 0x227   : > { %v4662_v20 = vpop.f32.mrb[47].mxu0 }
 0x228   : > { %v4663_v42 = vadd.f32 %v4662_v20, %v4661_v17  ;;  %v4594_v23 = vpop.f32.mrb[28].mxu1  ;;  %v5990_v24 = vadd.f32 %v4657_v5, %v3384_v40 }
 0x229   : > { %v4595_v25 = vpop.f32.mrb[29].mxu1 }
 0x22a   : > { %v4596_v27 = vadd.f32 %v4595_v25, %v4594_v23  ;;  %v4597_v28 = vpop.f32.mrb[30].mxu1 }
 0x22b   : > { %v4598_v29 = vpop.f32.mrb[31].mxu1 }
 0x22c   : > { %v3389_v56 = vadd.f32 %v4596_v27, %v5954_v50  ;;  %v4599_v31 = vadd.f32 %v4598_v29, %v4597_v28  ;;  %v4664_v34 = vpop.f32.mrb[48].mxu0 }
 0x22d   : > { %v4665_v35 = vpop.f32.mrb[49].mxu0 }
 0x22e   : > { %v3392_v48 = vadd.f32 %v4599_v31, %v5954_v50  ;;  %v4666_v38 = vadd.f32 %v4665_v35, %v4664_v34  ;;  %v4667_v39 = vpop.f32.mrb[50].mxu0  ;;  %v5994_v21 = vadd.f32 %v4660_v16, %v3389_v56 }
 0x22f   : > { %v4668_v41 = vpop.f32.mrb[51].mxu0 }
 0x230   : > { %v4669_v11 = vadd.f32 %v4668_v41, %v4667_v39  ;;  %v4600_v22 = vpop.f32.mrb[32].mxu1  ;;  %v5996_v10 = vadd.f32 %v4663_v42, %v3392_v48 }
 0x231   : > { %v4601_v30 = vpop.f32.mrb[33].mxu1 }
 0x232   : > { %v4602_v44 = vadd.f32 %v4601_v30, %v4600_v22  ;;  %v4603_v45 = vpop.f32.mrb[34].mxu1 }
 0x233   : > { %v4604_v36 = vpop.f32.mrb[35].mxu1 }
 0x234   : > { %v3397_v47 = vadd.f32 %v4602_v44, %v5954_v50  ;;  %v4605_v49 = vadd.f32 %v4604_v36, %v4603_v45  ;;  %v4750_v26 = vpop.f32.mrb[52].mxu0 }
 0x235   : > { %v4751_v32 = vpop.f32.mrb[53].mxu0 }
 0x236   : > { %v3400_v54 = vadd.f32 %v4605_v49, %v5954_v50  ;;  %v4752_v55 = vadd.f32 %v4751_v32, %v4750_v26  ;;  %v4753_v52 = vpop.f32.mrb[54].mxu0  ;;  %v6000_v57 = vadd.f32 %v4666_v38, %v3397_v47 }
 0x237   : > { %v4754_v43 = vpop.f32.mrb[55].mxu0 }
 0x238   : > { %v4755_v59 = vadd.f32 %v4754_v43, %v4753_v52  ;;  %v4686_v14 = vpop.f32.mrb[36].mxu1  ;;  %v6002_v61 = vadd.f32 %v4669_v11, %v3400_v54 }
 0x239   : > { %v4687_v62 = vpop.f32.mrb[37].mxu1 }
 0x23a   : > { %v4688_v1 = vadd.f32 %v4687_v62, %v4686_v14  ;;  %v4689_v3 = vpop.f32.mrb[38].mxu1 }
 0x23b   : > { %v4690_v5 = vpop.f32.mrb[39].mxu1 }
 0x23c   : > { %v3535_v7 = vadd.f32 %v4688_v1, %v5958_v0  ;;  %v4691_v6 = vadd.f32 %v4690_v5, %v4689_v3  ;;  %v4756_v9 = vpop.f32.mrb[56].mxu0 }
 0x23d   : > { %v4757_v12 = vpop.f32.mrb[57].mxu0 }
 0x23e   : > { %v3538_v50 = vadd.f32 %v4691_v6, %v5960_v4  ;;  %v4758_v60 = vadd.f32 %v4757_v12, %v4756_v9  ;;  %v4759_v13 = vpop.f32.mrb[58].mxu0  ;;  %v6006_v58 = vadd.f32 %v4752_v55, %v3535_v7 }
 0x23f   : > { %v4760_v8 = vpop.f32.mrb[59].mxu0 }
 0x240   : > { %v4761_v15 = vadd.f32 %v4760_v8, %v4759_v13  ;;  %v4692_v40 = vpop.f32.mrb[40].mxu1  ;;  %v6008_v16 = vadd.f32 %v4755_v59, %v3538_v50 }
 0x241   : > { %v4693_v17 = vpop.f32.mrb[41].mxu1 }
 0x242   : > { %v4694_v20 = vadd.f32 %v4693_v17, %v4692_v40  ;;  %v4695_v42 = vpop.f32.mrb[42].mxu1 }
 0x243   : > { %v4696_v23 = vpop.f32.mrb[43].mxu1 }
 0x244   : > { %v3543_v0 = vadd.f32 %v4694_v20, %v5964_v63  ;;  %v4697_v25 = vadd.f32 %v4696_v23, %v4695_v42  ;;  %v4762_v27 = vpop.f32.mrb[60].mxu0 }
 0x245   : > { %v4763_v28 = vpop.f32.mrb[61].mxu0 }
 0x246   : > { %v3546_v4 = vadd.f32 %v4697_v25, %v5966_v18  ;;  %v4764_v29 = vadd.f32 %v4763_v28, %v4762_v27  ;;  %v4765_v56 = vpop.f32.mrb[62].mxu0  ;;  %v6012_v31 = vadd.f32 %v4758_v60, %v3543_v0 }
 0x247   : > { %v4766_v34 = vpop.f32.mrb[63].mxu0 }
 0x248   : > { %v4767_v35 = vadd.f32 %v4766_v34, %v4765_v56  ;;  %v4698_v48 = vpop.f32.mrb[44].mxu1  ;;  %v6014_v38 = vadd.f32 %v4761_v15, %v3546_v4 }
 0x249   : > { %v4699_v39 = vpop.f32.mrb[45].mxu1 }
 0x24a   : > { %v4700_v41 = vadd.f32 %v4699_v39, %v4698_v48  ;;  %v4701_v11 = vpop.f32.mrb[46].mxu1 }
 0x24b   : > { %v4702_v22 = vpop.f32.mrb[47].mxu1 }
 0x24c   : > { %v3551_v63 = vadd.f32 %v4700_v41, %v5970_v33  ;;  %v4703_v30 = vadd.f32 %v4702_v22, %v4701_v11  ;;  %v4768_v44 = vpop.f32.mrb[64].mxu0 }
 0x24d   : > { %v4769_v45 = vpop.f32.mrb[65].mxu0 }
 0x24e   : > { %v3554_v18 = vadd.f32 %v4703_v30, %v5972_v37  ;;  %v4770_v36 = vadd.f32 %v4769_v45, %v4768_v44  ;;  %v4771_v47 = vpop.f32.mrb[66].mxu0  ;;  %v6018_v49 = vadd.f32 %v4764_v29, %v3551_v63 }
 0x24f   : > { %v4772_v26 = vpop.f32.mrb[67].mxu0 }
 0x250   : > { %v4773_v32 = vadd.f32 %v4772_v26, %v4771_v47  ;;  %v4704_v54 = vpop.f32.mrb[48].mxu1  ;;  %v6020_v55 = vadd.f32 %v4767_v35, %v3554_v18 }
 0x251   : > { %v4705_v52 = vpop.f32.mrb[49].mxu1 }
 0x252   : > { %v4706_v43 = vadd.f32 %v4705_v52, %v4704_v54  ;;  %v4707_v59 = vpop.f32.mrb[50].mxu1 }
 0x253   : > { %v4708_v14 = vpop.f32.mrb[51].mxu1 }
 0x254   : > { %v3559_v33 = vadd.f32 %v4706_v43, %v5976_v46  ;;  %v4709_v62 = vadd.f32 %v4708_v14, %v4707_v59  ;;  %v4774_v1 = vpop.f32.mrb[68].mxu0 }
 0x255   : > { %v4775_v3 = vpop.f32.mrb[69].mxu0 }
 0x256   : > { %v3562_v37 = vadd.f32 %v4709_v62, %v5978_v51  ;;  %v4776_v5 = vadd.f32 %v4775_v3, %v4774_v1  ;;  %v4777_v7 = vpop.f32.mrb[70].mxu0  ;;  %v6024_v6 = vadd.f32 %v4770_v36, %v3559_v33 }
 0x257   : > { %v4778_v9 = vpop.f32.mrb[71].mxu0 }
 0x258   : > { %v4779_v12 = vadd.f32 %v4778_v9, %v4777_v7  ;;  %v4710_v50 = vpop.f32.mrb[52].mxu1  ;;  %v6026_v60 = vadd.f32 %v4773_v32, %v3562_v37 }
 0x259   : > { %v4711_v13 = vpop.f32.mrb[53].mxu1 }
 0x25a   : > { %v4712_v8 = vadd.f32 %v4711_v13, %v4710_v50  ;;  %v4713_v15 = vpop.f32.mrb[54].mxu1 }
 0x25b   : > { %v4714_v40 = vpop.f32.mrb[55].mxu1 }
 0x25c   : > { %v3567_v46 = vadd.f32 %v4712_v8, %v5982_v2  ;;  %v4715_v17 = vadd.f32 %v4714_v40, %v4713_v15  ;;  %v4780_v20 = vpop.f32.mrb[72].mxu0 }
 0x25d   : > { %v4781_v42 = vpop.f32.mrb[73].mxu0 }
 0x25e   : > { %v3570_v51 = vadd.f32 %v4715_v17, %v5984_v53  ;;  %v4782_v23 = vadd.f32 %v4781_v42, %v4780_v20  ;;  %v4783_v0 = vpop.f32.mrb[74].mxu0  ;;  %v6030_v25 = vadd.f32 %v4776_v5, %v3567_v46 }
 0x25f   : > { %v4784_v27 = vpop.f32.mrb[75].mxu0 }
 0x260   : > { %v4785_v28 = vadd.f32 %v4784_v27, %v4783_v0  ;;  %v4716_v4 = vpop.f32.mrb[56].mxu1  ;;  %v6032_v29 = vadd.f32 %v4779_v12, %v3570_v51 }
 0x261   : > { %v4717_v56 = vpop.f32.mrb[57].mxu1 }
 0x262   : > { %v4718_v34 = vadd.f32 %v4717_v56, %v4716_v4  ;;  %v4719_v35 = vpop.f32.mrb[58].mxu1 }
 0x263   : > { %v4720_v48 = vpop.f32.mrb[59].mxu1 }
 0x264   : > { %v3575_v2 = vadd.f32 %v4718_v34, %v5988_v19  ;;  %v4721_v39 = vadd.f32 %v4720_v48, %v4719_v35  ;;  %v4786_v41 = vpop.f32.mrb[76].mxu0 }
 0x265   : > { %v4787_v11 = vpop.f32.mrb[77].mxu0 }
 0x266   : > { %v3578_v53 = vadd.f32 %v4721_v39, %v5990_v24  ;;  %v4788_v22 = vadd.f32 %v4787_v11, %v4786_v41  ;;  %v4789_v63 = vpop.f32.mrb[78].mxu0  ;;  %v3672_v30 = vadd.f32 %v4782_v23, %v3575_v2 }
 0x267   : > { %v4790_v44 = vpop.f32.mrb[79].mxu0 }
 0x268   : > { %v4791_v45 = vadd.f32 %v4790_v44, %v4789_v63  ;;  %v4722_v18 = vpop.f32.mrb[60].mxu1  ;;  %v3675_v36 = vadd.f32 %v4785_v28, %v3578_v53 }
 0x269   : > { %v4723_v47 = vpop.f32.mrb[61].mxu1 }
 0x26a   : > { %v4724_v26 = vadd.f32 %v4723_v47, %v4722_v18  ;;  %v4725_v32 = vpop.f32.mrb[62].mxu1 }
 0x26b   : > { %v4726_v54 = vpop.f32.mrb[63].mxu1 }
 0x26c   : > { %v3583_v52 = vadd.f32 %v4724_v26, %v5994_v21  ;;  %v4727_v43 = vadd.f32 %v4726_v54, %v4725_v32  ;;  %v4792_v19 = vpop.f32.mrb[80].mxu0 }
 0x26d   : > { %v4793_v59 = vpop.f32.mrb[81].mxu0 }
 0x26e   : > { %v3586_v14 = vadd.f32 %v4727_v43, %v5996_v10  ;;  %v4794_v33 = vadd.f32 %v4793_v59, %v4792_v19  ;;  %v4795_v24 = vpop.f32.mrb[82].mxu0  ;;  %v3680_v62 = vadd.f32 %v4788_v22, %v3583_v52 }
 0x26f   : > { %v4796_v1 = vpop.f32.mrb[83].mxu0 }
 0x270   : > { %v4728_v3 = vpop.f32.mrb[64].mxu1  ;;  %v4797_v37 = vadd.f32 %v4796_v1, %v4795_v24  ;;  %v3683_v5 = vadd.f32 %v4791_v45, %v3586_v14 }
 0x271   : > { %v4729_v7 = vpop.f32.mrb[65].mxu1 }
 0x272   : > { %v4730_v9 = vadd.f32 %v4729_v7, %v4728_v3  ;;  %v4731_v12 = vpop.f32.mrb[66].mxu1 }
 0x273   : > { %v4732_v50 = vpop.f32.mrb[67].mxu1 }
 0x274   : > { %v3591_v13 = vadd.f32 %v4730_v9, %v6000_v57  ;;  %v4733_v21 = vadd.f32 %v4732_v50, %v4731_v12 }
 0x276   : > { %v3594_v8 = vadd.f32 %v4733_v21, %v6002_v61  ;;  %v3688_v15 = vadd.f32 %v4794_v33, %v3591_v13 }
 0x278   : > { %v4904_v40 = vpop.f32.mrb[68].mxu1  ;;  %v3691_v10 = vadd.f32 %v4797_v37, %v3594_v8 }
 0x279   : > { %v3737_v46 = vadd.f32 %v4904_v40, %v6012_v31  ;;  %v3728_v17 = vpop.f32.mrb[69].mxu1 }
 0x27a   : > { %v3729_v20 = vadd.f32 %v3728_v17, %v6006_v58  ;;  %v4905_v42 = vpop.f32.mrb[70].mxu1 }
 0x27b   : > { %v3740_v51 = vadd.f32 %v4905_v42, %v6014_v38  ;;  %v3731_v23 = vpop.f32.mrb[71].mxu1 }
 0x27c   : > { %v3732_v57 = vadd.f32 %v3731_v23, %v6008_v16 }
 0x27d   : > { %v4466_v61 = vpack.c.bf16 %v3740_v51, %v3737_v46 }
 0x27e   : > { %v4461_v31 = vpack.c.bf16 %v3732_v57, %v3729_v20 }
 0x27f   : > { %4501 = vst [vmem:[%s6048_s11 + $0x8] sm:$0xff] %v4466_v61  }
 0x280   : > { %4462 = vst [vmem:[%s6048_s11] sm:$0xff] %v4461_v31   ;;  %v4908_v58 = vpop.f32.mrb[72].mxu1 }
 0x281   : > { %v3753_v38 = vadd.f32 %v4908_v58, %v6024_v6  ;;  %v3744_v0 = vpop.f32.mrb[73].mxu1 }
 0x282   : > { %v3745_v27 = vadd.f32 %v3744_v0, %v6018_v49  ;;  %v4909_v28 = vpop.f32.mrb[74].mxu1 }
 0x283   : > { %v3756_v4 = vadd.f32 %v4909_v28, %v6026_v60  ;;  %v3747_v56 = vpop.f32.mrb[75].mxu1 }
 0x284   : > { %v3748_v34 = vadd.f32 %v3747_v56, %v6020_v55 }
 0x285   : > { %v4476_v16 = vpack.c.bf16 %v3756_v4, %v3753_v38 }
 0x286   : > { %v4471_v35 = vpack.c.bf16 %v3748_v34, %v3745_v27 }
 0x287   : > { %4503 = vst [vmem:[%s6048_s11 + $0x18] sm:$0xff] %v4476_v16  }
 0x288   : > { %4502 = vst [vmem:[%s6048_s11 + $0x10] sm:$0xff] %v4471_v35   ;;  %v4912_v48 = vpop.f32.mrb[76].mxu1 }
 0x289   : > { %v3769_v2 = vadd.f32 %v4912_v48, %v3672_v30  ;;  %v3760_v39 = vpop.f32.mrb[77].mxu1 }
 0x28a   : > { %v3761_v6 = vadd.f32 %v3760_v39, %v6030_v25  ;;  %v4913_v41 = vpop.f32.mrb[78].mxu1 }
 0x28b   : > { %v3772_v11 = vadd.f32 %v4913_v41, %v3675_v36  ;;  %v3763_v49 = vpop.f32.mrb[79].mxu1 }
 0x28c   : > { %v3764_v60 = vadd.f32 %v3763_v49, %v6032_v29 }
 0x28d   : > { %v4486_v53 = vpack.c.bf16 %v3772_v11, %v3769_v2 }
 0x28e   : > { %v4481_v22 = vpack.c.bf16 %v3764_v60, %v3761_v6 }
 0x28f   : > { %4505 = vst [vmem:[%s6048_s11 + $0x28] sm:$0xff] %v4486_v53  }
 0x290   : > { %4504 = vst [vmem:[%s6048_s11 + $0x20] sm:$0xff] %v4481_v22   ;;  %v4916_v55 = vpop.f32.mrb[80].mxu1 }
 0x291   : > { %v3785_v63 = vadd.f32 %v4916_v55, %v3688_v15  ;;  %v3776_v44 = vpop.f32.mrb[81].mxu1 }
 0x292   : > { %v3777_v45 = vadd.f32 %v3776_v44, %v3680_v62  ;;  %v4917_v18 = vpop.f32.mrb[82].mxu1 }
 0x293   : > { %v3788_v30 = vadd.f32 %v4917_v18, %v3691_v10  ;;  %v3779_v47 = vpop.f32.mrb[83].mxu1 }
 0x294   : > { %v3780_v26 = vadd.f32 %v3779_v47, %v3683_v5 }
 0x295   : > { %v4496_v25 = vpack.c.bf16 %v3788_v30, %v3785_v63 }
 0x296   : > { %v4491_v32 = vpack.c.bf16 %v3780_v26, %v3777_v45 }
 0x297   : > { %4507 = vst [vmem:[%s6048_s11 + $0x38] sm:$0xff] %v4496_v25  }
 0x298   : > { %4506 = vst [vmem:[%s6048_s11 + $0x30] sm:$0xff] %v4491_v32  }
 0x299 PF: > { %s20_s17 = sadd.s32 1, %s5210_s17   ;;  %s6109_s20 = sld [smem:[#allocation4_spill]] }
 0x29a   : > { %p17_p2 = scmp.ge.s32.totalorder %s20_s17, 6   ;;  %s6110_s1 = sld [smem:[#allocation5_spill]] }
 0x29b   : > { %s6111_s13 = smov %s5202_s15  ;;  %s6112_s14 = smov %s5206_s16 }
 0x29c   :  { %19 = sbr.rel (!%p17_p2) target bundleno = 4 (0x4), region = 108 }
 0x29f   : > { %s6113_s15 = smov %s6109_s20 }
 0x2a0   : > { %s6114_s16 = smov %s6110_s1 }

</bundles_post_ra>
